<compile_context>
chip_gen: v7x
topology: tpu7x:2x2x1
jax: 0.10.0
libtpu: 0.0.40
codegen_flags: <defaults>
</compile_context>

<pallas_src>
import jax
import jax.numpy as jnp
from jax import lax
from jax.experimental import pallas as pl
from jax.experimental.pallas import tpu as pltpu

BN_EPS = 1e-5


def _round_up(x, m):
    return ((x + m - 1) // m) * m


def _row_tile(m, cap=512):
    """Largest sublane-aligned row tile <= cap (full array if it is smaller).

    Chosen so double-buffered (tile x C) f32 blocks stay well under the
    32 MiB scoped-VMEM default on all generations (incl. v7x's 64 MiB VMEM).
    """
    return min(cap, _round_up(m, 8))


# ---------------------------------------------------------------------------
# Pallas kernels
# ---------------------------------------------------------------------------
def _conv1x1_relu_kernel(x_ref, w_ref, b_ref, o_ref):
    y = jnp.dot(x_ref[...], w_ref[...], preferred_element_type=jnp.float32)
    o_ref[...] = jnp.maximum(y + b_ref[...], 0.0)


def conv1x1_bn_relu(x_nhwc, w, b):
    """1x1 conv (BN pre-folded into w, b) + ReLU as a Pallas matmul kernel."""
    B, H, W, Cin = x_nhwc.shape
    Cout = w.shape[1]
    M = B * H * W
    tm = _row_tile(M)
    Mp = _round_up(M, tm)
    x2 = x_nhwc.reshape(M, Cin)
    if Mp != M:
        x2 = jnp.pad(x2, ((0, Mp - M), (0, 0)))
    out = pl.pallas_call(
        _conv1x1_relu_kernel,
        out_shape=jax.ShapeDtypeStruct((Mp, Cout), jnp.float32),
        grid=(Mp // tm,),
        in_specs=[
            pl.BlockSpec((tm, Cin), lambda i: (i, 0)),
            pl.BlockSpec((Cin, Cout), lambda i: (0, 0)),
            pl.BlockSpec((1, Cout), lambda i: (0, 0)),
        ],
        out_specs=pl.BlockSpec((tm, Cout), lambda i: (i, 0)),
        compiler_params=pltpu.CompilerParams(dimension_semantics=("parallel",)),
    )(x2, w, b.reshape(1, Cout))
    return out[:M].reshape(B, H, W, Cout)


def _seg_conv1x1_relu_kernel(seg_ref, x_ref, w_ref, b_ref, o_ref):
    del seg_ref  # only used by the index maps
    y = jnp.dot(x_ref[...], w_ref[0], preferred_element_type=jnp.float32)
    o_ref[...] = jnp.maximum(y + b_ref[0], 0.0)


def multi_conv1x1_bn_relu(xs_nhwc, w_stack, b_stack):
    """Several 1x1-conv+BN+ReLU branches sharing Cin/Cout in ONE pallas_call.

    Pixels of all branches are concatenated (each branch padded to a tile
    multiple); a scalar-prefetched segment-id table selects the per-tile
    weight / bias block, so p0..p4 cost one launch instead of five.
    """
    nseg = len(xs_nhwc)
    Cin = xs_nhwc[0].shape[-1]
    Cout = w_stack.shape[-1]
    shapes = [x.shape for x in xs_nhwc]
    Ms = [s[0] * s[1] * s[2] for s in shapes]
    tm = _row_tile(max(Ms))
    Mps = [_round_up(m, tm) for m in Ms]
    xcat = jnp.concatenate(
        [jnp.pad(x.reshape(m, Cin), ((0, mp - m), (0, 0)))
         for x, m, mp in zip(xs_nhwc, Ms, Mps)], axis=0)
    tiles = [mp // tm for mp in Mps]
    seg_ids = jnp.concatenate(
        [jnp.full((t,), s, jnp.int32) for s, t in enumerate(tiles)])
    n_tiles = int(sum(tiles))
    out = pl.pallas_call(
        _seg_conv1x1_relu_kernel,
        out_shape=jax.ShapeDtypeStruct((int(sum(Mps)), Cout), jnp.float32),
        grid_spec=pltpu.PrefetchScalarGridSpec(
            num_scalar_prefetch=1,
            grid=(n_tiles,),
            in_specs=[
                pl.BlockSpec((tm, Cin), lambda i, seg: (i, 0)),
                pl.BlockSpec((1, Cin, Cout), lambda i, seg: (seg[i], 0, 0)),
                pl.BlockSpec((1, 1, Cout), lambda i, seg: (seg[i], 0, 0)),
            ],
            out_specs=pl.BlockSpec((tm, Cout), lambda i, seg: (i, 0)),
        ),
        compiler_params=pltpu.CompilerParams(dimension_semantics=("parallel",)),
    )(seg_ids, xcat, w_stack, b_stack.reshape(nseg, 1, Cout))
    outs, off = [], 0
    for (bb, h, w, _), m, mp in zip(shapes, Ms, Mps):
        outs.append(out[off:off + m].reshape(bb, h, w, Cout))
        off += mp
    return outs


def _make_fuse_kernel(nf):
    def kernel(*refs):
        f_refs = refs[:nf]
        (wgbd_ref, bg_ref, w1_ref, b1_ref, w2_ref, b2_ref,
         o_ref, pool_ref) = refs[nf:]
        fs = [r[0] for r in f_refs]                      # nf x (tm, C)
        # Grouped 1x1-conv gate as MXU matmuls: wgbd[g] is (C, nf) with only
        # column g nonzero, so summing the nf products rebuilds the (tm, nf)
        # gate without XLU cross-lane reductions / width-1 lane concats.
        a = bg_ref[...]
        for g in range(nf):
            a = a + jnp.dot(fs[g], wgbd_ref[g],
                            preferred_element_type=jnp.float32)
        a = jnp.maximum(a, 0.0)
        z = jnp.maximum(
            jnp.dot(a, w1_ref[...], preferred_element_type=jnp.float32)
            + b1_ref[...], 0.0)
        attn = jax.nn.sigmoid(
            jnp.dot(z, w2_ref[...], preferred_element_type=jnp.float32)
            + b2_ref[...])
        # Weighted sum over groups (elementwise in pixels -> VPU work).
        acc = attn[:, 0:1] * fs[0]
        for g in range(1, nf):
            acc = acc + attn[:, g:g + 1] * fs[g]
        o_ref[0] = acc

        # Per-batch channel-sum accumulator (ca's global avg-pool numerator);
        # emitted here so the fused tensor is not re-read from HBM.
        @pl.when(pl.program_id(1) == 0)
        def _():
            pool_ref[...] = jnp.zeros_like(pool_ref)
        pool_ref[...] = pool_ref[...] + jnp.sum(acc, axis=0,
                                                keepdims=True)[None]
    return kernel


def fused_spatial_attn_sum(flats, wgbd, bg, w1, b1, w2, b2, *, tm):
    """c128to1 gate + repeat + multiply + group-sum, fused; also accumulates
    the per-batch channel sum of the result.  flats: nf x (B, HWp, C)."""
    nf = len(flats)
    B, HWp, C = flats[0].shape
    nt = HWp // tm
    in_specs = [pl.BlockSpec((1, tm, C), lambda b, t: (b, t, 0))
                for _ in range(nf)]
    in_specs += [
        pl.BlockSpec((nf, C, nf), lambda b, t: (0, 0, 0)),
        pl.BlockSpec((1, nf), lambda b, t: (0, 0)),
        pl.BlockSpec((nf, nf), lambda b, t: (0, 0)),
        pl.BlockSpec((1, nf), lambda b, t: (0, 0)),
        pl.BlockSpec((nf, nf), lambda b, t: (0, 0)),
        pl.BlockSpec((1, nf), lambda b, t: (0, 0)),
    ]
    fused, pooled_sum = pl.pallas_call(
        _make_fuse_kernel(nf),
        out_shape=(jax.ShapeDtypeStruct((B, HWp, C), jnp.float32),
                   jax.ShapeDtypeStruct((B, 1, C), jnp.float32)),
        grid=(B, nt),
        in_specs=in_specs,
        out_specs=(pl.BlockSpec((1, tm, C), lambda b, t: (b, t, 0)),
                   pl.BlockSpec((1, 1, C), lambda b, t: (b, 0, 0))),
        compiler_params=pltpu.CompilerParams(
            dimension_semantics=("parallel", "arbitrary")),
    )(*flats, wgbd, bg.reshape(1, nf), w1, b1.reshape(1, nf),
      w2, b2.reshape(1, nf))
    return fused, pooled_sum


def _ca_apply_kernel(x_ref, pm_ref, w1_ref, b1_ref, w2_ref, b2_ref,
                     y_ref, xm_ref):
    pooled = pm_ref[0]                                       # (1, C)
    h = jnp.maximum(
        jnp.dot(pooled, w1_ref[...], preferred_element_type=jnp.float32)
        + b1_ref[...], 0.0)
    s = jax.nn.sigmoid(
        jnp.dot(h, w2_ref[...], preferred_element_type=jnp.float32)
        + b2_ref[...])
    y = x_ref[0] * s                                         # (tm, C)
    y_ref[0] = y
    # Channel-mean needed by sa -- emit it here instead of re-reading y later.
    xm_ref[0] = jnp.mean(y, axis=-1, keepdims=True)


def channel_attention_apply(fused, pooled_mean, w1, b1, w2, b2, *, tm):
    """ca gate (from precomputed pooled mean) applied over pixel tiles; also
    emits the channel-mean map consumed by sa.  Tiling keeps VMEM bounded."""
    B, HWp, C = fused.shape
    Cr = w1.shape[1]
    nt = HWp // tm
    return pl.pallas_call(
        _ca_apply_kernel,
        out_shape=(jax.ShapeDtypeStruct((B, HWp, C), jnp.float32),
                   jax.ShapeDtypeStruct((B, HWp, 1), jnp.float32)),
        grid=(B, nt),
        in_specs=[
            pl.BlockSpec((1, tm, C), lambda b, t: (b, t, 0)),
            pl.BlockSpec((1, 1, C), lambda b, t: (b, 0, 0)),
            pl.BlockSpec((C, Cr), lambda b, t: (0, 0)),
            pl.BlockSpec((1, Cr), lambda b, t: (0, 0)),
            pl.BlockSpec((Cr, C), lambda b, t: (0, 0)),
            pl.BlockSpec((1, C), lambda b, t: (0, 0)),
        ],
        out_specs=(pl.BlockSpec((1, tm, C), lambda b, t: (b, t, 0)),
                   pl.BlockSpec((1, tm, 1), lambda b, t: (b, t, 0))),
        compiler_params=pltpu.CompilerParams(
            dimension_semantics=("parallel", "parallel")),
    )(fused, pooled_mean, w1, b1.reshape(1, Cr), w2, b2.reshape(1, C))


def _sa_attn_kernel(q_ref, k_ref, vo_ref, o_ref):
    q = q_ref[0]                      # (1, tq)   query pixels on lanes
    k = k_ref[0]                      # (Np, 1)
    vo = vo_ref[0]                    # (2, Np)   row 0 = v, row 1 = ones
    sim = k * q                       # (Np, tq)  rank-1 outer product
    m = jnp.max(sim, axis=0, keepdims=True)
    e = jnp.exp(sim - m)
    nd = jnp.dot(vo, e, preferred_element_type=jnp.float32)   # (2, tq)
    # numerator * 1/denominator; reciprocal rides the EUP slot.
    o_ref[0] = nd[0:1, :] * pl.reciprocal(nd[1:2, :], approx=True)


def sa_attention(q_flat, k_flat, v_flat):
    """Spatial-attention core (softmax(q k^T) @ v) in transposed layout.

    Pixels live on lanes, so the num/denom reductions are one MXU matmul and
    the output store is lane-dense; tq adapts to Np so the (Np, tq)
    intermediates stay a few MiB at production resolutions.
    """
    B, HW = q_flat.shape
    Np = k_flat.shape[-1]
    cap = 512
    while cap > 128 and 2 * Np * cap * 4 > 8 * 1024 * 1024:
        cap //= 2
    tq = _row_tile(HW, cap=cap)
    HWp = _round_up(HW, tq)
    if HWp != HW:
        q_flat = jnp.pad(q_flat, ((0, 0), (0, HWp - HW)))
    q3 = q_flat.reshape(B, 1, HWp)
    k3 = k_flat.reshape(B, Np, 1)
    vo = jnp.stack([v_flat, jnp.ones_like(v_flat)], axis=1)   # (B, 2, Np)
    out = pl.pallas_call(
        _sa_attn_kernel,
        out_shape=jax.ShapeDtypeStruct((B, 1, HWp), jnp.float32),
        grid=(B, HWp // tq),
        in_specs=[
            pl.BlockSpec((1, 1, tq), lambda b, t: (b, 0, t)),
            pl.BlockSpec((1, Np, 1), lambda b, t: (b, 0, 0)),
            pl.BlockSpec((1, 2, Np), lambda b, t: (b, 0, 0)),
        ],
        out_specs=pl.BlockSpec((1, 1, tq), lambda b, t: (b, 0, t)),
        compiler_params=pltpu.CompilerParams(
            dimension_semantics=("parallel", "parallel")),
    )(q3, k3, vo)
    return out.reshape(B, HWp)[:, :HW]


# ---------------------------------------------------------------------------
# JAX glue
# ---------------------------------------------------------------------------
def fold_bn_conv(w, gamma, beta, mean, var, eps=BN_EPS):
    """Fold eval-mode BN into a (Cin, Cout) 1x1 conv weight."""
    scale = gamma / jnp.sqrt(var + eps)
    return w * scale[None, :], beta - mean * scale


def avg_pool_nhwc(x, k, s, p):
    # PyTorch AvgPool2d default: count_include_pad=True -> divide by k*k.
    summed = lax.reduce_window(
        x, 0.0, lax.add,
        window_dimensions=(1, k, k, 1),
        window_strides=(1, s, s, 1),
        padding=((0, 0), (p, p), (p, p), (0, 0)))
    return summed / float(k * k)


def conv2d_nhwc(x, w_hwio, b, pad):
    y = lax.conv_general_dilated(
        x, w_hwio, window_strides=(1, 1),
        padding=((pad, pad), (pad, pad)),
        dimension_numbers=('NHWC', 'HWIO', 'NHWC'))
    return y + b


def bilinear_resize(x, hs, ws):
    B, _, _, C = x.shape
    return jax.image.resize(x, (B, hs, ws, C), method='bilinear')


# ---------------------------------------------------------------------------
# FSA forward
# ---------------------------------------------------------------------------
def fsa_forward(params, feat8, feat16, feat32, featSp):
    del feat8  # unused by the PyTorch forward as well
    to_nhwc = lambda t: jnp.transpose(t, (0, 2, 3, 1))
    f16, f32, fsp = to_nhwc(feat16), to_nhwc(feat32), to_nhwc(featSp)
    B, Hs, Ws, _ = fsp.shape

    # pyramid pooled inputs (plain-JAX pooling), then ONE pallas_call for the
    # five ch_32 -> out_ch 1x1 conv+BN+ReLU branches.
    pooled = [
        f32,
        avg_pool_nhwc(f32, 17, 8, 8),
        avg_pool_nhwc(f32, 9, 4, 4),
        avg_pool_nhwc(f32, 5, 2, 2),
        jnp.mean(f32, axis=(1, 2), keepdims=True),
    ]
    p0, p1, p2, p3, p4 = multi_conv1x1_bn_relu(pooled, params['p_w'],
                                               params['p_b'])
    s16 = conv1x1_bn_relu(f16, *params['s16'])
    sp = conv1x1_bn_relu(fsp, *params['sp'])

    feats = [bilinear_resize(p0, Hs, Ws), bilinear_resize(p1, Hs, Ws),
             bilinear_resize(p2, Hs, Ws), bilinear_resize(p3, Hs, Ws),
             bilinear_resize(p4, Hs, Ws), bilinear_resize(s16, Hs, Ws), sp]
    C = sp.shape[-1]
    HW = Hs * Ws
    tm = _row_tile(HW)
    HWp = _round_up(HW, tm)
    flats = [f.reshape(B, HW, C) for f in feats]           # free reshapes
    if HWp != HW:
        flats = [jnp.pad(f, ((0, 0), (0, HWp - HW), (0, 0))) for f in flats]

    # c128to1 gate + repeat + multiply + group-sum, fused in one kernel; it
    # also emits the per-batch channel sum (ca's global avg-pool numerator).
    fused, pooled_sum = fused_spatial_attn_sum(flats, *params['c128to1'],
                                               tm=tm)
    pooled_mean = pooled_sum / float(HW)

    # channel attention (ca), tiled; also emits channel-mean map for sa.
    y3, xm3 = channel_attention_apply(fused, pooled_mean, *params['ca'],
                                      tm=tm)
    x = y3[:, :HW].reshape(B, Hs, Ws, C)
    xm = xm3[:, :HW].reshape(B, Hs, Ws, 1)

    # spatial attention (sa)
    wq, bq = params['sa_q']
    wk, bk = params['sa_k']
    wv, bv = params['sa_v']
    # TODO(synk): 7x7 single-channel convs / bilinear resize / avg-pools stay
    # as XLA glue (tiny single-channel spatial ops).
    q = jnp.maximum(conv2d_nhwc(xm, wq, bq, pad=3), 0.0)
    kmap = avg_pool_nhwc(jnp.maximum(conv2d_nhwc(xm, wk, bk, pad=3), 0.0),
                         3, 2, 1)
    vmap_ = avg_pool_nhwc(jnp.maximum(conv2d_nhwc(xm, wv, bv, pad=3), 0.0),
                          3, 2, 1)
    Np = kmap.shape[1] * kmap.shape[2]
    attn = sa_attention(q.reshape(B, HW), kmap.reshape(B, Np),
                        vmap_.reshape(B, Np))
    attn = attn.reshape(B, Hs, Ws, 1)
    ww, bw = params['sa_w']
    gate = jax.nn.sigmoid(conv2d_nhwc(attn, ww, bw, pad=3))
    out = gate * x
    return jnp.transpose(out, (0, 3, 1, 2))                 # NCHW out


# ---------------------------------------------------------------------------
# Deterministic parameter construction (fresh-init BN folded into conv)
# ---------------------------------------------------------------------------
def make_params(key, ch_16, ch_32, ch_sp, out_ch, num_feat=7):
    keys = iter(jax.random.split(key, 64))
    nxt = lambda: next(keys)

    def bn_id(c):
        return (jnp.ones(c), jnp.zeros(c), jnp.zeros(c), jnp.ones(c))

    def conv1x1_bn(cin, cout):
        w = jax.random.normal(nxt(), (cin, cout), jnp.float32) / jnp.sqrt(cin)
        return fold_bn_conv(w, *bn_id(cout))

    params = {}
    p_ws, p_bs = zip(*[conv1x1_bn(ch_32, out_ch) for _ in range(5)])
    params['p_w'] = jnp.stack(p_ws, axis=0)                # (5, ch_32, out_ch)
    params['p_b'] = jnp.stack(p_bs, axis=0)                # (5, out_ch)
    params['s16'] = conv1x1_bn(ch_16, out_ch)
    params['sp'] = conv1x1_bn(ch_sp, out_ch)

    # c128to1: grouped 1x1 conv (groups=num_feat) + BN + ReLU, then two 1x1
    # convs (num_feat -> num_feat) with bias.  The grouped weight is expanded
    # to block-diagonal (nf, C, nf) form so the in-kernel gate is MXU work.
    wg = jax.random.normal(nxt(), (num_feat, out_ch),
                           jnp.float32) / jnp.sqrt(out_ch)
    gamma, beta, mean, var = bn_id(num_feat)
    scale = gamma / jnp.sqrt(var + BN_EPS)
    wg_eff = wg * scale[:, None]
    bg_eff = beta - mean * scale
    wg_bd = jnp.einsum('gc,gh->gch', wg_eff,
                       jnp.eye(num_feat, dtype=jnp.float32))   # (nf, C, nf)
    w1 = jax.random.normal(nxt(), (num_feat, num_feat),
                           jnp.float32) / jnp.sqrt(num_feat)
    w2 = jax.random.normal(nxt(), (num_feat, num_feat),
                           jnp.float32) / jnp.sqrt(num_feat)
    params['c128to1'] = (wg_bd, bg_eff, w1, jnp.zeros(num_feat),
                         w2, jnp.zeros(num_feat))

    # ca: Conv(out_ch -> out_ch//4) + ReLU + Conv(out_ch//4 -> out_ch), bias.
    cr = out_ch // 4
    params['ca'] = (
        jax.random.normal(nxt(), (out_ch, cr), jnp.float32) / jnp.sqrt(out_ch),
        jnp.zeros(cr),
        jax.random.normal(nxt(), (cr, out_ch), jnp.float32) / jnp.sqrt(cr),
        jnp.zeros(out_ch),
    )

    # sa: three 7x7 ConvModules (1->1, BN folded) and the final 7x7 conv.
    def conv7_bn():
        w = jax.random.normal(nxt(), (7, 7, 1, 1), jnp.float32) / 7.0
        g, b, m, v = bn_id(1)
        sc = g / jnp.sqrt(v + BN_EPS)
        return w * sc, b - m * sc

    params['sa_q'] = conv7_bn()
    params['sa_k'] = conv7_bn()
    params['sa_v'] = conv7_bn()
    params['sa_w'] = (jax.random.normal(nxt(), (7, 7, 1, 1), jnp.float32) / 7.0,
                      jnp.zeros(1))
    return params


# ---------------------------------------------------------------------------
if __name__ == "__main__":
    key = jax.random.PRNGKey(0)
    kf, kp = jax.random.split(key)

    B = 2
    ch_8, ch_16, ch_32, ch_sp, out_ch = 8, 8, 8, 8, 16
    k1, k2, k3, k4 = jax.random.split(kf, 4)
    feat8 = jax.random.normal(k1, (B, ch_8, 32, 32), jnp.float32)   # unused
    feat16 = jax.random.normal(k2, (B, ch_16, 8, 8), jnp.float32)
    feat32 = jax.random.normal(k3, (B, ch_32, 4, 4), jnp.float32)
    featSp = jax.random.normal(k4, (B, ch_sp, 16, 16), jnp.float32)

    params = make_params(kp, ch_16, ch_32, ch_sp, out_ch)

    out = jax.jit(fsa_forward)(params, feat8, feat16, feat32, featSp)
    out = jax.block_until_ready(out)
    assert out.shape == (B, out_ch, 16, 16), out.shape
    assert jnp.all(jnp.isfinite(out))
    print("KERNEL_OK")
</pallas_src>

<mosaic_0001>
module attributes {stable_mosaic.version = 11 : i64} {
  func.func @_seg_conv1x1_relu_kernel(%arg0: i32, %arg1: memref<5xi32, #tpu.memory_space<smem>>, %arg2: memref<32x8xf32, #tpu.memory_space<vmem>>, %arg3: memref<1x8x16xf32, #tpu.memory_space<vmem>>, %arg4: memref<1x1x16xf32, #tpu.memory_space<vmem>>, %arg5: memref<32x16xf32, #tpu.memory_space<vmem>>) attributes {dimension_semantics = [#tpu.dimension_semantics<parallel>], iteration_bounds = array<i64: 5>, scalar_prefetch = 1 : i64, scratch_operands = 0 : i64, tpu.core_type = #tpu.core_type<tc>, window_params = [{transform_indices = @transform_0, window_bounds = array<i64: 32, 8>}, {transform_indices = @transform_1, window_bounds = array<i64: 1, 8, 16>}, {transform_indices = @transform_2, window_bounds = array<i64: 1, 1, 16>}, {transform_indices = @transform_3, window_bounds = array<i64: 32, 16>}]} {
    %c0 = arith.constant 0 : index
    %c0_0 = arith.constant 0 : index
    %0 = vector.load %arg2[%c0, %c0_0] : memref<32x8xf32, #tpu.memory_space<vmem>>, vector<32x8xf32>
    %c0_1 = arith.constant 0 : index
    %c0_2 = arith.constant 0 : index
    %c0_3 = arith.constant 0 : index
    %1 = vector.load %arg3[%c0_1, %c0_2, %c0_3] : memref<1x8x16xf32, #tpu.memory_space<vmem>>, vector<1x8x16xf32>
    %2 = vector.shape_cast %1 : vector<1x8x16xf32> to vector<8x16xf32>
    %cst = arith.constant dense<0.000000e+00> : vector<32x16xf32>
    %3 = tpu.matmul %0, %2, %cst {dimension_numbers = #tpu.dot_dimension_numbers<[1], [0], [0], [1], [0, 0, 1, 1], [], []>} : vector<32x8xf32>, vector<8x16xf32>, vector<32x16xf32> -> vector<32x16xf32>
    %c0_4 = arith.constant 0 : index
    %c0_5 = arith.constant 0 : index
    %c0_6 = arith.constant 0 : index
    %4 = vector.load %arg4[%c0_4, %c0_5, %c0_6] : memref<1x1x16xf32, #tpu.memory_space<vmem>>, vector<1x1x16xf32>
    %5 = vector.shape_cast %4 : vector<1x1x16xf32> to vector<1x16xf32>
    %6 = vector.broadcast %5 : vector<1x16xf32> to vector<32x16xf32>
    %7 = arith.addf %3, %6 : vector<32x16xf32>
    %cst_7 = arith.constant 0.000000e+00 : f32
    %8 = vector.broadcast %cst_7 : f32 to vector<32x16xf32>
    %9 = arith.maximumf %7, %8 : vector<32x16xf32>
    %c0_8 = arith.constant 0 : index
    %c0_9 = arith.constant 0 : index
    %10 = vector.load %arg5[%c0_8, %c0_9] : memref<32x16xf32, #tpu.memory_space<vmem>>, vector<32x16xf32>
    tpu.vector_store %arg5[%c0_8, %c0_9], %9 {strides = array<i32>} : memref<32x16xf32, #tpu.memory_space<vmem>>, vector<32x16xf32>,
    return
  }
  func.func @transform_0(%arg0: i32, %arg1: memref<5xi32, #tpu.memory_space<smem>>) -> (i32, i32) {
    %c0_i32 = arith.constant 0 : i32
    %c0_i32_0 = arith.constant 0 : i32
    return %arg0, %c0_i32 : i32, i32
  }
  func.func @transform_1(%arg0: i32, %arg1: memref<5xi32, #tpu.memory_space<smem>>) -> (i32, i32, i32) {
    %0 = arith.index_cast %arg0 : i32 to index
    %1 = memref.load %arg1[%0] : memref<5xi32, #tpu.memory_space<smem>>
    %c0_i32 = arith.constant 0 : i32
    %c0_i32_0 = arith.constant 0 : i32
    %c0_i32_1 = arith.constant 0 : i32
    return %1, %c0_i32, %c0_i32_0 : i32, i32, i32
  }
  func.func @transform_2(%arg0: i32, %arg1: memref<5xi32, #tpu.memory_space<smem>>) -> (i32, i32, i32) {
    %0 = arith.index_cast %arg0 : i32 to index
    %1 = memref.load %arg1[%0] : memref<5xi32, #tpu.memory_space<smem>>
    %c0_i32 = arith.constant 0 : i32
    %c0_i32_0 = arith.constant 0 : i32
    %c0_i32_1 = arith.constant 0 : i32
    return %1, %c0_i32, %c0_i32_0 : i32, i32, i32
  }
  func.func @transform_3(%arg0: i32, %arg1: memref<5xi32, #tpu.memory_space<smem>>) -> (i32, i32) {
    %c0_i32 = arith.constant 0 : i32
    %c0_i32_0 = arith.constant 0 : i32
    return %arg0, %c0_i32 : i32, i32
  }
}

module attributes {stable_mosaic.version = 11 : i64} {
  func.func @_conv1x1_relu_kernel(%arg0: i32, %arg1: memref<128x8xf32, #tpu.memory_space<vmem>>, %arg2: memref<8x16xf32, #tpu.memory_space<vmem>>, %arg3: memref<1x16xf32, #tpu.memory_space<vmem>>, %arg4: memref<128x16xf32, #tpu.memory_space<vmem>>) attributes {dimension_semantics = [#tpu.dimension_semantics<parallel>], iteration_bounds = array<i64: 1>, scalar_prefetch = 0 : i64, scratch_operands = 0 : i64, tpu.core_type = #tpu.core_type<tc>, window_params = [{transform_indices = @transform_0, window_bounds = array<i64: 128, 8>}, {pipeline_mode = #tpu.pipeline_mode<synchronous>, transform_indices = @transform_1, window_bounds = array<i64: 8, 16>}, {pipeline_mode = #tpu.pipeline_mode<synchronous>, transform_indices = @transform_2, window_bounds = array<i64: 1, 16>}, {transform_indices = @transform_3, window_bounds = array<i64: 128, 16>}]} {
    %c0 = arith.constant 0 : index
    %c0_0 = arith.constant 0 : index
    %0 = vector.load %arg1[%c0, %c0_0] : memref<128x8xf32, #tpu.memory_space<vmem>>, vector<128x8xf32>
    %c0_1 = arith.constant 0 : index
    %c0_2 = arith.constant 0 : index
    %1 = vector.load %arg2[%c0_1, %c0_2] : memref<8x16xf32, #tpu.memory_space<vmem>>, vector<8x16xf32>
    %cst = arith.constant dense<0.000000e+00> : vector<128x16xf32>
    %2 = tpu.matmul %0, %1, %cst {dimension_numbers = #tpu.dot_dimension_numbers<[1], [0], [0], [1], [0, 0, 1, 1], [], []>} : vector<128x8xf32>, vector<8x16xf32>, vector<128x16xf32> -> vector<128x16xf32>
    %c0_3 = arith.constant 0 : index
    %c0_4 = arith.constant 0 : index
    %3 = vector.load %arg3[%c0_3, %c0_4] : memref<1x16xf32, #tpu.memory_space<vmem>>, vector<1x16xf32>
    %4 = vector.broadcast %3 : vector<1x16xf32> to vector<128x16xf32>
    %5 = arith.addf %2, %4 : vector<128x16xf32>
    %cst_5 = arith.constant 0.000000e+00 : f32
    %6 = vector.broadcast %cst_5 : f32 to vector<128x16xf32>
    %7 = arith.maximumf %5, %6 : vector<128x16xf32>
    %c0_6 = arith.constant 0 : index
    %c0_7 = arith.constant 0 : index
    %8 = vector.load %arg4[%c0_6, %c0_7] : memref<128x16xf32, #tpu.memory_space<vmem>>, vector<128x16xf32>
    tpu.vector_store %arg4[%c0_6, %c0_7], %7 {strides = array<i32>} : memref<128x16xf32, #tpu.memory_space<vmem>>, vector<128x16xf32>,
    return
  }
  func.func @transform_0(%arg0: i32) -> (i32, i32) {
    %c0_i32 = arith.constant 0 : i32
    %c0_i32_0 = arith.constant 0 : i32
    return %arg0, %c0_i32 : i32, i32
  }
  func.func @transform_1(%arg0: i32) -> (i32, i32) {
    %c0_i32 = arith.constant 0 : i32
    %c0_i32_0 = arith.constant 0 : i32
    %c0_i32_1 = arith.constant 0 : i32
    return %c0_i32, %c0_i32_0 : i32, i32
  }
  func.func @transform_2(%arg0: i32) -> (i32, i32) {
    %c0_i32 = arith.constant 0 : i32
    %c0_i32_0 = arith.constant 0 : i32
    %c0_i32_1 = arith.constant 0 : i32
    return %c0_i32, %c0_i32_0 : i32, i32
  }
  func.func @transform_3(%arg0: i32) -> (i32, i32) {
    %c0_i32 = arith.constant 0 : i32
    %c0_i32_0 = arith.constant 0 : i32
    return %arg0, %c0_i32 : i32, i32
  }
}

module attributes {stable_mosaic.version = 11 : i64} {
  func.func @_conv1x1_relu_kernel(%arg0: i32, %arg1: memref<512x8xf32, #tpu.memory_space<vmem>>, %arg2: memref<8x16xf32, #tpu.memory_space<vmem>>, %arg3: memref<1x16xf32, #tpu.memory_space<vmem>>, %arg4: memref<512x16xf32, #tpu.memory_space<vmem>>) attributes {dimension_semantics = [#tpu.dimension_semantics<parallel>], iteration_bounds = array<i64: 1>, scalar_prefetch = 0 : i64, scratch_operands = 0 : i64, tpu.core_type = #tpu.core_type<tc>, window_params = [{transform_indices = @transform_0, window_bounds = array<i64: 512, 8>}, {pipeline_mode = #tpu.pipeline_mode<synchronous>, transform_indices = @transform_1, window_bounds = array<i64: 8, 16>}, {pipeline_mode = #tpu.pipeline_mode<synchronous>, transform_indices = @transform_2, window_bounds = array<i64: 1, 16>}, {transform_indices = @transform_3, window_bounds = array<i64: 512, 16>}]} {
    %c0 = arith.constant 0 : index
    %c0_0 = arith.constant 0 : index
    %0 = vector.load %arg1[%c0, %c0_0] : memref<512x8xf32, #tpu.memory_space<vmem>>, vector<512x8xf32>
    %c0_1 = arith.constant 0 : index
    %c0_2 = arith.constant 0 : index
    %1 = vector.load %arg2[%c0_1, %c0_2] : memref<8x16xf32, #tpu.memory_space<vmem>>, vector<8x16xf32>
    %cst = arith.constant dense<0.000000e+00> : vector<512x16xf32>
    %2 = tpu.matmul %0, %1, %cst {dimension_numbers = #tpu.dot_dimension_numbers<[1], [0], [0], [1], [0, 0, 1, 1], [], []>} : vector<512x8xf32>, vector<8x16xf32>, vector<512x16xf32> -> vector<512x16xf32>
    %c0_3 = arith.constant 0 : index
    %c0_4 = arith.constant 0 : index
    %3 = vector.load %arg3[%c0_3, %c0_4] : memref<1x16xf32, #tpu.memory_space<vmem>>, vector<1x16xf32>
    %4 = vector.broadcast %3 : vector<1x16xf32> to vector<512x16xf32>
    %5 = arith.addf %2, %4 : vector<512x16xf32>
    %cst_5 = arith.constant 0.000000e+00 : f32
    %6 = vector.broadcast %cst_5 : f32 to vector<512x16xf32>
    %7 = arith.maximumf %5, %6 : vector<512x16xf32>
    %c0_6 = arith.constant 0 : index
    %c0_7 = arith.constant 0 : index
    %8 = vector.load %arg4[%c0_6, %c0_7] : memref<512x16xf32, #tpu.memory_space<vmem>>, vector<512x16xf32>
    tpu.vector_store %arg4[%c0_6, %c0_7], %7 {strides = array<i32>} : memref<512x16xf32, #tpu.memory_space<vmem>>, vector<512x16xf32>,
    return
  }
  func.func @transform_0(%arg0: i32) -> (i32, i32) {
    %c0_i32 = arith.constant 0 : i32
    %c0_i32_0 = arith.constant 0 : i32
    return %arg0, %c0_i32 : i32, i32
  }
  func.func @transform_1(%arg0: i32) -> (i32, i32) {
    %c0_i32 = arith.constant 0 : i32
    %c0_i32_0 = arith.constant 0 : i32
    %c0_i32_1 = arith.constant 0 : i32
    return %c0_i32, %c0_i32_0 : i32, i32
  }
  func.func @transform_2(%arg0: i32) -> (i32, i32) {
    %c0_i32 = arith.constant 0 : i32
    %c0_i32_0 = arith.constant 0 : i32
    %c0_i32_1 = arith.constant 0 : i32
    return %c0_i32, %c0_i32_0 : i32, i32
  }
  func.func @transform_3(%arg0: i32) -> (i32, i32) {
    %c0_i32 = arith.constant 0 : i32
    %c0_i32_0 = arith.constant 0 : i32
    return %arg0, %c0_i32 : i32, i32
  }
}

module attributes {stable_mosaic.version = 11 : i64} {
  func.func @kernel(%arg0: i32, %arg1: i32, %arg2: memref<1x256x16xf32, #tpu.memory_space<vmem>>, %arg3: memref<1x256x16xf32, #tpu.memory_space<vmem>>, %arg4: memref<1x256x16xf32, #tpu.memory_space<vmem>>, %arg5: memref<1x256x16xf32, #tpu.memory_space<vmem>>, %arg6: memref<1x256x16xf32, #tpu.memory_space<vmem>>, %arg7: memref<1x256x16xf32, #tpu.memory_space<vmem>>, %arg8: memref<1x256x16xf32, #tpu.memory_space<vmem>>, %arg9: memref<7x16x7xf32, #tpu.memory_space<vmem>>, %arg10: memref<1x7xf32, #tpu.memory_space<vmem>>, %arg11: memref<7x7xf32, #tpu.memory_space<vmem>>, %arg12: memref<1x7xf32, #tpu.memory_space<vmem>>, %arg13: memref<7x7xf32, #tpu.memory_space<vmem>>, %arg14: memref<1x7xf32, #tpu.memory_space<vmem>>, %arg15: memref<1x256x16xf32, #tpu.memory_space<vmem>>, %arg16: memref<1x1x16xf32, #tpu.memory_space<vmem>>) attributes {dimension_semantics = [#tpu.dimension_semantics<parallel>, #tpu.dimension_semantics<arbitrary>], iteration_bounds = array<i64: 2, 1>, scalar_prefetch = 0 : i64, scratch_operands = 0 : i64, tpu.core_type = #tpu.core_type<tc>, window_params = [{transform_indices = @transform_0, window_bounds = array<i64: 1, 256, 16>}, {transform_indices = @transform_1, window_bounds = array<i64: 1, 256, 16>}, {transform_indices = @transform_2, window_bounds = array<i64: 1, 256, 16>}, {transform_indices = @transform_3, window_bounds = array<i64: 1, 256, 16>}, {transform_indices = @transform_4, window_bounds = array<i64: 1, 256, 16>}, {transform_indices = @transform_5, window_bounds = array<i64: 1, 256, 16>}, {transform_indices = @transform_6, window_bounds = array<i64: 1, 256, 16>}, {pipeline_mode = #tpu.pipeline_mode<synchronous>, transform_indices = @transform_7, window_bounds = array<i64: 7, 16, 7>}, {pipeline_mode = #tpu.pipeline_mode<synchronous>, transform_indices = @transform_8, window_bounds = array<i64: 1, 7>}, {pipeline_mode = #tpu.pipeline_mode<synchronous>, transform_indices = @transform_9, window_bounds = array<i64: 7, 7>}, {pipeline_mode = #tpu.pipeline_mode<synchronous>, transform_indices = @transform_10, window_bounds = array<i64: 1, 7>}, {pipeline_mode = #tpu.pipeline_mode<synchronous>, transform_indices = @transform_11, window_bounds = array<i64: 7, 7>}, {pipeline_mode = #tpu.pipeline_mode<synchronous>, transform_indices = @transform_12, window_bounds = array<i64: 1, 7>}, {transform_indices = @transform_13, window_bounds = array<i64: 1, 256, 16>}, {transform_indices = @transform_14, window_bounds = array<i64: 1, 1, 16>}]} {
    %c0 = arith.constant 0 : index
    %c0_0 = arith.constant 0 : index
    %c0_1 = arith.constant 0 : index
    %0 = vector.load %arg2[%c0, %c0_0, %c0_1] : memref<1x256x16xf32, #tpu.memory_space<vmem>>, vector<1x256x16xf32>
    %1 = vector.shape_cast %0 : vector<1x256x16xf32> to vector<256x16xf32>
    %c0_2 = arith.constant 0 : index
    %c0_3 = arith.constant 0 : index
    %c0_4 = arith.constant 0 : index
    %2 = vector.load %arg3[%c0_2, %c0_3, %c0_4] : memref<1x256x16xf32, #tpu.memory_space<vmem>>, vector<1x256x16xf32>
    %3 = vector.shape_cast %2 : vector<1x256x16xf32> to vector<256x16xf32>
    %c0_5 = arith.constant 0 : index
    %c0_6 = arith.constant 0 : index
    %c0_7 = arith.constant 0 : index
    %4 = vector.load %arg4[%c0_5, %c0_6, %c0_7] : memref<1x256x16xf32, #tpu.memory_space<vmem>>, vector<1x256x16xf32>
    %5 = vector.shape_cast %4 : vector<1x256x16xf32> to vector<256x16xf32>
    %c0_8 = arith.constant 0 : index
    %c0_9 = arith.constant 0 : index
    %c0_10 = arith.constant 0 : index
    %6 = vector.load %arg5[%c0_8, %c0_9, %c0_10] : memref<1x256x16xf32, #tpu.memory_space<vmem>>, vector<1x256x16xf32>
    %7 = vector.shape_cast %6 : vector<1x256x16xf32> to vector<256x16xf32>
    %c0_11 = arith.constant 0 : index
    %c0_12 = arith.constant 0 : index
    %c0_13 = arith.constant 0 : index
    %8 = vector.load %arg6[%c0_11, %c0_12, %c0_13] : memref<1x256x16xf32, #tpu.memory_space<vmem>>, vector<1x256x16xf32>
    %9 = vector.shape_cast %8 : vector<1x256x16xf32> to vector<256x16xf32>
    %c0_14 = arith.constant 0 : index
    %c0_15 = arith.constant 0 : index
    %c0_16 = arith.constant 0 : index
    %10 = vector.load %arg7[%c0_14, %c0_15, %c0_16] : memref<1x256x16xf32, #tpu.memory_space<vmem>>, vector<1x256x16xf32>
    %11 = vector.shape_cast %10 : vector<1x256x16xf32> to vector<256x16xf32>
    %c0_17 = arith.constant 0 : index
    %c0_18 = arith.constant 0 : index
    %c0_19 = arith.constant 0 : index
    %12 = vector.load %arg8[%c0_17, %c0_18, %c0_19] : memref<1x256x16xf32, #tpu.memory_space<vmem>>, vector<1x256x16xf32>
    %13 = vector.shape_cast %12 : vector<1x256x16xf32> to vector<256x16xf32>
    %c0_20 = arith.constant 0 : index
    %c0_21 = arith.constant 0 : index
    %14 = vector.load %arg10[%c0_20, %c0_21] : memref<1x7xf32, #tpu.memory_space<vmem>>, vector<1x7xf32>
    %c0_22 = arith.constant 0 : index
    %c0_23 = arith.constant 0 : index
    %c0_24 = arith.constant 0 : index
    %15 = vector.load %arg9[%c0_22, %c0_23, %c0_24] : memref<7x16x7xf32, #tpu.memory_space<vmem>>, vector<1x16x7xf32>
    %16 = vector.shape_cast %15 : vector<1x16x7xf32> to vector<16x7xf32>
    %cst = arith.constant dense<0.000000e+00> : vector<256x7xf32>
    %17 = tpu.matmul %1, %16, %cst {dimension_numbers = #tpu.dot_dimension_numbers<[1], [0], [0], [1], [0, 0, 1, 1], [], []>} : vector<256x16xf32>, vector<16x7xf32>, vector<256x7xf32> -> vector<256x7xf32>
    %18 = vector.broadcast %14 : vector<1x7xf32> to vector<256x7xf32>
    %19 = arith.addf %18, %17 : vector<256x7xf32>
    %c1 = arith.constant 1 : index
    %c0_25 = arith.constant 0 : index
    %c0_26 = arith.constant 0 : index
    %20 = vector.load %arg9[%c1, %c0_25, %c0_26] : memref<7x16x7xf32, #tpu.memory_space<vmem>>, vector<1x16x7xf32>
    %21 = vector.shape_cast %20 : vector<1x16x7xf32> to vector<16x7xf32>
    %cst_27 = arith.constant dense<0.000000e+00> : vector<256x7xf32>
    %22 = tpu.matmul %3, %21, %cst_27 {dimension_numbers = #tpu.dot_dimension_numbers<[1], [0], [0], [1], [0, 0, 1, 1], [], []>} : vector<256x16xf32>, vector<16x7xf32>, vector<256x7xf32> -> vector<256x7xf32>
    %23 = arith.addf %19, %22 : vector<256x7xf32>
    %c2 = arith.constant 2 : index
    %c0_28 = arith.constant 0 : index
    %c0_29 = arith.constant 0 : index
    %24 = vector.load %arg9[%c2, %c0_28, %c0_29] : memref<7x16x7xf32, #tpu.memory_space<vmem>>, vector<1x16x7xf32>
    %25 = vector.shape_cast %24 : vector<1x16x7xf32> to vector<16x7xf32>
    %cst_30 = arith.constant dense<0.000000e+00> : vector<256x7xf32>
    %26 = tpu.matmul %5, %25, %cst_30 {dimension_numbers = #tpu.dot_dimension_numbers<[1], [0], [0], [1], [0, 0, 1, 1], [], []>} : vector<256x16xf32>, vector<16x7xf32>, vector<256x7xf32> -> vector<256x7xf32>
    %27 = arith.addf %23, %26 : vector<256x7xf32>
    %c3 = arith.constant 3 : index
    %c0_31 = arith.constant 0 : index
    %c0_32 = arith.constant 0 : index
    %28 = vector.load %arg9[%c3, %c0_31, %c0_32] : memref<7x16x7xf32, #tpu.memory_space<vmem>>, vector<1x16x7xf32>
    %29 = vector.shape_cast %28 : vector<1x16x7xf32> to vector<16x7xf32>
    %cst_33 = arith.constant dense<0.000000e+00> : vector<256x7xf32>
    %30 = tpu.matmul %7, %29, %cst_33 {dimension_numbers = #tpu.dot_dimension_numbers<[1], [0], [0], [1], [0, 0, 1, 1], [], []>} : vector<256x16xf32>, vector<16x7xf32>, vector<256x7xf32> -> vector<256x7xf32>
    %31 = arith.addf %27, %30 : vector<256x7xf32>
    %c4 = arith.constant 4 : index
    %c0_34 = arith.constant 0 : index
    %c0_35 = arith.constant 0 : index
    %32 = vector.load %arg9[%c4, %c0_34, %c0_35] : memref<7x16x7xf32, #tpu.memory_space<vmem>>, vector<1x16x7xf32>
    %33 = vector.shape_cast %32 : vector<1x16x7xf32> to vector<16x7xf32>
    %cst_36 = arith.constant dense<0.000000e+00> : vector<256x7xf32>
    %34 = tpu.matmul %9, %33, %cst_36 {dimension_numbers = #tpu.dot_dimension_numbers<[1], [0], [0], [1], [0, 0, 1, 1], [], []>} : vector<256x16xf32>, vector<16x7xf32>, vector<256x7xf32> -> vector<256x7xf32>
    %35 = arith.addf %31, %34 : vector<256x7xf32>
    %c5 = arith.constant 5 : index
    %c0_37 = arith.constant 0 : index
    %c0_38 = arith.constant 0 : index
    %36 = vector.load %arg9[%c5, %c0_37, %c0_38] : memref<7x16x7xf32, #tpu.memory_space<vmem>>, vector<1x16x7xf32>
    %37 = vector.shape_cast %36 : vector<1x16x7xf32> to vector<16x7xf32>
    %cst_39 = arith.constant dense<0.000000e+00> : vector<256x7xf32>
    %38 = tpu.matmul %11, %37, %cst_39 {dimension_numbers = #tpu.dot_dimension_numbers<[1], [0], [0], [1], [0, 0, 1, 1], [], []>} : vector<256x16xf32>, vector<16x7xf32>, vector<256x7xf32> -> vector<256x7xf32>
    %39 = arith.addf %35, %38 : vector<256x7xf32>
    %c6 = arith.constant 6 : index
    %c0_40 = arith.constant 0 : index
    %c0_41 = arith.constant 0 : index
    %40 = vector.load %arg9[%c6, %c0_40, %c0_41] : memref<7x16x7xf32, #tpu.memory_space<vmem>>, vector<1x16x7xf32>
    %41 = vector.shape_cast %40 : vector<1x16x7xf32> to vector<16x7xf32>
    %cst_42 = arith.constant dense<0.000000e+00> : vector<256x7xf32>
    %42 = tpu.matmul %13, %41, %cst_42 {dimension_numbers = #tpu.dot_dimension_numbers<[1], [0], [0], [1], [0, 0, 1, 1], [], []>} : vector<256x16xf32>, vector<16x7xf32>, vector<256x7xf32> -> vector<256x7xf32>
    %43 = arith.addf %39, %42 : vector<256x7xf32>
    %cst_43 = arith.constant 0.000000e+00 : f32
    %44 = vector.broadcast %cst_43 : f32 to vector<256x7xf32>
    %45 = arith.maximumf %43, %44 : vector<256x7xf32>
    %c0_44 = arith.constant 0 : index
    %c0_45 = arith.constant 0 : index
    %46 = vector.load %arg11[%c0_44, %c0_45] : memref<7x7xf32, #tpu.memory_space<vmem>>, vector<7x7xf32>
    %cst_46 = arith.constant dense<0.000000e+00> : vector<256x7xf32>
    %47 = tpu.matmul %45, %46, %cst_46 {dimension_numbers = #tpu.dot_dimension_numbers<[1], [0], [0], [1], [0, 0, 1, 1], [], []>} : vector<256x7xf32>, vector<7x7xf32>, vector<256x7xf32> -> vector<256x7xf32>
    %c0_47 = arith.constant 0 : index
    %c0_48 = arith.constant 0 : index
    %48 = vector.load %arg12[%c0_47, %c0_48] : memref<1x7xf32, #tpu.memory_space<vmem>>, vector<1x7xf32>
    %49 = vector.broadcast %48 : vector<1x7xf32> to vector<256x7xf32>
    %50 = arith.addf %47, %49 : vector<256x7xf32>
    %cst_49 = arith.constant 0.000000e+00 : f32
    %51 = vector.broadcast %cst_49 : f32 to vector<256x7xf32>
    %52 = arith.maximumf %50, %51 : vector<256x7xf32>
    %c0_50 = arith.constant 0 : index
    %c0_51 = arith.constant 0 : index
    %53 = vector.load %arg13[%c0_50, %c0_51] : memref<7x7xf32, #tpu.memory_space<vmem>>, vector<7x7xf32>
    %cst_52 = arith.constant dense<0.000000e+00> : vector<256x7xf32>
    %54 = tpu.matmul %52, %53, %cst_52 {dimension_numbers = #tpu.dot_dimension_numbers<[1], [0], [0], [1], [0, 0, 1, 1], [], []>} : vector<256x7xf32>, vector<7x7xf32>, vector<256x7xf32> -> vector<256x7xf32>
    %c0_53 = arith.constant 0 : index
    %c0_54 = arith.constant 0 : index
    %55 = vector.load %arg14[%c0_53, %c0_54] : memref<1x7xf32, #tpu.memory_space<vmem>>, vector<1x7xf32>
    %56 = vector.broadcast %55 : vector<1x7xf32> to vector<256x7xf32>
    %57 = arith.addf %54, %56 : vector<256x7xf32>
    %58 = arith.negf %57 : vector<256x7xf32>
    %59 = math.exp %58 : vector<256x7xf32>
    %cst_55 = arith.constant 1.000000e+00 : f32
    %60 = vector.broadcast %cst_55 : f32 to vector<256x7xf32>
    %61 = arith.addf %60, %59 : vector<256x7xf32>
    %62 = arith.divf %60, %61 : vector<256x7xf32>
    %63 = vector.extract_strided_slice %62 {offsets = [0, 0], sizes = [256, 1], strides = [1, 1]} : vector<256x7xf32> to vector<256x1xf32>
    %64 = vector.broadcast %63 : vector<256x1xf32> to vector<256x16xf32>
    %65 = arith.mulf %64, %1 : vector<256x16xf32>
    %66 = vector.extract_strided_slice %62 {offsets = [0, 1], sizes = [256, 1], strides = [1, 1]} : vector<256x7xf32> to vector<256x1xf32>
    %67 = vector.broadcast %66 : vector<256x1xf32> to vector<256x16xf32>
    %68 = arith.mulf %67, %3 : vector<256x16xf32>
    %69 = arith.addf %65, %68 : vector<256x16xf32>
    %70 = vector.extract_strided_slice %62 {offsets = [0, 2], sizes = [256, 1], strides = [1, 1]} : vector<256x7xf32> to vector<256x1xf32>
    %71 = vector.broadcast %70 : vector<256x1xf32> to vector<256x16xf32>
    %72 = arith.mulf %71, %5 : vector<256x16xf32>
    %73 = arith.addf %69, %72 : vector<256x16xf32>
    %74 = vector.extract_strided_slice %62 {offsets = [0, 3], sizes = [256, 1], strides = [1, 1]} : vector<256x7xf32> to vector<256x1xf32>
    %75 = vector.broadcast %74 : vector<256x1xf32> to vector<256x16xf32>
    %76 = arith.mulf %75, %7 : vector<256x16xf32>
    %77 = arith.addf %73, %76 : vector<256x16xf32>
    %78 = vector.extract_strided_slice %62 {offsets = [0, 4], sizes = [256, 1], strides = [1, 1]} : vector<256x7xf32> to vector<256x1xf32>
    %79 = vector.broadcast %78 : vector<256x1xf32> to vector<256x16xf32>
    %80 = arith.mulf %79, %9 : vector<256x16xf32>
    %81 = arith.addf %77, %80 : vector<256x16xf32>
    %82 = vector.extract_strided_slice %62 {offsets = [0, 5], sizes = [256, 1], strides = [1, 1]} : vector<256x7xf32> to vector<256x1xf32>
    %83 = vector.broadcast %82 : vector<256x1xf32> to vector<256x16xf32>
    %84 = arith.mulf %83, %11 : vector<256x16xf32>
    %85 = arith.addf %81, %84 : vector<256x16xf32>
    %86 = vector.extract_strided_slice %62 {offsets = [0, 6], sizes = [256, 1], strides = [1, 1]} : vector<256x7xf32> to vector<256x1xf32>
    %87 = vector.broadcast %86 : vector<256x1xf32> to vector<256x16xf32>
    %88 = arith.mulf %87, %13 : vector<256x16xf32>
    %89 = arith.addf %85, %88 : vector<256x16xf32>
    %c0_56 = arith.constant 0 : index
    %c0_57 = arith.constant 0 : index
    %c0_58 = arith.constant 0 : index
    %90 = vector.load %arg15[%c0_56, %c0_57, %c0_58] : memref<1x256x16xf32, #tpu.memory_space<vmem>>, vector<1x256x16xf32>
    %91 = vector.shape_cast %90 : vector<1x256x16xf32> to vector<256x16xf32>
    %92 = vector.shape_cast %89 : vector<256x16xf32> to vector<1x256x16xf32>
    tpu.vector_store %arg15[%c0_56, %c0_57, %c0_58], %92 {strides = array<i32>} : memref<1x256x16xf32, #tpu.memory_space<vmem>>, vector<1x256x16xf32>,
    %c0_i32 = arith.constant 0 : i32
    %93 = arith.cmpi eq, %arg1, %c0_i32 : i32
    %94 = arith.extui %93 : i1 to i32
    %c0_i32_59 = arith.constant 0 : i32
    %95 = arith.cmpi ne, %94, %c0_i32_59 : i32
    scf.if %95 {
      %cst_67 = arith.constant 0.000000e+00 : f32
      %102 = vector.broadcast %cst_67 : f32 to vector<1x1x16xf32>
      %c0_68 = arith.constant 0 : index
      %c0_69 = arith.constant 0 : index
      %c0_70 = arith.constant 0 : index
      %103 = vector.load %arg16[%c0_68, %c0_69, %c0_70] : memref<1x1x16xf32, #tpu.memory_space<vmem>>, vector<1x1x16xf32>
      tpu.vector_store %arg16[%c0_68, %c0_69, %c0_70], %102 {strides = array<i32>} : memref<1x1x16xf32, #tpu.memory_space<vmem>>, vector<1x1x16xf32>,
    } else {
    }
    %c0_60 = arith.constant 0 : index
    %c0_61 = arith.constant 0 : index
    %c0_62 = arith.constant 0 : index
    %96 = vector.load %arg16[%c0_60, %c0_61, %c0_62] : memref<1x1x16xf32, #tpu.memory_space<vmem>>, vector<1x1x16xf32>
    %cst_63 = arith.constant dense<0.000000e+00> : vector<16xf32>
    %97 = vector.multi_reduction <add>, %89, %cst_63 [0] : vector<256x16xf32> to vector<16xf32>
    %98 = vector.shape_cast %97 : vector<16xf32> to vector<1x16xf32>
    %99 = vector.shape_cast %98 : vector<1x16xf32> to vector<1x1x16xf32>
    %100 = arith.addf %96, %99 : vector<1x1x16xf32>
    %c0_64 = arith.constant 0 : index
    %c0_65 = arith.constant 0 : index
    %c0_66 = arith.constant 0 : index
    %101 = vector.load %arg16[%c0_64, %c0_65, %c0_66] : memref<1x1x16xf32, #tpu.memory_space<vmem>>, vector<1x1x16xf32>
    tpu.vector_store %arg16[%c0_64, %c0_65, %c0_66], %100 {strides = array<i32>} : memref<1x1x16xf32, #tpu.memory_space<vmem>>, vector<1x1x16xf32>,
    return
  }
  func.func @transform_0(%arg0: i32, %arg1: i32) -> (i32, i32, i32) {
    %c0_i32 = arith.constant 0 : i32
    %c0_i32_0 = arith.constant 0 : i32
    return %arg0, %arg1, %c0_i32 : i32, i32, i32
  }
  func.func @transform_1(%arg0: i32, %arg1: i32) -> (i32, i32, i32) {
    %c0_i32 = arith.constant 0 : i32
    %c0_i32_0 = arith.constant 0 : i32
    return %arg0, %arg1, %c0_i32 : i32, i32, i32
  }
  func.func @transform_2(%arg0: i32, %arg1: i32) -> (i32, i32, i32) {
    %c0_i32 = arith.constant 0 : i32
    %c0_i32_0 = arith.constant 0 : i32
    return %arg0, %arg1, %c0_i32 : i32, i32, i32
  }
  func.func @transform_3(%arg0: i32, %arg1: i32) -> (i32, i32, i32) {
    %c0_i32 = arith.constant 0 : i32
    %c0_i32_0 = arith.constant 0 : i32
    return %arg0, %arg1, %c0_i32 : i32, i32, i32
  }
  func.func @transform_4(%arg0: i32, %arg1: i32) -> (i32, i32, i32) {
    %c0_i32 = arith.constant 0 : i32
    %c0_i32_0 = arith.constant 0 : i32
    return %arg0, %arg1, %c0_i32 : i32, i32, i32
  }
  func.func @transform_5(%arg0: i32, %arg1: i32) -> (i32, i32, i32) {
    %c0_i32 = arith.constant 0 : i32
    %c0_i32_0 = arith.constant 0 : i32
    return %arg0, %arg1, %c0_i32 : i32, i32, i32
  }
  func.func @transform_6(%arg0: i32, %arg1: i32) -> (i32, i32, i32) {
    %c0_i32 = arith.constant 0 : i32
    %c0_i32_0 = arith.constant 0 : i32
    return %arg0, %arg1, %c0_i32 : i32, i32, i32
  }
  func.func @transform_7(%arg0: i32, %arg1: i32) -> (i32, i32, i32) {
    %c0_i32 = arith.constant 0 : i32
    %c0_i32_0 = arith.constant 0 : i32
    %c0_i32_1 = arith.constant 0 : i32
    %c0_i32_2 = arith.constant 0 : i32
    return %c0_i32, %c0_i32_0, %c0_i32_1 : i32, i32, i32
  }
  func.func @transform_8(%arg0: i32, %arg1: i32) -> (i32, i32) {
    %c0_i32 = arith.constant 0 : i32
    %c0_i32_0 = arith.constant 0 : i32
    %c0_i32_1 = arith.constant 0 : i32
    return %c0_i32, %c0_i32_0 : i32, i32
  }
  func.func @transform_9(%arg0: i32, %arg1: i32) -> (i32, i32) {
    %c0_i32 = arith.constant 0 : i32
    %c0_i32_0 = arith.constant 0 : i32
    %c0_i32_1 = arith.constant 0 : i32
    return %c0_i32, %c0_i32_0 : i32, i32
  }
  func.func @transform_10(%arg0: i32, %arg1: i32) -> (i32, i32) {
    %c0_i32 = arith.constant 0 : i32
    %c0_i32_0 = arith.constant 0 : i32
    %c0_i32_1 = arith.constant 0 : i32
    return %c0_i32, %c0_i32_0 : i32, i32
  }
  func.func @transform_11(%arg0: i32, %arg1: i32) -> (i32, i32) {
    %c0_i32 = arith.constant 0 : i32
    %c0_i32_0 = arith.constant 0 : i32
    %c0_i32_1 = arith.constant 0 : i32
    return %c0_i32, %c0_i32_0 : i32, i32
  }
  func.func @transform_12(%arg0: i32, %arg1: i32) -> (i32, i32) {
    %c0_i32 = arith.constant 0 : i32
    %c0_i32_0 = arith.constant 0 : i32
    %c0_i32_1 = arith.constant 0 : i32
    return %c0_i32, %c0_i32_0 : i32, i32
  }
  func.func @transform_13(%arg0: i32, %arg1: i32) -> (i32, i32, i32) {
    %c0_i32 = arith.constant 0 : i32
    %c0_i32_0 = arith.constant 0 : i32
    return %arg0, %arg1, %c0_i32 : i32, i32, i32
  }
  func.func @transform_14(%arg0: i32, %arg1: i32) -> (i32, i32, i32) {
    %c0_i32 = arith.constant 0 : i32
    %c0_i32_0 = arith.constant 0 : i32
    %c0_i32_1 = arith.constant 0 : i32
    return %arg0, %c0_i32, %c0_i32_0 : i32, i32, i32
  }
}

module attributes {stable_mosaic.version = 11 : i64} {
  func.func @_ca_apply_kernel(%arg0: i32, %arg1: i32, %arg2: memref<1x256x16xf32, #tpu.memory_space<vmem>>, %arg3: memref<1x1x16xf32, #tpu.memory_space<vmem>>, %arg4: memref<16x4xf32, #tpu.memory_space<vmem>>, %arg5: memref<1x4xf32, #tpu.memory_space<vmem>>, %arg6: memref<4x16xf32, #tpu.memory_space<vmem>>, %arg7: memref<1x16xf32, #tpu.memory_space<vmem>>, %arg8: memref<1x256x16xf32, #tpu.memory_space<vmem>>, %arg9: memref<1x256x1xf32, #tpu.memory_space<vmem>>) attributes {dimension_semantics = [#tpu.dimension_semantics<parallel>, #tpu.dimension_semantics<parallel>], iteration_bounds = array<i64: 2, 1>, scalar_prefetch = 0 : i64, scratch_operands = 0 : i64, tpu.core_type = #tpu.core_type<tc>, window_params = [{transform_indices = @transform_0, window_bounds = array<i64: 1, 256, 16>}, {transform_indices = @transform_1, window_bounds = array<i64: 1, 1, 16>}, {pipeline_mode = #tpu.pipeline_mode<synchronous>, transform_indices = @transform_2, window_bounds = array<i64: 16, 4>}, {pipeline_mode = #tpu.pipeline_mode<synchronous>, transform_indices = @transform_3, window_bounds = array<i64: 1, 4>}, {pipeline_mode = #tpu.pipeline_mode<synchronous>, transform_indices = @transform_4, window_bounds = array<i64: 4, 16>}, {pipeline_mode = #tpu.pipeline_mode<synchronous>, transform_indices = @transform_5, window_bounds = array<i64: 1, 16>}, {transform_indices = @transform_6, window_bounds = array<i64: 1, 256, 16>}, {transform_indices = @transform_7, window_bounds = array<i64: 1, 256, 1>}]} {
    %c0 = arith.constant 0 : index
    %c0_0 = arith.constant 0 : index
    %c0_1 = arith.constant 0 : index
    %0 = vector.load %arg3[%c0, %c0_0, %c0_1] : memref<1x1x16xf32, #tpu.memory_space<vmem>>, vector<1x1x16xf32>
    %1 = vector.shape_cast %0 : vector<1x1x16xf32> to vector<1x16xf32>
    %c0_2 = arith.constant 0 : index
    %c0_3 = arith.constant 0 : index
    %2 = vector.load %arg4[%c0_2, %c0_3] : memref<16x4xf32, #tpu.memory_space<vmem>>, vector<16x4xf32>
    %cst = arith.constant dense<0.000000e+00> : vector<1x4xf32>
    %3 = tpu.matmul %1, %2, %cst {dimension_numbers = #tpu.dot_dimension_numbers<[1], [0], [0], [1], [0, 0, 1, 1], [], []>} : vector<1x16xf32>, vector<16x4xf32>, vector<1x4xf32> -> vector<1x4xf32>
    %c0_4 = arith.constant 0 : index
    %c0_5 = arith.constant 0 : index
    %4 = vector.load %arg5[%c0_4, %c0_5] : memref<1x4xf32, #tpu.memory_space<vmem>>, vector<1x4xf32>
    %5 = arith.addf %3, %4 : vector<1x4xf32>
    %cst_6 = arith.constant 0.000000e+00 : f32
    %6 = vector.broadcast %cst_6 : f32 to vector<1x4xf32>
    %7 = arith.maximumf %5, %6 : vector<1x4xf32>
    %c0_7 = arith.constant 0 : index
    %c0_8 = arith.constant 0 : index
    %8 = vector.load %arg6[%c0_7, %c0_8] : memref<4x16xf32, #tpu.memory_space<vmem>>, vector<4x16xf32>
    %cst_9 = arith.constant dense<0.000000e+00> : vector<1x16xf32>
    %9 = tpu.matmul %7, %8, %cst_9 {dimension_numbers = #tpu.dot_dimension_numbers<[1], [0], [0], [1], [0, 0, 1, 1], [], []>} : vector<1x4xf32>, vector<4x16xf32>, vector<1x16xf32> -> vector<1x16xf32>
    %c0_10 = arith.constant 0 : index
    %c0_11 = arith.constant 0 : index
    %10 = vector.load %arg7[%c0_10, %c0_11] : memref<1x16xf32, #tpu.memory_space<vmem>>, vector<1x16xf32>
    %11 = arith.addf %9, %10 : vector<1x16xf32>
    %12 = arith.negf %11 : vector<1x16xf32>
    %13 = math.exp %12 : vector<1x16xf32>
    %cst_12 = arith.constant 1.000000e+00 : f32
    %14 = vector.broadcast %cst_12 : f32 to vector<1x16xf32>
    %15 = arith.addf %14, %13 : vector<1x16xf32>
    %16 = arith.divf %14, %15 : vector<1x16xf32>
    %c0_13 = arith.constant 0 : index
    %c0_14 = arith.constant 0 : index
    %c0_15 = arith.constant 0 : index
    %17 = vector.load %arg2[%c0_13, %c0_14, %c0_15] : memref<1x256x16xf32, #tpu.memory_space<vmem>>, vector<1x256x16xf32>
    %18 = vector.shape_cast %17 : vector<1x256x16xf32> to vector<256x16xf32>
    %19 = vector.broadcast %16 : vector<1x16xf32> to vector<256x16xf32>
    %20 = arith.mulf %18, %19 : vector<256x16xf32>
    %c0_16 = arith.constant 0 : index
    %c0_17 = arith.constant 0 : index
    %c0_18 = arith.constant 0 : index
    %21 = vector.load %arg8[%c0_16, %c0_17, %c0_18] : memref<1x256x16xf32, #tpu.memory_space<vmem>>, vector<1x256x16xf32>
    %22 = vector.shape_cast %21 : vector<1x256x16xf32> to vector<256x16xf32>
    %23 = vector.shape_cast %20 : vector<256x16xf32> to vector<1x256x16xf32>
    tpu.vector_store %arg8[%c0_16, %c0_17, %c0_18], %23 {strides = array<i32>} : memref<1x256x16xf32, #tpu.memory_space<vmem>>, vector<1x256x16xf32>,
    %cst_19 = arith.constant dense<0.000000e+00> : vector<256xf32>
    %24 = vector.multi_reduction <add>, %20, %cst_19 [1] : vector<256x16xf32> to vector<256xf32>
    %25 = vector.shape_cast %24 : vector<256xf32> to vector<256x1xf32>
    %cst_20 = arith.constant 1.600000e+01 : f32
    %26 = vector.broadcast %cst_20 : f32 to vector<256x1xf32>
    %27 = arith.divf %25, %26 : vector<256x1xf32>
    %c0_21 = arith.constant 0 : index
    %c0_22 = arith.constant 0 : index
    %c0_23 = arith.constant 0 : index
    %28 = vector.load %arg9[%c0_21, %c0_22, %c0_23] : memref<1x256x1xf32, #tpu.memory_space<vmem>>, vector<1x256x1xf32>
    %29 = vector.shape_cast %28 : vector<1x256x1xf32> to vector<256x1xf32>
    %30 = vector.shape_cast %27 : vector<256x1xf32> to vector<1x256x1xf32>
    tpu.vector_store %arg9[%c0_21, %c0_22, %c0_23], %30 {strides = array<i32>} : memref<1x256x1xf32, #tpu.memory_space<vmem>>, vector<1x256x1xf32>,
    return
  }
  func.func @transform_0(%arg0: i32, %arg1: i32) -> (i32, i32, i32) {
    %c0_i32 = arith.constant 0 : i32
    %c0_i32_0 = arith.constant 0 : i32
    return %arg0, %arg1, %c0_i32 : i32, i32, i32
  }
  func.func @transform_1(%arg0: i32, %arg1: i32) -> (i32, i32, i32) {
    %c0_i32 = arith.constant 0 : i32
    %c0_i32_0 = arith.constant 0 : i32
    %c0_i32_1 = arith.constant 0 : i32
    return %arg0, %c0_i32, %c0_i32_0 : i32, i32, i32
  }
  func.func @transform_2(%arg0: i32, %arg1: i32) -> (i32, i32) {
    %c0_i32 = arith.constant 0 : i32
    %c0_i32_0 = arith.constant 0 : i32
    %c0_i32_1 = arith.constant 0 : i32
    return %c0_i32, %c0_i32_0 : i32, i32
  }
  func.func @transform_3(%arg0: i32, %arg1: i32) -> (i32, i32) {
    %c0_i32 = arith.constant 0 : i32
    %c0_i32_0 = arith.constant 0 : i32
    %c0_i32_1 = arith.constant 0 : i32
    return %c0_i32, %c0_i32_0 : i32, i32
  }
  func.func @transform_4(%arg0: i32, %arg1: i32) -> (i32, i32) {
    %c0_i32 = arith.constant 0 : i32
    %c0_i32_0 = arith.constant 0 : i32
    %c0_i32_1 = arith.constant 0 : i32
    return %c0_i32, %c0_i32_0 : i32, i32
  }
  func.func @transform_5(%arg0: i32, %arg1: i32) -> (i32, i32) {
    %c0_i32 = arith.constant 0 : i32
    %c0_i32_0 = arith.constant 0 : i32
    %c0_i32_1 = arith.constant 0 : i32
    return %c0_i32, %c0_i32_0 : i32, i32
  }
  func.func @transform_6(%arg0: i32, %arg1: i32) -> (i32, i32, i32) {
    %c0_i32 = arith.constant 0 : i32
    %c0_i32_0 = arith.constant 0 : i32
    return %arg0, %arg1, %c0_i32 : i32, i32, i32
  }
  func.func @transform_7(%arg0: i32, %arg1: i32) -> (i32, i32, i32) {
    %c0_i32 = arith.constant 0 : i32
    %c0_i32_0 = arith.constant 0 : i32
    return %arg0, %arg1, %c0_i32 : i32, i32, i32
  }
}

module attributes {stable_mosaic.version = 11 : i64} {
  func.func @_sa_attn_kernel(%arg0: i32, %arg1: i32, %arg2: memref<1x1x256xf32, #tpu.memory_space<vmem>>, %arg3: memref<1x64x1xf32, #tpu.memory_space<vmem>>, %arg4: memref<1x2x64xf32, #tpu.memory_space<vmem>>, %arg5: memref<1x1x256xf32, #tpu.memory_space<vmem>>) attributes {dimension_semantics = [#tpu.dimension_semantics<parallel>, #tpu.dimension_semantics<parallel>], iteration_bounds = array<i64: 2, 1>, scalar_prefetch = 0 : i64, scratch_operands = 0 : i64, tpu.core_type = #tpu.core_type<tc>, window_params = [{transform_indices = @transform_0, window_bounds = array<i64: 1, 1, 256>}, {transform_indices = @transform_1, window_bounds = array<i64: 1, 64, 1>}, {transform_indices = @transform_2, window_bounds = array<i64: 1, 2, 64>}, {transform_indices = @transform_3, window_bounds = array<i64: 1, 1, 256>}]} {
    %c0 = arith.constant 0 : index
    %c0_0 = arith.constant 0 : index
    %c0_1 = arith.constant 0 : index
    %0 = vector.load %arg2[%c0, %c0_0, %c0_1] : memref<1x1x256xf32, #tpu.memory_space<vmem>>, vector<1x1x256xf32>
    %1 = vector.shape_cast %0 : vector<1x1x256xf32> to vector<1x256xf32>
    %c0_2 = arith.constant 0 : index
    %c0_3 = arith.constant 0 : index
    %c0_4 = arith.constant 0 : index
    %2 = vector.load %arg3[%c0_2, %c0_3, %c0_4] : memref<1x64x1xf32, #tpu.memory_space<vmem>>, vector<1x64x1xf32>
    %3 = vector.shape_cast %2 : vector<1x64x1xf32> to vector<64x1xf32>
    %c0_5 = arith.constant 0 : index
    %c0_6 = arith.constant 0 : index
    %c0_7 = arith.constant 0 : index
    %4 = vector.load %arg4[%c0_5, %c0_6, %c0_7] : memref<1x2x64xf32, #tpu.memory_space<vmem>>, vector<1x2x64xf32>
    %5 = vector.shape_cast %4 : vector<1x2x64xf32> to vector<2x64xf32>
    %6 = vector.broadcast %3 : vector<64x1xf32> to vector<64x256xf32>
    %7 = vector.broadcast %1 : vector<1x256xf32> to vector<64x256xf32>
    %8 = arith.mulf %6, %7 : vector<64x256xf32>
    %cst = arith.constant dense<0xFF800000> : vector<256xf32>
    %9 = vector.multi_reduction <maximumf>, %8, %cst [0] : vector<64x256xf32> to vector<256xf32>
    %10 = vector.shape_cast %9 : vector<256xf32> to vector<1x256xf32>
    %11 = vector.broadcast %10 : vector<1x256xf32> to vector<64x256xf32>
    %12 = arith.subf %8, %11 : vector<64x256xf32>
    %13 = math.exp %12 : vector<64x256xf32>
    %cst_8 = arith.constant dense<0.000000e+00> : vector<2x256xf32>
    %14 = tpu.matmul %5, %13, %cst_8 {dimension_numbers = #tpu.dot_dimension_numbers<[1], [0], [0], [1], [0, 0, 1, 1], [], []>} : vector<2x64xf32>, vector<64x256xf32>, vector<2x256xf32> -> vector<2x256xf32>
    %15 = vector.extract_strided_slice %14 {offsets = [0, 0], sizes = [1, 256], strides = [1, 1]} : vector<2x256xf32> to vector<1x256xf32>
    %16 = vector.extract_strided_slice %14 {offsets = [1, 0], sizes = [1, 256], strides = [1, 1]} : vector<2x256xf32> to vector<1x256xf32>
    %17 = tpu.reciprocal %16 {approx = true} : vector<1x256xf32> -> vector<1x256xf32>
    %18 = arith.mulf %15, %17 : vector<1x256xf32>
    %c0_9 = arith.constant 0 : index
    %c0_10 = arith.constant 0 : index
    %c0_11 = arith.constant 0 : index
    %19 = vector.load %arg5[%c0_9, %c0_10, %c0_11] : memref<1x1x256xf32, #tpu.memory_space<vmem>>, vector<1x1x256xf32>
    %20 = vector.shape_cast %19 : vector<1x1x256xf32> to vector<1x256xf32>
    %21 = vector.shape_cast %18 : vector<1x256xf32> to vector<1x1x256xf32>
    tpu.vector_store %arg5[%c0_9, %c0_10, %c0_11], %21 {strides = array<i32>} : memref<1x1x256xf32, #tpu.memory_space<vmem>>, vector<1x1x256xf32>,
    return
  }
  func.func @transform_0(%arg0: i32, %arg1: i32) -> (i32, i32, i32) {
    %c0_i32 = arith.constant 0 : i32
    %c0_i32_0 = arith.constant 0 : i32
    return %arg0, %c0_i32, %arg1 : i32, i32, i32
  }
  func.func @transform_1(%arg0: i32, %arg1: i32) -> (i32, i32, i32) {
    %c0_i32 = arith.constant 0 : i32
    %c0_i32_0 = arith.constant 0 : i32
    %c0_i32_1 = arith.constant 0 : i32
    return %arg0, %c0_i32, %c0_i32_0 : i32, i32, i32
  }
  func.func @transform_2(%arg0: i32, %arg1: i32) -> (i32, i32, i32) {
    %c0_i32 = arith.constant 0 : i32
    %c0_i32_0 = arith.constant 0 : i32
    %c0_i32_1 = arith.constant 0 : i32
    return %arg0, %c0_i32, %c0_i32_0 : i32, i32, i32
  }
  func.func @transform_3(%arg0: i32, %arg1: i32) -> (i32, i32, i32) {
    %c0_i32 = arith.constant 0 : i32
    %c0_i32_0 = arith.constant 0 : i32
    return %arg0, %c0_i32, %arg1 : i32, i32, i32
  }
}

</mosaic_0001>

<bundles_post_ra>
// kernel: fsa_forward.6
= control target key start
LH: loop header
LB: loop body
LE: loop exit
PB: predicated region body
PF: predicated region fallthrough
CT: control target
= control target key end

     0   :  { %s548_s0 = inlined_call_operand.vmem [shape: s32[5], index: 0, kind: input, shape index: {}]   ;;  %s549_s1 = inlined_call_operand.vmem [shape: f32[160,8], index: 1, kind: input, shape index: {}]   ;;  %s550_s2 = inlined_call_operand.vmem [shape: f32[5,8,16], index: 2, kind: input, shape index: {}]   ;;  %s551_s3 = inlined_call_operand.vmem [shape: f32[5,1,16], index: 3, kind: input, shape index: {}]   ;;  %s552_s4 = inlined_call_operand.vmem [shape: f32[160,16], index: 4, kind: output, shape index: {}]  }
   0x1   :  { %s9_s17 = sshll.u32 %s548_s0, 4  ;;  %s10_s17 = int_to_ptr.vmem [resolvable:$true] %s9_s17 }
   0x2   :  { %s463_s18 = scalar_lea.vmem %s10_s17, 16  ;;  %p468_p1 = scmp.lt.s32.totalorder %s10_s17, %s10_s17 }
   0x3   :  { %p464_p0 = scmp.ne.s32.totalorder %s10_s17, %s463_s18  ;;  %p469_p2 = scmp.lt.s32.totalorder %s463_s18, %s463_s18 }
   0x5   :  { %p470_p3 = por %p469_p2, %p468_p1 }
   0x7   :  { %p471_p4 = pnand %p470_p3, %p464_p0 }
   0x9   :  { %474 = shalt.err (!%p471_p4)  }
   0xa   :  { %s485_s19 = smov [#allocation3]  }
   0xb   :  { %12 = dma.vmem_to_smem %s10_s17, 16, %s485_s19, [#allocation2] }
   0xc   :  { %479 = dma.done.wait [#allocation2], 16 }
   0xd   :  { %480 = vsyncadd [#allocation2], 4294967280 }
   0xe   :  { %14 = sfence }
   0xf   :  { %s514_s20 = smov 0  }
  0x10 LB: > { %s422_s0 = sadd.s32 4294967295, %s483_s20   ;;  %p426_p5 = scmp.ge.s32.totalorder %s483_s20, 1  ;;  %s483_s20 = sphi %s514_s20, %s20_s20  }
  0x11   : > { %p170_p6 = scmp.lt.s32.totalorder %s483_s20, 6 }
  0x13   : > { %p171_p7 = pnand %p426_p5, %p170_p6 }
  0x14   : > { %s209_s21 = sld [smem:[#allocation3 + %s422_s0]] (!%p171_p7)  ;;  %s427_s22 = sshll.u32 (!%p171_p7), %s422_s0, 2  ;;  %vm238_vm0 = vcmask (!%p171_p7), 64512   ;;  %vm340_vm1 = vcmask (!%p171_p7), 130048  }
  0x15   : > { %174 = sbr.rel (%p171_p7) target bundleno = 253 (0xfd), region = 32  ;;  %p204_p8 = scmp.lt.s32.totalorder (!%p171_p7), %s427_s22, 19 }
  0x16   : > { %s215_s5 = sld [smem:[#allocation3 + %s422_s0]] (!%p171_p7) }
  0x1a   : > { %p210_p9 = scmp.lt.s32.totalorder (!%p171_p7), %s209_s21, 4 }
  0x1c   : > { %s554_s22 = smov (!%p204_p8, %s427_s22), 19  ;;  %s556_s21 = smov (!%p210_p9, %s209_s21), 4 }
  0x1d   : > { %s428_s23 = sshll.u32 %s554_s22, 3  ;;  %s429_s27 = sshll.u32 %s556_s21, 3 }
  0x1e   : > { %s207_s26 = scalar_lea.vmem %s549_s1, %s428_s23  ;;  %s213_s30 = scalar_lea.vmem %s550_s2, %s429_s27 }
  0x1f   : > { %v226_v0 = vld [vmem:[%s207_s26] sm:$0xff]  ;;  %v228_v1 = vld [vmem:[%s207_s26 + $0x10] sm:$0xff]  ;;  %v227_v3 = vld [vmem:[%s207_s26 + $0x8] sm:$0xff]  ;;  %p216_p10 = scmp.lt.s32.totalorder %s215_s5, 4  ;;  %s224_s11 = scalar_lea.vmem %s552_s4, %s428_s23 }
  0x20   : > { %446 = vmatprep.mubr.msk.f32.mxu0 %vm238_vm0, %v226_v0  ;;  %449 = vmatprep.mubr.msk.f32.mxu1 %vm238_vm0, %v228_v1  ;;  %v230_v2 = vld [vmem:[%s213_s30] sm:$0xff]  ;;  %v229_v4 = vld [vmem:[%s207_s26 + $0x18] sm:$0xff] }
  0x21   : > { %444 = vmatprep.subr.mxu0 %v230_v2  ;;  %452 = vmatprep.subr.mxu1 %v230_v2  ;;  %s558_s5 = smov (!%p216_p10, %s215_s5), 4 }
  0x22   : > { %445 = vmatpush3.msra.mxu0 %v230_v2  ;;  %453 = vmatpush3.msra.mxu1 %v230_v2  ;;  %s218_s8 = scalar_lea.vmem %s551_s3, %s558_s5 }
  0x23   : > { %447 = vmatmul.mubr.msk.f32.vlgmr.msra.gmra.mrb[0].mxu0 %vm238_vm0, %v227_v3  ;;  %450 = vmatmul.mubr.msk.f32.vlgmr.msra.gmra.mrb[0].mxu1 %vm238_vm0, %v229_v4  ;;  %v432_v5 = vld [vmem:[%s218_s8] ss:$0 sm:$0xff] }
  0xf6   : > { %v448_v6 = vpop.f32.mrb[0].mxu0  ;;  %v451_v7 = vpop.f32.mrb[0].mxu1 }
  0xf7   : > { %v323_v8 = vadd.f32 %v448_v6, %v432_v5  ;;  %v333_v9 = vadd.f32 %v451_v7, %v432_v5  ;;  %v317_v10 = vpop.f32.mrb[1].mxu0  ;;  %v327_v11 = vpop.f32.mrb[1].mxu1 }
  0xf8   : > { %v318_v12 = vadd.f32 %v432_v5, %v317_v10  ;;  %v328_v13 = vadd.f32 %v432_v5, %v327_v11 }
  0xf9   : > { %v337_v14 = vmax.f32 %v323_v8, 0.0  ;;  %v339_v15 = vmax.f32 %v333_v9, 0.0 }
  0xfa   : > { %v336_v16 = vmax.f32 %v318_v12, 0.0  ;;  %v338_v17 = vmax.f32 %v328_v13, 0.0 }
  0xfb   : > { %342 = vst.msk [vmem:[%s224_s11 + $0x8] sm:$0xff] %vm340_vm1, %v337_v14  ;;  %344 = vst.msk [vmem:[%s224_s11 + $0x18] sm:$0xff] %vm340_vm1, %v339_v15 }
  0xfc   : > { %341 = vst.msk [vmem:[%s224_s11] sm:$0xff] %vm340_vm1, %v336_v16  ;;  %343 = vst.msk [vmem:[%s224_s11 + $0x10] sm:$0xff] %vm340_vm1, %v338_v17 }
  0xfd PF: > { %s20_s20 = sadd.s32 1, %s483_s20  }
  0xfe   : > { %p17_p11 = scmp.ge.s32.totalorder %s20_s20, 7  }
 0x100   :  { %19 = sbr.rel (!%p17_p11) target bundleno = 16 (0x10), region = 68 }

// kernel: fsa_forward.7
= control target key start
LH: loop header
LB: loop body
LE: loop exit
PB: predicated region body
PF: predicated region fallthrough
CT: control target
= control target key end

     0   :  { %vm38_vm0 = vcmask 64512   ;;  %vm248_vm1 = vcmask 130048   ;;  %s485_s1 = inlined_call_operand.vmem [shape: f32[8,16], index: 1, kind: input, shape index: {}]   ;;  %s486_s0 = inlined_call_operand.vmem [shape: f32[128,8], index: 0, kind: input, shape index: {}]   ;;  %s487_s2 = inlined_call_operand.vmem [shape: f32[1,16], index: 2, kind: input, shape index: {}]   ;;  %s488_s3 = inlined_call_operand.vmem [shape: f32[128,16], index: 3, kind: output, shape index: {}]  }
   0x1   :  { %v30_v0 = vld [vmem:[%s485_s1] sm:$0xff]  ;;  %v15_v3 = vld [vmem:[%s486_s0 + $0x8] sm:$0xff]  ;;  %v16_v5 = vld [vmem:[%s486_s0 + $0x10] sm:$0xff] }
   0x2   :  { %v14_v1 = vld [vmem:[%s486_s0] sm:$0xff]  ;;  %303 = vmatprep.subr.mxu0 %v30_v0  ;;  %329 = vmatprep.subr.mxu1 %v30_v0  ;;  %v23_v4 = vld [vmem:[%s486_s0 + $0x48] sm:$0xff]  ;;  %v24_v6 = vld [vmem:[%s486_s0 + $0x50] sm:$0xff] }
   0x3   :  { %v22_v2 = vld [vmem:[%s486_s0 + $0x40] sm:$0xff]  ;;  %304 = vmatpush3.msra.mxu0 %v30_v0  ;;  %330 = vmatpush3.msra.mxu1 %v30_v0  ;;  %v17_v7 = vld [vmem:[%s486_s0 + $0x18] sm:$0xff]  ;;  %v19_v11 = vld [vmem:[%s486_s0 + $0x28] sm:$0xff] }
   0x4   :  { %305 = vmatprep.mubr.msk.f32.mxu0 %vm38_vm0, %v14_v1  ;;  %317 = vmatprep.mubr.msk.f32.mxu1 %vm38_vm0, %v22_v2  ;;  %v25_v8 = vld [vmem:[%s486_s0 + $0x58] sm:$0xff]  ;;  %v18_v9 = vld [vmem:[%s486_s0 + $0x20] sm:$0xff]  ;;  %v27_v12 = vld [vmem:[%s486_s0 + $0x68] sm:$0xff] }
   0x5   :  { %306 = vmatmul.mubr.msk.f32.vlgmr.msra.gmra.mrb[0].mxu0 %vm38_vm0, %v15_v3  ;;  %318 = vmatmul.mubr.msk.f32.vlgmr.msra.gmra.mrb[0].mxu1 %vm38_vm0, %v23_v4  ;;  %v26_v10 = vld [vmem:[%s486_s0 + $0x60] sm:$0xff]  ;;  %v20_v13 = vld [vmem:[%s486_s0 + $0x30] sm:$0xff]  ;;  %v21_v15 = vld [vmem:[%s486_s0 + $0x38] sm:$0xff] }
   0x6   :  { %308 = vmatprep.mubr.msk.f32.mxu0 %vm38_vm0, %v16_v5  ;;  %320 = vmatprep.mubr.msk.f32.mxu1 %vm38_vm0, %v24_v6  ;;  %v28_v14 = vld [vmem:[%s486_s0 + $0x70] sm:$0xff]  ;;  %v29_v16 = vld [vmem:[%s486_s0 + $0x78] sm:$0xff]  ;;  %v269_v17 = vld [vmem:[%s487_s2] ss:$0 sm:$0xff] }
   0x9   :  { %309 = vmatmul.mubr.msk.f32.gmra.mrb[2].mxu0 %vm38_vm0, %v17_v7  ;;  %321 = vmatmul.mubr.msk.f32.gmra.mrb[2].mxu1 %vm38_vm0, %v25_v8 }
   0xa   :  { %311 = vmatprep.mubr.msk.f32.mxu0 %vm38_vm0, %v18_v9  ;;  %323 = vmatprep.mubr.msk.f32.mxu1 %vm38_vm0, %v26_v10 }
   0xd   :  { %312 = vmatmul.mubr.msk.f32.gmra.mrb[4].mxu0 %vm38_vm0, %v19_v11  ;;  %324 = vmatmul.mubr.msk.f32.gmra.mrb[4].mxu1 %vm38_vm0, %v27_v12 }
   0xe   :  { %314 = vmatprep.mubr.msk.f32.mxu0 %vm38_vm0, %v20_v13  ;;  %326 = vmatprep.mubr.msk.f32.mxu1 %vm38_vm0, %v28_v14 }
  0x11   :  { %315 = vmatmul.mubr.msk.f32.gmra.mrb[6].mxu0 %vm38_vm0, %v21_v15  ;;  %327 = vmatmul.mubr.msk.f32.gmra.mrb[6].mxu1 %vm38_vm0, %v29_v16 }
  0xd8   :  { %v307_v18 = vpop.f32.mrb[0].mxu0  ;;  %v319_v19 = vpop.f32.mrb[0].mxu1 }
  0xd9   :  { %v159_v20 = vadd.f32 %v307_v18, %v269_v17  ;;  %v199_v21 = vadd.f32 %v319_v19, %v269_v17  ;;  %v153_v22 = vpop.f32.mrb[1].mxu0  ;;  %v193_v23 = vpop.f32.mrb[1].mxu1 }
  0xda   :  { %v154_v24 = vadd.f32 %v269_v17, %v153_v22  ;;  %v194_v25 = vadd.f32 %v269_v17, %v193_v23 }
  0xdb   :  { %v233_v26 = vmax.f32 %v159_v20, 0.0  ;;  %v241_v27 = vmax.f32 %v199_v21, 0.0 }
  0xdc   :  { %v232_v28 = vmax.f32 %v154_v24, 0.0  ;;  %v240_v29 = vmax.f32 %v194_v25, 0.0  ;;  %v310_v30 = vpop.f32.mrb[2].mxu0  ;;  %v322_v31 = vpop.f32.mrb[2].mxu1 }
  0xdd   :  { %250 = vst.msk [vmem:[%s488_s3 + $0x8] sm:$0xff] %vm248_vm1, %v233_v26  ;;  %258 = vst.msk [vmem:[%s488_s3 + $0x48] sm:$0xff] %vm248_vm1, %v241_v27  ;;  %v169_v32 = vadd.f32 %v310_v30, %v269_v17  ;;  %v209_v33 = vadd.f32 %v322_v31, %v269_v17  ;;  %v163_v34 = vpop.f32.mrb[3].mxu0  ;;  %v203_v35 = vpop.f32.mrb[3].mxu1 }
  0xde   :  { %249 = vst.msk [vmem:[%s488_s3] sm:$0xff] %vm248_vm1, %v232_v28  ;;  %257 = vst.msk [vmem:[%s488_s3 + $0x40] sm:$0xff] %vm248_vm1, %v240_v29  ;;  %v164_v36 = vadd.f32 %v269_v17, %v163_v34  ;;  %v204_v37 = vadd.f32 %v269_v17, %v203_v35 }
  0xdf   :  { %v235_v38 = vmax.f32 %v169_v32, 0.0  ;;  %v243_v39 = vmax.f32 %v209_v33, 0.0 }
  0xe0   :  { %v234_v40 = vmax.f32 %v164_v36, 0.0  ;;  %v242_v41 = vmax.f32 %v204_v37, 0.0  ;;  %v313_v42 = vpop.f32.mrb[4].mxu0  ;;  %v325_v43 = vpop.f32.mrb[4].mxu1 }
  0xe1   :  { %252 = vst.msk [vmem:[%s488_s3 + $0x18] sm:$0xff] %vm248_vm1, %v235_v38  ;;  %260 = vst.msk [vmem:[%s488_s3 + $0x58] sm:$0xff] %vm248_vm1, %v243_v39  ;;  %v179_v44 = vadd.f32 %v313_v42, %v269_v17  ;;  %v219_v45 = vadd.f32 %v325_v43, %v269_v17  ;;  %v173_v46 = vpop.f32.mrb[5].mxu0  ;;  %v213_v47 = vpop.f32.mrb[5].mxu1 }
  0xe2   :  { %251 = vst.msk [vmem:[%s488_s3 + $0x10] sm:$0xff] %vm248_vm1, %v234_v40  ;;  %259 = vst.msk [vmem:[%s488_s3 + $0x50] sm:$0xff] %vm248_vm1, %v242_v41  ;;  %v174_v48 = vadd.f32 %v269_v17, %v173_v46  ;;  %v214_v49 = vadd.f32 %v269_v17, %v213_v47 }
  0xe3   :  { %v237_v50 = vmax.f32 %v179_v44, 0.0  ;;  %v245_v51 = vmax.f32 %v219_v45, 0.0 }
  0xe4   :  { %v236_v52 = vmax.f32 %v174_v48, 0.0  ;;  %v244_v53 = vmax.f32 %v214_v49, 0.0  ;;  %v316_v54 = vpop.f32.mrb[6].mxu0  ;;  %v328_v55 = vpop.f32.mrb[6].mxu1 }
  0xe5   :  { %254 = vst.msk [vmem:[%s488_s3 + $0x28] sm:$0xff] %vm248_vm1, %v237_v50  ;;  %262 = vst.msk [vmem:[%s488_s3 + $0x68] sm:$0xff] %vm248_vm1, %v245_v51  ;;  %v189_v56 = vadd.f32 %v316_v54, %v269_v17  ;;  %v229_v57 = vadd.f32 %v328_v55, %v269_v17  ;;  %v183_v58 = vpop.f32.mrb[7].mxu0  ;;  %v223_v59 = vpop.f32.mrb[7].mxu1 }
  0xe6   :  { %253 = vst.msk [vmem:[%s488_s3 + $0x20] sm:$0xff] %vm248_vm1, %v236_v52  ;;  %261 = vst.msk [vmem:[%s488_s3 + $0x60] sm:$0xff] %vm248_vm1, %v244_v53  ;;  %v184_v60 = vadd.f32 %v269_v17, %v183_v58  ;;  %v224_v61 = vadd.f32 %v269_v17, %v223_v59 }
  0xe7   :  { %v239_v62 = vmax.f32 %v189_v56, 0.0  ;;  %v247_v63 = vmax.f32 %v229_v57, 0.0 }
  0xe8   :  { %v238_v0 = vmax.f32 %v184_v60, 0.0  ;;  %v246_v1 = vmax.f32 %v224_v61, 0.0 }
  0xe9   :  { %256 = vst.msk [vmem:[%s488_s3 + $0x38] sm:$0xff] %vm248_vm1, %v239_v62  ;;  %264 = vst.msk [vmem:[%s488_s3 + $0x78] sm:$0xff] %vm248_vm1, %v247_v63 }
  0xea   :  { %255 = vst.msk [vmem:[%s488_s3 + $0x30] sm:$0xff] %vm248_vm1, %v238_v0  ;;  %263 = vst.msk [vmem:[%s488_s3 + $0x70] sm:$0xff] %vm248_vm1, %v246_v1 }

// kernel: fsa_forward.8
= control target key start
LH: loop header
LB: loop body
LE: loop exit
PB: predicated region body
PF: predicated region fallthrough
CT: control target
= control target key end

     0   :  { %vm86_vm0 = vcmask 64512   ;;  %vm728_vm1 = vcmask 130048   ;;  %s1631_s1 = inlined_call_operand.vmem [shape: f32[8,16], index: 1, kind: input, shape index: {}]   ;;  %s1632_s0 = inlined_call_operand.vmem [shape: f32[512,8], index: 0, kind: input, shape index: {}]   ;;  %s1633_s2 = inlined_call_operand.vmem [shape: f32[1,16], index: 2, kind: input, shape index: {}]   ;;  %s1634_s3 = inlined_call_operand.vmem [shape: f32[512,16], index: 3, kind: output, shape index: {}]  }
   0x1   :  { %v78_v0 = vld [vmem:[%s1631_s1] sm:$0xff]  ;;  %v15_v3 = vld [vmem:[%s1632_s0 + $0x8] sm:$0xff]  ;;  %v16_v5 = vld [vmem:[%s1632_s0 + $0x10] sm:$0xff] }
   0x2   :  { %v14_v1 = vld [vmem:[%s1632_s0] sm:$0xff]  ;;  %927 = vmatprep.subr.mxu0 %v78_v0  ;;  %1025 = vmatprep.subr.mxu1 %v78_v0  ;;  %v47_v4 = vld [vmem:[%s1632_s0 + $0x108] sm:$0xff]  ;;  %v48_v6 = vld [vmem:[%s1632_s0 + $0x110] sm:$0xff] }
   0x3   :  { %v46_v2 = vld [vmem:[%s1632_s0 + $0x100] sm:$0xff]  ;;  %928 = vmatpush3.msra.mxu0 %v78_v0  ;;  %1026 = vmatpush3.msra.mxu1 %v78_v0  ;;  %v17_v7 = vld [vmem:[%s1632_s0 + $0x18] sm:$0xff]  ;;  %v19_v11 = vld [vmem:[%s1632_s0 + $0x28] sm:$0xff] }
   0x4   :  { %929 = vmatprep.mubr.msk.f32.mxu0 %vm86_vm0, %v14_v1  ;;  %977 = vmatprep.mubr.msk.f32.mxu1 %vm86_vm0, %v46_v2  ;;  %v49_v8 = vld [vmem:[%s1632_s0 + $0x118] sm:$0xff]  ;;  %v18_v9 = vld [vmem:[%s1632_s0 + $0x20] sm:$0xff]  ;;  %v51_v12 = vld [vmem:[%s1632_s0 + $0x128] sm:$0xff] }
   0x5   :  { %930 = vmatmul.mubr.msk.f32.vlgmr.msra.gmra.mrb[0].mxu0 %vm86_vm0, %v15_v3  ;;  %978 = vmatmul.mubr.msk.f32.vlgmr.msra.gmra.mrb[0].mxu1 %vm86_vm0, %v47_v4  ;;  %v50_v10 = vld [vmem:[%s1632_s0 + $0x120] sm:$0xff]  ;;  %v20_v13 = vld [vmem:[%s1632_s0 + $0x30] sm:$0xff]  ;;  %v21_v15 = vld [vmem:[%s1632_s0 + $0x38] sm:$0xff] }
   0x6   :  { %932 = vmatprep.mubr.msk.f32.mxu0 %vm86_vm0, %v16_v5  ;;  %980 = vmatprep.mubr.msk.f32.mxu1 %vm86_vm0, %v48_v6  ;;  %v52_v14 = vld [vmem:[%s1632_s0 + $0x130] sm:$0xff]  ;;  %v53_v16 = vld [vmem:[%s1632_s0 + $0x138] sm:$0xff]  ;;  %v22_v17 = vld [vmem:[%s1632_s0 + $0x40] sm:$0xff] }
   0x7   :  { %v54_v18 = vld [vmem:[%s1632_s0 + $0x140] sm:$0xff]  ;;  %v23_v19 = vld [vmem:[%s1632_s0 + $0x48] sm:$0xff]  ;;  %v24_v21 = vld [vmem:[%s1632_s0 + $0x50] sm:$0xff] }
   0x8   :  { %v55_v20 = vld [vmem:[%s1632_s0 + $0x148] sm:$0xff]  ;;  %v56_v22 = vld [vmem:[%s1632_s0 + $0x150] sm:$0xff]  ;;  %v25_v23 = vld [vmem:[%s1632_s0 + $0x58] sm:$0xff] }
   0x9   :  { %933 = vmatmul.mubr.msk.f32.gmra.mrb[2].mxu0 %vm86_vm0, %v17_v7  ;;  %981 = vmatmul.mubr.msk.f32.gmra.mrb[2].mxu1 %vm86_vm0, %v49_v8  ;;  %v57_v24 = vld [vmem:[%s1632_s0 + $0x158] sm:$0xff]  ;;  %v26_v25 = vld [vmem:[%s1632_s0 + $0x60] sm:$0xff]  ;;  %v27_v27 = vld [vmem:[%s1632_s0 + $0x68] sm:$0xff] }
   0xa   :  { %935 = vmatprep.mubr.msk.f32.mxu0 %vm86_vm0, %v18_v9  ;;  %983 = vmatprep.mubr.msk.f32.mxu1 %vm86_vm0, %v50_v10  ;;  %v58_v26 = vld [vmem:[%s1632_s0 + $0x160] sm:$0xff]  ;;  %v59_v28 = vld [vmem:[%s1632_s0 + $0x168] sm:$0xff]  ;;  %v28_v29 = vld [vmem:[%s1632_s0 + $0x70] sm:$0xff] }
   0xb   :  { %v60_v30 = vld [vmem:[%s1632_s0 + $0x170] sm:$0xff]  ;;  %v29_v31 = vld [vmem:[%s1632_s0 + $0x78] sm:$0xff]  ;;  %v30_v33 = vld [vmem:[%s1632_s0 + $0x80] sm:$0xff] }
   0xc   :  { %v61_v32 = vld [vmem:[%s1632_s0 + $0x178] sm:$0xff]  ;;  %v62_v34 = vld [vmem:[%s1632_s0 + $0x180] sm:$0xff]  ;;  %v31_v35 = vld [vmem:[%s1632_s0 + $0x88] sm:$0xff] }
   0xd   :  { %936 = vmatmul.mubr.msk.f32.gmra.mrb[4].mxu0 %vm86_vm0, %v19_v11  ;;  %984 = vmatmul.mubr.msk.f32.gmra.mrb[4].mxu1 %vm86_vm0, %v51_v12  ;;  %v63_v36 = vld [vmem:[%s1632_s0 + $0x188] sm:$0xff]  ;;  %v32_v37 = vld [vmem:[%s1632_s0 + $0x90] sm:$0xff]  ;;  %v33_v39 = vld [vmem:[%s1632_s0 + $0x98] sm:$0xff] }
   0xe   :  { %938 = vmatprep.mubr.msk.f32.mxu0 %vm86_vm0, %v20_v13  ;;  %986 = vmatprep.mubr.msk.f32.mxu1 %vm86_vm0, %v52_v14  ;;  %v64_v38 = vld [vmem:[%s1632_s0 + $0x190] sm:$0xff]  ;;  %v65_v40 = vld [vmem:[%s1632_s0 + $0x198] sm:$0xff]  ;;  %v34_v41 = vld [vmem:[%s1632_s0 + $0xa0] sm:$0xff] }
   0xf   :  { %v66_v42 = vld [vmem:[%s1632_s0 + $0x1a0] sm:$0xff]  ;;  %v35_v43 = vld [vmem:[%s1632_s0 + $0xa8] sm:$0xff]  ;;  %v36_v45 = vld [vmem:[%s1632_s0 + $0xb0] sm:$0xff] }
  0x10   :  { %v67_v44 = vld [vmem:[%s1632_s0 + $0x1a8] sm:$0xff]  ;;  %v68_v46 = vld [vmem:[%s1632_s0 + $0x1b0] sm:$0xff]  ;;  %v37_v47 = vld [vmem:[%s1632_s0 + $0xb8] sm:$0xff] }
  0x11   :  { %939 = vmatmul.mubr.msk.f32.gmra.mrb[6].mxu0 %vm86_vm0, %v21_v15  ;;  %987 = vmatmul.mubr.msk.f32.gmra.mrb[6].mxu1 %vm86_vm0, %v53_v16  ;;  %v69_v48 = vld [vmem:[%s1632_s0 + $0x1b8] sm:$0xff]  ;;  %v38_v49 = vld [vmem:[%s1632_s0 + $0xc0] sm:$0xff]  ;;  %v39_v51 = vld [vmem:[%s1632_s0 + $0xc8] sm:$0xff] }
  0x12   :  { %941 = vmatprep.mubr.msk.f32.mxu0 %vm86_vm0, %v22_v17  ;;  %989 = vmatprep.mubr.msk.f32.mxu1 %vm86_vm0, %v54_v18  ;;  %v70_v50 = vld [vmem:[%s1632_s0 + $0x1c0] sm:$0xff]  ;;  %v71_v52 = vld [vmem:[%s1632_s0 + $0x1c8] sm:$0xff]  ;;  %v40_v53 = vld [vmem:[%s1632_s0 + $0xd0] sm:$0xff] }
  0x13   :  { %v72_v54 = vld [vmem:[%s1632_s0 + $0x1d0] sm:$0xff]  ;;  %v41_v55 = vld [vmem:[%s1632_s0 + $0xd8] sm:$0xff]  ;;  %v42_v57 = vld [vmem:[%s1632_s0 + $0xe0] sm:$0xff] }
  0x14   :  { %v73_v56 = vld [vmem:[%s1632_s0 + $0x1d8] sm:$0xff]  ;;  %v74_v58 = vld [vmem:[%s1632_s0 + $0x1e0] sm:$0xff]  ;;  %v43_v59 = vld [vmem:[%s1632_s0 + $0xe8] sm:$0xff] }
  0x15   :  { %942 = vmatmul.mubr.msk.f32.gmra.mrb[8].mxu0 %vm86_vm0, %v23_v19  ;;  %990 = vmatmul.mubr.msk.f32.gmra.mrb[8].mxu1 %vm86_vm0, %v55_v20  ;;  %v75_v60 = vld [vmem:[%s1632_s0 + $0x1e8] sm:$0xff]  ;;  %v44_v61 = vld [vmem:[%s1632_s0 + $0xf0] sm:$0xff]  ;;  %v45_v63 = vld [vmem:[%s1632_s0 + $0xf8] sm:$0xff] }
  0x16   :  { %944 = vmatprep.mubr.msk.f32.mxu0 %vm86_vm0, %v24_v21  ;;  %992 = vmatprep.mubr.msk.f32.mxu1 %vm86_vm0, %v56_v22  ;;  %v76_v62 = vld [vmem:[%s1632_s0 + $0x1f0] sm:$0xff]  ;;  %v77_v0 = vld [vmem:[%s1632_s0 + $0x1f8] sm:$0xff]  ;;  %v1309_v1 = vld [vmem:[%s1633_s2] ss:$0 sm:$0xff] }
  0x19   :  { %945 = vmatmul.mubr.msk.f32.gmra.mrb[10].mxu0 %vm86_vm0, %v25_v23  ;;  %993 = vmatmul.mubr.msk.f32.gmra.mrb[10].mxu1 %vm86_vm0, %v57_v24 }
  0x1a   :  { %947 = vmatprep.mubr.msk.f32.mxu0 %vm86_vm0, %v26_v25  ;;  %995 = vmatprep.mubr.msk.f32.mxu1 %vm86_vm0, %v58_v26 }
  0x1d   :  { %948 = vmatmul.mubr.msk.f32.gmra.mrb[12].mxu0 %vm86_vm0, %v27_v27  ;;  %996 = vmatmul.mubr.msk.f32.gmra.mrb[12].mxu1 %vm86_vm0, %v59_v28 }
  0x1e   :  { %950 = vmatprep.mubr.msk.f32.mxu0 %vm86_vm0, %v28_v29  ;;  %998 = vmatprep.mubr.msk.f32.mxu1 %vm86_vm0, %v60_v30 }
  0x21   :  { %951 = vmatmul.mubr.msk.f32.gmra.mrb[14].mxu0 %vm86_vm0, %v29_v31  ;;  %999 = vmatmul.mubr.msk.f32.gmra.mrb[14].mxu1 %vm86_vm0, %v61_v32 }
  0x22   :  { %953 = vmatprep.mubr.msk.f32.mxu0 %vm86_vm0, %v30_v33  ;;  %1001 = vmatprep.mubr.msk.f32.mxu1 %vm86_vm0, %v62_v34 }
  0x25   :  { %954 = vmatmul.mubr.msk.f32.gmra.mrb[16].mxu0 %vm86_vm0, %v31_v35  ;;  %1002 = vmatmul.mubr.msk.f32.gmra.mrb[16].mxu1 %vm86_vm0, %v63_v36 }
  0x26   :  { %956 = vmatprep.mubr.msk.f32.mxu0 %vm86_vm0, %v32_v37  ;;  %1004 = vmatprep.mubr.msk.f32.mxu1 %vm86_vm0, %v64_v38 }
  0x29   :  { %957 = vmatmul.mubr.msk.f32.gmra.mrb[18].mxu0 %vm86_vm0, %v33_v39  ;;  %1005 = vmatmul.mubr.msk.f32.gmra.mrb[18].mxu1 %vm86_vm0, %v65_v40 }
  0x2a   :  { %959 = vmatprep.mubr.msk.f32.mxu0 %vm86_vm0, %v34_v41  ;;  %1007 = vmatprep.mubr.msk.f32.mxu1 %vm86_vm0, %v66_v42 }
  0x2d   :  { %960 = vmatmul.mubr.msk.f32.gmra.mrb[20].mxu0 %vm86_vm0, %v35_v43  ;;  %1008 = vmatmul.mubr.msk.f32.gmra.mrb[20].mxu1 %vm86_vm0, %v67_v44 }
  0x2e   :  { %962 = vmatprep.mubr.msk.f32.mxu0 %vm86_vm0, %v36_v45  ;;  %1010 = vmatprep.mubr.msk.f32.mxu1 %vm86_vm0, %v68_v46 }
  0x31   :  { %963 = vmatmul.mubr.msk.f32.gmra.mrb[22].mxu0 %vm86_vm0, %v37_v47  ;;  %1011 = vmatmul.mubr.msk.f32.gmra.mrb[22].mxu1 %vm86_vm0, %v69_v48 }
  0x32   :  { %965 = vmatprep.mubr.msk.f32.mxu0 %vm86_vm0, %v38_v49  ;;  %1013 = vmatprep.mubr.msk.f32.mxu1 %vm86_vm0, %v70_v50 }
  0x35   :  { %966 = vmatmul.mubr.msk.f32.gmra.mrb[24].mxu0 %vm86_vm0, %v39_v51  ;;  %1014 = vmatmul.mubr.msk.f32.gmra.mrb[24].mxu1 %vm86_vm0, %v71_v52 }
  0x36   :  { %968 = vmatprep.mubr.msk.f32.mxu0 %vm86_vm0, %v40_v53  ;;  %1016 = vmatprep.mubr.msk.f32.mxu1 %vm86_vm0, %v72_v54 }
  0x39   :  { %969 = vmatmul.mubr.msk.f32.gmra.mrb[26].mxu0 %vm86_vm0, %v41_v55  ;;  %1017 = vmatmul.mubr.msk.f32.gmra.mrb[26].mxu1 %vm86_vm0, %v73_v56 }
  0x3a   :  { %971 = vmatprep.mubr.msk.f32.mxu0 %vm86_vm0, %v42_v57  ;;  %1019 = vmatprep.mubr.msk.f32.mxu1 %vm86_vm0, %v74_v58 }
  0x3d   :  { %972 = vmatmul.mubr.msk.f32.gmra.mrb[28].mxu0 %vm86_vm0, %v43_v59  ;;  %1020 = vmatmul.mubr.msk.f32.gmra.mrb[28].mxu1 %vm86_vm0, %v75_v60 }
  0x3e   :  { %974 = vmatprep.mubr.msk.f32.mxu0 %vm86_vm0, %v44_v61  ;;  %1022 = vmatprep.mubr.msk.f32.mxu1 %vm86_vm0, %v76_v62 }
  0x41   :  { %975 = vmatmul.mubr.msk.f32.gmra.mrb[30].mxu0 %vm86_vm0, %v45_v63  ;;  %1023 = vmatmul.mubr.msk.f32.gmra.mrb[30].mxu1 %vm86_vm0, %v77_v0 }
  0xd8   :  { %v931_v2 = vpop.f32.mrb[0].mxu0  ;;  %v979_v3 = vpop.f32.mrb[0].mxu1 }
  0xd9   :  { %v351_v4 = vadd.f32 %v931_v2, %v1309_v1  ;;  %v511_v5 = vadd.f32 %v979_v3, %v1309_v1  ;;  %v345_v6 = vpop.f32.mrb[1].mxu0  ;;  %v505_v7 = vpop.f32.mrb[1].mxu1 }
  0xda   :  { %v346_v8 = vadd.f32 %v1309_v1, %v345_v6  ;;  %v506_v9 = vadd.f32 %v1309_v1, %v505_v7 }
  0xdb   :  { %v665_v10 = vmax.f32 %v351_v4, 0.0  ;;  %v697_v11 = vmax.f32 %v511_v5, 0.0 }
  0xdc   :  { %v664_v12 = vmax.f32 %v346_v8, 0.0  ;;  %v696_v13 = vmax.f32 %v506_v9, 0.0  ;;  %v934_v14 = vpop.f32.mrb[2].mxu0  ;;  %v982_v15 = vpop.f32.mrb[2].mxu1 }
  0xdd   :  { %730 = vst.msk [vmem:[%s1634_s3 + $0x8] sm:$0xff] %vm728_vm1, %v665_v10  ;;  %762 = vst.msk [vmem:[%s1634_s3 + $0x108] sm:$0xff] %vm728_vm1, %v697_v11  ;;  %v361_v16 = vadd.f32 %v934_v14, %v1309_v1  ;;  %v521_v17 = vadd.f32 %v982_v15, %v1309_v1  ;;  %v355_v18 = vpop.f32.mrb[3].mxu0  ;;  %v515_v19 = vpop.f32.mrb[3].mxu1 }
  0xde   :  { %729 = vst.msk [vmem:[%s1634_s3] sm:$0xff] %vm728_vm1, %v664_v12  ;;  %761 = vst.msk [vmem:[%s1634_s3 + $0x100] sm:$0xff] %vm728_vm1, %v696_v13  ;;  %v356_v20 = vadd.f32 %v1309_v1, %v355_v18  ;;  %v516_v21 = vadd.f32 %v1309_v1, %v515_v19 }
  0xdf   :  { %v667_v22 = vmax.f32 %v361_v16, 0.0  ;;  %v699_v23 = vmax.f32 %v521_v17, 0.0 }
  0xe0   :  { %v666_v24 = vmax.f32 %v356_v20, 0.0  ;;  %v698_v25 = vmax.f32 %v516_v21, 0.0  ;;  %v937_v26 = vpop.f32.mrb[4].mxu0  ;;  %v985_v27 = vpop.f32.mrb[4].mxu1 }
  0xe1   :  { %732 = vst.msk [vmem:[%s1634_s3 + $0x18] sm:$0xff] %vm728_vm1, %v667_v22  ;;  %764 = vst.msk [vmem:[%s1634_s3 + $0x118] sm:$0xff] %vm728_vm1, %v699_v23  ;;  %v371_v28 = vadd.f32 %v937_v26, %v1309_v1  ;;  %v531_v29 = vadd.f32 %v985_v27, %v1309_v1  ;;  %v365_v30 = vpop.f32.mrb[5].mxu0  ;;  %v525_v31 = vpop.f32.mrb[5].mxu1 }
  0xe2   :  { %731 = vst.msk [vmem:[%s1634_s3 + $0x10] sm:$0xff] %vm728_vm1, %v666_v24  ;;  %763 = vst.msk [vmem:[%s1634_s3 + $0x110] sm:$0xff] %vm728_vm1, %v698_v25  ;;  %v366_v32 = vadd.f32 %v1309_v1, %v365_v30  ;;  %v526_v33 = vadd.f32 %v1309_v1, %v525_v31 }
  0xe3   :  { %v669_v34 = vmax.f32 %v371_v28, 0.0  ;;  %v701_v35 = vmax.f32 %v531_v29, 0.0 }
  0xe4   :  { %v668_v36 = vmax.f32 %v366_v32, 0.0  ;;  %v700_v37 = vmax.f32 %v526_v33, 0.0  ;;  %v940_v38 = vpop.f32.mrb[6].mxu0  ;;  %v988_v39 = vpop.f32.mrb[6].mxu1 }
  0xe5   :  { %734 = vst.msk [vmem:[%s1634_s3 + $0x28] sm:$0xff] %vm728_vm1, %v669_v34  ;;  %766 = vst.msk [vmem:[%s1634_s3 + $0x128] sm:$0xff] %vm728_vm1, %v701_v35  ;;  %v381_v40 = vadd.f32 %v940_v38, %v1309_v1  ;;  %v541_v41 = vadd.f32 %v988_v39, %v1309_v1  ;;  %v375_v42 = vpop.f32.mrb[7].mxu0  ;;  %v535_v43 = vpop.f32.mrb[7].mxu1 }
  0xe6   :  { %733 = vst.msk [vmem:[%s1634_s3 + $0x20] sm:$0xff] %vm728_vm1, %v668_v36  ;;  %765 = vst.msk [vmem:[%s1634_s3 + $0x120] sm:$0xff] %vm728_vm1, %v700_v37  ;;  %v376_v44 = vadd.f32 %v1309_v1, %v375_v42  ;;  %v536_v45 = vadd.f32 %v1309_v1, %v535_v43 }
  0xe7   :  { %v671_v46 = vmax.f32 %v381_v40, 0.0  ;;  %v703_v47 = vmax.f32 %v541_v41, 0.0 }
  0xe8   :  { %v670_v48 = vmax.f32 %v376_v44, 0.0  ;;  %v702_v49 = vmax.f32 %v536_v45, 0.0  ;;  %v943_v50 = vpop.f32.mrb[8].mxu0  ;;  %v991_v51 = vpop.f32.mrb[8].mxu1 }
  0xe9   :  { %736 = vst.msk [vmem:[%s1634_s3 + $0x38] sm:$0xff] %vm728_vm1, %v671_v46  ;;  %768 = vst.msk [vmem:[%s1634_s3 + $0x138] sm:$0xff] %vm728_vm1, %v703_v47  ;;  %v391_v52 = vadd.f32 %v943_v50, %v1309_v1  ;;  %v551_v53 = vadd.f32 %v991_v51, %v1309_v1  ;;  %v385_v54 = vpop.f32.mrb[9].mxu0  ;;  %v545_v55 = vpop.f32.mrb[9].mxu1 }
  0xea   :  { %735 = vst.msk [vmem:[%s1634_s3 + $0x30] sm:$0xff] %vm728_vm1, %v670_v48  ;;  %767 = vst.msk [vmem:[%s1634_s3 + $0x130] sm:$0xff] %vm728_vm1, %v702_v49  ;;  %v386_v56 = vadd.f32 %v1309_v1, %v385_v54  ;;  %v546_v57 = vadd.f32 %v1309_v1, %v545_v55 }
  0xeb   :  { %v673_v58 = vmax.f32 %v391_v52, 0.0  ;;  %v705_v59 = vmax.f32 %v551_v53, 0.0 }
  0xec   :  { %v672_v60 = vmax.f32 %v386_v56, 0.0  ;;  %v704_v61 = vmax.f32 %v546_v57, 0.0  ;;  %v946_v62 = vpop.f32.mrb[10].mxu0  ;;  %v994_v63 = vpop.f32.mrb[10].mxu1 }
  0xed   :  { %738 = vst.msk [vmem:[%s1634_s3 + $0x48] sm:$0xff] %vm728_vm1, %v673_v58  ;;  %770 = vst.msk [vmem:[%s1634_s3 + $0x148] sm:$0xff] %vm728_vm1, %v705_v59  ;;  %v401_v0 = vadd.f32 %v946_v62, %v1309_v1  ;;  %v561_v2 = vadd.f32 %v994_v63, %v1309_v1  ;;  %v395_v3 = vpop.f32.mrb[11].mxu0  ;;  %v555_v4 = vpop.f32.mrb[11].mxu1 }
  0xee   :  { %737 = vst.msk [vmem:[%s1634_s3 + $0x40] sm:$0xff] %vm728_vm1, %v672_v60  ;;  %769 = vst.msk [vmem:[%s1634_s3 + $0x140] sm:$0xff] %vm728_vm1, %v704_v61  ;;  %v396_v5 = vadd.f32 %v1309_v1, %v395_v3  ;;  %v556_v6 = vadd.f32 %v1309_v1, %v555_v4 }
  0xef   :  { %v675_v7 = vmax.f32 %v401_v0, 0.0  ;;  %v707_v8 = vmax.f32 %v561_v2, 0.0 }
  0xf0   :  { %v674_v9 = vmax.f32 %v396_v5, 0.0  ;;  %v706_v10 = vmax.f32 %v556_v6, 0.0  ;;  %v949_v11 = vpop.f32.mrb[12].mxu0  ;;  %v997_v12 = vpop.f32.mrb[12].mxu1 }
  0xf1   :  { %740 = vst.msk [vmem:[%s1634_s3 + $0x58] sm:$0xff] %vm728_vm1, %v675_v7  ;;  %772 = vst.msk [vmem:[%s1634_s3 + $0x158] sm:$0xff] %vm728_vm1, %v707_v8  ;;  %v411_v13 = vadd.f32 %v949_v11, %v1309_v1  ;;  %v571_v14 = vadd.f32 %v997_v12, %v1309_v1  ;;  %v405_v15 = vpop.f32.mrb[13].mxu0  ;;  %v565_v16 = vpop.f32.mrb[13].mxu1 }
  0xf2   :  { %739 = vst.msk [vmem:[%s1634_s3 + $0x50] sm:$0xff] %vm728_vm1, %v674_v9  ;;  %771 = vst.msk [vmem:[%s1634_s3 + $0x150] sm:$0xff] %vm728_vm1, %v706_v10  ;;  %v406_v17 = vadd.f32 %v1309_v1, %v405_v15  ;;  %v566_v18 = vadd.f32 %v1309_v1, %v565_v16 }
  0xf3   :  { %v677_v19 = vmax.f32 %v411_v13, 0.0  ;;  %v709_v20 = vmax.f32 %v571_v14, 0.0 }
  0xf4   :  { %v676_v21 = vmax.f32 %v406_v17, 0.0  ;;  %v708_v22 = vmax.f32 %v566_v18, 0.0  ;;  %v952_v23 = vpop.f32.mrb[14].mxu0  ;;  %v1000_v24 = vpop.f32.mrb[14].mxu1 }
  0xf5   :  { %742 = vst.msk [vmem:[%s1634_s3 + $0x68] sm:$0xff] %vm728_vm1, %v677_v19  ;;  %774 = vst.msk [vmem:[%s1634_s3 + $0x168] sm:$0xff] %vm728_vm1, %v709_v20  ;;  %v421_v25 = vadd.f32 %v952_v23, %v1309_v1  ;;  %v581_v26 = vadd.f32 %v1000_v24, %v1309_v1  ;;  %v415_v27 = vpop.f32.mrb[15].mxu0  ;;  %v575_v28 = vpop.f32.mrb[15].mxu1 }
  0xf6   :  { %741 = vst.msk [vmem:[%s1634_s3 + $0x60] sm:$0xff] %vm728_vm1, %v676_v21  ;;  %773 = vst.msk [vmem:[%s1634_s3 + $0x160] sm:$0xff] %vm728_vm1, %v708_v22  ;;  %v416_v29 = vadd.f32 %v1309_v1, %v415_v27  ;;  %v576_v30 = vadd.f32 %v1309_v1, %v575_v28 }
  0xf7   :  { %v679_v31 = vmax.f32 %v421_v25, 0.0  ;;  %v711_v32 = vmax.f32 %v581_v26, 0.0 }
  0xf8   :  { %v678_v33 = vmax.f32 %v416_v29, 0.0  ;;  %v710_v34 = vmax.f32 %v576_v30, 0.0  ;;  %v955_v35 = vpop.f32.mrb[16].mxu0  ;;  %v1003_v36 = vpop.f32.mrb[16].mxu1 }
  0xf9   :  { %744 = vst.msk [vmem:[%s1634_s3 + $0x78] sm:$0xff] %vm728_vm1, %v679_v31  ;;  %776 = vst.msk [vmem:[%s1634_s3 + $0x178] sm:$0xff] %vm728_vm1, %v711_v32  ;;  %v431_v37 = vadd.f32 %v955_v35, %v1309_v1  ;;  %v591_v38 = vadd.f32 %v1003_v36, %v1309_v1  ;;  %v425_v39 = vpop.f32.mrb[17].mxu0  ;;  %v585_v40 = vpop.f32.mrb[17].mxu1 }
  0xfa   :  { %743 = vst.msk [vmem:[%s1634_s3 + $0x70] sm:$0xff] %vm728_vm1, %v678_v33  ;;  %775 = vst.msk [vmem:[%s1634_s3 + $0x170] sm:$0xff] %vm728_vm1, %v710_v34  ;;  %v426_v41 = vadd.f32 %v1309_v1, %v425_v39  ;;  %v586_v42 = vadd.f32 %v1309_v1, %v585_v40 }
  0xfb   :  { %v681_v43 = vmax.f32 %v431_v37, 0.0  ;;  %v713_v44 = vmax.f32 %v591_v38, 0.0 }
  0xfc   :  { %v680_v45 = vmax.f32 %v426_v41, 0.0  ;;  %v712_v46 = vmax.f32 %v586_v42, 0.0  ;;  %v958_v47 = vpop.f32.mrb[18].mxu0  ;;  %v1006_v48 = vpop.f32.mrb[18].mxu1 }
  0xfd   :  { %746 = vst.msk [vmem:[%s1634_s3 + $0x88] sm:$0xff] %vm728_vm1, %v681_v43  ;;  %778 = vst.msk [vmem:[%s1634_s3 + $0x188] sm:$0xff] %vm728_vm1, %v713_v44  ;;  %v441_v49 = vadd.f32 %v958_v47, %v1309_v1  ;;  %v601_v50 = vadd.f32 %v1006_v48, %v1309_v1  ;;  %v435_v51 = vpop.f32.mrb[19].mxu0  ;;  %v595_v52 = vpop.f32.mrb[19].mxu1 }
  0xfe   :  { %745 = vst.msk [vmem:[%s1634_s3 + $0x80] sm:$0xff] %vm728_vm1, %v680_v45  ;;  %777 = vst.msk [vmem:[%s1634_s3 + $0x180] sm:$0xff] %vm728_vm1, %v712_v46  ;;  %v436_v53 = vadd.f32 %v1309_v1, %v435_v51  ;;  %v596_v54 = vadd.f32 %v1309_v1, %v595_v52 }
  0xff   :  { %v683_v55 = vmax.f32 %v441_v49, 0.0  ;;  %v715_v56 = vmax.f32 %v601_v50, 0.0 }
 0x100   :  { %v682_v57 = vmax.f32 %v436_v53, 0.0  ;;  %v714_v58 = vmax.f32 %v596_v54, 0.0  ;;  %v961_v59 = vpop.f32.mrb[20].mxu0  ;;  %v1009_v60 = vpop.f32.mrb[20].mxu1 }
 0x101   :  { %748 = vst.msk [vmem:[%s1634_s3 + $0x98] sm:$0xff] %vm728_vm1, %v683_v55  ;;  %780 = vst.msk [vmem:[%s1634_s3 + $0x198] sm:$0xff] %vm728_vm1, %v715_v56  ;;  %v451_v61 = vadd.f32 %v961_v59, %v1309_v1  ;;  %v611_v62 = vadd.f32 %v1009_v60, %v1309_v1  ;;  %v445_v63 = vpop.f32.mrb[21].mxu0  ;;  %v605_v0 = vpop.f32.mrb[21].mxu1 }
 0x102   :  { %747 = vst.msk [vmem:[%s1634_s3 + $0x90] sm:$0xff] %vm728_vm1, %v682_v57  ;;  %779 = vst.msk [vmem:[%s1634_s3 + $0x190] sm:$0xff] %vm728_vm1, %v714_v58  ;;  %v446_v2 = vadd.f32 %v1309_v1, %v445_v63  ;;  %v606_v3 = vadd.f32 %v1309_v1, %v605_v0 }
 0x103   :  { %v685_v4 = vmax.f32 %v451_v61, 0.0  ;;  %v717_v5 = vmax.f32 %v611_v62, 0.0 }
 0x104   :  { %v684_v6 = vmax.f32 %v446_v2, 0.0  ;;  %v716_v7 = vmax.f32 %v606_v3, 0.0  ;;  %v964_v8 = vpop.f32.mrb[22].mxu0  ;;  %v1012_v9 = vpop.f32.mrb[22].mxu1 }
 0x105   :  { %750 = vst.msk [vmem:[%s1634_s3 + $0xa8] sm:$0xff] %vm728_vm1, %v685_v4  ;;  %782 = vst.msk [vmem:[%s1634_s3 + $0x1a8] sm:$0xff] %vm728_vm1, %v717_v5  ;;  %v461_v10 = vadd.f32 %v964_v8, %v1309_v1  ;;  %v621_v11 = vadd.f32 %v1012_v9, %v1309_v1  ;;  %v455_v12 = vpop.f32.mrb[23].mxu0  ;;  %v615_v13 = vpop.f32.mrb[23].mxu1 }
 0x106   :  { %749 = vst.msk [vmem:[%s1634_s3 + $0xa0] sm:$0xff] %vm728_vm1, %v684_v6  ;;  %781 = vst.msk [vmem:[%s1634_s3 + $0x1a0] sm:$0xff] %vm728_vm1, %v716_v7  ;;  %v456_v14 = vadd.f32 %v1309_v1, %v455_v12  ;;  %v616_v15 = vadd.f32 %v1309_v1, %v615_v13 }
 0x107   :  { %v687_v16 = vmax.f32 %v461_v10, 0.0  ;;  %v719_v17 = vmax.f32 %v621_v11, 0.0 }
 0x108   :  { %v686_v18 = vmax.f32 %v456_v14, 0.0  ;;  %v718_v19 = vmax.f32 %v616_v15, 0.0  ;;  %v967_v20 = vpop.f32.mrb[24].mxu0  ;;  %v1015_v21 = vpop.f32.mrb[24].mxu1 }
 0x109   :  { %752 = vst.msk [vmem:[%s1634_s3 + $0xb8] sm:$0xff] %vm728_vm1, %v687_v16  ;;  %784 = vst.msk [vmem:[%s1634_s3 + $0x1b8] sm:$0xff] %vm728_vm1, %v719_v17  ;;  %v471_v22 = vadd.f32 %v967_v20, %v1309_v1  ;;  %v631_v23 = vadd.f32 %v1015_v21, %v1309_v1  ;;  %v465_v24 = vpop.f32.mrb[25].mxu0  ;;  %v625_v25 = vpop.f32.mrb[25].mxu1 }
 0x10a   :  { %751 = vst.msk [vmem:[%s1634_s3 + $0xb0] sm:$0xff] %vm728_vm1, %v686_v18  ;;  %783 = vst.msk [vmem:[%s1634_s3 + $0x1b0] sm:$0xff] %vm728_vm1, %v718_v19  ;;  %v466_v26 = vadd.f32 %v1309_v1, %v465_v24  ;;  %v626_v27 = vadd.f32 %v1309_v1, %v625_v25 }
 0x10b   :  { %v689_v28 = vmax.f32 %v471_v22, 0.0  ;;  %v721_v29 = vmax.f32 %v631_v23, 0.0 }
 0x10c   :  { %v688_v30 = vmax.f32 %v466_v26, 0.0  ;;  %v720_v31 = vmax.f32 %v626_v27, 0.0  ;;  %v970_v32 = vpop.f32.mrb[26].mxu0  ;;  %v1018_v33 = vpop.f32.mrb[26].mxu1 }
 0x10d   :  { %754 = vst.msk [vmem:[%s1634_s3 + $0xc8] sm:$0xff] %vm728_vm1, %v689_v28  ;;  %786 = vst.msk [vmem:[%s1634_s3 + $0x1c8] sm:$0xff] %vm728_vm1, %v721_v29  ;;  %v481_v34 = vadd.f32 %v970_v32, %v1309_v1  ;;  %v641_v35 = vadd.f32 %v1018_v33, %v1309_v1  ;;  %v475_v36 = vpop.f32.mrb[27].mxu0  ;;  %v635_v37 = vpop.f32.mrb[27].mxu1 }
 0x10e   :  { %753 = vst.msk [vmem:[%s1634_s3 + $0xc0] sm:$0xff] %vm728_vm1, %v688_v30  ;;  %785 = vst.msk [vmem:[%s1634_s3 + $0x1c0] sm:$0xff] %vm728_vm1, %v720_v31  ;;  %v476_v38 = vadd.f32 %v1309_v1, %v475_v36  ;;  %v636_v39 = vadd.f32 %v1309_v1, %v635_v37 }
 0x10f   :  { %v691_v40 = vmax.f32 %v481_v34, 0.0  ;;  %v723_v41 = vmax.f32 %v641_v35, 0.0 }
 0x110   :  { %v690_v42 = vmax.f32 %v476_v38, 0.0  ;;  %v722_v43 = vmax.f32 %v636_v39, 0.0  ;;  %v973_v44 = vpop.f32.mrb[28].mxu0  ;;  %v1021_v45 = vpop.f32.mrb[28].mxu1 }
 0x111   :  { %756 = vst.msk [vmem:[%s1634_s3 + $0xd8] sm:$0xff] %vm728_vm1, %v691_v40  ;;  %788 = vst.msk [vmem:[%s1634_s3 + $0x1d8] sm:$0xff] %vm728_vm1, %v723_v41  ;;  %v491_v46 = vadd.f32 %v973_v44, %v1309_v1  ;;  %v651_v47 = vadd.f32 %v1021_v45, %v1309_v1  ;;  %v485_v48 = vpop.f32.mrb[29].mxu0  ;;  %v645_v49 = vpop.f32.mrb[29].mxu1 }
 0x112   :  { %755 = vst.msk [vmem:[%s1634_s3 + $0xd0] sm:$0xff] %vm728_vm1, %v690_v42  ;;  %787 = vst.msk [vmem:[%s1634_s3 + $0x1d0] sm:$0xff] %vm728_vm1, %v722_v43  ;;  %v486_v50 = vadd.f32 %v1309_v1, %v485_v48  ;;  %v646_v51 = vadd.f32 %v1309_v1, %v645_v49 }
 0x113   :  { %v693_v52 = vmax.f32 %v491_v46, 0.0  ;;  %v725_v53 = vmax.f32 %v651_v47, 0.0 }
 0x114   :  { %v692_v54 = vmax.f32 %v486_v50, 0.0  ;;  %v724_v55 = vmax.f32 %v646_v51, 0.0  ;;  %v976_v56 = vpop.f32.mrb[30].mxu0  ;;  %v1024_v57 = vpop.f32.mrb[30].mxu1 }
 0x115   :  { %758 = vst.msk [vmem:[%s1634_s3 + $0xe8] sm:$0xff] %vm728_vm1, %v693_v52  ;;  %790 = vst.msk [vmem:[%s1634_s3 + $0x1e8] sm:$0xff] %vm728_vm1, %v725_v53  ;;  %v501_v58 = vadd.f32 %v976_v56, %v1309_v1  ;;  %v661_v59 = vadd.f32 %v1024_v57, %v1309_v1  ;;  %v495_v60 = vpop.f32.mrb[31].mxu0  ;;  %v655_v61 = vpop.f32.mrb[31].mxu1 }
 0x116   :  { %757 = vst.msk [vmem:[%s1634_s3 + $0xe0] sm:$0xff] %vm728_vm1, %v692_v54  ;;  %789 = vst.msk [vmem:[%s1634_s3 + $0x1e0] sm:$0xff] %vm728_vm1, %v724_v55  ;;  %v496_v62 = vadd.f32 %v1309_v1, %v495_v60  ;;  %v656_v63 = vadd.f32 %v1309_v1, %v655_v61 }
 0x117   :  { %v695_v0 = vmax.f32 %v501_v58, 0.0  ;;  %v727_v2 = vmax.f32 %v661_v59, 0.0 }
 0x118   :  { %v694_v3 = vmax.f32 %v496_v62, 0.0  ;;  %v726_v4 = vmax.f32 %v656_v63, 0.0 }
 0x119   :  { %760 = vst.msk [vmem:[%s1634_s3 + $0xf8] sm:$0xff] %vm728_vm1, %v695_v0  ;;  %792 = vst.msk [vmem:[%s1634_s3 + $0x1f8] sm:$0xff] %vm728_vm1, %v727_v2 }
 0x11a   :  { %759 = vst.msk [vmem:[%s1634_s3 + $0xf0] sm:$0xff] %vm728_vm1, %v694_v3  ;;  %791 = vst.msk [vmem:[%s1634_s3 + $0x1f0] sm:$0xff] %vm728_vm1, %v726_v4 }

// kernel: fsa_forward.10
= control target key start
LH: loop header
LB: loop body
LE: loop exit
PB: predicated region body
PF: predicated region fallthrough
CT: control target
= control target key end

     0   :  { %s1067_s24 = smov 0   ;;  %s1069_s25 = smov 0   ;;  %s1439_s0 = inlined_call_operand.vmem [shape: f32[2,256,16], index: 0, kind: input, shape index: {}]   ;;  %s1440_s1 = inlined_call_operand.vmem [shape: f32[2,1,16], index: 1, kind: input, shape index: {}]   ;;  %s1441_s2 = inlined_call_operand.vmem [shape: f32[16,4], index: 2, kind: input, shape index: {}]   ;;  %s1442_s3 = inlined_call_operand.vmem [shape: f32[1,4], index: 3, kind: input, shape index: {}]   ;;  %s1443_s4 = inlined_call_operand.vmem [shape: f32[4,16], index: 4, kind: input, shape index: {}]   ;;  %s1444_s5 = inlined_call_operand.vmem [shape: f32[1,16], index: 5, kind: input, shape index: {}]   ;;  %s1445_s6 = inlined_call_operand.vmem [shape: f32[2,256,16], index: 6, kind: output, shape index: {0}]   ;;  %s1446_s7 = inlined_call_operand.vmem [shape: f32[2,256,1], index: 7, kind: output, shape index: {1}]  }
   0x1   :  { %s1071_s26 = smov 0  }
   0x2 LB: > { %s30_s27 = sadd.s32 1, %s1018_s25  ;;  %p933_p0 = scmp.ge.s32.totalorder %s1022_s26, 1  ;;  %s1022_s26 = sphi %s1071_s26, %s18_s26   ;;  %s1018_s25 = sphi %s1069_s25, %s1448_s25   ;;  %s1014_s24 = sphi %s1067_s24, %s1447_s24  }
   0x3   : > { %p32_p1 = scmp.ge.s32.totalorder %s30_s27, 2  ;;  %p271_p2 = scmp.lt.s32.totalorder %s1022_s26, 3 }
   0x5   : > { %s1450_s27 = smov (%p32_p1, %s30_s27), 0  ;;  %p272_p3 = pnand %p933_p0, %p271_p2 }
   0x6   : > { %v357_v0 = vld [vmem:[%s1441_s2] sm:$0xff] (!%p272_p3)  ;;  %v358_v1 = vld [vmem:[%s1441_s2 + $0x8] sm:$0xff] (!%p272_p3)  ;;  %p324_p4 = scmp.lt.s32.totalorder (!%p272_p3), %s1014_s24, 1  ;;  %v1024_v2 = vmov (!%p272_p3), 0.0|0.0   ;;  %vm1025_vm0 = vmmov (!%p272_p3), 0   ;;  %v1026_v4 = vmov (!%p272_p3), 0.0   ;;  %v553_v19 = vlaneseq (!%p272_p3) }
   0x7   : > { %275 = sbr.rel (%p272_p3) target bundleno = 683 (0x2ab), region = 44  ;;  %966 = vmatprep.subr.bf16.mxu0 (!%p272_p3), %v1024_v2  ;;  %v967_v3 = vpack.c.bf16 (!%p272_p3), %v358_v1, %v357_v0  ;;  %958 = vmatprep.mubr.msk.f32.mxu0 (!%p272_p3), %vm1025_vm0, %v1026_v4  ;;  %vm360_vm1 = vcmask (!%p272_p3), 130048   ;;  %v435_v6 = vld [vmem:[%s1443_s4] sm:$0xf] (!%p272_p3)  ;;  %vm441_vm2 = vcmask (!%p272_p3), 1043456   ;;  %vm437_vm3 = vcmask (!%p272_p3), 31744  }
   0x8   : > { %961 = vmatprep.subr.mxu1 (!%p272_p3), %v1026_v4  ;;  %963 = vmatprep.mubr.msk.f32.mxu1 (!%p272_p3), %vm1025_vm0, %v1026_v4  ;;  %v359_v7 = vld [vmem:[%s1442_s3] sm:$0x1] (!%p272_p3)  ;;  %v554_v20 = vshrl.u32 (!%p272_p3), %v553_v19, 7  ;;  %vm750_vm4 = vcmask (!%p272_p3), 7168  }
   0x9   : > { %968 = vmatpush3.bf16.msra.mxu0 (!%p272_p3), %v967_v3  ;;  %962 = vmatpush3.msk.msra.mxu1 (!%p272_p3), %vm441_vm2, %v435_v6  ;;  %v436_v12 = vld [vmem:[%s1444_s5] sm:$0x1] (!%p272_p3) }
   0xa   : > { %v555_v21 = vsub.s32 (!%p272_p3), 0, %v554_v20 }
   0xe   : > { %s1452_s24 = smov (!%p324_p4, %s1014_s24), 1 }
   0xf   : > { %s335_s11 = scalar_lea.vmem %s1440_s1, %s1452_s24  ;;  %s1104_s18 = sshll.u32 %s1452_s24, 8 }
  0x10   : > { %v356_v5 = vld [vmem:[%s335_s11] sm:$0x1]  ;;  %s1110_s21 = scalar_lea.vmem %s1439_s0, %s1104_s18  ;;  %s1126_s24 = scalar_lea.vmem %s1445_s6, %s1104_s18 }
  0x11   : > { %959 = vmatmul.mubr.msk.f32.vlgmr.msra.gmra.mrb[0].mxu0 %vm360_vm1, %v356_v5  ;;  %v523_v22 = vld [vmem:[%s1110_s21 + $0x10] sm:$0xff]  ;;  %v521_v23 = vld [vmem:[%s1110_s21] sm:$0xff]  ;;  %v524_v25 = vld [vmem:[%s1110_s21 + $0x18] sm:$0xff]  ;;  %s1364_s30 = scalar_lea.vmem %s1446_s7, %s1104_s18 }
  0x12   : > { %v522_v26 = vld [vmem:[%s1110_s21 + $0x8] sm:$0xff]  ;;  %v525_v29 = vld [vmem:[%s1110_s21 + $0x20] sm:$0xff]  ;;  %v528_v30 = vld [vmem:[%s1110_s21 + $0x38] sm:$0xff] }
  0x13   : > { %v526_v27 = vld [vmem:[%s1110_s21 + $0x28] sm:$0xff]  ;;  %v527_v31 = vld [vmem:[%s1110_s21 + $0x30] sm:$0xff]  ;;  %v529_v37 = vld [vmem:[%s1110_s21 + $0x40] sm:$0xff] }
  0x14   : > { %v530_v36 = vld [vmem:[%s1110_s21 + $0x48] sm:$0xff]  ;;  %v532_v42 = vld [vmem:[%s1110_s21 + $0x58] sm:$0xff]  ;;  %v531_v43 = vld [vmem:[%s1110_s21 + $0x50] sm:$0xff] }
  0x15   : > { %v534_v44 = vld [vmem:[%s1110_s21 + $0x68] sm:$0xff]  ;;  %v533_v47 = vld [vmem:[%s1110_s21 + $0x60] sm:$0xff]  ;;  %v536_v48 = vld [vmem:[%s1110_s21 + $0x78] sm:$0xff] }
  0x16   : > { %v535_v49 = vld [vmem:[%s1110_s21 + $0x70] sm:$0xff]  ;;  %v538_v54 = vld [vmem:[%s1110_s21 + $0x88] sm:$0xff]  ;;  %v537_v55 = vld [vmem:[%s1110_s21 + $0x80] sm:$0xff] }
  0x17   : > { %v540_v60 = vld [vmem:[%s1110_s21 + $0x98] sm:$0xff]  ;;  %v539_v61 = vld [vmem:[%s1110_s21 + $0x90] sm:$0xff]  ;;  %v542_v62 = vld [vmem:[%s1110_s21 + $0xa8] sm:$0xff] }
  0x18   : > { %v541_v1 = vld [vmem:[%s1110_s21 + $0xa0] sm:$0xff]  ;;  %v544_v2 = vld [vmem:[%s1110_s21 + $0xb8] sm:$0xff]  ;;  %v543_v3 = vld [vmem:[%s1110_s21 + $0xb0] sm:$0xff] }
  0x19   : > { %v549_v19 = vld [vmem:[%s1110_s21 + $0xe0] sm:$0xff]  ;;  %v552_v20 = vld [vmem:[%s1110_s21 + $0xf8] sm:$0xff] }
  0xe4   : > { %v430_v8 = vpop.f32.mrb[0].mxu0 }
  0xe5   : > { %v431_v9 = vadd.f32 %v430_v8, %v359_v7  ;;  %v960_v10 = vpop.f32.mrb[1].mxu0  ;;  %v546_v8 = vld [vmem:[%s1110_s21 + $0xc8] sm:$0xff] }
  0xe7   : > { %v434_v11 = vmax.f32 %v431_v9, 0.0  ;;  %v545_v9 = vld [vmem:[%s1110_s21 + $0xc0] sm:$0xff] }
  0xe9   : > { %964 = vmatmul.mubr.msk.f32.vlgmr.msra.gmra.mrb[0].mxu1 %vm437_vm3, %v434_v11 }
 0x1bc   : > { %v511_v13 = vpop.f32.mrb[0].mxu1 }
 0x1bd   : > { %v512_v14 = vadd.f32 %v511_v13, %v436_v12  ;;  %v965_v15 = vpop.f32.mrb[1].mxu1 }
 0x1be   : > { %v547_v15 = vld [vmem:[%s1110_s21 + $0xd0] sm:$0xff] }
 0x1bf   : > { %v943_v16 = vmul.f32 -1.442695, %v512_v14  ;;  %v548_v14 = vld [vmem:[%s1110_s21 + $0xd8] sm:$0xff] }
 0x1c1   : > { %996 = vpow2.f32 %v943_v16  ;;  %v550_v16 = vld [vmem:[%s1110_s21 + $0xe8] sm:$0xff] }
 0x1cb   : > { %v997_v17 = vpop.eup %996 }
 0x1cc   : > { %v518_v18 = vadd.f32 1.0, %v997_v17 }
 0x1ce   : > { %998 = vrcp.f32 %v518_v18 }
 0x1d8   : > { %v999_v24 = vpop.eup %998 }
 0x1d9   : > { %v1117_v28 = vrot.slane %v999_v24, %v555_v21  ;;  %v551_v21 = vld [vmem:[%s1110_s21 + $0xf0] sm:$0xff] }
 0x1db   : > { %v559_v32 = vmul.f32 %v1117_v28, %v523_v22  ;;  %v557_v33 = vmul.f32 %v1117_v28, %v521_v23  ;;  %v560_v34 = vmul.f32 %v1117_v28, %v524_v25  ;;  %v558_v35 = vmul.f32 %v1117_v28, %v522_v26 }
 0x1dc   : > { %v1135_v38 = vmul.f32 %v1117_v28, %v526_v27  ;;  %v1138_v39 = vmul.f32 %v1117_v28, %v525_v29  ;;  %v1141_v40 = vmul.f32 %v1117_v28, %v528_v30  ;;  %v1144_v41 = vmul.f32 %v1117_v28, %v527_v31 }
 0x1dd   : > { %v627_v45 = vsel %vm360_vm1, %v559_v32, 0.0  ;;  %591 = vst.msk [vmem:[%s1126_s24 + $0x10] sm:$0xff] %vm360_vm1, %v559_v32  ;;  %v621_v46 = vsel %vm360_vm1, %v557_v33, 0.0  ;;  %589 = vst.msk [vmem:[%s1126_s24] sm:$0xff] %vm360_vm1, %v557_v33  ;;  %v1175_v50 = vmul.f32 %v1117_v28, %v530_v36  ;;  %v1178_v51 = vmul.f32 %v1117_v28, %v529_v37 }
 0x1de   : > { %592 = vst.msk [vmem:[%s1126_s24 + $0x18] sm:$0xff] %vm360_vm1, %v560_v34  ;;  %590 = vst.msk [vmem:[%s1126_s24 + $0x8] sm:$0xff] %vm360_vm1, %v558_v35  ;;  %628 = vadd.xlane.f32.xlu1 %v627_v45  ;;  %622 = vadd.xlane.f32.xlu0 %v621_v46  ;;  %v1181_v52 = vmul.f32 %v1117_v28, %v532_v42  ;;  %v1184_v53 = vmul.f32 %v1117_v28, %v531_v43  ;;  %v630_v63 = vsel %vm360_vm1, %v560_v34, 0.0 }
 0x1df   : > { %594 = vst.msk [vmem:[%s1126_s24 + $0x28] sm:$0xff] %vm360_vm1, %v1135_v38  ;;  %593 = vst.msk [vmem:[%s1126_s24 + $0x20] sm:$0xff] %vm360_vm1, %v1138_v39  ;;  %v1189_v56 = vmul.f32 %v1117_v28, %v534_v44  ;;  %v1192_v57 = vmul.f32 %v1117_v28, %v533_v47  ;;  %v1195_v58 = vmul.f32 %v1117_v28, %v536_v48  ;;  %v624_v0 = vsel %vm360_vm1, %v558_v35, 0.0 }
 0x1e0   : > { %596 = vst.msk [vmem:[%s1126_s24 + $0x38] sm:$0xff] %vm360_vm1, %v1141_v40  ;;  %595 = vst.msk [vmem:[%s1126_s24 + $0x30] sm:$0xff] %vm360_vm1, %v1144_v41  ;;  %v1198_v59 = vmul.f32 %v1117_v28, %v535_v49  ;;  %v1233_v4 = vmul.f32 %v1117_v28, %v538_v54  ;;  %v1236_v5 = vmul.f32 %v1117_v28, %v537_v55  ;;  %v636_v17 = vsel %vm360_vm1, %v1135_v38, 0.0 }
 0x1e1   : > { %598 = vst.msk [vmem:[%s1126_s24 + $0x48] sm:$0xff] %vm360_vm1, %v1175_v50  ;;  %597 = vst.msk [vmem:[%s1126_s24 + $0x40] sm:$0xff] %vm360_vm1, %v1178_v51  ;;  %v1239_v6 = vmul.f32 %v1117_v28, %v540_v60  ;;  %v1242_v7 = vmul.f32 %v1117_v28, %v539_v61  ;;  %v1247_v10 = vmul.f32 %v1117_v28, %v542_v62  ;;  %v633_v18 = vsel %vm360_vm1, %v1138_v39, 0.0 }
 0x1e2   : > { %600 = vst.msk [vmem:[%s1126_s24 + $0x58] sm:$0xff] %vm360_vm1, %v1181_v52  ;;  %599 = vst.msk [vmem:[%s1126_s24 + $0x50] sm:$0xff] %vm360_vm1, %v1184_v53  ;;  %631 = vadd.xlane.f32.xlu1 %v630_v63  ;;  %625 = vadd.xlane.f32.xlu0 %v624_v0  ;;  %v1250_v11 = vmul.f32 %v1117_v28, %v541_v1  ;;  %v1253_v12 = vmul.f32 %v1117_v28, %v544_v2  ;;  %v642_v31 = vsel %vm360_vm1, %v1141_v40, 0.0 }
 0x1e3   : > { %602 = vst.msk [vmem:[%s1126_s24 + $0x68] sm:$0xff] %vm360_vm1, %v1189_v56  ;;  %601 = vst.msk [vmem:[%s1126_s24 + $0x60] sm:$0xff] %vm360_vm1, %v1192_v57  ;;  %v1256_v13 = vmul.f32 %v1117_v28, %v543_v3  ;;  %v582_v22 = vmul.f32 %v1117_v28, %v546_v8  ;;  %v581_v23 = vmul.f32 %v1117_v28, %v545_v9  ;;  %v639_v32 = vsel %vm360_vm1, %v1144_v41, 0.0 }
 0x1e4   : > { %604 = vst.msk [vmem:[%s1126_s24 + $0x78] sm:$0xff] %vm360_vm1, %v1195_v58  ;;  %603 = vst.msk [vmem:[%s1126_s24 + $0x70] sm:$0xff] %vm360_vm1, %v1198_v59  ;;  %v584_v24 = vmul.f32 %v1117_v28, %v548_v14  ;;  %v583_v25 = vmul.f32 %v1117_v28, %v547_v15  ;;  %v586_v26 = vmul.f32 %v1117_v28, %v550_v16  ;;  %v645_v33 = vsel %vm360_vm1, %v1178_v51, 0.0 }
 0x1e5   : > { %606 = vst.msk [vmem:[%s1126_s24 + $0x88] sm:$0xff] %vm360_vm1, %v1233_v4  ;;  %605 = vst.msk [vmem:[%s1126_s24 + $0x80] sm:$0xff] %vm360_vm1, %v1236_v5  ;;  %v585_v27 = vmul.f32 %v1117_v28, %v549_v19  ;;  %v588_v29 = vmul.f32 %v1117_v28, %v552_v20  ;;  %v587_v30 = vmul.f32 %v1117_v28, %v551_v21  ;;  %v648_v28 = vsel %vm360_vm1, %v1175_v50, 0.0 }
 0x1e6   : > { %608 = vst.msk [vmem:[%s1126_s24 + $0x98] sm:$0xff] %vm360_vm1, %v1239_v6  ;;  %607 = vst.msk [vmem:[%s1126_s24 + $0x90] sm:$0xff] %vm360_vm1, %v1242_v7  ;;  %637 = vadd.xlane.f32.xlu1 %v636_v17  ;;  %634 = vadd.xlane.f32.xlu0 %v633_v18  ;;  %v654_v34 = vsel %vm360_vm1, %v1181_v52, 0.0  ;;  %v651_v35 = vsel %vm360_vm1, %v1184_v53, 0.0  ;;  %v660_v36 = vsel %vm360_vm1, %v1189_v56, 0.0  ;;  %v657_v37 = vsel %vm360_vm1, %v1192_v57, 0.0 }
 0x1e7   : > { %610 = vst.msk [vmem:[%s1126_s24 + $0xa8] sm:$0xff] %vm360_vm1, %v1247_v10  ;;  %609 = vst.msk [vmem:[%s1126_s24 + $0xa0] sm:$0xff] %vm360_vm1, %v1250_v11  ;;  %v666_v38 = vsel %vm360_vm1, %v1195_v58, 0.0  ;;  %v663_v39 = vsel %vm360_vm1, %v1198_v59, 0.0  ;;  %v672_v40 = vsel %vm360_vm1, %v1233_v4, 0.0  ;;  %v669_v41 = vsel %vm360_vm1, %v1236_v5, 0.0 }
 0x1e8   : > { %612 = vst.msk [vmem:[%s1126_s24 + $0xb8] sm:$0xff] %vm360_vm1, %v1253_v12  ;;  %611 = vst.msk [vmem:[%s1126_s24 + $0xb0] sm:$0xff] %vm360_vm1, %v1256_v13  ;;  %v678_v42 = vsel %vm360_vm1, %v1239_v6, 0.0  ;;  %v675_v43 = vsel %vm360_vm1, %v1242_v7, 0.0  ;;  %v684_v44 = vsel %vm360_vm1, %v1247_v10, 0.0  ;;  %v681_v45 = vsel %vm360_vm1, %v1250_v11, 0.0 }
 0x1e9   : > { %614 = vst.msk [vmem:[%s1126_s24 + $0xc8] sm:$0xff] %vm360_vm1, %v582_v22  ;;  %613 = vst.msk [vmem:[%s1126_s24 + $0xc0] sm:$0xff] %vm360_vm1, %v581_v23  ;;  %v690_v46 = vsel %vm360_vm1, %v1253_v12, 0.0  ;;  %v687_v47 = vsel %vm360_vm1, %v1256_v13, 0.0  ;;  %v696_v48 = vsel %vm360_vm1, %v582_v22, 0.0  ;;  %v693_v49 = vsel %vm360_vm1, %v581_v23, 0.0 }
 0x1ea   : > { %616 = vst.msk [vmem:[%s1126_s24 + $0xd8] sm:$0xff] %vm360_vm1, %v584_v24  ;;  %615 = vst.msk [vmem:[%s1126_s24 + $0xd0] sm:$0xff] %vm360_vm1, %v583_v25  ;;  %643 = vadd.xlane.f32.xlu1 %v642_v31  ;;  %640 = vadd.xlane.f32.xlu0 %v639_v32  ;;  %v702_v50 = vsel %vm360_vm1, %v584_v24, 0.0  ;;  %v699_v51 = vsel %vm360_vm1, %v583_v25, 0.0  ;;  %v708_v52 = vsel %vm360_vm1, %v586_v26, 0.0  ;;  %v705_v53 = vsel %vm360_vm1, %v585_v27, 0.0 }
 0x1eb   : > { %618 = vst.msk [vmem:[%s1126_s24 + $0xe8] sm:$0xff] %vm360_vm1, %v586_v26  ;;  %617 = vst.msk [vmem:[%s1126_s24 + $0xe0] sm:$0xff] %vm360_vm1, %v585_v27  ;;  %v714_v54 = vsel %vm360_vm1, %v588_v29, 0.0  ;;  %v711_v55 = vsel %vm360_vm1, %v587_v30, 0.0 }
 0x1ec   : > { %620 = vst.msk [vmem:[%s1126_s24 + $0xf8] sm:$0xff] %vm360_vm1, %v588_v29  ;;  %619 = vst.msk [vmem:[%s1126_s24 + $0xf0] sm:$0xff] %vm360_vm1, %v587_v30 }
 0x1ee   : > { %649 = vadd.xlane.f32.xlu1 %v648_v28  ;;  %646 = vadd.xlane.f32.xlu0 %v645_v33 }
 0x1f2   : > { %655 = vadd.xlane.f32.xlu1 %v654_v34  ;;  %652 = vadd.xlane.f32.xlu0 %v651_v35 }
 0x1f6   : > { %661 = vadd.xlane.f32.xlu1 %v660_v36  ;;  %658 = vadd.xlane.f32.xlu0 %v657_v37 }
 0x1fa   : > { %667 = vadd.xlane.f32.xlu1 %v666_v38  ;;  %664 = vadd.xlane.f32.xlu0 %v663_v39 }
 0x1fe   : > { %673 = vadd.xlane.f32.xlu1 %v672_v40  ;;  %670 = vadd.xlane.f32.xlu0 %v669_v41 }
 0x202   : > { %679 = vadd.xlane.f32.xlu1 %v678_v42  ;;  %676 = vadd.xlane.f32.xlu0 %v675_v43 }
 0x206   : > { %685 = vadd.xlane.f32.xlu1 %v684_v44  ;;  %682 = vadd.xlane.f32.xlu0 %v681_v45 }
 0x20a   : > { %691 = vadd.xlane.f32.xlu1 %v690_v46  ;;  %688 = vadd.xlane.f32.xlu0 %v687_v47 }
 0x20e   : > { %697 = vadd.xlane.f32.xlu1 %v696_v48  ;;  %694 = vadd.xlane.f32.xlu0 %v693_v49 }
 0x212   : > { %703 = vadd.xlane.f32.xlu1 %v702_v50  ;;  %700 = vadd.xlane.f32.xlu0 %v699_v51 }
 0x216   : > { %709 = vadd.xlane.f32.xlu1 %v708_v52  ;;  %706 = vadd.xlane.f32.xlu0 %v705_v53 }
 0x21a   : > { %715 = vadd.xlane.f32.xlu1 %v714_v54  ;;  %712 = vadd.xlane.f32.xlu0 %v711_v55 }
 0x26b   : > { %v629_v56 = vpop.xlane.xlu1 %628  ;;  %v623_v57 = vpop.xlane.xlu0 %622 }
 0x26c   : > { %v720_v58 = vmul.f32 0.0625, %v629_v56  ;;  %v718_v59 = vmul.f32 0.0625, %v623_v57 }
 0x26e   : > { %753 = vst.msk [vmem:[%s1364_s30 + $0x10] sm:$0xff] %vm750_vm4, %v720_v58  ;;  %751 = vst.msk [vmem:[%s1364_s30] sm:$0xff] %vm750_vm4, %v718_v59 }
 0x26f   : > { %v632_v60 = vpop.xlane.xlu1 %631  ;;  %v626_v61 = vpop.xlane.xlu0 %625 }
 0x270   : > { %v721_v62 = vmul.f32 0.0625, %v632_v60  ;;  %v719_v63 = vmul.f32 0.0625, %v626_v61 }
 0x272   : > { %754 = vst.msk [vmem:[%s1364_s30 + $0x18] sm:$0xff] %vm750_vm4, %v721_v62  ;;  %752 = vst.msk [vmem:[%s1364_s30 + $0x8] sm:$0xff] %vm750_vm4, %v719_v63 }
 0x273   : > { %v638_v0 = vpop.xlane.xlu1 %637  ;;  %v635_v1 = vpop.xlane.xlu0 %634 }
 0x274   : > { %v723_v2 = vmul.f32 0.0625, %v638_v0  ;;  %v722_v3 = vmul.f32 0.0625, %v635_v1 }
 0x276   : > { %756 = vst.msk [vmem:[%s1364_s30 + $0x28] sm:$0xff] %vm750_vm4, %v723_v2  ;;  %755 = vst.msk [vmem:[%s1364_s30 + $0x20] sm:$0xff] %vm750_vm4, %v722_v3 }
 0x277   : > { %v644_v4 = vpop.xlane.xlu1 %643  ;;  %v641_v5 = vpop.xlane.xlu0 %640 }
 0x278   : > { %v725_v6 = vmul.f32 0.0625, %v644_v4  ;;  %v724_v7 = vmul.f32 0.0625, %v641_v5 }
 0x27a   : > { %758 = vst.msk [vmem:[%s1364_s30 + $0x38] sm:$0xff] %vm750_vm4, %v725_v6  ;;  %757 = vst.msk [vmem:[%s1364_s30 + $0x30] sm:$0xff] %vm750_vm4, %v724_v7 }
 0x27b   : > { %v650_v8 = vpop.xlane.xlu1 %649  ;;  %v647_v9 = vpop.xlane.xlu0 %646 }
 0x27c   : > { %v727_v10 = vmul.f32 0.0625, %v650_v8  ;;  %v726_v11 = vmul.f32 0.0625, %v647_v9 }
 0x27e   : > { %760 = vst.msk [vmem:[%s1364_s30 + $0x48] sm:$0xff] %vm750_vm4, %v727_v10  ;;  %759 = vst.msk [vmem:[%s1364_s30 + $0x40] sm:$0xff] %vm750_vm4, %v726_v11 }
 0x27f   : > { %v656_v12 = vpop.xlane.xlu1 %655  ;;  %v653_v13 = vpop.xlane.xlu0 %652 }
 0x280   : > { %v729_v14 = vmul.f32 0.0625, %v656_v12  ;;  %v728_v15 = vmul.f32 0.0625, %v653_v13 }
 0x282   : > { %762 = vst.msk [vmem:[%s1364_s30 + $0x58] sm:$0xff] %vm750_vm4, %v729_v14  ;;  %761 = vst.msk [vmem:[%s1364_s30 + $0x50] sm:$0xff] %vm750_vm4, %v728_v15 }
 0x283   : > { %v662_v16 = vpop.xlane.xlu1 %661  ;;  %v659_v17 = vpop.xlane.xlu0 %658 }
 0x284   : > { %v731_v18 = vmul.f32 0.0625, %v662_v16  ;;  %v730_v19 = vmul.f32 0.0625, %v659_v17 }
 0x286   : > { %764 = vst.msk [vmem:[%s1364_s30 + $0x68] sm:$0xff] %vm750_vm4, %v731_v18  ;;  %763 = vst.msk [vmem:[%s1364_s30 + $0x60] sm:$0xff] %vm750_vm4, %v730_v19 }
 0x287   : > { %v668_v20 = vpop.xlane.xlu1 %667  ;;  %v665_v21 = vpop.xlane.xlu0 %664 }
 0x288   : > { %v733_v22 = vmul.f32 0.0625, %v668_v20  ;;  %v732_v23 = vmul.f32 0.0625, %v665_v21 }
 0x28a   : > { %766 = vst.msk [vmem:[%s1364_s30 + $0x78] sm:$0xff] %vm750_vm4, %v733_v22  ;;  %765 = vst.msk [vmem:[%s1364_s30 + $0x70] sm:$0xff] %vm750_vm4, %v732_v23 }
 0x28b   : > { %v674_v24 = vpop.xlane.xlu1 %673  ;;  %v671_v25 = vpop.xlane.xlu0 %670 }
 0x28c   : > { %v735_v26 = vmul.f32 0.0625, %v674_v24  ;;  %v734_v27 = vmul.f32 0.0625, %v671_v25 }
 0x28e   : > { %768 = vst.msk [vmem:[%s1364_s30 + $0x88] sm:$0xff] %vm750_vm4, %v735_v26  ;;  %767 = vst.msk [vmem:[%s1364_s30 + $0x80] sm:$0xff] %vm750_vm4, %v734_v27 }
 0x28f   : > { %v680_v29 = vpop.xlane.xlu1 %679  ;;  %v677_v30 = vpop.xlane.xlu0 %676 }
 0x290   : > { %v737_v31 = vmul.f32 0.0625, %v680_v29  ;;  %v736_v32 = vmul.f32 0.0625, %v677_v30 }
 0x292   : > { %770 = vst.msk [vmem:[%s1364_s30 + $0x98] sm:$0xff] %vm750_vm4, %v737_v31  ;;  %769 = vst.msk [vmem:[%s1364_s30 + $0x90] sm:$0xff] %vm750_vm4, %v736_v32 }
 0x293   : > { %v686_v28 = vpop.xlane.xlu1 %685  ;;  %v683_v33 = vpop.xlane.xlu0 %682 }
 0x294   : > { %v739_v34 = vmul.f32 0.0625, %v686_v28  ;;  %v738_v35 = vmul.f32 0.0625, %v683_v33 }
 0x296   : > { %772 = vst.msk [vmem:[%s1364_s30 + $0xa8] sm:$0xff] %vm750_vm4, %v739_v34  ;;  %771 = vst.msk [vmem:[%s1364_s30 + $0xa0] sm:$0xff] %vm750_vm4, %v738_v35 }
 0x297   : > { %v692_v36 = vpop.xlane.xlu1 %691  ;;  %v689_v37 = vpop.xlane.xlu0 %688 }
 0x298   : > { %v741_v38 = vmul.f32 0.0625, %v692_v36  ;;  %v740_v39 = vmul.f32 0.0625, %v689_v37 }
 0x29a   : > { %774 = vst.msk [vmem:[%s1364_s30 + $0xb8] sm:$0xff] %vm750_vm4, %v741_v38  ;;  %773 = vst.msk [vmem:[%s1364_s30 + $0xb0] sm:$0xff] %vm750_vm4, %v740_v39 }
 0x29b   : > { %v698_v40 = vpop.xlane.xlu1 %697  ;;  %v695_v41 = vpop.xlane.xlu0 %694 }
 0x29c   : > { %v743_v42 = vmul.f32 0.0625, %v698_v40  ;;  %v742_v43 = vmul.f32 0.0625, %v695_v41 }
 0x29e   : > { %776 = vst.msk [vmem:[%s1364_s30 + $0xc8] sm:$0xff] %vm750_vm4, %v743_v42  ;;  %775 = vst.msk [vmem:[%s1364_s30 + $0xc0] sm:$0xff] %vm750_vm4, %v742_v43 }
 0x29f   : > { %v704_v44 = vpop.xlane.xlu1 %703  ;;  %v701_v45 = vpop.xlane.xlu0 %700 }
 0x2a0   : > { %v745_v46 = vmul.f32 0.0625, %v704_v44  ;;  %v744_v47 = vmul.f32 0.0625, %v701_v45 }
 0x2a2   : > { %778 = vst.msk [vmem:[%s1364_s30 + $0xd8] sm:$0xff] %vm750_vm4, %v745_v46  ;;  %777 = vst.msk [vmem:[%s1364_s30 + $0xd0] sm:$0xff] %vm750_vm4, %v744_v47 }
 0x2a3   : > { %v710_v48 = vpop.xlane.xlu1 %709  ;;  %v707_v49 = vpop.xlane.xlu0 %706 }
 0x2a4   : > { %v747_v50 = vmul.f32 0.0625, %v710_v48  ;;  %v746_v51 = vmul.f32 0.0625, %v707_v49 }
 0x2a6   : > { %780 = vst.msk [vmem:[%s1364_s30 + $0xe8] sm:$0xff] %vm750_vm4, %v747_v50  ;;  %779 = vst.msk [vmem:[%s1364_s30 + $0xe0] sm:$0xff] %vm750_vm4, %v746_v51 }
 0x2a7   : > { %v716_v52 = vpop.xlane.xlu1 %715  ;;  %v713_v53 = vpop.xlane.xlu0 %712 }
 0x2a8   : > { %v749_v54 = vmul.f32 0.0625, %v716_v52  ;;  %v748_v55 = vmul.f32 0.0625, %v713_v53 }
 0x2aa   : > { %782 = vst.msk [vmem:[%s1364_s30 + $0xf8] sm:$0xff] %vm750_vm4, %v749_v54  ;;  %781 = vst.msk [vmem:[%s1364_s30 + $0xf0] sm:$0xff] %vm750_vm4, %v748_v55 }
 0x2ab PF: > { %s18_s26 = sadd.s32 1, %s1022_s26   ;;  %s1447_s24 = smov %s1018_s25 }
 0x2ac   : > { %p15_p5 = scmp.ge.s32.totalorder %s18_s26, 4   ;;  %s1448_s25 = smov %s1450_s27 }
 0x2ae   :  { %17 = sbr.rel (!%p15_p5) target bundleno = 2 (0x2), region = 89 }

// kernel: fsa_forward.11
= control target key start
LH: loop header
LB: loop body
LE: loop exit
PB: predicated region body
PF: predicated region fallthrough
CT: control target
= control target key end

     0   :  { %s745_s12 = smov 0   ;;  %s747_s13 = smov 0   ;;  %s836_s0 = inlined_call_operand.vmem [shape: f32[2,1,256], index: 0, kind: input, shape index: {}]   ;;  %s837_s1 = inlined_call_operand.vmem [shape: f32[2,64,1], index: 1, kind: input, shape index: {}]   ;;  %s838_s2 = inlined_call_operand.vmem [shape: f32[2,2,64], index: 2, kind: input, shape index: {}]   ;;  %s839_s3 = inlined_call_operand.vmem [shape: f32[2,1,256], index: 3, kind: output, shape index: {}]  }
   0x1   :  { %s749_s14 = smov 0  }
   0x2 LB: > { %s25_s15 = sadd.s32 1, %s716_s13  ;;  %p607_p0 = scmp.ge.s32.totalorder %s720_s14, 1  ;;  %s720_s14 = sphi %s749_s14, %s13_s14   ;;  %s716_s13 = sphi %s747_s13, %s841_s13   ;;  %s712_s12 = sphi %s745_s12, %s840_s12  }
   0x3   : > { %p27_p1 = scmp.ge.s32.totalorder %s25_s15, 2  ;;  %p176_p2 = scmp.lt.s32.totalorder %s720_s14, 3 }
   0x5   : > { %s843_s15 = smov (%p27_p1, %s25_s15), 0  ;;  %p177_p3 = pnand %p607_p0, %p176_p2 }
   0x6   : > { %p216_p4 = scmp.lt.s32.totalorder (!%p177_p3), %s712_s12, 1  ;;  %v722_v0 = vmov (!%p177_p3), 0   ;;  %v723_v9 = vmov (!%p177_p3), 0.0   ;;  %v293_v10 = vlaneseq (!%p177_p3)  ;;  %vm393_vm0 = vcmask (!%p177_p3), 523264  }
   0x7   : > { %180 = sbr.rel (%p177_p3) target bundleno = 448 (0x1c0), region = 32  ;;  %661 = vset.pattern.permute.xlu1 (!%p177_p3), %v722_v0  ;;  %660 = vset.pattern.permute.xlu0 (!%p177_p3), %v722_v0 }
   0x8   : > { %461 = vmatprep.mubr.f32.mxu0 (!%p177_p3), %v723_v9  ;;  %v769_v11 = vshrl.u32 (!%p177_p3), %v293_v10, 7  ;;  %vm498_vm1 = vcmp.lt.s32.totalorder (!%p177_p3), %v293_v10, 256 }
   0xa   : > { %v295_v12 = vsub.s32 (!%p177_p3), 0, %v769_v11  ;;  %v299_v13 = vsub.s32 (!%p177_p3), 1, %v769_v11 }
   0xe   : > { %s845_s12 = smov (!%p216_p4, %s712_s12), 1 }
   0xf   : > { %s616_s16 = sshll.u32 %s845_s12, 6  ;;  %s766_s20 = sshll.u32 %s845_s12, 1 }
  0x10   : > { %s228_s19 = scalar_lea.vmem %s837_s1, %s616_s16  ;;  %s222_s23 = scalar_lea.vmem %s836_s0, %s766_s20 }
  0x11   : > { %v245_v1 = vld [vmem:[%s228_s19 + $0x10] sm:$0xff]  ;;  %v243_v2 = vld [vmem:[%s228_s19] sm:$0xff]  ;;  %v246_v3 = vld [vmem:[%s228_s19 + $0x18] sm:$0xff]  ;;  %s232_s26 = scalar_lea.vmem %s838_s2, %s766_s20  ;;  %s240_s29 = scalar_lea.vmem %s839_s3, %s766_s20 }
  0x12   : > { %264 = vperm.xlu1 %661, %v245_v1   ;;  %254 = vperm.xlu0 %660, %v243_v2   ;;  %v244_v4 = vld [vmem:[%s228_s19 + $0x8] sm:$0xff]  ;;  %v247_v6 = vld [vmem:[%s228_s19 + $0x20] sm:$0xff]  ;;  %v250_v7 = vld [vmem:[%s228_s19 + $0x38] sm:$0xff] }
  0x13   : > { %v248_v5 = vld [vmem:[%s228_s19 + $0x28] sm:$0xff]  ;;  %v249_v8 = vld [vmem:[%s228_s19 + $0x30] sm:$0xff]  ;;  %v242_v14 = vld [vmem:[%s222_s23] sm:$0x3] }
  0x14   : > { %v296_v17 = vrot.slane %v242_v14, %v295_v12  ;;  %v300_v18 = vrot.slane %v242_v14, %v299_v13 }
  0x16   : > { %269 = vperm.xlu1 %661, %v246_v3   ;;  %259 = vperm.xlu0 %660, %v244_v4  }
  0x1a   : > { %279 = vperm.xlu1 %661, %v248_v5   ;;  %274 = vperm.xlu0 %660, %v247_v6  }
  0x1e   : > { %289 = vperm.xlu1 %661, %v250_v7   ;;  %284 = vperm.xlu0 %660, %v249_v8  }
  0x91   : > { %v265_v15 = vpop.permute.xlu1 %264  ;;  %v255_v16 = vpop.permute.xlu0 %254 }
  0x92   : > { %v777_v21 = vmul.f32 %v296_v17, %v265_v15  ;;  %v779_v22 = vmul.f32 %v300_v18, %v265_v15  ;;  %v303_v23 = vmul.f32 %v296_v17, %v255_v16  ;;  %v304_v24 = vmul.f32 %v300_v18, %v255_v16 }
  0x94   : > { %v319_v35 = vmax.f32 %v303_v23, %v777_v21  ;;  %v332_v36 = vmax.f32 %v304_v24, %v779_v22 }
  0x95   : > { %v270_v19 = vpop.permute.xlu1 %269  ;;  %v260_v20 = vpop.permute.xlu0 %259 }
  0x96   : > { %v781_v25 = vmul.f32 %v296_v17, %v270_v19  ;;  %v783_v26 = vmul.f32 %v300_v18, %v270_v19  ;;  %v305_v27 = vmul.f32 %v296_v17, %v260_v20  ;;  %v306_v28 = vmul.f32 %v300_v18, %v260_v20 }
  0x98   : > { %v320_v37 = vmax.f32 %v305_v27, %v781_v25  ;;  %v333_v38 = vmax.f32 %v306_v28, %v783_v26 }
  0x99   : > { %v280_v29 = vpop.permute.xlu1 %279  ;;  %v275_v30 = vpop.permute.xlu0 %274 }
  0x9a   : > { %v785_v31 = vmul.f32 %v296_v17, %v280_v29  ;;  %v787_v32 = vmul.f32 %v300_v18, %v280_v29  ;;  %v789_v33 = vmul.f32 %v296_v17, %v275_v30  ;;  %v791_v34 = vmul.f32 %v300_v18, %v275_v30 }
  0x9c   : > { %v322_v39 = vmax.f32 %v320_v37, %v785_v31  ;;  %v335_v40 = vmax.f32 %v333_v38, %v787_v32  ;;  %v321_v41 = vmax.f32 %v319_v35, %v789_v33  ;;  %v334_v42 = vmax.f32 %v332_v36, %v791_v34 }
  0x9d   : > { %v290_v43 = vpop.permute.xlu1 %289  ;;  %v285_v44 = vpop.permute.xlu0 %284 }
  0x9e   : > { %v801_v45 = vmul.f32 %v296_v17, %v290_v43  ;;  %v803_v46 = vmul.f32 %v300_v18, %v290_v43  ;;  %v315_v47 = vmul.f32 %v296_v17, %v285_v44  ;;  %v316_v48 = vmul.f32 %v300_v18, %v285_v44 }
  0xa0   : > { %v324_v49 = vmax.f32 %v322_v39, %v801_v45  ;;  %v337_v50 = vmax.f32 %v335_v40, %v803_v46  ;;  %v323_v51 = vmax.f32 %v321_v41, %v315_v47  ;;  %v336_v52 = vmax.f32 %v334_v42, %v316_v48 }
  0xa2   : > { %v325_v53 = vmax.f32 %v323_v51, %v324_v49  ;;  %v338_v54 = vmax.f32 %v336_v52, %v337_v50 }
  0xa4   : > { %v326_v55 = vrot.slane %v325_v53, 4  ;;  %v339_v56 = vrot.slane %v338_v54, 4 }
  0xa6   : > { %v327_v57 = vmax.f32 %v325_v53, %v326_v55  ;;  %v340_v58 = vmax.f32 %v338_v54, %v339_v56 }
  0xa8   : > { %v328_v59 = vrot.slane %v327_v57, 2  ;;  %v341_v60 = vrot.slane %v340_v58, 2 }
  0xaa   : > { %v329_v61 = vmax.f32 %v327_v57, %v328_v59  ;;  %v342_v62 = vmax.f32 %v340_v58, %v341_v60 }
  0xac   : > { %v330_v63 = vrot.slane %v329_v61, 1  ;;  %v343_v0 = vrot.slane %v342_v62, 1 }
  0xae   : > { %v331_v1 = vmax.f32 %v329_v61, %v330_v63  ;;  %v344_v2 = vmax.f32 %v342_v62, %v343_v0  ;;  %v251_v61 = vld [vmem:[%s232_s26] sm:$0x3]  ;;  %v724_v0 = vmov 1966171168  }
  0xb0   : > { %v357_v3 = vsub.f32 %v315_v47, %v331_v1  ;;  %v358_v4 = vsub.f32 %v316_v48, %v344_v2  ;;  %v346_v5 = vsub.f32 %v304_v24, %v344_v2  ;;  %v348_v6 = vsub.f32 %v306_v28, %v344_v2 }
  0xb1   : > { %v345_v7 = vsub.f32 %v303_v23, %v331_v1  ;;  %v347_v8 = vsub.f32 %v305_v27, %v331_v1  ;;  %v350_v14 = vsub.f32 %v779_v22, %v344_v2  ;;  %v352_v16 = vsub.f32 %v783_v26, %v344_v2 }
  0xb2   : > { %v385_v9 = vmul.f32 1.442695, %v357_v3  ;;  %v387_v12 = vmul.f32 1.442695, %v358_v4  ;;  %v363_v13 = vmul.f32 1.442695, %v346_v5  ;;  %v349_v18 = vsub.f32 %v777_v21, %v331_v1 }
  0xb3   : > { %v367_v15 = vmul.f32 1.442695, %v348_v6  ;;  %v361_v17 = vmul.f32 1.442695, %v345_v7  ;;  %v365_v19 = vmul.f32 1.442695, %v347_v8  ;;  %v351_v20 = vsub.f32 %v781_v25, %v331_v1 }
  0xb4   : > { %662 = vpow2.f32 %v385_v9  ;;  %v371_v24 = vmul.f32 1.442695, %v350_v14  ;;  %v354_v23 = vsub.f32 %v791_v34, %v344_v2  ;;  %v375_v27 = vmul.f32 1.442695, %v352_v16 }
  0xb5   : > { %664 = vpow2.f32 %v387_v12  ;;  %v356_v28 = vsub.f32 %v787_v32, %v344_v2  ;;  %v369_v22 = vmul.f32 1.442695, %v349_v18  ;;  %v353_v26 = vsub.f32 %v789_v33, %v331_v1 }
  0xb6   : > { %666 = vpow2.f32 %v363_v13  ;;  %v373_v29 = vmul.f32 1.442695, %v351_v20  ;;  %v355_v21 = vsub.f32 %v785_v31, %v331_v1  ;;  %v379_v30 = vmul.f32 1.442695, %v354_v23 }
  0xb7   : > { %668 = vpow2.f32 %v367_v15  ;;  %v360_v25 = vsub.f32 %v803_v46, %v344_v2  ;;  %v383_v35 = vmul.f32 1.442695, %v356_v28  ;;  %v359_v34 = vsub.f32 %v801_v45, %v331_v1 }
  0xb8   : > { %670 = vpow2.f32 %v361_v17  ;;  %v377_v36 = vmul.f32 1.442695, %v353_v26  ;;  %v381_v32 = vmul.f32 1.442695, %v355_v21  ;;  %v482_v1 = vunpack.c.l.s4 %v724_v0 }
  0xb9   : > { %672 = vpow2.f32 %v365_v19  ;;  %v391_v38 = vmul.f32 1.442695, %v360_v25  ;;  %v389_v39 = vmul.f32 1.442695, %v359_v34 }
  0xba   : > { %674 = vpow2.f32 %v371_v24  ;;  %v483_v3 = vunpack.c.0.s8 %v482_v1 }
  0xbb   : > { %676 = vpow2.f32 %v375_v27 }
  0xbc   : > { %678 = vpow2.f32 %v369_v22  ;;  %v486_v9 = vsub.s32 %v483_v3, %v769_v11 }
  0xbd   : > { %680 = vpow2.f32 %v373_v29 }
  0xbe   : > { %v663_v37 = vpop.eup %662  ;;  %682 = vpow2.f32 %v379_v30 }
  0xbf   : > { %v665_v33 = vpop.eup %664  ;;  %684 = vpow2.f32 %v383_v35 }
  0xc0   : > { %v667_v40 = vpop.eup %666  ;;  %686 = vpow2.f32 %v377_v36 }
  0xc1   : > { %v669_v31 = vpop.eup %668  ;;  %688 = vpow2.f32 %v381_v32 }
  0xc2   : > { %v671_v41 = vpop.eup %670  ;;  %v617_v42 = vpack.c.bf16 %v669_v31, %v667_v40  ;;  %690 = vpow2.f32 %v391_v38 }
  0xc3   : > { %v673_v43 = vpop.eup %672  ;;  %692 = vpow2.f32 %v389_v39 }
  0xc4   : > { %v675_v44 = vpop.eup %674  ;;  %618 = vmatprep.subr.bf16.mxu0 %v617_v42  ;;  %v619_v45 = vpack.c.bf16 %v673_v43, %v671_v41 }
  0xc5   : > { %v677_v46 = vpop.eup %676 }
  0xc6   : > { %v679_v47 = vpop.eup %678  ;;  %620 = vmatpush1.bf16.msra.mxu0 %v619_v45  ;;  %v621_v48 = vpack.c.bf16 %v677_v46, %v675_v44 }
  0xc7   : > { %v681_v49 = vpop.eup %680 }
  0xc8   : > { %v683_v50 = vpop.eup %682  ;;  %622 = vmatprep.subr.bf16.mxu0 %v621_v48  ;;  %v623_v51 = vpack.c.bf16 %v681_v49, %v679_v47 }
  0xc9   : > { %v685_v52 = vpop.eup %684 }
  0xca   : > { %v687_v53 = vpop.eup %686  ;;  %624 = vmatpush1.bf16.msra.mxu0 %v623_v51  ;;  %v625_v54 = vpack.c.bf16 %v685_v52, %v683_v50 }
  0xcb   : > { %v689_v55 = vpop.eup %688 }
  0xcc   : > { %v691_v56 = vpop.eup %690  ;;  %626 = vmatprep.subr.bf16.mxu0 %v625_v54  ;;  %v627_v57 = vpack.c.bf16 %v689_v55, %v687_v53 }
  0xcd   : > { %v693_v58 = vpop.eup %692  ;;  %v629_v59 = vpack.c.bf16 %v691_v56, %v665_v33 }
  0xce   : > { %628 = vmatpush1.bf16.msra.mxu0 %v627_v57  ;;  %v631_v60 = vpack.c.bf16 %v693_v58, %v663_v37 }
  0xcf   : > { %630 = vmatprep.subr.bf16.mxu0 %v629_v59 }
  0xd2   : > { %632 = vmatpush1.bf16.msra.mxu0 %v631_v60 }
  0xd5   : > { %613 = vmatmul.mubr.msk.f32.vlgmr.msra.gmra.mrb[0].mxu0 %vm393_vm0, %v251_v61 }
 0x1a8   : > { %v463_v62 = vpop.f32.mrb[0].mxu0 }
 0x1a9   : > { %694 = vrcp.f32 %v463_v62  ;;  %v465_v63 = vpop.f32.mrb[1].mxu0 }
 0x1aa   : > { %696 = vrcp.f32 %v465_v63 }
 0x1b3   : > { %v695_v2 = vpop.eup %694 }
 0x1b4   : > { %v697_v4 = vpop.eup %696  ;;  %v472_v5 = vrot.slane %v695_v2, 1 }
 0x1b5   : > { %v473_v6 = vrot.slane %v697_v4, 1 }
 0x1b6   : > { %v476_v7 = vmul.f32 %v472_v5, %v463_v62 }
 0x1b7   : > { %v477_v8 = vmul.f32 %v473_v6, %v465_v63 }
 0x1b9   : > { %v480_v12 = vcombine.low %v476_v7, %v477_v8 }
 0x1bb   : > { %v487_v13 = vrot.slane %v480_v12, %v486_v9 }
 0x1bd   : > { %v494_v14 = vrot.slane %v487_v13, %v486_v9 }
 0x1bf   : > { %500 = vst.msk [vmem:[%s240_s29] sm:$0x3] %vm498_vm1, %v494_v14 }
 0x1c0 PF: > { %s13_s14 = sadd.s32 1, %s720_s14   ;;  %s840_s12 = smov %s716_s13 }
 0x1c1   : > { %p10_p5 = scmp.ge.s32.totalorder %s13_s14, 4   ;;  %s841_s13 = smov %s843_s15 }
 0x1c3   :  { %12 = sbr.rel (!%p10_p5) target bundleno = 2 (0x2), region = 68 }

// kernel: fsa_forward.9
= control target key start
LH: loop header
LB: loop body
LE: loop exit
PB: predicated region body
PF: predicated region fallthrough
CT: control target
= control target key end

     0   :  { %s8157_s29 = smov 0   ;;  %s8159_s30 = smov 0   ;;  %s10151_s0 = inlined_call_operand.vmem [shape: f32[2,256,16], index: 0, kind: input, shape index: {}]   ;;  %s10152_s1 = inlined_call_operand.vmem [shape: f32[2,256,16], index: 1, kind: input, shape index: {}]   ;;  %s10153_s2 = inlined_call_operand.vmem [shape: f32[2,256,16], index: 2, kind: input, shape index: {}]   ;;  %s10154_s3 = inlined_call_operand.vmem [shape: f32[2,256,16], index: 3, kind: input, shape index: {}]   ;;  %s10155_s4 = inlined_call_operand.vmem [shape: f32[2,256,16], index: 4, kind: input, shape index: {}]   ;;  %s10156_s5 = inlined_call_operand.vmem [shape: f32[2,256,16], index: 5, kind: input, shape index: {}]   ;;  %s10157_s6 = inlined_call_operand.vmem [shape: f32[2,256,16], index: 6, kind: input, shape index: {}]   ;;  %s10158_s7 = inlined_call_operand.vmem [shape: f32[7,16,7], index: 7, kind: input, shape index: {}]   ;;  %s10159_s8 = inlined_call_operand.vmem [shape: f32[1,7], index: 8, kind: input, shape index: {}]   ;;  %s10160_s9 = inlined_call_operand.vmem [shape: f32[7,7], index: 9, kind: input, shape index: {}]   ;;  %s10161_s10 = inlined_call_operand.vmem [shape: f32[1,7], index: 10, kind: input, shape index: {}]   ;;  %s10162_s11 = inlined_call_operand.vmem [shape: f32[7,7], index: 11, kind: input, shape index: {}]   ;;  %s10163_s12 = inlined_call_operand.vmem [shape: f32[1,7], index: 12, kind: input, shape index: {}]   ;;  %s10164_s13 = inlined_call_operand.vmem [shape: f32[2,256,16], index: 13, kind: output, shape index: {0}]   ;;  %s10165_s14 = inlined_call_operand.vmem [shape: f32[2,1,16], index: 14, kind: output, shape index: {1}]  }
   0x1   :  { %s8161_s15 = smov 0  }
   0x2 LB: > { %s37_s16 = sadd.s32 1, %s8068_s30  ;;  %p6056_p0 = scmp.ge.s32.totalorder %s8072_s15, 1  ;;  %s8072_s15 = sphi %s8161_s15, %s25_s15   ;;  %s8068_s30 = sphi %s8159_s30, %s10167_s30   ;;  %s8064_s29 = sphi %s8157_s29, %s10166_s29  }
   0x3   : > { %p39_p1 = scmp.ge.s32.totalorder %s37_s16, 2  ;;  %p538_p2 = scmp.lt.s32.totalorder %s8072_s15, 3 }
   0x5   : > { %s10169_s16 = smov (%p39_p1, %s37_s16), 0  ;;  %p539_p3 = pnand %p6056_p0, %p538_p2 }
   0x6   : > { %v6140_v0 = vld [vmem:[%s10158_s7 + $0x20] sm:$0xff] (!%p539_p3)  ;;  %v6141_v1 = vld [vmem:[%s10158_s7 + $0x28] sm:$0xff] (!%p539_p3)  ;;  %p650_p4 = scmp.lt.s32.totalorder (!%p539_p3), %s8064_s29, 1  ;;  %v6174_v2 = vld [vmem:[%s10158_s7 + $0x30] sm:$0xff] (!%p539_p3)  ;;  %vm959_vm0 = vcmask (!%p539_p3), 130048   ;;  %vm3592_vm1 = vcmask (!%p539_p3), 1046528  }
   0x7   : > { %542 = sbr.rel (%p539_p3) target bundleno = 1639 (0x667), region = 72  ;;  %v8184_v3 = vpack.c.bf16 (!%p539_p3), %v6141_v1, %v6140_v0  ;;  %v6175_v4 = vld [vmem:[%s10158_s7 + $0x38] sm:$0xff] (!%p539_p3)  ;;  %v6208_v6 = vld [vmem:[%s10158_s7 + $0x40] sm:$0xff] (!%p539_p3)  ;;  %v958_v8 = vld [vmem:[%s10158_s7 + $0x8] sm:$0xff] (!%p539_p3)  ;;  %vm3495_vm2 = vcmask (!%p539_p3), 56320   ;;  %vm5757_vm3 = vcmask (!%p539_p3), 122880  }
   0x8   : > { %v7200_v5 = vpack.c.bf16 (!%p539_p3), %v6175_v4, %v6174_v2  ;;  %v957_v7 = vld [vmem:[%s10158_s7] sm:$0xff] (!%p539_p3)  ;;  %v6209_v9 = vld [vmem:[%s10158_s7 + $0x48] sm:$0xff] (!%p539_p3)  ;;  %v6106_v11 = vld [vmem:[%s10158_s7 + $0x10] sm:$0xff] (!%p539_p3) }
   0x9   : > { %7197 = vmatprep.subr.bf16.mxu0 (!%p539_p3), %v8184_v3  ;;  %v7188_v10 = vpack.c.bf16 (!%p539_p3), %v958_v8, %v957_v7  ;;  %v6107_v12 = vld [vmem:[%s10158_s7 + $0x18] sm:$0xff] (!%p539_p3)  ;;  %v8223_v17 = vpack.c.bf16 (!%p539_p3), %v6209_v9, %v6208_v6  ;;  %v6242_v44 = vld [vmem:[%s10158_s7 + $0x50] sm:$0xff] (!%p539_p3) }
   0xa   : > { %7199 = vmatpush3.bf16.msra.mxu0 (!%p539_p3), %v8184_v3  ;;  %v7192_v13 = vpack.c.bf16 (!%p539_p3), %v6107_v12, %v6106_v11  ;;  %v6243_v45 = vld [vmem:[%s10158_s7 + $0x58] sm:$0xff] (!%p539_p3) }
   0xb   : > { %7201 = vmatprep.subr.bf16.mxu0 (!%p539_p3), %v7200_v5  ;;  %7189 = vmatprep.subr.bf16.mxu1 (!%p539_p3), %v7188_v10  ;;  %v8303_v49 = vpack.c.bf16 (!%p539_p3), %v6243_v45, %v6242_v44 }
   0xc   : > { %7191 = vmatpush3.bf16.msra.mxu1 (!%p539_p3), %v7188_v10 }
   0xd   : > { %7193 = vmatprep.subr.bf16.mxu1 (!%p539_p3), %v7192_v13 }
   0xe   : > { %s10171_s29 = smov (!%p650_p4, %s8064_s29), 1 }
   0xf   : > { %s8212_s25 = sshll.u32 %s10171_s29, 8  ;;  %s10049_s27 = scalar_lea.vmem %s10165_s14, %s10171_s29 }
  0x10   : > { %s8218_s28 = scalar_lea.vmem %s10153_s2, %s8212_s25  ;;  %s8238_s19 = scalar_lea.vmem %s10151_s0, %s8212_s25 }
  0x11   : > { %v796_v14 = vld [vmem:[%s8218_s28] sm:$0xff]  ;;  %v797_v15 = vld [vmem:[%s8218_s28 + $0x8] sm:$0xff]  ;;  %v798_v16 = vld [vmem:[%s8218_s28 + $0x10] sm:$0xff]  ;;  %s8279_s22 = scalar_lea.vmem %s10154_s3, %s8212_s25  ;;  %s8381_s20 = scalar_lea.vmem %s10152_s1, %s8212_s25 }
  0x12   : > { %6832 = vmatprep.mubr.msk.f32.mxu0 %vm959_vm0, %v796_v14  ;;  %v799_v18 = vld [vmem:[%s8218_s28 + $0x18] sm:$0xff]  ;;  %v800_v19 = vld [vmem:[%s8218_s28 + $0x20] sm:$0xff]  ;;  %v801_v20 = vld [vmem:[%s8218_s28 + $0x28] sm:$0xff]  ;;  %s8430_s24 = scalar_lea.vmem %s10155_s4, %s8212_s25  ;;  %s8574_s26 = scalar_lea.vmem %s10156_s5, %s8212_s25 }
  0x13   : > { %6833 = vmatmul.mubr.msk.f32.vlgmr.msra.gmra.mrb[0].mxu0 %vm959_vm0, %v797_v15  ;;  %v802_v21 = vld [vmem:[%s8218_s28 + $0x30] sm:$0xff]  ;;  %v732_v22 = vld [vmem:[%s8238_s19] sm:$0xff]  ;;  %v803_v23 = vld [vmem:[%s8218_s28 + $0x38] sm:$0xff]  ;;  %s8660_s18 = scalar_lea.vmem %s10157_s6, %s8212_s25  ;;  %s9147_s21 = scalar_lea.vmem %s10164_s13, %s8212_s25 }
  0x14   : > { %7203 = vmatpush3.bf16.msra.mxu0 %v7200_v5  ;;  %6835 = vmatprep.mubr.msk.f32.mxu0 %vm959_vm0, %v798_v16  ;;  %v733_v24 = vld [vmem:[%s8238_s19 + $0x8] sm:$0xff]  ;;  %v734_v25 = vld [vmem:[%s8238_s19 + $0x10] sm:$0xff]  ;;  %v804_v26 = vld [vmem:[%s8218_s28 + $0x40] sm:$0xff] }
  0x15   : > { %7205 = vmatprep.subr.bf16.mxu0 %v8223_v17  ;;  %6728 = vmatprep.mubr.msk.f32.mxu1 %vm959_vm0, %v732_v22  ;;  %v735_v27 = vld [vmem:[%s8238_s19 + $0x18] sm:$0xff]  ;;  %v736_v28 = vld [vmem:[%s8238_s19 + $0x20] sm:$0xff]  ;;  %v805_v29 = vld [vmem:[%s8218_s28 + $0x48] sm:$0xff] }
  0x16   : > { %6729 = vmatmul.mubr.msk.f32.vlgmr.msra.gmra.mrb[0].mxu1 %vm959_vm0, %v733_v24  ;;  %v806_v30 = vld [vmem:[%s8218_s28 + $0x50] sm:$0xff]  ;;  %v737_v31 = vld [vmem:[%s8238_s19 + $0x28] sm:$0xff]  ;;  %v807_v33 = vld [vmem:[%s8218_s28 + $0x58] sm:$0xff] }
  0x17   : > { %6836 = vmatmul.mubr.msk.f32.gmra.mrb[2].mxu0 %vm959_vm0, %v799_v18  ;;  %6731 = vmatprep.mubr.msk.f32.mxu1 %vm959_vm0, %v734_v25  ;;  %v738_v32 = vld [vmem:[%s8238_s19 + $0x30] sm:$0xff]  ;;  %v808_v34 = vld [vmem:[%s8218_s28 + $0x60] sm:$0xff]  ;;  %v739_v35 = vld [vmem:[%s8238_s19 + $0x38] sm:$0xff] }
  0x18   : > { %6838 = vmatprep.mubr.msk.f32.mxu0 %vm959_vm0, %v800_v19  ;;  %7195 = vmatpush3.bf16.msra.mxu1 %v7192_v13  ;;  %v740_v36 = vld [vmem:[%s8238_s19 + $0x40] sm:$0xff]  ;;  %v809_v37 = vld [vmem:[%s8218_s28 + $0x68] sm:$0xff]  ;;  %v810_v38 = vld [vmem:[%s8218_s28 + $0x70] sm:$0xff] }
  0x19   : > { %7216 = vmatprep.subr.bf16.mxu1 %v8184_v3  ;;  %v741_v39 = vld [vmem:[%s8238_s19 + $0x48] sm:$0xff]  ;;  %v742_v40 = vld [vmem:[%s8238_s19 + $0x50] sm:$0xff]  ;;  %v811_v41 = vld [vmem:[%s8218_s28 + $0x78] sm:$0xff] }
  0x1a   : > { %6732 = vmatmul.mubr.msk.f32.gmra.mrb[2].mxu1 %vm959_vm0, %v735_v27  ;;  %v828_v42 = vld [vmem:[%s8279_s22] sm:$0xff]  ;;  %v743_v43 = vld [vmem:[%s8238_s19 + $0x58] sm:$0xff]  ;;  %v829_v47 = vld [vmem:[%s8279_s22 + $0x8] sm:$0xff] }
  0x1b   : > { %6839 = vmatmul.mubr.msk.f32.gmra.mrb[4].mxu0 %vm959_vm0, %v801_v20  ;;  %6734 = vmatprep.mubr.msk.f32.mxu1 %vm959_vm0, %v736_v28  ;;  %v744_v46 = vld [vmem:[%s8238_s19 + $0x60] sm:$0xff]  ;;  %v830_v48 = vld [vmem:[%s8279_s22 + $0x10] sm:$0xff]  ;;  %v745_v50 = vld [vmem:[%s8238_s19 + $0x68] sm:$0xff] }
  0x1c   : > { %6841 = vmatprep.mubr.msk.f32.mxu0 %vm959_vm0, %v802_v21  ;;  %v746_v51 = vld [vmem:[%s8238_s19 + $0x70] sm:$0xff]  ;;  %v831_v52 = vld [vmem:[%s8279_s22 + $0x18] sm:$0xff]  ;;  %v832_v53 = vld [vmem:[%s8279_s22 + $0x20] sm:$0xff] }
  0x1d   : > { %v747_v54 = vld [vmem:[%s8238_s19 + $0x78] sm:$0xff]  ;;  %v748_v55 = vld [vmem:[%s8238_s19 + $0x80] sm:$0xff]  ;;  %v833_v56 = vld [vmem:[%s8279_s22 + $0x28] sm:$0xff] }
  0x1e   : > { %6735 = vmatmul.mubr.msk.f32.gmra.mrb[4].mxu1 %vm959_vm0, %v737_v31  ;;  %v834_v57 = vld [vmem:[%s8279_s22 + $0x30] sm:$0xff]  ;;  %v749_v58 = vld [vmem:[%s8238_s19 + $0x88] sm:$0xff]  ;;  %v835_v60 = vld [vmem:[%s8279_s22 + $0x38] sm:$0xff] }
  0x1f   : > { %6842 = vmatmul.mubr.msk.f32.gmra.mrb[6].mxu0 %vm959_vm0, %v803_v23  ;;  %6737 = vmatprep.mubr.msk.f32.mxu1 %vm959_vm0, %v738_v32  ;;  %v750_v59 = vld [vmem:[%s8238_s19 + $0x90] sm:$0xff]  ;;  %v836_v61 = vld [vmem:[%s8279_s22 + $0x40] sm:$0xff]  ;;  %v751_v62 = vld [vmem:[%s8238_s19 + $0x98] sm:$0xff] }
  0x20   : > { %6844 = vmatprep.mubr.msk.f32.mxu0 %vm959_vm0, %v804_v26  ;;  %v752_v63 = vld [vmem:[%s8238_s19 + $0xa0] sm:$0xff]  ;;  %v837_v0 = vld [vmem:[%s8279_s22 + $0x48] sm:$0xff]  ;;  %v838_v1 = vld [vmem:[%s8279_s22 + $0x50] sm:$0xff] }
  0x21   : > { %v753_v2 = vld [vmem:[%s8238_s19 + $0xa8] sm:$0xff]  ;;  %v754_v4 = vld [vmem:[%s8238_s19 + $0xb0] sm:$0xff]  ;;  %v839_v5 = vld [vmem:[%s8279_s22 + $0x58] sm:$0xff] }
  0x22   : > { %6738 = vmatmul.mubr.msk.f32.gmra.mrb[6].mxu1 %vm959_vm0, %v739_v35  ;;  %v840_v6 = vld [vmem:[%s8279_s22 + $0x60] sm:$0xff]  ;;  %v755_v7 = vld [vmem:[%s8238_s19 + $0xb8] sm:$0xff]  ;;  %v841_v9 = vld [vmem:[%s8279_s22 + $0x68] sm:$0xff] }
  0x23   : > { %6845 = vmatmul.mubr.msk.f32.gmra.mrb[8].mxu0 %vm959_vm0, %v805_v29  ;;  %6740 = vmatprep.mubr.msk.f32.mxu1 %vm959_vm0, %v740_v36  ;;  %v756_v8 = vld [vmem:[%s8238_s19 + $0xc0] sm:$0xff]  ;;  %v842_v10 = vld [vmem:[%s8279_s22 + $0x70] sm:$0xff]  ;;  %v757_v11 = vld [vmem:[%s8238_s19 + $0xc8] sm:$0xff] }
  0x24   : > { %6847 = vmatprep.mubr.msk.f32.mxu0 %vm959_vm0, %v806_v30  ;;  %v758_v12 = vld [vmem:[%s8238_s19 + $0xd0] sm:$0xff]  ;;  %v843_v13 = vld [vmem:[%s8279_s22 + $0x78] sm:$0xff]  ;;  %v844_v14 = vld [vmem:[%s8279_s22 + $0x80] sm:$0xff] }
  0x25   : > { %v759_v15 = vld [vmem:[%s8238_s19 + $0xd8] sm:$0xff]  ;;  %v760_v16 = vld [vmem:[%s8238_s19 + $0xe0] sm:$0xff]  ;;  %v846_v18 = vld [vmem:[%s8279_s22 + $0x90] sm:$0xff] }
  0x26   : > { %6741 = vmatmul.mubr.msk.f32.gmra.mrb[8].mxu1 %vm959_vm0, %v741_v39  ;;  %v761_v19 = vld [vmem:[%s8238_s19 + $0xe8] sm:$0xff]  ;;  %v762_v20 = vld [vmem:[%s8238_s19 + $0xf0] sm:$0xff]  ;;  %v847_v21 = vld [vmem:[%s8279_s22 + $0x98] sm:$0xff] }
  0x27   : > { %6848 = vmatmul.mubr.msk.f32.gmra.mrb[10].mxu0 %vm959_vm0, %v807_v33  ;;  %6743 = vmatprep.mubr.msk.f32.mxu1 %vm959_vm0, %v742_v40  ;;  %v848_v22 = vld [vmem:[%s8279_s22 + $0xa0] sm:$0xff]  ;;  %v763_v23 = vld [vmem:[%s8238_s19 + $0xf8] sm:$0xff]  ;;  %v849_v25 = vld [vmem:[%s8279_s22 + $0xa8] sm:$0xff] }
  0x28   : > { %6850 = vmatprep.mubr.msk.f32.mxu0 %vm959_vm0, %v808_v34  ;;  %v764_v24 = vld [vmem:[%s8381_s20] sm:$0xff]  ;;  %v850_v26 = vld [vmem:[%s8279_s22 + $0xb0] sm:$0xff]  ;;  %v765_v27 = vld [vmem:[%s8381_s20 + $0x8] sm:$0xff] }
  0x29   : > { %v766_v28 = vld [vmem:[%s8381_s20 + $0x10] sm:$0xff]  ;;  %v851_v29 = vld [vmem:[%s8279_s22 + $0xb8] sm:$0xff]  ;;  %v852_v30 = vld [vmem:[%s8279_s22 + $0xc0] sm:$0xff] }
  0x2a   : > { %6744 = vmatmul.mubr.msk.f32.gmra.mrb[10].mxu1 %vm959_vm0, %v743_v43  ;;  %v767_v31 = vld [vmem:[%s8381_s20 + $0x18] sm:$0xff]  ;;  %v768_v32 = vld [vmem:[%s8381_s20 + $0x20] sm:$0xff]  ;;  %v853_v33 = vld [vmem:[%s8279_s22 + $0xc8] sm:$0xff] }
  0x2b   : > { %6851 = vmatmul.mubr.msk.f32.gmra.mrb[12].mxu0 %vm959_vm0, %v809_v37  ;;  %6746 = vmatprep.mubr.msk.f32.mxu1 %vm959_vm0, %v744_v46  ;;  %v854_v34 = vld [vmem:[%s8279_s22 + $0xd0] sm:$0xff]  ;;  %v769_v35 = vld [vmem:[%s8381_s20 + $0x28] sm:$0xff]  ;;  %v855_v36 = vld [vmem:[%s8279_s22 + $0xd8] sm:$0xff] }
  0x2c   : > { %6853 = vmatprep.mubr.msk.f32.mxu0 %vm959_vm0, %v810_v38  ;;  %v856_v37 = vld [vmem:[%s8279_s22 + $0xe0] sm:$0xff]  ;;  %v771_v38 = vld [vmem:[%s8381_s20 + $0x38] sm:$0xff]  ;;  %v857_v40 = vld [vmem:[%s8279_s22 + $0xe8] sm:$0xff] }
  0x2d   : > { %v772_v39 = vld [vmem:[%s8381_s20 + $0x40] sm:$0xff]  ;;  %v774_v43 = vld [vmem:[%s8381_s20 + $0x50] sm:$0xff]  ;;  %v859_v44 = vld [vmem:[%s8279_s22 + $0xf8] sm:$0xff] }
  0x2e   : > { %6747 = vmatmul.mubr.msk.f32.gmra.mrb[12].mxu1 %vm959_vm0, %v745_v50  ;;  %v860_v45 = vld [vmem:[%s8430_s24] sm:$0xff]  ;;  %v775_v46 = vld [vmem:[%s8381_s20 + $0x58] sm:$0xff] }
  0x2f   : > { %6854 = vmatmul.mubr.msk.f32.gmra.mrb[14].mxu0 %vm959_vm0, %v811_v41  ;;  %6749 = vmatprep.mubr.msk.f32.mxu1 %vm959_vm0, %v746_v51  ;;  %v858_v41 = vld [vmem:[%s8279_s22 + $0xf0] sm:$0xff]  ;;  %v776_v50 = vld [vmem:[%s8381_s20 + $0x60] sm:$0xff]  ;;  %v861_v51 = vld [vmem:[%s8430_s24 + $0x8] sm:$0xff] }
  0x30   : > { %6884 = vmatprep.mubr.msk.f32.mxu0 %vm959_vm0, %v828_v42  ;;  %v773_v42 = vld [vmem:[%s8381_s20 + $0x48] sm:$0xff] }
  0x32   : > { %6750 = vmatmul.mubr.msk.f32.gmra.mrb[14].mxu1 %vm959_vm0, %v747_v54  ;;  %v777_v54 = vld [vmem:[%s8381_s20 + $0x68] sm:$0xff] }
  0x33   : > { %6885 = vmatmul.mubr.msk.f32.vlgmr.msra.gmra.mrb[0].mxu0 %vm959_vm0, %v829_v47  ;;  %6752 = vmatprep.mubr.msk.f32.mxu1 %vm959_vm0, %v748_v55  ;;  %v6276_v47 = vld [vmem:[%s10158_s7 + $0x60] sm:$0xff]  ;;  %v778_v55 = vld [vmem:[%s8381_s20 + $0x70] sm:$0xff] }
  0x34   : > { %7207 = vmatpush3.bf16.msra.mxu0 %v8223_v17  ;;  %6887 = vmatprep.mubr.msk.f32.mxu0 %vm959_vm0, %v830_v48  ;;  %v845_v17 = vld [vmem:[%s8279_s22 + $0x88] sm:$0xff] }
  0x35   : > { %7209 = vmatprep.subr.bf16.mxu0 %v8303_v49  ;;  %v6277_v48 = vld [vmem:[%s10158_s7 + $0x68] sm:$0xff] }
  0x36   : > { %6753 = vmatmul.mubr.msk.f32.gmra.mrb[16].mxu1 %vm959_vm0, %v749_v58  ;;  %v779_v58 = vld [vmem:[%s8381_s20 + $0x78] sm:$0xff] }
  0x37   : > { %6888 = vmatmul.mubr.msk.f32.gmra.mrb[2].mxu0 %vm959_vm0, %v831_v52  ;;  %6755 = vmatprep.mubr.msk.f32.mxu1 %vm959_vm0, %v750_v59  ;;  %v862_v52 = vld [vmem:[%s8430_s24 + $0x10] sm:$0xff]  ;;  %v780_v59 = vld [vmem:[%s8381_s20 + $0x80] sm:$0xff] }
  0x38   : > { %6890 = vmatprep.mubr.msk.f32.mxu0 %vm959_vm0, %v832_v53  ;;  %v8454_v53 = vpack.c.bf16 %v6277_v48, %v6276_v47  ;;  %v891_v47 = vld [vmem:[%s8430_s24 + $0xf8] sm:$0xff]  ;;  %v892_v48 = vld [vmem:[%s8574_s26] sm:$0xff] }
  0x3a   : > { %6756 = vmatmul.mubr.msk.f32.gmra.mrb[18].mxu1 %vm959_vm0, %v751_v62  ;;  %v782_v62 = vld [vmem:[%s8381_s20 + $0x90] sm:$0xff] }
  0x3b   : > { %6891 = vmatmul.mubr.msk.f32.gmra.mrb[4].mxu0 %vm959_vm0, %v833_v56  ;;  %6758 = vmatprep.mubr.msk.f32.mxu1 %vm959_vm0, %v752_v63  ;;  %v863_v56 = vld [vmem:[%s8430_s24 + $0x18] sm:$0xff] }
  0x3c   : > { %6893 = vmatprep.mubr.msk.f32.mxu0 %vm959_vm0, %v834_v57  ;;  %v864_v57 = vld [vmem:[%s8430_s24 + $0x20] sm:$0xff]  ;;  %v867_v63 = vld [vmem:[%s8430_s24 + $0x38] sm:$0xff] }
  0x3e   : > { %6759 = vmatmul.mubr.msk.f32.gmra.mrb[20].mxu1 %vm959_vm0, %v753_v2  ;;  %v784_v2 = vld [vmem:[%s8381_s20 + $0xa0] sm:$0xff] }
  0x3f   : > { %6894 = vmatmul.mubr.msk.f32.gmra.mrb[6].mxu0 %vm959_vm0, %v835_v60  ;;  %6761 = vmatprep.mubr.msk.f32.mxu1 %vm959_vm0, %v754_v4  ;;  %v866_v60 = vld [vmem:[%s8430_s24 + $0x30] sm:$0xff]  ;;  %v869_v4 = vld [vmem:[%s8430_s24 + $0x48] sm:$0xff] }
  0x40   : > { %6896 = vmatprep.mubr.msk.f32.mxu0 %vm959_vm0, %v836_v61  ;;  %v781_v61 = vld [vmem:[%s8381_s20 + $0x88] sm:$0xff] }
  0x42   : > { %6762 = vmatmul.mubr.msk.f32.gmra.mrb[22].mxu1 %vm959_vm0, %v755_v7  ;;  %v786_v7 = vld [vmem:[%s8381_s20 + $0xb0] sm:$0xff] }
  0x43   : > { %6897 = vmatmul.mubr.msk.f32.gmra.mrb[8].mxu0 %vm959_vm0, %v837_v0  ;;  %6764 = vmatprep.mubr.msk.f32.mxu1 %vm959_vm0, %v756_v8  ;;  %v868_v0 = vld [vmem:[%s8430_s24 + $0x40] sm:$0xff]  ;;  %v871_v8 = vld [vmem:[%s8430_s24 + $0x58] sm:$0xff] }
  0x44   : > { %6899 = vmatprep.mubr.msk.f32.mxu0 %vm959_vm0, %v838_v1  ;;  %v783_v1 = vld [vmem:[%s8381_s20 + $0x98] sm:$0xff] }
  0x46   : > { %6765 = vmatmul.mubr.msk.f32.gmra.mrb[24].mxu1 %vm959_vm0, %v757_v11  ;;  %v788_v11 = vld [vmem:[%s8381_s20 + $0xc0] sm:$0xff] }
  0x47   : > { %6900 = vmatmul.mubr.msk.f32.gmra.mrb[10].mxu0 %vm959_vm0, %v839_v5  ;;  %6767 = vmatprep.mubr.msk.f32.mxu1 %vm959_vm0, %v758_v12  ;;  %v870_v5 = vld [vmem:[%s8430_s24 + $0x50] sm:$0xff]  ;;  %v873_v12 = vld [vmem:[%s8430_s24 + $0x68] sm:$0xff] }
  0x48   : > { %6902 = vmatprep.mubr.msk.f32.mxu0 %vm959_vm0, %v840_v6  ;;  %v785_v6 = vld [vmem:[%s8381_s20 + $0xa8] sm:$0xff] }
  0x4a   : > { %6768 = vmatmul.mubr.msk.f32.gmra.mrb[26].mxu1 %vm959_vm0, %v759_v15  ;;  %v790_v15 = vld [vmem:[%s8381_s20 + $0xd0] sm:$0xff] }
  0x4b   : > { %6903 = vmatmul.mubr.msk.f32.gmra.mrb[12].mxu0 %vm959_vm0, %v841_v9  ;;  %6770 = vmatprep.mubr.msk.f32.mxu1 %vm959_vm0, %v760_v16  ;;  %v872_v9 = vld [vmem:[%s8430_s24 + $0x60] sm:$0xff]  ;;  %v875_v16 = vld [vmem:[%s8430_s24 + $0x78] sm:$0xff] }
  0x4c   : > { %6905 = vmatprep.mubr.msk.f32.mxu0 %vm959_vm0, %v842_v10  ;;  %v787_v10 = vld [vmem:[%s8381_s20 + $0xb8] sm:$0xff] }
  0x4e   : > { %6771 = vmatmul.mubr.msk.f32.gmra.mrb[28].mxu1 %vm959_vm0, %v761_v19  ;;  %v792_v19 = vld [vmem:[%s8381_s20 + $0xe0] sm:$0xff] }
  0x4f   : > { %6906 = vmatmul.mubr.msk.f32.gmra.mrb[14].mxu0 %vm959_vm0, %v843_v13  ;;  %6773 = vmatprep.mubr.msk.f32.mxu1 %vm959_vm0, %v762_v20  ;;  %v874_v13 = vld [vmem:[%s8430_s24 + $0x70] sm:$0xff]  ;;  %v877_v20 = vld [vmem:[%s8430_s24 + $0x88] sm:$0xff] }
  0x50   : > { %6908 = vmatprep.mubr.msk.f32.mxu0 %vm959_vm0, %v844_v14  ;;  %v789_v14 = vld [vmem:[%s8381_s20 + $0xc8] sm:$0xff] }
  0x52   : > { %6774 = vmatmul.mubr.msk.f32.gmra.mrb[30].mxu1 %vm959_vm0, %v763_v23  ;;  %v794_v23 = vld [vmem:[%s8381_s20 + $0xf0] sm:$0xff] }
  0x53   : > { %6909 = vmatmul.mubr.msk.f32.gmra.mrb[16].mxu0 %vm959_vm0, %v845_v17  ;;  %6780 = vmatprep.mubr.msk.f32.mxu1 %vm959_vm0, %v764_v24  ;;  %v876_v17 = vld [vmem:[%s8430_s24 + $0x80] sm:$0xff]  ;;  %v879_v24 = vld [vmem:[%s8430_s24 + $0x98] sm:$0xff] }
  0x54   : > { %6911 = vmatprep.mubr.msk.f32.mxu0 %vm959_vm0, %v846_v18  ;;  %v791_v18 = vld [vmem:[%s8381_s20 + $0xd8] sm:$0xff] }
  0x56   : > { %6781 = vmatmul.mubr.msk.f32.vlgmr.msra.gmra.mrb[0].mxu1 %vm959_vm0, %v765_v27  ;;  %v812_v27 = vld [vmem:[%s8218_s28 + $0x80] sm:$0xff] }
  0x57   : > { %6912 = vmatmul.mubr.msk.f32.gmra.mrb[18].mxu0 %vm959_vm0, %v847_v21  ;;  %6783 = vmatprep.mubr.msk.f32.mxu1 %vm959_vm0, %v766_v28  ;;  %v878_v21 = vld [vmem:[%s8430_s24 + $0x90] sm:$0xff]  ;;  %v881_v28 = vld [vmem:[%s8430_s24 + $0xa8] sm:$0xff] }
  0x58   : > { %6914 = vmatprep.mubr.msk.f32.mxu0 %vm959_vm0, %v848_v22  ;;  %7217 = vmatpush3.bf16.msra.mxu1 %v8184_v3  ;;  %v770_v3 = vld [vmem:[%s8381_s20 + $0x30] sm:$0xff]  ;;  %v793_v22 = vld [vmem:[%s8381_s20 + $0xe8] sm:$0xff] }
  0x5a   : > { %6784 = vmatmul.mubr.msk.f32.gmra.mrb[2].mxu1 %vm959_vm0, %v767_v31  ;;  %v814_v31 = vld [vmem:[%s8218_s28 + $0x90] sm:$0xff] }
  0x5b   : > { %6915 = vmatmul.mubr.msk.f32.gmra.mrb[20].mxu0 %vm959_vm0, %v849_v25  ;;  %6786 = vmatprep.mubr.msk.f32.mxu1 %vm959_vm0, %v768_v32  ;;  %v880_v25 = vld [vmem:[%s8430_s24 + $0xa0] sm:$0xff]  ;;  %v883_v32 = vld [vmem:[%s8430_s24 + $0xb8] sm:$0xff] }
  0x5c   : > { %6917 = vmatprep.mubr.msk.f32.mxu0 %vm959_vm0, %v850_v26  ;;  %v795_v26 = vld [vmem:[%s8381_s20 + $0xf8] sm:$0xff] }
  0x5e   : > { %6787 = vmatmul.mubr.msk.f32.gmra.mrb[4].mxu1 %vm959_vm0, %v769_v35  ;;  %v816_v35 = vld [vmem:[%s8218_s28 + $0xa0] sm:$0xff] }
  0x5f   : > { %6918 = vmatmul.mubr.msk.f32.gmra.mrb[22].mxu0 %vm959_vm0, %v851_v29  ;;  %6789 = vmatprep.mubr.msk.f32.mxu1 %vm959_vm0, %v770_v3  ;;  %v882_v29 = vld [vmem:[%s8430_s24 + $0xb0] sm:$0xff]  ;;  %v885_v3 = vld [vmem:[%s8430_s24 + $0xc8] sm:$0xff] }
  0x60   : > { %6920 = vmatprep.mubr.msk.f32.mxu0 %vm959_vm0, %v852_v30  ;;  %v813_v30 = vld [vmem:[%s8218_s28 + $0x88] sm:$0xff] }
  0x62   : > { %6790 = vmatmul.mubr.msk.f32.gmra.mrb[6].mxu1 %vm959_vm0, %v771_v38  ;;  %v818_v38 = vld [vmem:[%s8218_s28 + $0xb0] sm:$0xff] }
  0x63   : > { %6921 = vmatmul.mubr.msk.f32.gmra.mrb[24].mxu0 %vm959_vm0, %v853_v33  ;;  %6792 = vmatprep.mubr.msk.f32.mxu1 %vm959_vm0, %v772_v39  ;;  %v884_v33 = vld [vmem:[%s8430_s24 + $0xc0] sm:$0xff]  ;;  %v887_v39 = vld [vmem:[%s8430_s24 + $0xd8] sm:$0xff] }
  0x64   : > { %6923 = vmatprep.mubr.msk.f32.mxu0 %vm959_vm0, %v854_v34  ;;  %v815_v34 = vld [vmem:[%s8218_s28 + $0x98] sm:$0xff] }
  0x66   : > { %6793 = vmatmul.mubr.msk.f32.gmra.mrb[8].mxu1 %vm959_vm0, %v773_v42  ;;  %v820_v42 = vld [vmem:[%s8218_s28 + $0xc0] sm:$0xff] }
  0x67   : > { %6924 = vmatmul.mubr.msk.f32.gmra.mrb[26].mxu0 %vm959_vm0, %v855_v36  ;;  %6795 = vmatprep.mubr.msk.f32.mxu1 %vm959_vm0, %v774_v43  ;;  %v886_v36 = vld [vmem:[%s8430_s24 + $0xd0] sm:$0xff]  ;;  %v889_v43 = vld [vmem:[%s8430_s24 + $0xe8] sm:$0xff] }
  0x68   : > { %6926 = vmatprep.mubr.msk.f32.mxu0 %vm959_vm0, %v856_v37  ;;  %v817_v37 = vld [vmem:[%s8218_s28 + $0xa8] sm:$0xff] }
  0x6a   : > { %6796 = vmatmul.mubr.msk.f32.gmra.mrb[10].mxu1 %vm959_vm0, %v775_v46  ;;  %v822_v46 = vld [vmem:[%s8218_s28 + $0xd0] sm:$0xff] }
  0x6b   : > { %6927 = vmatmul.mubr.msk.f32.gmra.mrb[28].mxu0 %vm959_vm0, %v857_v40  ;;  %6798 = vmatprep.mubr.msk.f32.mxu1 %vm959_vm0, %v776_v50  ;;  %v888_v40 = vld [vmem:[%s8430_s24 + $0xe0] sm:$0xff]  ;;  %v823_v50 = vld [vmem:[%s8218_s28 + $0xd8] sm:$0xff] }
  0x6c   : > { %6929 = vmatprep.mubr.msk.f32.mxu0 %vm959_vm0, %v858_v41  ;;  %v819_v41 = vld [vmem:[%s8218_s28 + $0xb8] sm:$0xff] }
  0x6e   : > { %6799 = vmatmul.mubr.msk.f32.gmra.mrb[12].mxu1 %vm959_vm0, %v777_v54  ;;  %v894_v54 = vld [vmem:[%s8574_s26 + $0x10] sm:$0xff] }
  0x6f   : > { %6930 = vmatmul.mubr.msk.f32.gmra.mrb[30].mxu0 %vm959_vm0, %v859_v44  ;;  %6801 = vmatprep.mubr.msk.f32.mxu1 %vm959_vm0, %v778_v55  ;;  %v890_v44 = vld [vmem:[%s8430_s24 + $0xf0] sm:$0xff]  ;;  %v825_v55 = vld [vmem:[%s8218_s28 + $0xe8] sm:$0xff] }
  0x70   : > { %6936 = vmatprep.mubr.msk.f32.mxu0 %vm959_vm0, %v860_v45  ;;  %v821_v45 = vld [vmem:[%s8218_s28 + $0xc8] sm:$0xff] }
  0x72   : > { %6802 = vmatmul.mubr.msk.f32.gmra.mrb[14].mxu1 %vm959_vm0, %v779_v58  ;;  %v896_v58 = vld [vmem:[%s8574_s26 + $0x20] sm:$0xff] }
  0x73   : > { %6937 = vmatmul.mubr.msk.f32.vlgmr.msra.gmra.mrb[0].mxu0 %vm959_vm0, %v861_v51  ;;  %6804 = vmatprep.mubr.msk.f32.mxu1 %vm959_vm0, %v780_v59  ;;  %v824_v51 = vld [vmem:[%s8218_s28 + $0xe0] sm:$0xff]  ;;  %v827_v59 = vld [vmem:[%s8218_s28 + $0xf8] sm:$0xff] }
  0x74   : > { %7211 = vmatpush3.bf16.msra.mxu0 %v8303_v49  ;;  %6939 = vmatprep.mubr.msk.f32.mxu0 %vm959_vm0, %v862_v52  ;;  %v865_v49 = vld [vmem:[%s8430_s24 + $0x28] sm:$0xff] }
  0x75   : > { %7213 = vmatprep.subr.bf16.mxu0 %v8454_v53  ;;  %v893_v52 = vld [vmem:[%s8574_s26 + $0x8] sm:$0xff] }
  0x76   : > { %6805 = vmatmul.mubr.msk.f32.gmra.mrb[16].mxu1 %vm959_vm0, %v781_v61  ;;  %v900_v61 = vld [vmem:[%s8574_s26 + $0x40] sm:$0xff] }
  0x77   : > { %6940 = vmatmul.mubr.msk.f32.gmra.mrb[2].mxu0 %vm959_vm0, %v863_v56  ;;  %6807 = vmatprep.mubr.msk.f32.mxu1 %vm959_vm0, %v782_v62  ;;  %v826_v56 = vld [vmem:[%s8218_s28 + $0xf0] sm:$0xff]  ;;  %v901_v62 = vld [vmem:[%s8574_s26 + $0x48] sm:$0xff] }
  0x78   : > { %6942 = vmatprep.mubr.msk.f32.mxu0 %vm959_vm0, %v864_v57  ;;  %v895_v57 = vld [vmem:[%s8574_s26 + $0x18] sm:$0xff] }
  0x7a   : > { %6808 = vmatmul.mubr.msk.f32.gmra.mrb[18].mxu1 %vm959_vm0, %v783_v1  ;;  %v904_v1 = vld [vmem:[%s8574_s26 + $0x60] sm:$0xff] }
  0x7b   : > { %6943 = vmatmul.mubr.msk.f32.gmra.mrb[4].mxu0 %vm959_vm0, %v865_v49  ;;  %6810 = vmatprep.mubr.msk.f32.mxu1 %vm959_vm0, %v784_v2  ;;  %v897_v49 = vld [vmem:[%s8574_s26 + $0x28] sm:$0xff] }
  0x7c   : > { %6945 = vmatprep.mubr.msk.f32.mxu0 %vm959_vm0, %v866_v60  ;;  %v898_v60 = vld [vmem:[%s8574_s26 + $0x30] sm:$0xff]  ;;  %v905_v2 = vld [vmem:[%s8574_s26 + $0x68] sm:$0xff] }
  0x7e   : > { %6811 = vmatmul.mubr.msk.f32.gmra.mrb[20].mxu1 %vm959_vm0, %v785_v6  ;;  %v908_v6 = vld [vmem:[%s8574_s26 + $0x80] sm:$0xff] }
  0x7f   : > { %6946 = vmatmul.mubr.msk.f32.gmra.mrb[6].mxu0 %vm959_vm0, %v867_v63  ;;  %6813 = vmatprep.mubr.msk.f32.mxu1 %vm959_vm0, %v786_v7  ;;  %v902_v63 = vld [vmem:[%s8574_s26 + $0x50] sm:$0xff]  ;;  %v909_v7 = vld [vmem:[%s8574_s26 + $0x88] sm:$0xff] }
  0x80   : > { %6948 = vmatprep.mubr.msk.f32.mxu0 %vm959_vm0, %v868_v0  ;;  %v903_v0 = vld [vmem:[%s8574_s26 + $0x58] sm:$0xff] }
  0x82   : > { %6814 = vmatmul.mubr.msk.f32.gmra.mrb[22].mxu1 %vm959_vm0, %v787_v10  ;;  %v912_v10 = vld [vmem:[%s8574_s26 + $0xa0] sm:$0xff] }
  0x83   : > { %6949 = vmatmul.mubr.msk.f32.gmra.mrb[8].mxu0 %vm959_vm0, %v869_v4  ;;  %6816 = vmatprep.mubr.msk.f32.mxu1 %vm959_vm0, %v788_v11  ;;  %v906_v4 = vld [vmem:[%s8574_s26 + $0x70] sm:$0xff]  ;;  %v913_v11 = vld [vmem:[%s8574_s26 + $0xa8] sm:$0xff] }
  0x84   : > { %6951 = vmatprep.mubr.msk.f32.mxu0 %vm959_vm0, %v870_v5  ;;  %v907_v5 = vld [vmem:[%s8574_s26 + $0x78] sm:$0xff] }
  0x86   : > { %6817 = vmatmul.mubr.msk.f32.gmra.mrb[24].mxu1 %vm959_vm0, %v789_v14  ;;  %v916_v14 = vld [vmem:[%s8574_s26 + $0xc0] sm:$0xff] }
  0x87   : > { %6952 = vmatmul.mubr.msk.f32.gmra.mrb[10].mxu0 %vm959_vm0, %v871_v8  ;;  %6819 = vmatprep.mubr.msk.f32.mxu1 %vm959_vm0, %v790_v15  ;;  %v910_v8 = vld [vmem:[%s8574_s26 + $0x90] sm:$0xff]  ;;  %v917_v15 = vld [vmem:[%s8574_s26 + $0xc8] sm:$0xff] }
  0x88   : > { %6954 = vmatprep.mubr.msk.f32.mxu0 %vm959_vm0, %v872_v9  ;;  %v911_v9 = vld [vmem:[%s8574_s26 + $0x98] sm:$0xff] }
  0x8a   : > { %6820 = vmatmul.mubr.msk.f32.gmra.mrb[26].mxu1 %vm959_vm0, %v791_v18  ;;  %v920_v18 = vld [vmem:[%s8574_s26 + $0xe0] sm:$0xff] }
  0x8b   : > { %6955 = vmatmul.mubr.msk.f32.gmra.mrb[12].mxu0 %vm959_vm0, %v873_v12  ;;  %6822 = vmatprep.mubr.msk.f32.mxu1 %vm959_vm0, %v792_v19  ;;  %v914_v12 = vld [vmem:[%s8574_s26 + $0xb0] sm:$0xff]  ;;  %v921_v19 = vld [vmem:[%s8574_s26 + $0xe8] sm:$0xff] }
  0x8c   : > { %6957 = vmatprep.mubr.msk.f32.mxu0 %vm959_vm0, %v874_v13  ;;  %v915_v13 = vld [vmem:[%s8574_s26 + $0xb8] sm:$0xff] }
  0x8e   : > { %6823 = vmatmul.mubr.msk.f32.gmra.mrb[28].mxu1 %vm959_vm0, %v793_v22  ;;  %v924_v22 = vld [vmem:[%s8660_s18] sm:$0xff] }
  0x8f   : > { %6958 = vmatmul.mubr.msk.f32.gmra.mrb[14].mxu0 %vm959_vm0, %v875_v16  ;;  %6825 = vmatprep.mubr.msk.f32.mxu1 %vm959_vm0, %v794_v23  ;;  %v918_v16 = vld [vmem:[%s8574_s26 + $0xd0] sm:$0xff]  ;;  %v925_v23 = vld [vmem:[%s8660_s18 + $0x8] sm:$0xff] }
  0x90   : > { %6960 = vmatprep.mubr.msk.f32.mxu0 %vm959_vm0, %v876_v17  ;;  %v919_v17 = vld [vmem:[%s8574_s26 + $0xd8] sm:$0xff] }
  0x92   : > { %6826 = vmatmul.mubr.msk.f32.gmra.mrb[30].mxu1 %vm959_vm0, %v795_v26  ;;  %v928_v26 = vld [vmem:[%s8660_s18 + $0x20] sm:$0xff] }
  0x93   : > { %6961 = vmatmul.mubr.msk.f32.gmra.mrb[16].mxu0 %vm959_vm0, %v877_v20  ;;  %6856 = vmatprep.mubr.msk.f32.mxu1 %vm959_vm0, %v812_v27  ;;  %v922_v20 = vld [vmem:[%s8574_s26 + $0xf0] sm:$0xff]  ;;  %v929_v27 = vld [vmem:[%s8660_s18 + $0x28] sm:$0xff] }
  0x94   : > { %6963 = vmatprep.mubr.msk.f32.mxu0 %vm959_vm0, %v878_v21  ;;  %v923_v21 = vld [vmem:[%s8574_s26 + $0xf8] sm:$0xff] }
  0x96   : > { %6857 = vmatmul.mubr.msk.f32.vlgmr.msra.gmra.mrb[16].mxu1 %vm959_vm0, %v813_v30  ;;  %v931_v30 = vld [vmem:[%s8660_s18 + $0x38] sm:$0xff] }
  0x97   : > { %6964 = vmatmul.mubr.msk.f32.gmra.mrb[18].mxu0 %vm959_vm0, %v879_v24  ;;  %6859 = vmatprep.mubr.msk.f32.mxu1 %vm959_vm0, %v814_v31  ;;  %v926_v24 = vld [vmem:[%s8660_s18 + $0x10] sm:$0xff]  ;;  %v932_v31 = vld [vmem:[%s8660_s18 + $0x40] sm:$0xff] }
  0x98   : > { %6966 = vmatprep.mubr.msk.f32.mxu0 %vm959_vm0, %v880_v25  ;;  %v927_v25 = vld [vmem:[%s8660_s18 + $0x18] sm:$0xff] }
  0x9a   : > { %6860 = vmatmul.mubr.msk.f32.gmra.mrb[18].mxu1 %vm959_vm0, %v815_v34  ;;  %v935_v34 = vld [vmem:[%s8660_s18 + $0x58] sm:$0xff] }
  0x9b   : > { %6967 = vmatmul.mubr.msk.f32.gmra.mrb[20].mxu0 %vm959_vm0, %v881_v28  ;;  %6862 = vmatprep.mubr.msk.f32.mxu1 %vm959_vm0, %v816_v35  ;;  %v930_v28 = vld [vmem:[%s8660_s18 + $0x30] sm:$0xff]  ;;  %v936_v35 = vld [vmem:[%s8660_s18 + $0x60] sm:$0xff] }
  0x9c   : > { %6969 = vmatprep.mubr.msk.f32.mxu0 %vm959_vm0, %v882_v29  ;;  %v3487_v29 = vld [vmem:[%s10160_s9] sm:$0x7f] }
  0x9d   : > { %7088 = vmatprep.subr.msk.mxu1 %vm3592_vm1, %v3487_v29 }
  0x9e   : > { %6863 = vmatmul.mubr.msk.f32.gmra.mrb[20].mxu1 %vm959_vm0, %v817_v37  ;;  %v939_v37 = vld [vmem:[%s8660_s18 + $0x78] sm:$0xff] }
  0x9f   : > { %6970 = vmatmul.mubr.msk.f32.gmra.mrb[22].mxu0 %vm959_vm0, %v883_v32  ;;  %6865 = vmatprep.mubr.msk.f32.mxu1 %vm959_vm0, %v818_v38  ;;  %v933_v32 = vld [vmem:[%s8660_s18 + $0x48] sm:$0xff]  ;;  %v940_v38 = vld [vmem:[%s8660_s18 + $0x80] sm:$0xff] }
  0xa0   : > { %6972 = vmatprep.mubr.msk.f32.mxu0 %vm959_vm0, %v884_v33  ;;  %7089 = vmatpush3.msk.msra.mxu1 %vm3592_vm1, %v3487_v29  ;;  %v934_v33 = vld [vmem:[%s8660_s18 + $0x50] sm:$0xff] }
  0xa2   : > { %6866 = vmatmul.mubr.msk.f32.gmra.mrb[22].mxu1 %vm959_vm0, %v819_v41  ;;  %v943_v41 = vld [vmem:[%s8660_s18 + $0x98] sm:$0xff] }
  0xa3   : > { %6973 = vmatmul.mubr.msk.f32.gmra.mrb[24].mxu0 %vm959_vm0, %v885_v3  ;;  %6868 = vmatprep.mubr.msk.f32.mxu1 %vm959_vm0, %v820_v42  ;;  %v937_v3 = vld [vmem:[%s8660_s18 + $0x68] sm:$0xff]  ;;  %v944_v42 = vld [vmem:[%s8660_s18 + $0xa0] sm:$0xff] }
  0xa4   : > { %6975 = vmatprep.mubr.msk.f32.mxu0 %vm959_vm0, %v886_v36  ;;  %v938_v36 = vld [vmem:[%s8660_s18 + $0x70] sm:$0xff] }
  0xa6   : > { %6869 = vmatmul.mubr.msk.f32.gmra.mrb[24].mxu1 %vm959_vm0, %v821_v45  ;;  %v947_v45 = vld [vmem:[%s8660_s18 + $0xb8] sm:$0xff] }
  0xa7   : > { %6976 = vmatmul.mubr.msk.f32.gmra.mrb[26].mxu0 %vm959_vm0, %v887_v39  ;;  %6871 = vmatprep.mubr.msk.f32.mxu1 %vm959_vm0, %v822_v46  ;;  %v941_v39 = vld [vmem:[%s8660_s18 + $0x88] sm:$0xff]  ;;  %v948_v46 = vld [vmem:[%s8660_s18 + $0xc0] sm:$0xff] }
  0xa8   : > { %6978 = vmatprep.mubr.msk.f32.mxu0 %vm959_vm0, %v888_v40  ;;  %v942_v40 = vld [vmem:[%s8660_s18 + $0x90] sm:$0xff] }
  0xaa   : > { %6872 = vmatmul.mubr.msk.f32.gmra.mrb[26].mxu1 %vm959_vm0, %v823_v50  ;;  %v951_v50 = vld [vmem:[%s8660_s18 + $0xd8] sm:$0xff] }
  0xab   : > { %6979 = vmatmul.mubr.msk.f32.gmra.mrb[28].mxu0 %vm959_vm0, %v889_v43  ;;  %6874 = vmatprep.mubr.msk.f32.mxu1 %vm959_vm0, %v824_v51  ;;  %v945_v43 = vld [vmem:[%s8660_s18 + $0xa8] sm:$0xff]  ;;  %v952_v51 = vld [vmem:[%s8660_s18 + $0xe0] sm:$0xff] }
  0xac   : > { %6981 = vmatprep.mubr.msk.f32.mxu0 %vm959_vm0, %v890_v44  ;;  %v946_v44 = vld [vmem:[%s8660_s18 + $0xb0] sm:$0xff] }
  0xae   : > { %6875 = vmatmul.mubr.msk.f32.gmra.mrb[28].mxu1 %vm959_vm0, %v825_v55  ;;  %v955_v55 = vld [vmem:[%s8660_s18 + $0xf8] sm:$0xff] }
  0xaf   : > { %6982 = vmatmul.mubr.msk.f32.gmra.mrb[30].mxu0 %vm959_vm0, %v891_v47  ;;  %6877 = vmatprep.mubr.msk.f32.mxu1 %vm959_vm0, %v826_v56  ;;  %v949_v47 = vld [vmem:[%s8660_s18 + $0xc8] sm:$0xff] }
  0xb0   : > { %6988 = vmatprep.mubr.msk.f32.mxu0 %vm959_vm0, %v892_v48  ;;  %v950_v48 = vld [vmem:[%s8660_s18 + $0xd0] sm:$0xff] }
  0xb2   : > { %6878 = vmatmul.mubr.msk.f32.gmra.mrb[30].mxu1 %vm959_vm0, %v827_v59 }
  0xb3   : > { %6989 = vmatmul.mubr.msk.f32.vlgmr.msra.gmra.mrb[0].mxu0 %vm959_vm0, %v893_v52  ;;  %v953_v52 = vld [vmem:[%s8660_s18 + $0xe8] sm:$0xff] }
  0xb4   : > { %7215 = vmatpush3.bf16.msra.mxu0 %v8454_v53  ;;  %6991 = vmatprep.mubr.msk.f32.mxu0 %vm959_vm0, %v894_v54  ;;  %v899_v53 = vld [vmem:[%s8574_s26 + $0x38] sm:$0xff]  ;;  %v954_v54 = vld [vmem:[%s8660_s18 + $0xf0] sm:$0xff] }
  0xb7   : > { %6992 = vmatmul.mubr.msk.f32.gmra.mrb[2].mxu0 %vm959_vm0, %v895_v57 }
  0xb8   : > { %6994 = vmatprep.mubr.msk.f32.mxu0 %vm959_vm0, %v896_v58 }
  0xbb   : > { %6995 = vmatmul.mubr.msk.f32.gmra.mrb[4].mxu0 %vm959_vm0, %v897_v49 }
  0xbc   : > { %6997 = vmatprep.mubr.msk.f32.mxu0 %vm959_vm0, %v898_v60 }
  0xbf   : > { %6998 = vmatmul.mubr.msk.f32.gmra.mrb[6].mxu0 %vm959_vm0, %v899_v53 }
  0xc0   : > { %7000 = vmatprep.mubr.msk.f32.mxu0 %vm959_vm0, %v900_v61 }
  0xc3   : > { %7001 = vmatmul.mubr.msk.f32.gmra.mrb[8].mxu0 %vm959_vm0, %v901_v62 }
  0xc4   : > { %7003 = vmatprep.mubr.msk.f32.mxu0 %vm959_vm0, %v902_v63 }
  0xc7   : > { %7004 = vmatmul.mubr.msk.f32.gmra.mrb[10].mxu0 %vm959_vm0, %v903_v0 }
  0xc8   : > { %7006 = vmatprep.mubr.msk.f32.mxu0 %vm959_vm0, %v904_v1 }
  0xcb   : > { %7007 = vmatmul.mubr.msk.f32.gmra.mrb[12].mxu0 %vm959_vm0, %v905_v2 }
  0xcc   : > { %7009 = vmatprep.mubr.msk.f32.mxu0 %vm959_vm0, %v906_v4 }
  0xcf   : > { %7010 = vmatmul.mubr.msk.f32.gmra.mrb[14].mxu0 %vm959_vm0, %v907_v5 }
  0xd0   : > { %7012 = vmatprep.mubr.msk.f32.mxu0 %vm959_vm0, %v908_v6 }
  0xd3   : > { %7013 = vmatmul.mubr.msk.f32.gmra.mrb[16].mxu0 %vm959_vm0, %v909_v7 }
  0xd4   : > { %7015 = vmatprep.mubr.msk.f32.mxu0 %vm959_vm0, %v910_v8 }
  0xd7   : > { %7016 = vmatmul.mubr.msk.f32.gmra.mrb[18].mxu0 %vm959_vm0, %v911_v9 }
  0xd8   : > { %7018 = vmatprep.mubr.msk.f32.mxu0 %vm959_vm0, %v912_v10 }
  0xdb   : > { %7019 = vmatmul.mubr.msk.f32.gmra.mrb[20].mxu0 %vm959_vm0, %v913_v11 }
  0xdc   : > { %7021 = vmatprep.mubr.msk.f32.mxu0 %vm959_vm0, %v914_v12 }
  0xdf   : > { %7022 = vmatmul.mubr.msk.f32.gmra.mrb[22].mxu0 %vm959_vm0, %v915_v13 }
  0xe0   : > { %7024 = vmatprep.mubr.msk.f32.mxu0 %vm959_vm0, %v916_v14 }
  0xe3   : > { %7025 = vmatmul.mubr.msk.f32.gmra.mrb[24].mxu0 %vm959_vm0, %v917_v15 }
  0xe4   : > { %7027 = vmatprep.mubr.msk.f32.mxu0 %vm959_vm0, %v918_v16 }
  0xe7   : > { %7028 = vmatmul.mubr.msk.f32.gmra.mrb[26].mxu0 %vm959_vm0, %v919_v17 }
  0xe8   : > { %7030 = vmatprep.mubr.msk.f32.mxu0 %vm959_vm0, %v920_v18 }
  0xeb   : > { %7031 = vmatmul.mubr.msk.f32.gmra.mrb[28].mxu0 %vm959_vm0, %v921_v19 }
  0xec   : > { %7033 = vmatprep.mubr.msk.f32.mxu0 %vm959_vm0, %v922_v20 }
  0xef   : > { %7034 = vmatmul.mubr.msk.f32.gmra.mrb[30].mxu0 %vm959_vm0, %v923_v21  ;;  %v3853_v21 = vld [vmem:[%s10162_s11] sm:$0x7f] }
  0xf0   : > { %7040 = vmatprep.mubr.msk.f32.mxu0 %vm959_vm0, %v924_v22  ;;  %7138 = vmatprep.subr.msk.mxu1 %vm3592_vm1, %v3853_v21 }
  0xf3   : > { %7041 = vmatmul.mubr.msk.f32.vlgmr.msra.gmra.mrb[0].mxu0 %vm959_vm0, %v925_v23 }
  0xf4   : > { %7043 = vmatprep.mubr.msk.f32.mxu0 %vm959_vm0, %v926_v24  ;;  %v8790_v24 = vld [vmem:[%s10159_s8] ss:$0 sm:$0xff] }
  0xf7   : > { %7044 = vmatmul.mubr.msk.f32.gmra.mrb[2].mxu0 %vm959_vm0, %v927_v25 }
  0xf8   : > { %7046 = vmatprep.mubr.msk.f32.mxu0 %vm959_vm0, %v928_v26 }
  0xfb   : > { %7047 = vmatmul.mubr.msk.f32.gmra.mrb[4].mxu0 %vm959_vm0, %v929_v27 }
  0xfc   : > { %7049 = vmatprep.mubr.msk.f32.mxu0 %vm959_vm0, %v930_v28 }
  0xff   : > { %7050 = vmatmul.mubr.msk.f32.gmra.mrb[6].mxu0 %vm959_vm0, %v931_v30 }
 0x100   : > { %7052 = vmatprep.mubr.msk.f32.mxu0 %vm959_vm0, %v932_v31 }
 0x103   : > { %7053 = vmatmul.mubr.msk.f32.gmra.mrb[8].mxu0 %vm959_vm0, %v933_v32 }
 0x104   : > { %7055 = vmatprep.mubr.msk.f32.mxu0 %vm959_vm0, %v934_v33 }
 0x107   : > { %7056 = vmatmul.mubr.msk.f32.gmra.mrb[10].mxu0 %vm959_vm0, %v935_v34 }
 0x108   : > { %7058 = vmatprep.mubr.msk.f32.mxu0 %vm959_vm0, %v936_v35 }
 0x10b   : > { %7059 = vmatmul.mubr.msk.f32.gmra.mrb[12].mxu0 %vm959_vm0, %v937_v3 }
 0x10c   : > { %7061 = vmatprep.mubr.msk.f32.mxu0 %vm959_vm0, %v938_v36 }
 0x10f   : > { %7062 = vmatmul.mubr.msk.f32.gmra.mrb[14].mxu0 %vm959_vm0, %v939_v37 }
 0x110   : > { %7064 = vmatprep.mubr.msk.f32.mxu0 %vm959_vm0, %v940_v38 }
 0x113   : > { %7065 = vmatmul.mubr.msk.f32.gmra.mrb[16].mxu0 %vm959_vm0, %v941_v39 }
 0x114   : > { %7067 = vmatprep.mubr.msk.f32.mxu0 %vm959_vm0, %v942_v40 }
 0x117   : > { %7068 = vmatmul.mubr.msk.f32.gmra.mrb[18].mxu0 %vm959_vm0, %v943_v41 }
 0x118   : > { %7070 = vmatprep.mubr.msk.f32.mxu0 %vm959_vm0, %v944_v42 }
 0x11b   : > { %7071 = vmatmul.mubr.msk.f32.gmra.mrb[20].mxu0 %vm959_vm0, %v945_v43 }
 0x11c   : > { %7073 = vmatprep.mubr.msk.f32.mxu0 %vm959_vm0, %v946_v44 }
 0x11f   : > { %7074 = vmatmul.mubr.msk.f32.gmra.mrb[22].mxu0 %vm959_vm0, %v947_v45 }
 0x120   : > { %7076 = vmatprep.mubr.msk.f32.mxu0 %vm959_vm0, %v948_v46 }
 0x123   : > { %7077 = vmatmul.mubr.msk.f32.gmra.mrb[24].mxu0 %vm959_vm0, %v949_v47 }
 0x124   : > { %7079 = vmatprep.mubr.msk.f32.mxu0 %vm959_vm0, %v950_v48 }
 0x127   : > { %7080 = vmatmul.mubr.msk.f32.gmra.mrb[26].mxu0 %vm959_vm0, %v951_v50 }
 0x128   : > { %7082 = vmatprep.mubr.msk.f32.mxu0 %vm959_vm0, %v952_v51 }
 0x129   : > { %v6782_v56 = vpop.f32.mrb[0].mxu1 }
 0x12a   : > { %v1484_v57 = vpop.f32.mrb[1].mxu1  ;;  %v7218_v25 = vadd.f32 %v6782_v56, %v8790_v24 }
 0x12b   : > { %7083 = vmatmul.mubr.msk.f32.gmra.mrb[28].mxu0 %vm959_vm0, %v953_v52  ;;  %v7220_v26 = vadd.f32 %v8790_v24, %v1484_v57 }
 0x12c   : > { %7085 = vmatprep.mubr.msk.f32.mxu0 %vm959_vm0, %v954_v54 }
 0x12d   : > { %v6785_v58 = vpop.f32.mrb[2].mxu1 }
 0x12e   : > { %v1494_v59 = vpop.f32.mrb[3].mxu1  ;;  %v7222_v31 = vadd.f32 %v6785_v58, %v8790_v24 }
 0x12f   : > { %7086 = vmatmul.mubr.msk.f32.gmra.mrb[30].mxu0 %vm959_vm0, %v955_v55  ;;  %v7224_v32 = vadd.f32 %v8790_v24, %v1494_v59 }
 0x131   : > { %v6788_v49 = vpop.f32.mrb[4].mxu1 }
 0x132   : > { %v1504_v60 = vpop.f32.mrb[5].mxu1  ;;  %v7226_v38 = vadd.f32 %v6788_v49, %v8790_v24 }
 0x133   : > { %v7228_v39 = vadd.f32 %v8790_v24, %v1504_v60 }
 0x135   : > { %v6791_v53 = vpop.f32.mrb[6].mxu1 }
 0x136   : > { %v1514_v61 = vpop.f32.mrb[7].mxu1  ;;  %v7230_v46 = vadd.f32 %v6791_v53, %v8790_v24 }
 0x137   : > { %v7232_v47 = vadd.f32 %v8790_v24, %v1514_v61 }
 0x139   : > { %v8735_v62 = vpop.f32.mrb[8].mxu1 }
 0x13a   : > { %v8737_v63 = vpop.f32.mrb[9].mxu1  ;;  %v7234_v56 = vadd.f32 %v8735_v62, %v8790_v24 }
 0x13b   : > { %v7236_v57 = vadd.f32 %v8790_v24, %v8737_v63 }
 0x13d   : > { %v8739_v0 = vpop.f32.mrb[10].mxu1 }
 0x13e   : > { %v8741_v1 = vpop.f32.mrb[11].mxu1 }
 0x13f   : > { %v7240_v62 = vadd.f32 %v8790_v24, %v8741_v1 }
 0x141   : > { %v8743_v2 = vpop.f32.mrb[12].mxu1 }
 0x142   : > { %v8745_v4 = vpop.f32.mrb[13].mxu1 }
 0x145   : > { %v8747_v5 = vpop.f32.mrb[14].mxu1 }
 0x146   : > { %v8749_v6 = vpop.f32.mrb[15].mxu1 }
 0x169   : > { %v8751_v7 = vpop.f32.mrb[16].mxu1 }
 0x16a   : > { %v8753_v8 = vpop.f32.mrb[17].mxu1 }
 0x16d   : > { %v8755_v9 = vpop.f32.mrb[18].mxu1 }
 0x16e   : > { %v8757_v10 = vpop.f32.mrb[19].mxu1 }
 0x171   : > { %v8759_v11 = vpop.f32.mrb[20].mxu1 }
 0x172   : > { %v8761_v12 = vpop.f32.mrb[21].mxu1 }
 0x175   : > { %v8763_v13 = vpop.f32.mrb[22].mxu1 }
 0x176   : > { %v8765_v14 = vpop.f32.mrb[23].mxu1 }
 0x179   : > { %v8767_v15 = vpop.f32.mrb[24].mxu1 }
 0x17a   : > { %v8769_v16 = vpop.f32.mrb[25].mxu1 }
 0x17d   : > { %v8771_v17 = vpop.f32.mrb[26].mxu1 }
 0x17e   : > { %v8773_v18 = vpop.f32.mrb[27].mxu1 }
 0x181   : > { %v8775_v19 = vpop.f32.mrb[28].mxu1 }
 0x182   : > { %v8777_v20 = vpop.f32.mrb[29].mxu1 }
 0x185   : > { %v8783_v22 = vpop.f32.mrb[30].mxu1 }
 0x186   : > { %v8785_v23 = vpop.f32.mrb[31].mxu1 }
 0x1c6   : > { %v7042_v27 = vpop.f32.mrb[0].mxu0 }
 0x1c7   : > { %v7219_v28 = vadd.f32 %v7218_v25, %v7042_v27  ;;  %v3264_v29 = vpop.f32.mrb[1].mxu0 }
 0x1c8   : > { %v7221_v30 = vadd.f32 %v7220_v26, %v3264_v29 }
 0x1c9   : > { %v3456_v35 = vmax.f32 %v7219_v28, 0.0 }
 0x1ca   : > { %v3455_v33 = vmax.f32 %v7221_v30, 0.0  ;;  %v7045_v34 = vpop.f32.mrb[2].mxu0  ;;  %v7242_v30 = vadd.f32 %v8743_v2, %v8790_v24  ;;  %v7248_v2 = vadd.f32 %v8790_v24, %v8749_v6 }
 0x1cb   : > { %v7223_v3 = vadd.f32 %v7222_v31, %v7045_v34  ;;  %v3274_v36 = vpop.f32.mrb[3].mxu0 }
 0x1cc   : > { %v7225_v37 = vadd.f32 %v7224_v32, %v3274_v36  ;;  %7090 = vmatprep.mubr.msk.f32.mxu1 %vm3495_vm2, %v3455_v33 }
 0x1cd   : > { %7091 = vmatmul.mubr.msk.f32.vlgmr.msra.gmra.mrb[32].mxu1 %vm3495_vm2, %v3456_v35  ;;  %v3458_v42 = vmax.f32 %v7223_v3, 0.0  ;;  %v7246_v3 = vadd.f32 %v8747_v5, %v8790_v24  ;;  %v7252_v5 = vadd.f32 %v8790_v24, %v8753_v8 }
 0x1ce   : > { %v3457_v40 = vmax.f32 %v7225_v37, 0.0  ;;  %v7048_v41 = vpop.f32.mrb[4].mxu0  ;;  %7139 = vmatpush3.msk.msra.mxu1 %vm3592_vm1, %v3853_v21  ;;  %v7238_v21 = vadd.f32 %v8739_v0, %v8790_v24  ;;  %v7244_v0 = vadd.f32 %v8790_v24, %v8745_v4 }
 0x1cf   : > { %v7227_v43 = vadd.f32 %v7226_v38, %v7048_v41  ;;  %v3284_v44 = vpop.f32.mrb[5].mxu0  ;;  %v7250_v41 = vadd.f32 %v8751_v7, %v8790_v24  ;;  %v7256_v7 = vadd.f32 %v8790_v24, %v8757_v10 }
 0x1d0   : > { %v7229_v45 = vadd.f32 %v7228_v39, %v3284_v44  ;;  %7093 = vmatprep.mubr.msk.f32.mxu1 %vm3495_vm2, %v3457_v40 }
 0x1d1   : > { %7094 = vmatmul.mubr.msk.f32.gmra.mrb[34].mxu1 %vm3495_vm2, %v3458_v42  ;;  %v3460_v51 = vmax.f32 %v7227_v43, 0.0 }
 0x1d2   : > { %v3459_v48 = vmax.f32 %v7229_v45, 0.0  ;;  %v7051_v50 = vpop.f32.mrb[6].mxu0 }
 0x1d3   : > { %v7231_v52 = vadd.f32 %v7230_v46, %v7051_v50  ;;  %v3294_v54 = vpop.f32.mrb[7].mxu0 }
 0x1d4   : > { %v7233_v55 = vadd.f32 %v7232_v47, %v3294_v54  ;;  %7096 = vmatprep.mubr.msk.f32.mxu1 %vm3495_vm2, %v3459_v48  ;;  %v7254_v47 = vadd.f32 %v8755_v9, %v8790_v24  ;;  %v7260_v9 = vadd.f32 %v8790_v24, %v8761_v12 }
 0x1d5   : > { %7097 = vmatmul.mubr.msk.f32.gmra.mrb[36].mxu1 %vm3495_vm2, %v3460_v51  ;;  %v3462_v49 = vmax.f32 %v7231_v52, 0.0 }
 0x1d6   : > { %v3461_v58 = vmax.f32 %v7233_v55, 0.0  ;;  %v7054_v59 = vpop.f32.mrb[8].mxu0  ;;  %v7258_v55 = vadd.f32 %v8759_v11, %v8790_v24  ;;  %v7264_v11 = vadd.f32 %v8790_v24, %v8765_v14 }
 0x1d7   : > { %v7235_v60 = vadd.f32 %v7234_v56, %v7054_v59  ;;  %v3304_v53 = vpop.f32.mrb[9].mxu0 }
 0x1d8   : > { %v7237_v61 = vadd.f32 %v7236_v57, %v3304_v53  ;;  %7099 = vmatprep.mubr.msk.f32.mxu1 %vm3495_vm2, %v3461_v58 }
 0x1d9   : > { %7100 = vmatmul.mubr.msk.f32.gmra.mrb[38].mxu1 %vm3495_vm2, %v3462_v49  ;;  %v3464_v27 = vmax.f32 %v7235_v60, 0.0  ;;  %v7262_v60 = vadd.f32 %v8763_v13, %v8790_v24  ;;  %v7268_v13 = vadd.f32 %v8790_v24, %v8769_v16 }
 0x1da   : > { %v3463_v25 = vmax.f32 %v7237_v61, 0.0  ;;  %v7057_v26 = vpop.f32.mrb[10].mxu0 }
 0x1db   : > { %v7239_v63 = vadd.f32 %v7238_v21, %v7057_v26  ;;  %v3314_v28 = vpop.f32.mrb[11].mxu0  ;;  %v7266_v26 = vadd.f32 %v8767_v15, %v8790_v24  ;;  %v7272_v15 = vadd.f32 %v8790_v24, %v8773_v18 }
 0x1dc   : > { %v7241_v29 = vadd.f32 %v7240_v62, %v3314_v28  ;;  %7102 = vmatprep.mubr.msk.f32.mxu1 %vm3495_vm2, %v3463_v25 }
 0x1dd   : > { %7103 = vmatmul.mubr.msk.f32.gmra.mrb[40].mxu1 %vm3495_vm2, %v3464_v27  ;;  %v3466_v33 = vmax.f32 %v7239_v63, 0.0 }
 0x1de   : > { %v3465_v31 = vmax.f32 %v7241_v29, 0.0  ;;  %v7060_v32 = vpop.f32.mrb[12].mxu0 }
 0x1df   : > { %v7243_v1 = vadd.f32 %v7242_v30, %v7060_v32  ;;  %v3324_v34 = vpop.f32.mrb[13].mxu0 }
 0x1e0   : > { %v7245_v35 = vadd.f32 %v7244_v0, %v3324_v34  ;;  %7105 = vmatprep.mubr.msk.f32.mxu1 %vm3495_vm2, %v3465_v31  ;;  %v7270_v0 = vadd.f32 %v8771_v17, %v8790_v24  ;;  %v7276_v17 = vadd.f32 %v8790_v24, %v8777_v20 }
 0x1e1   : > { %7106 = vmatmul.mubr.msk.f32.gmra.mrb[42].mxu1 %vm3495_vm2, %v3466_v33  ;;  %v3468_v38 = vmax.f32 %v7243_v1, 0.0 }
 0x1e2   : > { %v3467_v36 = vmax.f32 %v7245_v35, 0.0  ;;  %v7063_v37 = vpop.f32.mrb[14].mxu0  ;;  %v7274_v35 = vadd.f32 %v8775_v19, %v8790_v24  ;;  %v7280_v19 = vadd.f32 %v8790_v24, %v8785_v23 }
 0x1e3   : > { %v7247_v4 = vadd.f32 %v7246_v3, %v7063_v37  ;;  %v3334_v39 = vpop.f32.mrb[15].mxu0 }
 0x1e4   : > { %v7249_v40 = vadd.f32 %v7248_v2, %v3334_v39  ;;  %7108 = vmatprep.mubr.msk.f32.mxu1 %vm3495_vm2, %v3467_v36 }
 0x1e5   : > { %7109 = vmatmul.mubr.msk.f32.gmra.mrb[44].mxu1 %vm3495_vm2, %v3468_v38  ;;  %v3470_v44 = vmax.f32 %v7247_v4, 0.0  ;;  %v7278_v4 = vadd.f32 %v8783_v22, %v8790_v24  ;;  %v8884_v22 = vld [vmem:[%s10161_s10] ss:$0 sm:$0xff] }
 0x1e6   : > { %v3469_v42 = vmax.f32 %v7249_v40, 0.0  ;;  %v7066_v43 = vpop.f32.mrb[16].mxu0 }
 0x1e7   : > { %v7251_v6 = vadd.f32 %v7250_v41, %v7066_v43  ;;  %v3344_v45 = vpop.f32.mrb[17].mxu0 }
 0x1e8   : > { %v7253_v46 = vadd.f32 %v7252_v5, %v3344_v45  ;;  %7111 = vmatprep.mubr.msk.f32.mxu1 %vm3495_vm2, %v3469_v42 }
 0x1e9   : > { %7112 = vmatmul.mubr.msk.f32.gmra.mrb[46].mxu1 %vm3495_vm2, %v3470_v44  ;;  %v3472_v51 = vmax.f32 %v7251_v6, 0.0 }
 0x1ea   : > { %v3471_v48 = vmax.f32 %v7253_v46, 0.0  ;;  %v7069_v50 = vpop.f32.mrb[18].mxu0 }
 0x1eb   : > { %v7255_v8 = vadd.f32 %v7254_v47, %v7069_v50  ;;  %v3354_v52 = vpop.f32.mrb[19].mxu0 }
 0x1ec   : > { %v7257_v54 = vadd.f32 %v7256_v7, %v3354_v52  ;;  %7114 = vmatprep.mubr.msk.f32.mxu1 %vm3495_vm2, %v3471_v48 }
 0x1ed   : > { %7115 = vmatmul.mubr.msk.f32.gmra.mrb[48].mxu1 %vm3495_vm2, %v3472_v51  ;;  %v3474_v58 = vmax.f32 %v7255_v8, 0.0 }
 0x1ee   : > { %v3473_v56 = vmax.f32 %v7257_v54, 0.0  ;;  %v7072_v57 = vpop.f32.mrb[20].mxu0 }
 0x1ef   : > { %v7259_v10 = vadd.f32 %v7258_v55, %v7072_v57  ;;  %v3364_v59 = vpop.f32.mrb[21].mxu0 }
 0x1f0   : > { %v7261_v49 = vadd.f32 %v7260_v9, %v3364_v59  ;;  %7117 = vmatprep.mubr.msk.f32.mxu1 %vm3495_vm2, %v3473_v56 }
 0x1f1   : > { %7118 = vmatmul.mubr.msk.f32.gmra.mrb[50].mxu1 %vm3495_vm2, %v3474_v58  ;;  %v3476_v21 = vmax.f32 %v7259_v10, 0.0 }
 0x1f2   : > { %v3475_v53 = vmax.f32 %v7261_v49, 0.0  ;;  %v7075_v61 = vpop.f32.mrb[22].mxu0 }
 0x1f3   : > { %v7263_v12 = vadd.f32 %v7262_v60, %v7075_v61  ;;  %v3374_v62 = vpop.f32.mrb[23].mxu0 }
 0x1f4   : > { %v7265_v25 = vadd.f32 %v7264_v11, %v3374_v62  ;;  %7120 = vmatprep.mubr.msk.f32.mxu1 %vm3495_vm2, %v3475_v53 }
 0x1f5   : > { %7121 = vmatmul.mubr.msk.f32.gmra.mrb[52].mxu1 %vm3495_vm2, %v3476_v21  ;;  %v3478_v28 = vmax.f32 %v7263_v12, 0.0 }
 0x1f6   : > { %v3477_v27 = vmax.f32 %v7265_v25, 0.0  ;;  %v7078_v63 = vpop.f32.mrb[24].mxu0 }
 0x1f7   : > { %v7267_v14 = vadd.f32 %v7266_v26, %v7078_v63  ;;  %v3384_v29 = vpop.f32.mrb[25].mxu0 }
 0x1f8   : > { %v7269_v30 = vadd.f32 %v7268_v13, %v3384_v29  ;;  %7123 = vmatprep.mubr.msk.f32.mxu1 %vm3495_vm2, %v3477_v27 }
 0x1f9   : > { %7124 = vmatmul.mubr.msk.f32.gmra.mrb[54].mxu1 %vm3495_vm2, %v3478_v28  ;;  %v3480_v33 = vmax.f32 %v7267_v14, 0.0 }
 0x1fa   : > { %v3479_v31 = vmax.f32 %v7269_v30, 0.0  ;;  %v7081_v32 = vpop.f32.mrb[26].mxu0 }
 0x1fb   : > { %v7271_v16 = vadd.f32 %v7270_v0, %v7081_v32  ;;  %v3394_v1 = vpop.f32.mrb[27].mxu0 }
 0x1fc   : > { %v7273_v34 = vadd.f32 %v7272_v15, %v3394_v1  ;;  %7126 = vmatprep.mubr.msk.f32.mxu1 %vm3495_vm2, %v3479_v31 }
 0x1fd   : > { %7127 = vmatmul.mubr.msk.f32.gmra.mrb[56].mxu1 %vm3495_vm2, %v3480_v33  ;;  %v3482_v36 = vmax.f32 %v7271_v16, 0.0 }
 0x1fe   : > { %v3481_v3 = vmax.f32 %v7273_v34, 0.0  ;;  %v7084_v2 = vpop.f32.mrb[28].mxu0 }
 0x1ff   : > { %v7275_v18 = vadd.f32 %v7274_v35, %v7084_v2  ;;  %v3404_v37 = vpop.f32.mrb[29].mxu0 }
 0x200   : > { %v7277_v38 = vadd.f32 %v7276_v17, %v3404_v37  ;;  %7129 = vmatprep.mubr.msk.f32.mxu1 %vm3495_vm2, %v3481_v3 }
 0x201   : > { %7130 = vmatmul.mubr.msk.f32.gmra.mrb[58].mxu1 %vm3495_vm2, %v3482_v36  ;;  %v3484_v41 = vmax.f32 %v7275_v18, 0.0 }
 0x202   : > { %v3483_v39 = vmax.f32 %v7277_v38, 0.0  ;;  %v7087_v40 = vpop.f32.mrb[30].mxu0 }
 0x203   : > { %v7279_v20 = vadd.f32 %v7278_v4, %v7087_v40  ;;  %v3414_v5 = vpop.f32.mrb[31].mxu0 }
 0x204   : > { %v7281_v42 = vadd.f32 %v7280_v19, %v3414_v5  ;;  %7132 = vmatprep.mubr.msk.f32.mxu1 %vm3495_vm2, %v3483_v39 }
 0x205   : > { %7133 = vmatmul.mubr.msk.f32.gmra.mrb[60].mxu1 %vm3495_vm2, %v3484_v41  ;;  %v3486_v44 = vmax.f32 %v7279_v20, 0.0 }
 0x206   : > { %v3485_v43 = vmax.f32 %v7281_v42, 0.0 }
 0x208   : > { %7135 = vmatprep.mubr.msk.f32.mxu1 %vm3495_vm2, %v3485_v43 }
 0x209   : > { %7136 = vmatmul.mubr.msk.f32.gmra.mrb[62].mxu1 %vm3495_vm2, %v3486_v44 }
 0x2a0   : > { %v7092_v23 = vpop.f32.mrb[32].mxu1 }
 0x2a1   : > { %v3668_v24 = vadd.f32 %v7092_v23, %v8884_v22  ;;  %v3662_v6 = vpop.f32.mrb[33].mxu1 }
 0x2a2   : > { %v3663_v45 = vadd.f32 %v8884_v22, %v3662_v6 }
 0x2a3   : > { %v3822_v7 = vmax.f32 %v3668_v24, 0.0 }
 0x2a4   : > { %v3821_v46 = vmax.f32 %v3663_v45, 0.0  ;;  %v7095_v47 = vpop.f32.mrb[34].mxu1 }
 0x2a5   : > { %v3678_v48 = vadd.f32 %v7095_v47, %v8884_v22  ;;  %v3672_v50 = vpop.f32.mrb[35].mxu1 }
 0x2a6   : > { %v3673_v51 = vadd.f32 %v8884_v22, %v3672_v50  ;;  %7140 = vmatprep.mubr.msk.f32.mxu1 %vm3495_vm2, %v3821_v46 }
 0x2a7   : > { %7141 = vmatmul.mubr.msk.f32.vlgmr.msra.gmra.mrb[64].mxu1 %vm3495_vm2, %v3822_v7  ;;  %v3824_v54 = vmax.f32 %v3678_v48, 0.0 }
 0x2a8   : > { %v3823_v8 = vmax.f32 %v3673_v51, 0.0  ;;  %v7098_v52 = vpop.f32.mrb[36].mxu1 }
 0x2a9   : > { %v3688_v55 = vadd.f32 %v7098_v52, %v8884_v22  ;;  %v3682_v9 = vpop.f32.mrb[37].mxu1 }
 0x2aa   : > { %v3683_v56 = vadd.f32 %v8884_v22, %v3682_v9  ;;  %7143 = vmatprep.mubr.msk.f32.mxu1 %vm3495_vm2, %v3823_v8 }
 0x2ab   : > { %7144 = vmatmul.mubr.msk.f32.gmra.mrb[66].mxu1 %vm3495_vm2, %v3824_v54  ;;  %v3826_v10 = vmax.f32 %v3688_v55, 0.0 }
 0x2ac   : > { %v3825_v57 = vmax.f32 %v3683_v56, 0.0  ;;  %v7101_v58 = vpop.f32.mrb[38].mxu1 }
 0x2ad   : > { %v3698_v59 = vadd.f32 %v7101_v58, %v8884_v22  ;;  %v3692_v49 = vpop.f32.mrb[39].mxu1 }
 0x2ae   : > { %v3693_v60 = vadd.f32 %v8884_v22, %v3692_v49  ;;  %7146 = vmatprep.mubr.msk.f32.mxu1 %vm3495_vm2, %v3825_v57 }
 0x2af   : > { %7147 = vmatmul.mubr.msk.f32.gmra.mrb[68].mxu1 %vm3495_vm2, %v3826_v10  ;;  %v3828_v61 = vmax.f32 %v3698_v59, 0.0 }
 0x2b0   : > { %v3827_v11 = vmax.f32 %v3693_v60, 0.0  ;;  %v7104_v53 = vpop.f32.mrb[40].mxu1 }
 0x2b1   : > { %v3708_v21 = vadd.f32 %v7104_v53, %v8884_v22  ;;  %v3702_v12 = vpop.f32.mrb[41].mxu1 }
 0x2b2   : > { %v3703_v62 = vadd.f32 %v8884_v22, %v3702_v12  ;;  %7149 = vmatprep.mubr.msk.f32.mxu1 %vm3495_vm2, %v3827_v11 }
 0x2b3   : > { %7150 = vmatmul.mubr.msk.f32.gmra.mrb[70].mxu1 %vm3495_vm2, %v3828_v61  ;;  %v3830_v13 = vmax.f32 %v3708_v21, 0.0 }
 0x2b4   : > { %v3829_v25 = vmax.f32 %v3703_v62, 0.0  ;;  %v7107_v26 = vpop.f32.mrb[42].mxu1 }
 0x2b5   : > { %v3718_v27 = vadd.f32 %v7107_v26, %v8884_v22  ;;  %v3712_v63 = vpop.f32.mrb[43].mxu1 }
 0x2b6   : > { %v3713_v28 = vadd.f32 %v8884_v22, %v3712_v63  ;;  %7152 = vmatprep.mubr.msk.f32.mxu1 %vm3495_vm2, %v3829_v25 }
 0x2b7   : > { %7153 = vmatmul.mubr.msk.f32.gmra.mrb[72].mxu1 %vm3495_vm2, %v3830_v13  ;;  %v3832_v30 = vmax.f32 %v3718_v27, 0.0 }
 0x2b8   : > { %v3831_v14 = vmax.f32 %v3713_v28, 0.0  ;;  %v7110_v29 = vpop.f32.mrb[44].mxu1  ;;  %v8074_v28 = vmov 1  }
 0x2b9   : > { %v3728_v0 = vadd.f32 %v7110_v29, %v8884_v22  ;;  %v3722_v15 = vpop.f32.mrb[45].mxu1  ;;  %7475 = vset.pattern.permute.xlu1 %v8074_v28 }
 0x2ba   : > { %v3723_v31 = vadd.f32 %v8884_v22, %v3722_v15  ;;  %7155 = vmatprep.mubr.msk.f32.mxu1 %vm3495_vm2, %v3831_v14  ;;  %v8075_v14 = vmov 0  }
 0x2bb   : > { %7156 = vmatmul.mubr.msk.f32.gmra.mrb[74].mxu1 %vm3495_vm2, %v3832_v30  ;;  %v3834_v16 = vmax.f32 %v3728_v0, 0.0  ;;  %7474 = vset.pattern.permute.xlu0 %v8075_v14 }
 0x2bc   : > { %v3833_v32 = vmax.f32 %v3723_v31, 0.0  ;;  %v7113_v33 = vpop.f32.mrb[46].mxu1 }
 0x2bd   : > { %v3738_v1 = vadd.f32 %v7113_v33, %v8884_v22  ;;  %v3732_v34 = vpop.f32.mrb[47].mxu1 }
 0x2be   : > { %v3733_v35 = vadd.f32 %v8884_v22, %v3732_v34  ;;  %7158 = vmatprep.mubr.msk.f32.mxu1 %vm3495_vm2, %v3833_v32 }
 0x2bf   : > { %7159 = vmatmul.mubr.msk.f32.gmra.mrb[76].mxu1 %vm3495_vm2, %v3834_v16  ;;  %v3836_v2 = vmax.f32 %v3738_v1, 0.0 }
 0x2c0   : > { %v3835_v17 = vmax.f32 %v3733_v35, 0.0  ;;  %v7116_v3 = vpop.f32.mrb[48].mxu1 }
 0x2c1   : > { %v3748_v36 = vadd.f32 %v7116_v3, %v8884_v22  ;;  %v3742_v18 = vpop.f32.mrb[49].mxu1 }
 0x2c2   : > { %v3743_v37 = vadd.f32 %v8884_v22, %v3742_v18  ;;  %7161 = vmatprep.mubr.msk.f32.mxu1 %vm3495_vm2, %v3835_v17 }
 0x2c3   : > { %7162 = vmatmul.mubr.msk.f32.gmra.mrb[78].mxu1 %vm3495_vm2, %v3836_v2  ;;  %v3838_v19 = vmax.f32 %v3748_v36, 0.0 }
 0x2c4   : > { %v3837_v38 = vmax.f32 %v3743_v37, 0.0  ;;  %v7119_v4 = vpop.f32.mrb[50].mxu1 }
 0x2c5   : > { %v3758_v39 = vadd.f32 %v7119_v4, %v8884_v22  ;;  %v3752_v40 = vpop.f32.mrb[51].mxu1 }
 0x2c6   : > { %v3753_v41 = vadd.f32 %v8884_v22, %v3752_v40  ;;  %7164 = vmatprep.mubr.msk.f32.mxu1 %vm3495_vm2, %v3837_v38 }
 0x2c7   : > { %7165 = vmatmul.mubr.msk.f32.gmra.mrb[80].mxu1 %vm3495_vm2, %v3838_v19  ;;  %v3840_v42 = vmax.f32 %v3758_v39, 0.0 }
 0x2c8   : > { %v3839_v20 = vmax.f32 %v3753_v41, 0.0  ;;  %v7122_v5 = vpop.f32.mrb[52].mxu1 }
 0x2c9   : > { %v3768_v43 = vadd.f32 %v7122_v5, %v8884_v22  ;;  %v3762_v44 = vpop.f32.mrb[53].mxu1 }
 0x2ca   : > { %v3763_v23 = vadd.f32 %v8884_v22, %v3762_v44  ;;  %7167 = vmatprep.mubr.msk.f32.mxu1 %vm3495_vm2, %v3839_v20 }
 0x2cb   : > { %7168 = vmatmul.mubr.msk.f32.gmra.mrb[82].mxu1 %vm3495_vm2, %v3840_v42  ;;  %v3842_v45 = vmax.f32 %v3768_v43, 0.0 }
 0x2cc   : > { %v3841_v24 = vmax.f32 %v3763_v23, 0.0  ;;  %v7125_v6 = vpop.f32.mrb[54].mxu1 }
 0x2cd   : > { %v3778_v46 = vadd.f32 %v7125_v6, %v8884_v22  ;;  %v3772_v47 = vpop.f32.mrb[55].mxu1 }
 0x2ce   : > { %v3773_v7 = vadd.f32 %v8884_v22, %v3772_v47  ;;  %7170 = vmatprep.mubr.msk.f32.mxu1 %vm3495_vm2, %v3841_v24 }
 0x2cf   : > { %7171 = vmatmul.mubr.msk.f32.gmra.mrb[84].mxu1 %vm3495_vm2, %v3842_v45  ;;  %v3844_v51 = vmax.f32 %v3778_v46, 0.0 }
 0x2d0   : > { %v3843_v48 = vmax.f32 %v3773_v7, 0.0  ;;  %v7128_v50 = vpop.f32.mrb[56].mxu1 }
 0x2d1   : > { %v3788_v8 = vadd.f32 %v7128_v50, %v8884_v22  ;;  %v3782_v52 = vpop.f32.mrb[57].mxu1 }
 0x2d2   : > { %v3783_v54 = vadd.f32 %v8884_v22, %v3782_v52  ;;  %7173 = vmatprep.mubr.msk.f32.mxu1 %vm3495_vm2, %v3843_v48 }
 0x2d3   : > { %7174 = vmatmul.mubr.msk.f32.gmra.mrb[86].mxu1 %vm3495_vm2, %v3844_v51  ;;  %v3846_v56 = vmax.f32 %v3788_v8, 0.0 }
 0x2d4   : > { %v3845_v55 = vmax.f32 %v3783_v54, 0.0  ;;  %v7131_v9 = vpop.f32.mrb[58].mxu1  ;;  %v8076_v54 = vmov 3  }
 0x2d5   : > { %v3798_v57 = vadd.f32 %v7131_v9, %v8884_v22  ;;  %v3792_v58 = vpop.f32.mrb[59].mxu1 }
 0x2d6   : > { %v3793_v10 = vadd.f32 %v8884_v22, %v3792_v58  ;;  %7176 = vmatprep.mubr.msk.f32.mxu1 %vm3495_vm2, %v3845_v55  ;;  %v8077_v55 = vmov 2  }
 0x2d7   : > { %7177 = vmatmul.mubr.msk.f32.gmra.mrb[88].mxu1 %vm3495_vm2, %v3846_v56  ;;  %v3848_v60 = vmax.f32 %v3798_v57, 0.0 }
 0x2d8   : > { %v3847_v59 = vmax.f32 %v3793_v10, 0.0  ;;  %v7134_v49 = vpop.f32.mrb[60].mxu1 }
 0x2d9   : > { %v3808_v11 = vadd.f32 %v7134_v49, %v8884_v22  ;;  %v3802_v53 = vpop.f32.mrb[61].mxu1  ;;  %v8078_v49 = vmov 5  }
 0x2da   : > { %v3803_v61 = vadd.f32 %v8884_v22, %v3802_v53  ;;  %7179 = vmatprep.mubr.msk.f32.mxu1 %vm3495_vm2, %v3847_v59 }
 0x2db   : > { %7180 = vmatmul.mubr.msk.f32.gmra.mrb[90].mxu1 %vm3495_vm2, %v3848_v60  ;;  %v3850_v62 = vmax.f32 %v3808_v11, 0.0  ;;  %v8079_v60 = vmov 4  }
 0x2dc   : > { %v3849_v21 = vmax.f32 %v3803_v61, 0.0  ;;  %v7137_v12 = vpop.f32.mrb[62].mxu1 }
 0x2dd   : > { %v3818_v25 = vadd.f32 %v7137_v12, %v8884_v22  ;;  %v3812_v26 = vpop.f32.mrb[63].mxu1 }
 0x2de   : > { %v3813_v13 = vadd.f32 %v8884_v22, %v3812_v26  ;;  %7182 = vmatprep.mubr.msk.f32.mxu1 %vm3495_vm2, %v3849_v21  ;;  %v8955_v22 = vld [vmem:[%s10163_s12] ss:$0 sm:$0xff]  ;;  %v8080_v26 = vmov 6  }
 0x2df   : > { %7183 = vmatmul.mubr.msk.f32.gmra.mrb[92].mxu1 %vm3495_vm2, %v3850_v62  ;;  %v3852_v63 = vmax.f32 %v3818_v25, 0.0 }
 0x2e0   : > { %v3851_v27 = vmax.f32 %v3813_v13, 0.0 }
 0x2e2   : > { %7185 = vmatprep.mubr.msk.f32.mxu1 %vm3495_vm2, %v3851_v27 }
 0x2e3   : > { %7186 = vmatmul.mubr.msk.f32.gmra.mrb[94].mxu1 %vm3495_vm2, %v3852_v63 }
 0x37a   : > { %v7142_v29 = vpop.f32.mrb[64].mxu1 }
 0x37b   : > { %v4032_v30 = vadd.f32 %v7142_v29, %v8955_v22  ;;  %v4026_v0 = vpop.f32.mrb[65].mxu1 }
 0x37c   : > { %v4027_v33 = vadd.f32 %v8955_v22, %v4026_v0 }
 0x37d   : > { %v6379_v15 = vmul.f32 -1.442695, %v4032_v30 }
 0x37e   : > { %v7145_v31 = vpop.f32.mrb[66].mxu1  ;;  %v6378_v35 = vmul.f32 -1.442695, %v4027_v33 }
 0x37f   : > { %7698 = vpow2.f32 %v6379_v15  ;;  %v8958_v32 = vpop.f32.mrb[67].mxu1  ;;  %v4042_v42 = vadd.f32 %v7145_v31, %v8955_v22 }
 0x380   : > { %7700 = vpow2.f32 %v6378_v35  ;;  %v4037_v25 = vadd.f32 %v8955_v22, %v8958_v32 }
 0x381   : > { %v6381_v45 = vmul.f32 -1.442695, %v4042_v42 }
 0x382   : > { %v8961_v16 = vpop.f32.mrb[68].mxu1  ;;  %v6380_v0 = vmul.f32 -1.442695, %v4037_v25 }
 0x383   : > { %v4046_v1 = vpop.f32.mrb[69].mxu1  ;;  %v4052_v15 = vadd.f32 %v8961_v16, %v8955_v22 }
 0x384   : > { %v8964_v34 = vadd.f32 %v8955_v22, %v4046_v1 }
 0x385   : > { %v6383_v35 = vmul.f32 -1.442695, %v4052_v15 }
 0x386   : > { %v7151_v17 = vpop.f32.mrb[70].mxu1 }
 0x387   : > { %v8967_v3 = vadd.f32 %v7151_v17, %v8955_v22  ;;  %v4056_v2 = vpop.f32.mrb[71].mxu1 }
 0x388   : > { %v8970_v36 = vadd.f32 %v8955_v22, %v4056_v2 }
 0x389   : > { %v7699_v18 = vpop.eup %7698 }
 0x38a   : > { %v4282_v37 = vadd.f32 1.0, %v7699_v18  ;;  %v7154_v38 = vpop.f32.mrb[72].mxu1  ;;  %v7701_v24 = vpop.eup %7700 }
 0x38b   : > { %v8973_v4 = vadd.f32 %v7154_v38, %v8955_v22  ;;  %v4066_v19 = vpop.f32.mrb[73].mxu1  ;;  %v4281_v7 = vadd.f32 1.0, %v7701_v24 }
 0x38c   : > { %7702 = vrcp.f32 %v4282_v37  ;;  %v8976_v39 = vadd.f32 %v8955_v22, %v4066_v19 }
 0x38d   : > { %7704 = vpow2.f32 %v6381_v45  ;;  %v6387_v25 = vmul.f32 -1.442695, %v8973_v4 }
 0x38e   : > { %v7157_v40 = vpop.f32.mrb[74].mxu1  ;;  %7706 = vrcp.f32 %v4281_v7  ;;  %v6382_v7 = vmul.f32 -1.442695, %v8964_v34 }
 0x38f   : > { %v8979_v41 = vadd.f32 %v7157_v40, %v8955_v22  ;;  %v4076_v20 = vpop.f32.mrb[75].mxu1 }
 0x390   : > { %v8982_v5 = vadd.f32 %v8955_v22, %v4076_v20 }
 0x392   : > { %v7160_v43 = vpop.f32.mrb[76].mxu1 }
 0x393   : > { %v8986_v44 = vadd.f32 %v7160_v43, %v8955_v22  ;;  %v4086_v23 = vpop.f32.mrb[77].mxu1 }
 0x394   : > { %v8989_v6 = vadd.f32 %v8955_v22, %v4086_v23 }
 0x396   : > { %v7703_v46 = vpop.eup %7702  ;;  %v7163_v47 = vpop.f32.mrb[78].mxu1 }
 0x397   : > { %v8992_v48 = vadd.f32 %v7163_v47, %v8955_v22  ;;  %4574 = vperm.xlu1 %7475, %v7703_v46   ;;  %4384 = vperm.xlu0 %7474, %v7703_v46   ;;  %v4096_v50 = vpop.f32.mrb[79].mxu1  ;;  %v7705_v53 = vpop.eup %7704 }
 0x398   : > { %v8995_v51 = vadd.f32 %v8955_v22, %v4096_v50  ;;  %v7707_v62 = vpop.eup %7706  ;;  %v4284_v13 = vadd.f32 1.0, %v7705_v53 }
 0x39a   : > { %v7166_v8 = vpop.f32.mrb[80].mxu1  ;;  %7708 = vrcp.f32 %v4284_v13 }
 0x39b   : > { %v8998_v52 = vadd.f32 %v7166_v8, %v8955_v22  ;;  %7477 = vset.pattern.permute.xlu1 %v8076_v54  ;;  %7476 = vset.pattern.permute.xlu0 %v8077_v55  ;;  %v4106_v9 = vpop.f32.mrb[81].mxu1  ;;  %7710 = vpow2.f32 %v6380_v0 }
 0x39c   : > { %v9003_v56 = vadd.f32 %v8955_v22, %v4106_v9  ;;  %4958 = vperm.xlu1 %7477, %v7703_v46   ;;  %4766 = vperm.xlu0 %7476, %v7703_v46   ;;  %7712 = vpow2.f32 %v6383_v35  ;;  %v6389_v35 = vmul.f32 -1.442695, %v8979_v41  ;;  %v7828_v41 = vld [vmem:[%s8218_s28 + $0x8] sm:$0xff] }
 0x39e   : > { %v7169_v57 = vpop.f32.mrb[82].mxu1 }
 0x39f   : > { %v9006_v58 = vadd.f32 %v7169_v57, %v8955_v22  ;;  %v4116_v10 = vpop.f32.mrb[83].mxu1  ;;  %v6385_v57 = vmul.f32 -1.442695, %v8967_v3 }
 0x3a0   : > { %v9009_v59 = vadd.f32 %v8955_v22, %v4116_v10  ;;  %7479 = vset.pattern.permute.xlu1 %v8078_v49  ;;  %7478 = vset.pattern.permute.xlu0 %v8079_v60 }
 0x3a1   : > { %5342 = vperm.xlu1 %7479, %v7703_v46   ;;  %5150 = vperm.xlu0 %7478, %v7703_v46  }
 0x3a2   : > { %v7172_v11 = vpop.f32.mrb[84].mxu1 }
 0x3a3   : > { %v9014_v61 = vadd.f32 %v7172_v11, %v8955_v22  ;;  %v4126_v21 = vpop.f32.mrb[85].mxu1  ;;  %v6384_v11 = vmul.f32 -1.442695, %v8970_v36 }
 0x3a4   : > { %v9017_v12 = vadd.f32 %v8955_v22, %v4126_v21  ;;  %v7709_v40 = vpop.eup %7708 }
 0x3a5   : > { %7483 = vset.pattern.permute.xlu1 %v8077_v55  ;;  %7480 = vset.pattern.permute.xlu0 %v8080_v26  ;;  %v7711_v43 = vpop.eup %7710 }
 0x3a6   : > { %5534 = vperm.xlu0 %7480, %v7703_v46   ;;  %v7175_v27 = vpop.f32.mrb[86].mxu1  ;;  %4762 = vperm.xlu1 %7483, %v7707_v62   ;;  %v4283_v46 = vadd.f32 1.0, %v7711_v43  ;;  %v7713_v47 = vpop.eup %7712 }
 0x3a7   : > { %v9024_v63 = vadd.f32 %v7175_v27, %v8955_v22  ;;  %v4136_v29 = vpop.f32.mrb[87].mxu1  ;;  %v4286_v50 = vadd.f32 1.0, %v7713_v47  ;;  %v6386_v27 = vmul.f32 -1.442695, %v8976_v39 }
 0x3a8   : > { %v9027_v30 = vadd.f32 %v8955_v22, %v4136_v29  ;;  %7714 = vrcp.f32 %v4283_v46  ;;  %v7829_v46 = vld [vmem:[%s8279_s22 + $0x8] sm:$0xff] }
 0x3a9   : > { %7716 = vpow2.f32 %v6382_v7 }
 0x3aa   : > { %7481 = vset.pattern.permute.xlu0 %v8075_v14  ;;  %v7178_v31 = vpop.f32.mrb[88].mxu1  ;;  %7485 = vset.pattern.permute.xlu1 %v8079_v60  ;;  %7718 = vrcp.f32 %v4286_v50 }
 0x3ab   : > { %v9034_v32 = vadd.f32 %v7178_v31, %v8955_v22  ;;  %v4146_v33 = vpop.f32.mrb[89].mxu1  ;;  %5146 = vperm.xlu1 %7485, %v7707_v62   ;;  %4379 = vperm.xlu0 %7481, %v7707_v62  }
 0x3ac   : > { %v9037_v1 = vadd.f32 %v8955_v22, %v4146_v33 }
 0x3ae   : > { %v7181_v17 = vpop.f32.mrb[90].mxu1 }
 0x3af   : > { %v9040_v2 = vadd.f32 %v7181_v17, %v8955_v22  ;;  %v4156_v16 = vpop.f32.mrb[91].mxu1  ;;  %7487 = vset.pattern.permute.xlu1 %v8080_v26  ;;  %7482 = vset.pattern.permute.xlu0 %v8074_v28  ;;  %v7826_v17 = vld [vmem:[%s8381_s20 + $0x8] sm:$0xff] }
 0x3b0   : > { %v9045_v18 = vadd.f32 %v8955_v22, %v4156_v16  ;;  %5530 = vperm.xlu1 %7487, %v7707_v62   ;;  %4570 = vperm.xlu0 %7482, %v7707_v62  }
 0x3b2   : > { %v7184_v37 = vpop.f32.mrb[92].mxu1 }
 0x3b3   : > { %v9048_v38 = vadd.f32 %v7184_v37, %v8955_v22  ;;  %v4166_v19 = vpop.f32.mrb[93].mxu1  ;;  %v7827_v37 = vld [vmem:[%s8238_s19 + $0x8] sm:$0xff] }
 0x3b4   : > { %v9051_v20 = vadd.f32 %v8955_v22, %v4166_v19  ;;  %7488 = vset.pattern.permute.xlu1 %v8075_v14  ;;  %7484 = vset.pattern.permute.xlu0 %v8076_v54 }
 0x3b5   : > { %4394 = vperm.xlu1 %7488, %v7709_v40   ;;  %4954 = vperm.xlu0 %7484, %v7707_v62  }
 0x3b6   : > { %v7187_v42 = vpop.f32.mrb[94].mxu1 }
 0x3b7   : > { %v9056_v23 = vadd.f32 %v7187_v42, %v8955_v22  ;;  %v4176_v24 = vpop.f32.mrb[95].mxu1 }
 0x3b8   : > { %v9059_v45 = vadd.f32 %v8955_v22, %v4176_v24  ;;  %v7715_v22 = vpop.eup %7714 }
 0x3b9   : > { %7490 = vset.pattern.permute.xlu1 %v8077_v55  ;;  %7486 = vset.pattern.permute.xlu0 %v8078_v49  ;;  %v7717_v34 = vpop.eup %7716 }
 0x3ba   : > { %4774 = vperm.xlu1 %7490, %v7709_v40   ;;  %5338 = vperm.xlu0 %7486, %v7707_v62   ;;  %v7719_v8 = vpop.eup %7718  ;;  %v4285_v9 = vadd.f32 1.0, %v7717_v34 }
 0x3bc   : > { %7720 = vrcp.f32 %v4285_v9 }
 0x3bd   : > { %7722 = vpow2.f32 %v6385_v57 }
 0x3be   : > { %7492 = vset.pattern.permute.xlu1 %v8079_v60  ;;  %7489 = vset.pattern.permute.xlu0 %v8074_v28  ;;  %7724 = vpow2.f32 %v6384_v11 }
 0x3bf   : > { %5158 = vperm.xlu1 %7492, %v7709_v40   ;;  %4582 = vperm.xlu0 %7489, %v7709_v40  }
 0x3c3   : > { %7494 = vset.pattern.permute.xlu1 %v8080_v26  ;;  %7491 = vset.pattern.permute.xlu0 %v8076_v54 }
 0x3c4   : > { %5542 = vperm.xlu1 %7494, %v7709_v40   ;;  %4966 = vperm.xlu0 %7491, %v7709_v40  }
 0x3c6   : > { %v7721_v10 = vpop.eup %7720 }
 0x3c7   : > { %v7723_v3 = vpop.eup %7722 }
 0x3c8   : > { %7495 = vset.pattern.permute.xlu1 %v8075_v14  ;;  %7493 = vset.pattern.permute.xlu0 %v8078_v49  ;;  %v4288_v53 = vadd.f32 1.0, %v7723_v3  ;;  %v7725_v36 = vpop.eup %7724 }
 0x3c9   : > { %4389 = vperm.xlu1 %7495, %v7715_v22   ;;  %5350 = vperm.xlu0 %7493, %v7709_v40   ;;  %v4287_v62 = vadd.f32 1.0, %v7725_v36 }
 0x3ca   : > { %7726 = vrcp.f32 %v4288_v53 }
 0x3cb   : > { %7728 = vrcp.f32 %v4287_v62 }
 0x3cc   : > { %7730 = vpow2.f32 %v6387_v25  ;;  %v6388_v25 = vmul.f32 -1.442695, %v8982_v5 }
 0x3cd   : > { %7496 = vset.pattern.permute.xlu1 %v8074_v28  ;;  %7503 = vset.pattern.permute.xlu0 %v8074_v28  ;;  %7732 = vpow2.f32 %v6386_v27 }
 0x3ce   : > { %4578 = vperm.xlu1 %7496, %v7715_v22   ;;  %4590 = vperm.xlu0 %7503, %v7719_v8  }
 0x3d2   : > { %7497 = vset.pattern.permute.xlu1 %v8077_v55  ;;  %7505 = vset.pattern.permute.xlu0 %v8076_v54 }
 0x3d3   : > { %4770 = vperm.xlu1 %7497, %v7715_v22   ;;  %4974 = vperm.xlu0 %7505, %v7719_v8  }
 0x3d4   : > { %v9086_v21 = vpop.eup %7726 }
 0x3d5   : > { %v9098_v13 = vpop.eup %7728 }
 0x3d6   : > { %v7731_v4 = vpop.eup %7730 }
 0x3d7   : > { %7498 = vset.pattern.permute.xlu1 %v8076_v54  ;;  %7507 = vset.pattern.permute.xlu0 %v8078_v49  ;;  %v4290_v29 = vadd.f32 1.0, %v7731_v4  ;;  %v7733_v39 = vpop.eup %7732  ;;  %v7832_v4 = vld [vmem:[%s8660_s18 + $0x8] sm:$0xff] }
 0x3d8   : > { %4962 = vperm.xlu1 %7498, %v7715_v22   ;;  %5358 = vperm.xlu0 %7507, %v7719_v8   ;;  %v4289_v15 = vadd.f32 1.0, %v7733_v39 }
 0x3d9   : > { %7734 = vrcp.f32 %v4290_v29 }
 0x3da   : > { %7736 = vrcp.f32 %v4289_v15 }
 0x3db   : > { %7738 = vpow2.f32 %v6389_v35  ;;  %v7833_v35 = vld [vmem:[%s8238_s19] sm:$0xff] }
 0x3dc   : > { %7499 = vset.pattern.permute.xlu1 %v8079_v60  ;;  %7509 = vset.pattern.permute.xlu0 %v8075_v14  ;;  %7740 = vpow2.f32 %v6388_v25 }
 0x3dd   : > { %5154 = vperm.xlu1 %7499, %v7715_v22   ;;  %4399 = vperm.xlu0 %7509, %v7721_v10  }
 0x3e1   : > { %7500 = vset.pattern.permute.xlu1 %v8078_v49  ;;  %7511 = vset.pattern.permute.xlu0 %v8077_v55 }
 0x3e2   : > { %5346 = vperm.xlu1 %7500, %v7715_v22   ;;  %4778 = vperm.xlu0 %7511, %v7721_v10  }
 0x3e3   : > { %v9114_v0 = vpop.eup %7734 }
 0x3e4   : > { %v9134_v57 = vpop.eup %7736 }
 0x3e5   : > { %v7739_v53 = vpop.eup %7738 }
 0x3e6   : > { %7501 = vset.pattern.permute.xlu1 %v8080_v26  ;;  %7513 = vset.pattern.permute.xlu0 %v8079_v60  ;;  %v4292_v29 = vadd.f32 1.0, %v7739_v53  ;;  %v7838_v53 = vld [vmem:[%s8574_s26] sm:$0xff] }
 0x3e7   : > { %5538 = vperm.xlu1 %7501, %v7715_v22   ;;  %5162 = vperm.xlu0 %7513, %v7721_v10  }
 0x3e8   : > { %7742 = vrcp.f32 %v4292_v29  ;;  %v7840_v29 = vld [vmem:[%s8238_s19 + $0x18] sm:$0xff] }
 0x3eb   : > { %7502 = vset.pattern.permute.xlu1 %v8075_v14  ;;  %7515 = vset.pattern.permute.xlu0 %v8080_v26 }
 0x3ec   : > { %4404 = vperm.xlu1 %7502, %v7719_v8   ;;  %5546 = vperm.xlu0 %7515, %v7721_v10  }
 0x3f0   : > { %7504 = vset.pattern.permute.xlu1 %v8077_v55  ;;  %7517 = vset.pattern.permute.xlu0 %v8074_v28 }
 0x3f1   : > { %4782 = vperm.xlu1 %7504, %v7719_v8   ;;  %4598 = vperm.xlu0 %7517, %v9086_v21  }
 0x3f5   : > { %7506 = vset.pattern.permute.xlu1 %v8079_v60  ;;  %7519 = vset.pattern.permute.xlu0 %v8076_v54 }
 0x3f6   : > { %5166 = vperm.xlu1 %7506, %v7719_v8   ;;  %4982 = vperm.xlu0 %7519, %v9086_v21  }
 0x3fa   : > { %7508 = vset.pattern.permute.xlu1 %v8080_v26  ;;  %7521 = vset.pattern.permute.xlu0 %v8078_v49 }
 0x3fb   : > { %5550 = vperm.xlu1 %7508, %v7719_v8   ;;  %5366 = vperm.xlu0 %7521, %v9086_v21   ;;  %v7830_v8 = vld [vmem:[%s8430_s24 + $0x8] sm:$0xff] }
 0x3ff   : > { %7510 = vset.pattern.permute.xlu1 %v8074_v28  ;;  %7523 = vset.pattern.permute.xlu0 %v8075_v14 }
 0x400   : > { %4586 = vperm.xlu1 %7510, %v7721_v10   ;;  %4409 = vperm.xlu0 %7523, %v9098_v13  }
 0x404   : > { %7512 = vset.pattern.permute.xlu1 %v8076_v54  ;;  %7525 = vset.pattern.permute.xlu0 %v8077_v55 }
 0x405   : > { %4970 = vperm.xlu1 %7512, %v7721_v10   ;;  %4786 = vperm.xlu0 %7525, %v9098_v13  }
 0x409   : > { %7514 = vset.pattern.permute.xlu1 %v8078_v49  ;;  %7527 = vset.pattern.permute.xlu0 %v8079_v60 }
 0x40a   : > { %5354 = vperm.xlu1 %7514, %v7721_v10   ;;  %5170 = vperm.xlu0 %7527, %v9098_v13   ;;  %v7831_v10 = vld [vmem:[%s8574_s26 + $0x8] sm:$0xff] }
 0x40e   : > { %7516 = vset.pattern.permute.xlu1 %v8075_v14  ;;  %7529 = vset.pattern.permute.xlu0 %v8080_v26 }
 0x40f   : > { %4414 = vperm.xlu1 %7516, %v9086_v21   ;;  %5554 = vperm.xlu0 %7529, %v9098_v13  }
 0x413   : > { %7518 = vset.pattern.permute.xlu1 %v8077_v55  ;;  %7531 = vset.pattern.permute.xlu0 %v8074_v28 }
 0x414   : > { %4790 = vperm.xlu1 %7518, %v9086_v21   ;;  %4606 = vperm.xlu0 %7531, %v9114_v0  }
 0x416   : > { %v4575_v31 = vpop.permute.xlu1 %4574  ;;  %v4385_v33 = vpop.permute.xlu0 %4384 }
 0x417   : > { %v4698_v16 = vmul.f32 %v7826_v17, %v4575_v31  ;;  %v4538_v19 = vmul.f32 %v7827_v37, %v4385_v33 }
 0x418   : > { %7520 = vset.pattern.permute.xlu1 %v8079_v60  ;;  %7533 = vset.pattern.permute.xlu0 %v8076_v54 }
 0x419   : > { %5174 = vperm.xlu1 %7520, %v9086_v21   ;;  %4990 = vperm.xlu0 %7533, %v9114_v0   ;;  %v4730_v43 = vadd.f32 %v4698_v16, %v4538_v19  ;;  %v7834_v16 = vld [vmem:[%s8381_s20] sm:$0xff] }
 0x41a   : > { %v7835_v19 = vld [vmem:[%s8218_s28] sm:$0xff] }
 0x41b   : > { %v4959_v40 = vpop.permute.xlu1 %4958  ;;  %v4767_v42 = vpop.permute.xlu0 %4766 }
 0x41c   : > { %v4890_v24 = vmul.f32 %v7828_v41, %v4767_v42  ;;  %v5082_v47 = vmul.f32 %v7829_v46, %v4959_v40  ;;  %v7836_v46 = vld [vmem:[%s8279_s22] sm:$0xff] }
 0x41d   : > { %7522 = vset.pattern.permute.xlu1 %v8080_v26  ;;  %7535 = vset.pattern.permute.xlu0 %v8078_v49 }
 0x41e   : > { %v4922_v7 = vadd.f32 %v4890_v24, %v4730_v43  ;;  %5558 = vperm.xlu1 %7522, %v9086_v21   ;;  %5374 = vperm.xlu0 %7535, %v9114_v0  }
 0x420   : > { %v5343_v50 = vpop.permute.xlu1 %5342  ;;  %v5114_v22 = vadd.f32 %v5082_v47, %v4922_v7  ;;  %v5151_v34 = vpop.permute.xlu0 %5150 }
 0x421   : > { %v5274_v9 = vmul.f32 %v7830_v8, %v5151_v34  ;;  %v5466_v3 = vmul.f32 %v7831_v10, %v5343_v50 }
 0x422   : > { %7524 = vset.pattern.permute.xlu1 %v8074_v28  ;;  %7537 = vset.pattern.permute.xlu0 %v8075_v14 }
 0x423   : > { %v5306_v11 = vadd.f32 %v5274_v9, %v5114_v22  ;;  %4594 = vperm.xlu1 %7524, %v9098_v13   ;;  %4419 = vperm.xlu0 %7537, %v9134_v57   ;;  %v7837_v22 = vld [vmem:[%s8430_s24] sm:$0xff] }
 0x425   : > { %v5498_v36 = vadd.f32 %v5466_v3, %v5306_v11  ;;  %v5535_v21 = vpop.permute.xlu0 %5534  ;;  %v4763_v62 = vpop.permute.xlu1 %4762  ;;  %v6391_v11 = vmul.f32 -1.442695, %v8986_v44 }
 0x426   : > { %v5658_v27 = vmul.f32 %v7832_v4, %v5535_v21  ;;  %v4889_v40 = vmul.f32 %v7835_v19, %v4763_v62  ;;  %v7839_v21 = vld [vmem:[%s8660_s18] sm:$0xff] }
 0x427   : > { %7526 = vset.pattern.permute.xlu1 %v8076_v54  ;;  %7539 = vset.pattern.permute.xlu0 %v8077_v55 }
 0x428   : > { %v5690_v39 = vadd.f32 %v5658_v27, %v5498_v36  ;;  %4978 = vperm.xlu1 %7526, %v9098_v13   ;;  %4794 = vperm.xlu0 %7539, %v9134_v57  }
 0x42a   : > { %5722 = vst.msk [vmem:[%s9147_s21 + $0x8] sm:$0xff] %vm959_vm0, %v5690_v39  ;;  %v5147_v5 = vpop.permute.xlu1 %5146  ;;  %v4380_v15 = vpop.permute.xlu0 %4379 }
 0x42b   : > { %v4537_v17 = vmul.f32 %v7833_v35, %v4380_v15  ;;  %v5273_v34 = vmul.f32 %v7837_v22, %v5147_v5  ;;  %v7841_v15 = vld [vmem:[%s8381_s20 + $0x18] sm:$0xff]  ;;  %v5761_v35 = vsel %vm959_vm0, %v5690_v39, 0.0 }
 0x42c   : > { %7528 = vset.pattern.permute.xlu1 %v8078_v49  ;;  %7541 = vset.pattern.permute.xlu0 %v8079_v60 }
 0x42d   : > { %5362 = vperm.xlu1 %7528, %v9098_v13   ;;  %5178 = vperm.xlu0 %7541, %v9134_v57   ;;  %v7741_v13 = vpop.eup %7740 }
 0x42e   : > { %v9167_v7 = vpop.eup %7742  ;;  %v4291_v50 = vadd.f32 1.0, %v7741_v13  ;;  %v7843_v13 = vld [vmem:[%s8279_s22 + $0x18] sm:$0xff] }
 0x42f   : > { %v5531_v31 = vpop.permute.xlu1 %5530  ;;  %v4571_v33 = vpop.permute.xlu0 %4570 }
 0x430   : > { %v4697_v37 = vmul.f32 %v7834_v16, %v4571_v33  ;;  %7744 = vrcp.f32 %v4291_v50  ;;  %v5657_v62 = vmul.f32 %v7839_v21, %v5531_v31 }
 0x431   : > { %7530 = vset.pattern.permute.xlu1 %v8075_v14  ;;  %7543 = vset.pattern.permute.xlu0 %v8080_v26  ;;  %7746 = vpow2.f32 %v6391_v11  ;;  %v7846_v11 = vld [vmem:[%s8660_s18 + $0x18] sm:$0xff] }
 0x432   : > { %v4729_v42 = vadd.f32 %v4697_v37, %v4537_v17  ;;  %4424 = vperm.xlu1 %7530, %v9114_v0   ;;  %5562 = vperm.xlu0 %7543, %v9134_v57   ;;  %v7842_v17 = vld [vmem:[%s8218_s28 + $0x18] sm:$0xff] }
 0x434   : > { %v4395_v43 = vpop.permute.xlu1 %4394  ;;  %v4921_v41 = vadd.f32 %v4889_v40, %v4729_v42  ;;  %v4955_v24 = vpop.permute.xlu0 %4954 }
 0x435   : > { %v5081_v47 = vmul.f32 %v7836_v46, %v4955_v24  ;;  %v4540_v5 = vmul.f32 %v7840_v29, %v4395_v43  ;;  %v7844_v24 = vld [vmem:[%s8430_s24 + $0x18] sm:$0xff] }
 0x436   : > { %7532 = vset.pattern.permute.xlu1 %v8077_v55  ;;  %7545 = vset.pattern.permute.xlu0 %v8074_v28 }
 0x437   : > { %v5113_v8 = vadd.f32 %v5081_v47, %v4921_v41  ;;  %4798 = vperm.xlu1 %7532, %v9114_v0   ;;  %4614 = vperm.xlu0 %7545, %v9167_v7  }
 0x439   : > { %v4775_v9 = vpop.permute.xlu1 %4774  ;;  %v5305_v10 = vadd.f32 %v5273_v34, %v5113_v8  ;;  %v5339_v3 = vpop.permute.xlu0 %5338  ;;  %v6390_v8 = vmul.f32 -1.442695, %v8989_v6 }
 0x43a   : > { %v5465_v36 = vmul.f32 %v7838_v53, %v5339_v3  ;;  %v4892_v16 = vmul.f32 %v7842_v17, %v4775_v9  ;;  %v9195_v41 = vpop.eup %7744  ;;  %v7845_v9 = vld [vmem:[%s8574_s26 + $0x18] sm:$0xff]  ;;  %v6393_v17 = vmul.f32 -1.442695, %v8992_v48  ;;  %v7851_v48 = vld [vmem:[%s8430_s24 + $0x10] sm:$0xff] }
 0x43b   : > { %7534 = vset.pattern.permute.xlu1 %v8079_v60  ;;  %7547 = vset.pattern.permute.xlu0 %v8076_v54  ;;  %v7747_v47 = vpop.eup %7746  ;;  %7748 = vpow2.f32 %v6390_v8 }
 0x43c   : > { %v5497_v25 = vadd.f32 %v5465_v36, %v5305_v10  ;;  %5182 = vperm.xlu1 %7534, %v9114_v0   ;;  %4998 = vperm.xlu0 %7547, %v9167_v7   ;;  %v4294_v3 = vadd.f32 1.0, %v7747_v47 }
 0x43e   : > { %v5689_v4 = vadd.f32 %v5657_v62, %v5497_v25  ;;  %v5159_v44 = vpop.permute.xlu1 %5158  ;;  %v4583_v27 = vpop.permute.xlu0 %4582  ;;  %7750 = vrcp.f32 %v4294_v3 }
 0x43f   : > { %v4700_v33 = vmul.f32 %v7841_v15, %v4583_v27  ;;  %v5276_v46 = vmul.f32 %v7844_v24, %v5159_v44  ;;  %v7847_v15 = vld [vmem:[%s8381_s20 + $0x10] sm:$0xff] }
 0x440   : > { %5721 = vst.msk [vmem:[%s9147_s21] sm:$0xff] %vm959_vm0, %v5689_v4  ;;  %v5760_v31 = vsel %vm959_vm0, %v5689_v4, 0.0  ;;  %7536 = vset.pattern.permute.xlu1 %v8080_v26  ;;  %7549 = vset.pattern.permute.xlu0 %v8078_v49 }
 0x441   : > { %v4732_v37 = vadd.f32 %v4700_v33, %v4540_v5  ;;  %5566 = vperm.xlu1 %7536, %v9114_v0   ;;  %5382 = vperm.xlu0 %7549, %v9167_v7   ;;  %v9192_v19 = vadd.f32 %v5761_v35, %v5760_v31 }
 0x443   : > { %v5543_v40 = vpop.permute.xlu1 %5542  ;;  %v4924_v39 = vadd.f32 %v4892_v16, %v4732_v37  ;;  %v4967_v42 = vpop.permute.xlu0 %4966  ;;  %v7848_v16 = vld [vmem:[%s8238_s19 + $0x10] sm:$0xff] }
 0x444   : > { %v5084_v43 = vmul.f32 %v7843_v13, %v4967_v42  ;;  %v5660_v53 = vmul.f32 %v7846_v11, %v5543_v40  ;;  %v7849_v40 = vld [vmem:[%s8218_s28 + $0x10] sm:$0xff] }
 0x445   : > { %7538 = vset.pattern.permute.xlu1 %v8074_v28  ;;  %7551 = vset.pattern.permute.xlu0 %v8075_v14  ;;  %v7749_v44 = vpop.eup %7748  ;;  %v7850_v13 = vld [vmem:[%s8279_s22 + $0x10] sm:$0xff] }
 0x446   : > { %v5116_v0 = vadd.f32 %v5084_v43, %v4924_v39  ;;  %4602 = vperm.xlu1 %7538, %v9134_v57   ;;  %4429 = vperm.xlu0 %7551, %v9195_v41   ;;  %v4293_v5 = vadd.f32 1.0, %v7749_v44  ;;  %v7853_v11 = vld [vmem:[%s8660_s18 + $0x10] sm:$0xff] }
 0x448   : > { %v4390_v50 = vpop.permute.xlu1 %4389  ;;  %v5308_v22 = vadd.f32 %v5276_v46, %v5116_v0  ;;  %v5351_v34 = vpop.permute.xlu0 %5350  ;;  %7752 = vrcp.f32 %v4293_v5  ;;  %v6392_v5 = vmul.f32 -1.442695, %v8995_v51  ;;  %v7855_v51 = vld [vmem:[%s8381_s20 + $0x28] sm:$0xff] }
 0x449   : > { %v5468_v10 = vmul.f32 %v7845_v9, %v5351_v34  ;;  %v4539_v37 = vmul.f32 %v7848_v16, %v4390_v50  ;;  %7754 = vpow2.f32 %v6393_v17 }
 0x44a   : > { %7540 = vset.pattern.permute.xlu1 %v8076_v54  ;;  %7553 = vset.pattern.permute.xlu0 %v8077_v55  ;;  %7756 = vpow2.f32 %v6392_v5 }
 0x44b   : > { %v5500_v36 = vadd.f32 %v5468_v10, %v5308_v22  ;;  %4986 = vperm.xlu1 %7540, %v9134_v57   ;;  %4802 = vperm.xlu0 %7553, %v9195_v41   ;;  %v7852_v22 = vld [vmem:[%s8574_s26 + $0x10] sm:$0xff] }
 0x44d   : > { %v9209_v21 = vadd.f32 %v5660_v53, %v5500_v36  ;;  %v4579_v62 = vpop.permute.xlu1 %4578  ;;  %v9211_v6 = vpop.permute.xlu0 %4590 }
 0x44e   : > { %v4699_v33 = vmul.f32 %v7847_v15, %v4579_v62 }
 0x44f   : > { %5724 = vst.msk [vmem:[%s9147_s21 + $0x18] sm:$0xff] %vm959_vm0, %v9209_v21  ;;  %7542 = vset.pattern.permute.xlu1 %v8078_v49  ;;  %7555 = vset.pattern.permute.xlu0 %v8079_v60 }
 0x450   : > { %5370 = vperm.xlu1 %7542, %v9134_v57   ;;  %5186 = vperm.xlu0 %7555, %v9195_v41   ;;  %v9228_v57 = vpop.eup %7750  ;;  %v4731_v42 = vadd.f32 %v4699_v33, %v4539_v37  ;;  %v5765_v33 = vsel %vm959_vm0, %v9209_v21, 0.0 }
 0x452   : > { %v4771_v25 = vpop.permute.xlu1 %4770  ;;  %v9220_v4 = vpop.permute.xlu0 %4974 }
 0x453   : > { %v4891_v39 = vmul.f32 %v7849_v40, %v4771_v25  ;;  %v9256_v36 = vpop.eup %7752 }
 0x454   : > { %7544 = vset.pattern.permute.xlu1 %v8075_v14  ;;  %7557 = vset.pattern.permute.xlu0 %v8080_v26 }
 0x455   : > { %4434 = vperm.xlu1 %7544, %v9167_v7   ;;  %5570 = vperm.xlu0 %7557, %v9195_v41   ;;  %v4923_v24 = vadd.f32 %v4891_v39, %v4731_v42  ;;  %v7856_v42 = vld [vmem:[%s8218_s28 + $0x28] sm:$0xff] }
 0x457   : > { %v4963_v27 = vpop.permute.xlu1 %4962  ;;  %v9226_v29 = vpop.permute.xlu0 %5358 }
 0x458   : > { %v5083_v43 = vmul.f32 %v7850_v13, %v4963_v27 }
 0x459   : > { %7546 = vset.pattern.permute.xlu1 %v8077_v55  ;;  %7559 = vset.pattern.permute.xlu0 %v8074_v28 }
 0x45a   : > { %4806 = vperm.xlu1 %7546, %v9167_v7   ;;  %4622 = vperm.xlu0 %7559, %v9228_v57   ;;  %v5115_v50 = vadd.f32 %v5083_v43, %v4923_v24  ;;  %v7857_v43 = vld [vmem:[%s8279_s22 + $0x28] sm:$0xff] }
 0x45b   : > { %v5086_v24 = vmul.f32 %v7857_v43, %v9220_v4  ;;  %v7865_v43 = vld [vmem:[%s8430_s24 + $0x20] sm:$0xff] }
 0x45c   : > { %v5155_v35 = vpop.permute.xlu1 %5154  ;;  %v9235_v31 = vpop.permute.xlu0 %4399 }
 0x45d   : > { %v5275_v46 = vmul.f32 %v7851_v48, %v5155_v35  ;;  %v7854_v35 = vld [vmem:[%s8238_s19 + $0x28] sm:$0xff] }
 0x45e   : > { %7548 = vset.pattern.permute.xlu1 %v8079_v60  ;;  %7561 = vset.pattern.permute.xlu0 %v8076_v54 }
 0x45f   : > { %5190 = vperm.xlu1 %7548, %v9167_v7   ;;  %5006 = vperm.xlu0 %7561, %v9228_v57   ;;  %v5307_v8 = vadd.f32 %v5275_v46, %v5115_v50  ;;  %v7858_v50 = vld [vmem:[%s8430_s24 + $0x28] sm:$0xff] }
 0x461   : > { %v5347_v0 = vpop.permute.xlu1 %5346  ;;  %v9246_v47 = vpop.permute.xlu0 %4778 }
 0x462   : > { %v5467_v34 = vmul.f32 %v7852_v22, %v5347_v0 }
 0x463   : > { %7550 = vset.pattern.permute.xlu1 %v8080_v26  ;;  %7563 = vset.pattern.permute.xlu0 %v8078_v49 }
 0x464   : > { %5574 = vperm.xlu1 %7550, %v9167_v7   ;;  %5390 = vperm.xlu0 %7563, %v9228_v57   ;;  %v5499_v3 = vadd.f32 %v5467_v34, %v5307_v8  ;;  %v7755_v7 = vpop.eup %7754  ;;  %v7859_v34 = vld [vmem:[%s8574_s26 + $0x28] sm:$0xff] }
 0x465   : > { %v4296_v16 = vadd.f32 1.0, %v7755_v7  ;;  %v5470_v8 = vmul.f32 %v7859_v34, %v9226_v29 }
 0x466   : > { %v5539_v9 = vpop.permute.xlu1 %5538  ;;  %v9253_v10 = vpop.permute.xlu0 %5162 }
 0x467   : > { %v5659_v53 = vmul.f32 %v7853_v11, %v5539_v9  ;;  %7758 = vrcp.f32 %v4296_v16 }
 0x468   : > { %7552 = vset.pattern.permute.xlu1 %v8074_v28  ;;  %7565 = vset.pattern.permute.xlu0 %v8075_v14 }
 0x469   : > { %v5691_v62 = vadd.f32 %v5659_v53, %v5499_v3  ;;  %4610 = vperm.xlu1 %7552, %v9195_v41   ;;  %4439 = vperm.xlu0 %7565, %v9256_v36   ;;  %v7860_v53 = vld [vmem:[%s8660_s18 + $0x28] sm:$0xff] }
 0x46b   : > { %5723 = vst.msk [vmem:[%s9147_s21 + $0x10] sm:$0xff] %vm959_vm0, %v5691_v62  ;;  %v5763_v25 = vsel %vm959_vm0, %v5691_v62, 0.0  ;;  %v4405_v44 = vpop.permute.xlu1 %4404  ;;  %v9265_v27 = vpop.permute.xlu0 %5546 }
 0x46c   : > { %v5764_v15 = vadd.f32 %v5763_v25, %v9192_v19  ;;  %v4542_v17 = vmul.f32 %v7854_v35, %v4405_v44  ;;  %v4702_v19 = vmul.f32 %v7855_v51, %v9211_v6  ;;  %v7863_v51 = vld [vmem:[%s8218_s28 + $0x20] sm:$0xff] }
 0x46d   : > { %7554 = vset.pattern.permute.xlu1 %v8076_v54  ;;  %7567 = vset.pattern.permute.xlu0 %v8077_v55 }
 0x46e   : > { %v9274_v37 = vadd.f32 %v5765_v33, %v5764_v15  ;;  %4994 = vperm.xlu1 %7554, %v9195_v41   ;;  %4810 = vperm.xlu0 %7567, %v9256_v36   ;;  %v4734_v39 = vadd.f32 %v4702_v19, %v4542_v17  ;;  %v6395_v15 = vmul.f32 -1.442695, %v8998_v52  ;;  %v7861_v33 = vld [vmem:[%s8238_s19 + $0x20] sm:$0xff]  ;;  %v4893_v19 = vmul.f32 %v7863_v51, %v9246_v47 }
 0x46f   : > { %v4541_v35 = vmul.f32 %v7861_v33, %v9235_v31  ;;  %v7862_v17 = vld [vmem:[%s8381_s20 + $0x20] sm:$0xff]  ;;  %v5277_v47 = vmul.f32 %v7865_v43, %v9253_v10  ;;  %v7872_v43 = vld [vmem:[%s8430_s24 + $0x38] sm:$0xff] }
 0x470   : > { %v4783_v40 = vpop.permute.xlu1 %4782  ;;  %v9280_v21 = vpop.permute.xlu0 %4598  ;;  %v7867_v10 = vld [vmem:[%s8660_s18 + $0x20] sm:$0xff] }
 0x471   : > { %v4894_v13 = vmul.f32 %v7856_v42, %v4783_v40  ;;  %v7864_v42 = vld [vmem:[%s8279_s22 + $0x20] sm:$0xff] }
 0x472   : > { %7556 = vset.pattern.permute.xlu1 %v8078_v49  ;;  %7569 = vset.pattern.permute.xlu0 %v8079_v60 }
 0x473   : > { %v4926_v48 = vadd.f32 %v4894_v13, %v4734_v39  ;;  %5378 = vperm.xlu1 %7556, %v9195_v41   ;;  %5194 = vperm.xlu0 %7569, %v9256_v36   ;;  %v7757_v41 = vpop.eup %7756 }
 0x474   : > { %v9301_v7 = vpop.eup %7758  ;;  %v4295_v29 = vadd.f32 1.0, %v7757_v41 }
 0x475   : > { %v5167_v6 = vpop.permute.xlu1 %5166  ;;  %v5118_v46 = vadd.f32 %v5086_v24, %v4926_v48  ;;  %v9289_v0 = vpop.permute.xlu0 %4982 }
 0x476   : > { %v5278_v22 = vmul.f32 %v7858_v50, %v5167_v6  ;;  %7760 = vrcp.f32 %v4295_v29  ;;  %v7866_v50 = vld [vmem:[%s8574_s26 + $0x20] sm:$0xff]  ;;  %v7868_v29 = vld [vmem:[%s8238_s19 + $0x38] sm:$0xff] }
 0x477   : > { %7558 = vset.pattern.permute.xlu1 %v8075_v14  ;;  %7571 = vset.pattern.permute.xlu0 %v8080_v26  ;;  %7762 = vpow2.f32 %v6395_v15 }
 0x478   : > { %v5310_v4 = vadd.f32 %v5278_v22, %v5118_v46  ;;  %4444 = vperm.xlu1 %7558, %v9228_v57   ;;  %5578 = vperm.xlu0 %7571, %v9256_v36  }
 0x47a   : > { %v5551_v9 = vpop.permute.xlu1 %5550  ;;  %v5502_v3 = vadd.f32 %v5470_v8, %v5310_v4  ;;  %v9298_v11 = vpop.permute.xlu0 %5366  ;;  %v5661_v8 = vmul.f32 %v7867_v10, %v9265_v27  ;;  %v7874_v10 = vld [vmem:[%s8660_s18 + $0x38] sm:$0xff] }
 0x47b   : > { %v5662_v62 = vmul.f32 %v7860_v53, %v5551_v9  ;;  %v6394_v53 = vmul.f32 -1.442695, %v9003_v56  ;;  %v7869_v56 = vld [vmem:[%s8381_s20 + $0x38] sm:$0xff] }
 0x47c   : > { %7560 = vset.pattern.permute.xlu1 %v8077_v55  ;;  %7573 = vset.pattern.permute.xlu0 %v8074_v28  ;;  %v4704_v33 = vmul.f32 %v7869_v56, %v9280_v21 }
 0x47d   : > { %v5694_v25 = vadd.f32 %v5662_v62, %v5502_v3  ;;  %4814 = vperm.xlu1 %7560, %v9228_v57   ;;  %4630 = vperm.xlu0 %7573, %v9301_v7   ;;  %7764 = vpow2.f32 %v6394_v53  ;;  %v6397_v53 = vmul.f32 -1.442695, %v9006_v58 }
 0x47f   : > { %5726 = vst.msk [vmem:[%s9147_s21 + $0x28] sm:$0xff] %vm959_vm0, %v5694_v25  ;;  %v4587_v44 = vpop.permute.xlu1 %4586  ;;  %v9309_v5 = vpop.permute.xlu0 %4409 }
 0x480   : > { %v4701_v16 = vmul.f32 %v7862_v17, %v4587_v44  ;;  %v9333_v34 = vpop.eup %7760 }
 0x481   : > { %7562 = vset.pattern.permute.xlu1 %v8079_v60  ;;  %7575 = vset.pattern.permute.xlu0 %v8076_v54  ;;  %v7763_v4 = vpop.eup %7762 }
 0x482   : > { %v4733_v40 = vadd.f32 %v4701_v16, %v4541_v35  ;;  %5198 = vperm.xlu1 %7562, %v9228_v57   ;;  %5014 = vperm.xlu0 %7575, %v9301_v7   ;;  %v4298_v44 = vadd.f32 1.0, %v7763_v4  ;;  %v5769_v35 = vsel %vm959_vm0, %v5694_v25, 0.0 }
 0x484   : > { %v4971_v52 = vpop.permute.xlu1 %4970  ;;  %v4925_v31 = vadd.f32 %v4893_v19, %v4733_v40  ;;  %v9321_v39 = vpop.permute.xlu0 %4786  ;;  %v7870_v40 = vld [vmem:[%s8218_s28 + $0x38] sm:$0xff]  ;;  %7766 = vrcp.f32 %v4298_v44 }
 0x485   : > { %v5085_v13 = vmul.f32 %v7864_v42, %v4971_v52  ;;  %v7871_v52 = vld [vmem:[%s8279_s22 + $0x38] sm:$0xff] }
 0x486   : > { %7564 = vset.pattern.permute.xlu1 %v8080_v26  ;;  %7577 = vset.pattern.permute.xlu0 %v8078_v49  ;;  %v5088_v21 = vmul.f32 %v7871_v52, %v9289_v0 }
 0x487   : > { %v5117_v24 = vadd.f32 %v5085_v13, %v4925_v31  ;;  %5582 = vperm.xlu1 %7564, %v9228_v57   ;;  %5398 = vperm.xlu0 %7577, %v9301_v7  }
 0x489   : > { %v5355_v48 = vpop.permute.xlu1 %5354  ;;  %v5309_v6 = vadd.f32 %v5277_v47, %v5117_v24  ;;  %v9330_v46 = vpop.permute.xlu0 %5170  ;;  %v7873_v24 = vld [vmem:[%s8574_s26 + $0x38] sm:$0xff] }
 0x48a   : > { %v5469_v22 = vmul.f32 %v7866_v50, %v5355_v48  ;;  %v5472_v48 = vmul.f32 %v7873_v24, %v9298_v11 }
 0x48b   : > { %7566 = vset.pattern.permute.xlu1 %v8074_v28  ;;  %7579 = vset.pattern.permute.xlu0 %v8075_v14 }
 0x48c   : > { %v5501_v57 = vadd.f32 %v5469_v22, %v5309_v6  ;;  %4618 = vperm.xlu1 %7566, %v9256_v36   ;;  %4449 = vperm.xlu0 %7579, %v9333_v34  }
 0x48e   : > { %v5693_v41 = vadd.f32 %v5661_v8, %v5501_v57  ;;  %v4415_v9 = vpop.permute.xlu1 %4414  ;;  %v9341_v3 = vpop.permute.xlu0 %5554 }
 0x48f   : > { %v4544_v27 = vmul.f32 %v7868_v29, %v4415_v9 }
 0x490   : > { %5725 = vst.msk [vmem:[%s9147_s21 + $0x20] sm:$0xff] %vm959_vm0, %v5693_v41  ;;  %v5767_v62 = vsel %vm959_vm0, %v5693_v41, 0.0  ;;  %7568 = vset.pattern.permute.xlu1 %v8076_v54  ;;  %7581 = vset.pattern.permute.xlu0 %v8077_v55 }
 0x491   : > { %v5768_v15 = vadd.f32 %v5767_v62, %v9274_v37  ;;  %5002 = vperm.xlu1 %7568, %v9256_v36   ;;  %4818 = vperm.xlu0 %7581, %v9333_v34   ;;  %v4736_v19 = vadd.f32 %v4704_v33, %v4544_v27  ;;  %v7875_v62 = vld [vmem:[%s8238_s19 + $0x30] sm:$0xff] }
 0x492   : > { %v4543_v29 = vmul.f32 %v7875_v62, %v9309_v5  ;;  %v7876_v27 = vld [vmem:[%s8381_s20 + $0x30] sm:$0xff] }
 0x493   : > { %v4791_v17 = vpop.permute.xlu1 %4790  ;;  %v9356_v16 = vpop.permute.xlu0 %4606  ;;  %v9358_v51 = vadd.f32 %v5769_v35, %v5768_v15  ;;  %v7877_v15 = vld [vmem:[%s8218_s28 + $0x30] sm:$0xff] }
 0x494   : > { %v4896_v37 = vmul.f32 %v7870_v40, %v4791_v17  ;;  %v4895_v56 = vmul.f32 %v7877_v15, %v9321_v39  ;;  %v7878_v17 = vld [vmem:[%s8279_s22 + $0x30] sm:$0xff]  ;;  %v7884_v15 = vld [vmem:[%s8218_s28 + $0x48] sm:$0xff] }
 0x495   : > { %7570 = vset.pattern.permute.xlu1 %v8078_v49  ;;  %7583 = vset.pattern.permute.xlu0 %v8079_v60  ;;  %v7879_v40 = vld [vmem:[%s8430_s24 + $0x30] sm:$0xff] }
 0x496   : > { %v4928_v25 = vadd.f32 %v4896_v37, %v4736_v19  ;;  %5386 = vperm.xlu1 %7570, %v9256_v36   ;;  %5202 = vperm.xlu0 %7583, %v9333_v34   ;;  %v7765_v36 = vpop.eup %7764  ;;  %v5279_v39 = vmul.f32 %v7879_v40, %v9330_v46  ;;  %v7881_v46 = vld [vmem:[%s8660_s18 + $0x30] sm:$0xff]  ;;  %v7887_v40 = vld [vmem:[%s8574_s26 + $0x48] sm:$0xff] }
 0x497   : > { %v9379_v57 = vpop.eup %7766  ;;  %v4297_v11 = vadd.f32 1.0, %v7765_v36 }
 0x498   : > { %v5175_v31 = vpop.permute.xlu1 %5174  ;;  %v5120_v42 = vadd.f32 %v5088_v21, %v4928_v25  ;;  %v9367_v13 = vpop.permute.xlu0 %4990 }
 0x499   : > { %v5280_v47 = vmul.f32 %v7872_v43, %v5175_v31  ;;  %7768 = vrcp.f32 %v4297_v11  ;;  %v7880_v31 = vld [vmem:[%s8574_s26 + $0x30] sm:$0xff] }
 0x49a   : > { %7572 = vset.pattern.permute.xlu1 %v8075_v14  ;;  %7585 = vset.pattern.permute.xlu0 %v8080_v26  ;;  %7770 = vpow2.f32 %v6397_v53 }
 0x49b   : > { %v5312_v0 = vadd.f32 %v5280_v47, %v5120_v42  ;;  %4454 = vperm.xlu1 %7572, %v9301_v7   ;;  %5586 = vperm.xlu0 %7585, %v9333_v34   ;;  %v5663_v47 = vmul.f32 %v7881_v46, %v9341_v3 }
 0x49d   : > { %v5559_v6 = vpop.permute.xlu1 %5558  ;;  %v5504_v50 = vadd.f32 %v5472_v48, %v5312_v0  ;;  %v9376_v22 = vpop.permute.xlu0 %5374 }
 0x49e   : > { %v5664_v8 = vmul.f32 %v7874_v10, %v5559_v6  ;;  %v6396_v6 = vmul.f32 -1.442695, %v9009_v59  ;;  %v7882_v10 = vld [vmem:[%s8238_s19 + $0x48] sm:$0xff] }
 0x49f   : > { %7574 = vset.pattern.permute.xlu1 %v8077_v55  ;;  %7587 = vset.pattern.permute.xlu0 %v8074_v28  ;;  %v7883_v59 = vld [vmem:[%s8381_s20 + $0x48] sm:$0xff] }
 0x4a0   : > { %v5696_v4 = vadd.f32 %v5664_v8, %v5504_v50  ;;  %4822 = vperm.xlu1 %7574, %v9301_v7   ;;  %4638 = vperm.xlu0 %7587, %v9379_v57   ;;  %7772 = vpow2.f32 %v6396_v6 }
 0x4a2   : > { %5728 = vst.msk [vmem:[%s9147_s21 + $0x38] sm:$0xff] %vm959_vm0, %v5696_v4  ;;  %v4595_v41 = vpop.permute.xlu1 %4594  ;;  %v9387_v9 = vpop.permute.xlu0 %4419  ;;  %v5773_v53 = vsel %vm959_vm0, %v5696_v4, 0.0 }
 0x4a3   : > { %v4703_v44 = vmul.f32 %v7876_v27, %v4595_v41  ;;  %v9411_v43 = vpop.eup %7768  ;;  %v4706_v41 = vmul.f32 %v7883_v59, %v9356_v16 }
 0x4a4   : > { %7576 = vset.pattern.permute.xlu1 %v8079_v60  ;;  %7589 = vset.pattern.permute.xlu0 %v8076_v54  ;;  %v7771_v24 = vpop.eup %7770 }
 0x4a5   : > { %v4735_v33 = vadd.f32 %v4703_v44, %v4543_v29  ;;  %5206 = vperm.xlu1 %7576, %v9301_v7   ;;  %5022 = vperm.xlu0 %7589, %v9379_v57   ;;  %v4300_v8 = vadd.f32 1.0, %v7771_v24 }
 0x4a7   : > { %v4979_v58 = vpop.permute.xlu1 %4978  ;;  %v4927_v5 = vadd.f32 %v4895_v56, %v4735_v33  ;;  %v9399_v35 = vpop.permute.xlu0 %4794  ;;  %7774 = vrcp.f32 %v4300_v8  ;;  %v7885_v56 = vld [vmem:[%s8279_s22 + $0x48] sm:$0xff] }
 0x4a8   : > { %v5087_v19 = vmul.f32 %v7878_v17, %v4979_v58  ;;  %v5090_v16 = vmul.f32 %v7885_v56, %v9367_v13  ;;  %v7886_v17 = vld [vmem:[%s8430_s24 + $0x48] sm:$0xff] }
 0x4a9   : > { %7578 = vset.pattern.permute.xlu1 %v8080_v26  ;;  %7591 = vset.pattern.permute.xlu0 %v8078_v49 }
 0x4aa   : > { %v5119_v37 = vadd.f32 %v5087_v19, %v4927_v5  ;;  %5590 = vperm.xlu1 %7578, %v9301_v7   ;;  %5406 = vperm.xlu0 %7591, %v9379_v57  }
 0x4ac   : > { %v5363_v52 = vpop.permute.xlu1 %5362  ;;  %v5311_v21 = vadd.f32 %v5279_v39, %v5119_v37  ;;  %v9408_v25 = vpop.permute.xlu0 %5178  ;;  %v5474_v39 = vmul.f32 %v7887_v40, %v9376_v22 }
 0x4ad   : > { %v5471_v42 = vmul.f32 %v7880_v31, %v5363_v52  ;;  %v7888_v31 = vld [vmem:[%s8660_s18 + $0x48] sm:$0xff] }
 0x4ae   : > { %7580 = vset.pattern.permute.xlu1 %v8074_v28  ;;  %7593 = vset.pattern.permute.xlu0 %v8075_v14 }
 0x4af   : > { %v5503_v7 = vadd.f32 %v5471_v42, %v5311_v21  ;;  %4626 = vperm.xlu1 %7580, %v9333_v34   ;;  %4459 = vperm.xlu0 %7593, %v9411_v43  }
 0x4b1   : > { %v5695_v48 = vadd.f32 %v5663_v47, %v5503_v7  ;;  %v4425_v0 = vpop.permute.xlu1 %4424  ;;  %v9419_v36 = vpop.permute.xlu0 %5562 }
 0x4b2   : > { %v4546_v3 = vmul.f32 %v7882_v10, %v4425_v0  ;;  %v7889_v0 = vld [vmem:[%s8238_s19 + $0x40] sm:$0xff] }
 0x4b3   : > { %5727 = vst.msk [vmem:[%s9147_s21 + $0x30] sm:$0xff] %vm959_vm0, %v5695_v48  ;;  %v5771_v50 = vsel %vm959_vm0, %v5695_v48, 0.0  ;;  %7582 = vset.pattern.permute.xlu1 %v8076_v54  ;;  %7595 = vset.pattern.permute.xlu0 %v8077_v55  ;;  %v6399_v48 = vmul.f32 -1.442695, %v9014_v61  ;;  %v4545_v6 = vmul.f32 %v7889_v0, %v9387_v9 }
 0x4b4   : > { %v5772_v11 = vadd.f32 %v5771_v50, %v9358_v51  ;;  %5010 = vperm.xlu1 %7582, %v9333_v34   ;;  %4826 = vperm.xlu0 %7595, %v9411_v43   ;;  %v4738_v44 = vadd.f32 %v4706_v41, %v4546_v3  ;;  %v7890_v50 = vld [vmem:[%s8381_s20 + $0x40] sm:$0xff] }
 0x4b5   : > { %v7891_v3 = vld [vmem:[%s8218_s28 + $0x40] sm:$0xff] }
 0x4b6   : > { %v4799_v62 = vpop.permute.xlu1 %4798  ;;  %v9434_v29 = vpop.permute.xlu0 %4614  ;;  %v9436_v27 = vadd.f32 %v5773_v53, %v5772_v11  ;;  %v4897_v8 = vmul.f32 %v7891_v3, %v9399_v35  ;;  %v7892_v41 = vld [vmem:[%s8279_s22 + $0x40] sm:$0xff] }
 0x4b7   : > { %v4898_v51 = vmul.f32 %v7884_v15, %v4799_v62  ;;  %v7893_v62 = vld [vmem:[%s8430_s24 + $0x40] sm:$0xff] }
 0x4b8   : > { %7584 = vset.pattern.permute.xlu1 %v8078_v49  ;;  %7597 = vset.pattern.permute.xlu0 %v8079_v60  ;;  %v5281_v35 = vmul.f32 %v7893_v62, %v9408_v25  ;;  %v7895_v25 = vld [vmem:[%s8660_s18 + $0x40] sm:$0xff] }
 0x4b9   : > { %v4930_v4 = vadd.f32 %v4898_v51, %v4738_v44  ;;  %5394 = vperm.xlu1 %7584, %v9333_v34   ;;  %5210 = vperm.xlu0 %7597, %v9411_v43   ;;  %v7773_v34 = vpop.eup %7772 }
 0x4ba   : > { %v9457_v46 = vpop.eup %7774  ;;  %v4299_v22 = vadd.f32 1.0, %v7773_v34 }
 0x4bb   : > { %v5183_v33 = vpop.permute.xlu1 %5182  ;;  %v5122_v58 = vadd.f32 %v5090_v16, %v4930_v4  ;;  %v9445_v5 = vpop.permute.xlu0 %4998  ;;  %v7894_v16 = vld [vmem:[%s8574_s26 + $0x40] sm:$0xff] }
 0x4bc   : > { %v5282_v19 = vmul.f32 %v7886_v17, %v5183_v33  ;;  %7776 = vrcp.f32 %v4299_v22 }
 0x4bd   : > { %7586 = vset.pattern.permute.xlu1 %v8075_v14  ;;  %7599 = vset.pattern.permute.xlu0 %v8080_v26  ;;  %7778 = vpow2.f32 %v6399_v48 }
 0x4be   : > { %v5314_v13 = vadd.f32 %v5282_v19, %v5122_v58  ;;  %4464 = vperm.xlu1 %7586, %v9379_v57   ;;  %5594 = vperm.xlu0 %7599, %v9411_v43   ;;  %v5665_v58 = vmul.f32 %v7895_v25, %v9419_v36 }
 0x4c0   : > { %v5567_v37 = vpop.permute.xlu1 %5566  ;;  %v5506_v52 = vadd.f32 %v5474_v39, %v5314_v13  ;;  %v9454_v21 = vpop.permute.xlu0 %5382  ;;  %v6398_v13 = vmul.f32 -1.442695, %v9017_v12  ;;  %v7897_v12 = vld [vmem:[%s8381_s20 + $0x58] sm:$0xff] }
 0x4c1   : > { %v5666_v42 = vmul.f32 %v7888_v31, %v5567_v37  ;;  %v7896_v37 = vld [vmem:[%s8238_s19 + $0x58] sm:$0xff] }
 0x4c2   : > { %7588 = vset.pattern.permute.xlu1 %v8077_v55  ;;  %7601 = vset.pattern.permute.xlu0 %v8074_v28  ;;  %7780 = vpow2.f32 %v6398_v13 }
 0x4c3   : > { %v5698_v47 = vadd.f32 %v5666_v42, %v5506_v52  ;;  %4830 = vperm.xlu1 %7588, %v9379_v57   ;;  %4646 = vperm.xlu0 %7601, %v9457_v46   ;;  %v4708_v42 = vmul.f32 %v7897_v12, %v9434_v29 }
 0x4c5   : > { %5730 = vst.msk [vmem:[%s9147_s21 + $0x48] sm:$0xff] %vm959_vm0, %v5698_v47  ;;  %v4603_v7 = vpop.permute.xlu1 %4602  ;;  %v9465_v24 = vpop.permute.xlu0 %4429  ;;  %v5777_v22 = vsel %vm959_vm0, %v5698_v47, 0.0 }
 0x4c6   : > { %v4705_v10 = vmul.f32 %v7890_v50, %v4603_v7  ;;  %v9489_v33 = vpop.eup %7776  ;;  %v7898_v50 = vld [vmem:[%s8218_s28 + $0x58] sm:$0xff] }
 0x4c7   : > { %7590 = vset.pattern.permute.xlu1 %v8079_v60  ;;  %7603 = vset.pattern.permute.xlu0 %v8076_v54  ;;  %v7779_v17 = vpop.eup %7778 }
 0x4c8   : > { %v4737_v11 = vadd.f32 %v4705_v10, %v4545_v6  ;;  %5214 = vperm.xlu1 %7590, %v9379_v57   ;;  %5030 = vperm.xlu0 %7603, %v9457_v46   ;;  %v4302_v52 = vadd.f32 1.0, %v7779_v17  ;;  %v7899_v10 = vld [vmem:[%s8279_s22 + $0x58] sm:$0xff]  ;;  %v7903_v17 = vld [vmem:[%s8238_s19 + $0x50] sm:$0xff] }
 0x4c9   : > { %v5092_v29 = vmul.f32 %v7899_v10, %v9445_v5 }
 0x4ca   : > { %v4987_v61 = vpop.permute.xlu1 %4986  ;;  %v4929_v9 = vadd.f32 %v4897_v8, %v4737_v11  ;;  %v9477_v59 = vpop.permute.xlu0 %4802  ;;  %7782 = vrcp.f32 %v4302_v52 }
 0x4cb   : > { %v5089_v53 = vmul.f32 %v7892_v41, %v4987_v61  ;;  %v7900_v61 = vld [vmem:[%s8430_s24 + $0x58] sm:$0xff] }
 0x4cc   : > { %7592 = vset.pattern.permute.xlu1 %v8080_v26  ;;  %7605 = vset.pattern.permute.xlu0 %v8078_v49  ;;  %v7901_v41 = vld [vmem:[%s8574_s26 + $0x58] sm:$0xff] }
 0x4cd   : > { %v5121_v44 = vadd.f32 %v5089_v53, %v4929_v9  ;;  %5598 = vperm.xlu1 %7592, %v9379_v57   ;;  %5414 = vperm.xlu0 %7605, %v9457_v46   ;;  %v5476_v53 = vmul.f32 %v7901_v41, %v9454_v21  ;;  %v6400_v41 = vmul.f32 -1.442695, %v9027_v30  ;;  %v7911_v30 = vld [vmem:[%s8381_s20 + $0x68] sm:$0xff] }
 0x4cf   : > { %v5371_v15 = vpop.permute.xlu1 %5370  ;;  %v5313_v51 = vadd.f32 %v5281_v35, %v5121_v44  ;;  %v9486_v56 = vpop.permute.xlu0 %5186 }
 0x4d0   : > { %v5473_v4 = vmul.f32 %v7894_v16, %v5371_v15  ;;  %v7902_v15 = vld [vmem:[%s8660_s18 + $0x58] sm:$0xff] }
 0x4d1   : > { %7594 = vset.pattern.permute.xlu1 %v8074_v28  ;;  %7607 = vset.pattern.permute.xlu0 %v8075_v14 }
 0x4d2   : > { %v5505_v57 = vadd.f32 %v5473_v4, %v5313_v51  ;;  %4634 = vperm.xlu1 %7594, %v9411_v43   ;;  %4469 = vperm.xlu0 %7607, %v9489_v33  }
 0x4d4   : > { %v5697_v19 = vadd.f32 %v5665_v58, %v5505_v57  ;;  %v4435_v40 = vpop.permute.xlu1 %4434  ;;  %v9497_v39 = vpop.permute.xlu0 %5570  ;;  %v6401_v57 = vmul.f32 -1.442695, %v9024_v63 }
 0x4d5   : > { %v4548_v36 = vmul.f32 %v7896_v37, %v4435_v40  ;;  %v7904_v40 = vld [vmem:[%s8381_s20 + $0x50] sm:$0xff] }
 0x4d6   : > { %5729 = vst.msk [vmem:[%s9147_s21 + $0x40] sm:$0xff] %vm959_vm0, %v5697_v19  ;;  %v5775_v34 = vsel %vm959_vm0, %v5697_v19, 0.0  ;;  %7596 = vset.pattern.permute.xlu1 %v8076_v54  ;;  %7609 = vset.pattern.permute.xlu0 %v8077_v55  ;;  %v4547_v19 = vmul.f32 %v7903_v17, %v9465_v24  ;;  %v7912_v17 = vld [vmem:[%s8218_s28 + $0x68] sm:$0xff] }
 0x4d7   : > { %v5776_v31 = vadd.f32 %v5775_v34, %v9436_v27  ;;  %5018 = vperm.xlu1 %7596, %v9411_v43   ;;  %4834 = vperm.xlu0 %7609, %v9489_v33   ;;  %v4740_v6 = vadd.f32 %v4708_v42, %v4548_v36  ;;  %v7905_v34 = vld [vmem:[%s8218_s28 + $0x50] sm:$0xff] }
 0x4d8   : > { %v4899_v37 = vmul.f32 %v7905_v34, %v9477_v59  ;;  %v7907_v42 = vld [vmem:[%s8430_s24 + $0x50] sm:$0xff] }
 0x4d9   : > { %v4807_v7 = vpop.permute.xlu1 %4806  ;;  %v9512_v48 = vpop.permute.xlu0 %4622  ;;  %v9514_v0 = vadd.f32 %v5777_v22, %v5776_v31  ;;  %v7906_v31 = vld [vmem:[%s8279_s22 + $0x50] sm:$0xff]  ;;  %v5283_v59 = vmul.f32 %v7907_v42, %v9486_v56 }
 0x4da   : > { %v4900_v27 = vmul.f32 %v7898_v50, %v4807_v7  ;;  %v7909_v56 = vld [vmem:[%s8660_s18 + $0x50] sm:$0xff] }
 0x4db   : > { %7598 = vset.pattern.permute.xlu1 %v8078_v49  ;;  %7611 = vset.pattern.permute.xlu0 %v8079_v60 }
 0x4dc   : > { %v4932_v47 = vadd.f32 %v4900_v27, %v4740_v6  ;;  %5402 = vperm.xlu1 %7598, %v9411_v43   ;;  %5218 = vperm.xlu0 %7611, %v9489_v33   ;;  %v7781_v43 = vpop.eup %7780  ;;  %v7908_v27 = vld [vmem:[%s8574_s26 + $0x50] sm:$0xff] }
 0x4dd   : > { %v9535_v16 = vpop.eup %7782  ;;  %v4301_v21 = vadd.f32 1.0, %v7781_v43 }
 0x4de   : > { %v5191_v3 = vpop.permute.xlu1 %5190  ;;  %v5124_v8 = vadd.f32 %v5092_v29, %v4932_v47  ;;  %v9523_v11 = vpop.permute.xlu0 %5006  ;;  %v5667_v47 = vmul.f32 %v7909_v56, %v9497_v39  ;;  %v6403_v56 = vmul.f32 -1.442695, %v9034_v32 }
 0x4df   : > { %v5284_v9 = vmul.f32 %v7900_v61, %v5191_v3  ;;  %7784 = vrcp.f32 %v4301_v21 }
 0x4e0   : > { %7600 = vset.pattern.permute.xlu1 %v8075_v14  ;;  %7613 = vset.pattern.permute.xlu0 %v8080_v26  ;;  %7786 = vpow2.f32 %v6401_v57 }
 0x4e1   : > { %v5316_v5 = vadd.f32 %v5284_v9, %v5124_v8  ;;  %4474 = vperm.xlu1 %7600, %v9457_v46   ;;  %5602 = vperm.xlu0 %7613, %v9489_v33   ;;  %7788 = vpow2.f32 %v6400_v41 }
 0x4e3   : > { %v5575_v62 = vpop.permute.xlu1 %5574  ;;  %v5508_v35 = vadd.f32 %v5476_v53, %v5316_v5  ;;  %v9532_v44 = vpop.permute.xlu0 %5390  ;;  %v7910_v5 = vld [vmem:[%s8238_s19 + $0x68] sm:$0xff] }
 0x4e4   : > { %v5668_v51 = vmul.f32 %v7902_v15, %v5575_v62 }
 0x4e5   : > { %7602 = vset.pattern.permute.xlu1 %v8077_v55  ;;  %7615 = vset.pattern.permute.xlu0 %v8074_v28 }
 0x4e6   : > { %v5700_v4 = vadd.f32 %v5668_v51, %v5508_v35  ;;  %4838 = vperm.xlu1 %7602, %v9457_v46   ;;  %4654 = vperm.xlu0 %7615, %v9535_v16   ;;  %v4710_v35 = vmul.f32 %v7911_v30, %v9512_v48 }
 0x4e8   : > { %5732 = vst.msk [vmem:[%s9147_s21 + $0x58] sm:$0xff] %vm959_vm0, %v5700_v4  ;;  %v4611_v25 = vpop.permute.xlu1 %4610  ;;  %v9543_v58 = vpop.permute.xlu0 %4439  ;;  %v5781_v15 = vsel %vm959_vm0, %v5700_v4, 0.0 }
 0x4e9   : > { %v4707_v13 = vmul.f32 %v7904_v40, %v4611_v25  ;;  %v9567_v29 = vpop.eup %7784 }
 0x4ea   : > { %7604 = vset.pattern.permute.xlu1 %v8079_v60  ;;  %7617 = vset.pattern.permute.xlu0 %v8076_v54  ;;  %v7787_v3 = vpop.eup %7786 }
 0x4eb   : > { %v4739_v36 = vadd.f32 %v4707_v13, %v4547_v19  ;;  %5222 = vperm.xlu1 %7604, %v9457_v46   ;;  %5038 = vperm.xlu0 %7617, %v9535_v16   ;;  %v4304_v43 = vadd.f32 1.0, %v7787_v3  ;;  %v7913_v19 = vld [vmem:[%s8279_s22 + $0x68] sm:$0xff]  ;;  %v7918_v3 = vld [vmem:[%s8381_s20 + $0x60] sm:$0xff] }
 0x4ec   : > { %v5094_v48 = vmul.f32 %v7913_v19, %v9523_v11 }
 0x4ed   : > { %v4995_v63 = vpop.permute.xlu1 %4994  ;;  %v4931_v24 = vadd.f32 %v4899_v37, %v4739_v36  ;;  %v9555_v52 = vpop.permute.xlu0 %4810  ;;  %7790 = vrcp.f32 %v4304_v43  ;;  %v7914_v37 = vld [vmem:[%s8430_s24 + $0x68] sm:$0xff] }
 0x4ee   : > { %v5091_v12 = vmul.f32 %v7906_v31, %v4995_v63  ;;  %v7915_v63 = vld [vmem:[%s8574_s26 + $0x68] sm:$0xff] }
 0x4ef   : > { %7606 = vset.pattern.permute.xlu1 %v8080_v26  ;;  %7619 = vset.pattern.permute.xlu0 %v8078_v49 }
 0x4f0   : > { %v5123_v22 = vadd.f32 %v5091_v12, %v4931_v24  ;;  %5606 = vperm.xlu1 %7606, %v9457_v46   ;;  %5422 = vperm.xlu0 %7619, %v9535_v16   ;;  %v5478_v24 = vmul.f32 %v7915_v63, %v9532_v44  ;;  %v7924_v63 = vld [vmem:[%s8238_s19 + $0x78] sm:$0xff] }
 0x4f2   : > { %v5379_v7 = vpop.permute.xlu1 %5378  ;;  %v5315_v6 = vadd.f32 %v5283_v59, %v5123_v22  ;;  %v9564_v50 = vpop.permute.xlu0 %5194  ;;  %v7916_v59 = vld [vmem:[%s8660_s18 + $0x68] sm:$0xff] }
 0x4f3   : > { %v5475_v10 = vmul.f32 %v7908_v27, %v5379_v7 }
 0x4f4   : > { %7608 = vset.pattern.permute.xlu1 %v8074_v28  ;;  %7621 = vset.pattern.permute.xlu0 %v8075_v14 }
 0x4f5   : > { %v5507_v46 = vadd.f32 %v5475_v10, %v5315_v6  ;;  %4642 = vperm.xlu1 %7608, %v9489_v33   ;;  %4479 = vperm.xlu0 %7621, %v9567_v29  }
 0x4f7   : > { %v5699_v8 = vadd.f32 %v5667_v47, %v5507_v46  ;;  %v4445_v61 = vpop.permute.xlu1 %4444  ;;  %v9575_v9 = vpop.permute.xlu0 %5578  ;;  %v7917_v47 = vld [vmem:[%s8238_s19 + $0x60] sm:$0xff] }
 0x4f8   : > { %v4550_v39 = vmul.f32 %v7910_v5, %v4445_v61  ;;  %v4549_v46 = vmul.f32 %v7917_v47, %v9543_v58  ;;  %v7919_v61 = vld [vmem:[%s8218_s28 + $0x60] sm:$0xff] }
 0x4f9   : > { %5731 = vst.msk [vmem:[%s9147_s21 + $0x50] sm:$0xff] %vm959_vm0, %v5699_v8  ;;  %v5779_v53 = vsel %vm959_vm0, %v5699_v8, 0.0  ;;  %7610 = vset.pattern.permute.xlu1 %v8076_v54  ;;  %7623 = vset.pattern.permute.xlu0 %v8077_v55  ;;  %v4901_v41 = vmul.f32 %v7919_v61, %v9555_v52 }
 0x4fa   : > { %v5780_v62 = vadd.f32 %v5779_v53, %v9514_v0  ;;  %5026 = vperm.xlu1 %7610, %v9489_v33   ;;  %4842 = vperm.xlu0 %7623, %v9567_v29   ;;  %v4742_v57 = vadd.f32 %v4710_v35, %v4550_v39  ;;  %v7920_v39 = vld [vmem:[%s8279_s22 + $0x60] sm:$0xff] }
 0x4fc   : > { %v4815_v51 = vpop.permute.xlu1 %4814  ;;  %v9590_v21 = vpop.permute.xlu0 %4630  ;;  %v9592_v25 = vadd.f32 %v5781_v15, %v5780_v62  ;;  %v7921_v62 = vld [vmem:[%s8430_s24 + $0x60] sm:$0xff] }
 0x4fd   : > { %v4902_v0 = vmul.f32 %v7912_v17, %v4815_v51  ;;  %v5285_v52 = vmul.f32 %v7921_v62, %v9564_v50  ;;  %v7923_v50 = vld [vmem:[%s8660_s18 + $0x60] sm:$0xff] }
 0x4fe   : > { %7612 = vset.pattern.permute.xlu1 %v8078_v49  ;;  %7625 = vset.pattern.permute.xlu0 %v8079_v60  ;;  %v5669_v19 = vmul.f32 %v7923_v50, %v9575_v9 }
 0x4ff   : > { %v4934_v4 = vadd.f32 %v4902_v0, %v4742_v57  ;;  %5410 = vperm.xlu1 %7612, %v9489_v33   ;;  %5226 = vperm.xlu0 %7625, %v9567_v29   ;;  %v7789_v33 = vpop.eup %7788  ;;  %v7922_v57 = vld [vmem:[%s8574_s26 + $0x60] sm:$0xff] }
 0x500   : > { %v9613_v7 = vpop.eup %7790  ;;  %v4303_v44 = vadd.f32 1.0, %v7789_v33 }
 0x501   : > { %v5199_v40 = vpop.permute.xlu1 %5198  ;;  %v5126_v13 = vadd.f32 %v5094_v48, %v4934_v4  ;;  %v9601_v34 = vpop.permute.xlu0 %5014 }
 0x502   : > { %v5286_v36 = vmul.f32 %v7914_v37, %v5199_v40  ;;  %7792 = vrcp.f32 %v4303_v44  ;;  %v6402_v37 = vmul.f32 -1.442695, %v9037_v1  ;;  %v7925_v1 = vld [vmem:[%s8381_s20 + $0x78] sm:$0xff] }
 0x503   : > { %7614 = vset.pattern.permute.xlu1 %v8075_v14  ;;  %7627 = vset.pattern.permute.xlu0 %v8080_v26  ;;  %7794 = vpow2.f32 %v6403_v56  ;;  %v4712_v33 = vmul.f32 %v7925_v1, %v9590_v21  ;;  %v7927_v56 = vld [vmem:[%s8279_s22 + $0x78] sm:$0xff] }
 0x504   : > { %v5318_v11 = vadd.f32 %v5286_v36, %v5126_v13  ;;  %4484 = vperm.xlu1 %7614, %v9535_v16   ;;  %5610 = vperm.xlu0 %7627, %v9567_v29   ;;  %7796 = vpow2.f32 %v6402_v37  ;;  %v5096_v21 = vmul.f32 %v7927_v56, %v9601_v34 }
 0x506   : > { %v5583_v31 = vpop.permute.xlu1 %5582  ;;  %v5510_v12 = vadd.f32 %v5478_v24, %v5318_v11  ;;  %v9610_v42 = vpop.permute.xlu0 %5398 }
 0x507   : > { %v5670_v22 = vmul.f32 %v7916_v59, %v5583_v31 }
 0x508   : > { %7616 = vset.pattern.permute.xlu1 %v8077_v55  ;;  %7629 = vset.pattern.permute.xlu0 %v8074_v28 }
 0x509   : > { %v5702_v6 = vadd.f32 %v5670_v22, %v5510_v12  ;;  %4846 = vperm.xlu1 %7616, %v9535_v16   ;;  %4662 = vperm.xlu0 %7629, %v9613_v7  }
 0x50b   : > { %5734 = vst.msk [vmem:[%s9147_s21 + $0x68] sm:$0xff] %vm959_vm0, %v5702_v6  ;;  %v4619_v27 = vpop.permute.xlu1 %4618  ;;  %v9621_v10 = vpop.permute.xlu0 %4449  ;;  %v5785_v31 = vsel %vm959_vm0, %v5702_v6, 0.0 }
 0x50c   : > { %v4709_v8 = vmul.f32 %v7918_v3, %v4619_v27  ;;  %v9645_v0 = vpop.eup %7792  ;;  %v7926_v27 = vld [vmem:[%s8218_s28 + $0x78] sm:$0xff] }
 0x50d   : > { %7618 = vset.pattern.permute.xlu1 %v8079_v60  ;;  %7631 = vset.pattern.permute.xlu0 %v8076_v54  ;;  %v7795_v48 = vpop.eup %7794 }
 0x50e   : > { %v4741_v53 = vadd.f32 %v4709_v8, %v4549_v46  ;;  %5230 = vperm.xlu1 %7618, %v9535_v16   ;;  %5046 = vperm.xlu0 %7631, %v9613_v7   ;;  %v4306_v24 = vadd.f32 1.0, %v7795_v48  ;;  %v7928_v8 = vld [vmem:[%s8430_s24 + $0x78] sm:$0xff]  ;;  %v7933_v48 = vld [vmem:[%s8218_s28 + $0x70] sm:$0xff] }
 0x510   : > { %v5003_v32 = vpop.permute.xlu1 %5002  ;;  %v4933_v58 = vadd.f32 %v4901_v41, %v4741_v53  ;;  %v9633_v5 = vpop.permute.xlu0 %4818  ;;  %7798 = vrcp.f32 %v4306_v24  ;;  %v7929_v41 = vld [vmem:[%s8574_s26 + $0x78] sm:$0xff] }
 0x511   : > { %v5093_v43 = vmul.f32 %v7920_v39, %v5003_v32  ;;  %v5480_v53 = vmul.f32 %v7929_v41, %v9610_v42  ;;  %v7939_v41 = vld [vmem:[%s8381_s20 + $0x88] sm:$0xff] }
 0x512   : > { %7620 = vset.pattern.permute.xlu1 %v8080_v26  ;;  %7633 = vset.pattern.permute.xlu0 %v8078_v49 }
 0x513   : > { %v5125_v30 = vadd.f32 %v5093_v43, %v4933_v58  ;;  %5614 = vperm.xlu1 %7620, %v9535_v16   ;;  %5430 = vperm.xlu0 %7633, %v9613_v7   ;;  %v7930_v43 = vld [vmem:[%s8660_s18 + $0x78] sm:$0xff] }
 0x515   : > { %v5387_v35 = vpop.permute.xlu1 %5386  ;;  %v5317_v15 = vadd.f32 %v5285_v52, %v5125_v30  ;;  %v9642_v51 = vpop.permute.xlu0 %5202 }
 0x516   : > { %v5477_v17 = vmul.f32 %v7922_v57, %v5387_v35  ;;  %v6405_v57 = vmul.f32 -1.442695, %v9040_v2 }
 0x517   : > { %7622 = vset.pattern.permute.xlu1 %v8074_v28  ;;  %7635 = vset.pattern.permute.xlu0 %v8075_v14 }
 0x518   : > { %v5509_v16 = vadd.f32 %v5477_v17, %v5317_v15  ;;  %4650 = vperm.xlu1 %7622, %v9567_v29   ;;  %4489 = vperm.xlu0 %7635, %v9645_v0   ;;  %v7931_v17 = vld [vmem:[%s8238_s19 + $0x70] sm:$0xff] }
 0x519   : > { %v4551_v50 = vmul.f32 %v7931_v17, %v9621_v10 }
 0x51a   : > { %v5701_v4 = vadd.f32 %v5669_v19, %v5509_v16  ;;  %v4455_v40 = vpop.permute.xlu1 %4454  ;;  %v9653_v13 = vpop.permute.xlu0 %5586  ;;  %v7932_v19 = vld [vmem:[%s8381_s20 + $0x70] sm:$0xff] }
 0x51b   : > { %v4552_v9 = vmul.f32 %v7924_v63, %v4455_v40 }
 0x51c   : > { %5733 = vst.msk [vmem:[%s9147_s21 + $0x60] sm:$0xff] %vm959_vm0, %v5701_v4  ;;  %v5783_v36 = vsel %vm959_vm0, %v5701_v4, 0.0  ;;  %7624 = vset.pattern.permute.xlu1 %v8076_v54  ;;  %7637 = vset.pattern.permute.xlu0 %v8077_v55  ;;  %v4903_v4 = vmul.f32 %v7933_v48, %v9633_v5 }
 0x51d   : > { %v5784_v11 = vadd.f32 %v5783_v36, %v9592_v25  ;;  %5034 = vperm.xlu1 %7624, %v9567_v29   ;;  %4850 = vperm.xlu0 %7637, %v9645_v0   ;;  %v4744_v44 = vadd.f32 %v4712_v33, %v4552_v9  ;;  %v7934_v36 = vld [vmem:[%s8279_s22 + $0x70] sm:$0xff] }
 0x51e   : > { %v7935_v9 = vld [vmem:[%s8430_s24 + $0x70] sm:$0xff] }
 0x51f   : > { %v4823_v12 = vpop.permute.xlu1 %4822  ;;  %v9668_v59 = vpop.permute.xlu0 %4638  ;;  %v9670_v22 = vadd.f32 %v5785_v31, %v5784_v11  ;;  %v5287_v5 = vmul.f32 %v7935_v9, %v9642_v51  ;;  %v7936_v31 = vld [vmem:[%s8574_s26 + $0x70] sm:$0xff] }
 0x520   : > { %v4904_v25 = vmul.f32 %v7926_v27, %v4823_v12  ;;  %v7937_v51 = vld [vmem:[%s8660_s18 + $0x70] sm:$0xff] }
 0x521   : > { %7626 = vset.pattern.permute.xlu1 %v8078_v49  ;;  %7639 = vset.pattern.permute.xlu0 %v8079_v60  ;;  %v5671_v27 = vmul.f32 %v7937_v51, %v9653_v13  ;;  %v7947_v51 = vld [vmem:[%s8218_s28 + $0x80] sm:$0xff] }
 0x522   : > { %v4936_v6 = vadd.f32 %v4904_v25, %v4744_v44  ;;  %5418 = vperm.xlu1 %7626, %v9567_v29   ;;  %5234 = vperm.xlu0 %7639, %v9645_v0   ;;  %v7797_v29 = vpop.eup %7796 }
 0x523   : > { %v9691_v52 = vpop.eup %7798  ;;  %v4305_v42 = vadd.f32 1.0, %v7797_v29 }
 0x524   : > { %v5207_v47 = vpop.permute.xlu1 %5206  ;;  %v5128_v46 = vadd.f32 %v5096_v21, %v4936_v6  ;;  %v9679_v3 = vpop.permute.xlu0 %5022 }
 0x525   : > { %v5288_v61 = vmul.f32 %v7928_v8, %v5207_v47  ;;  %7800 = vrcp.f32 %v4305_v42 }
 0x526   : > { %7628 = vset.pattern.permute.xlu1 %v8075_v14  ;;  %7641 = vset.pattern.permute.xlu0 %v8080_v26  ;;  %7802 = vpow2.f32 %v6405_v57 }
 0x527   : > { %v5320_v34 = vadd.f32 %v5288_v61, %v5128_v46  ;;  %4494 = vperm.xlu1 %7628, %v9613_v7   ;;  %5618 = vperm.xlu0 %7641, %v9645_v0   ;;  %v7938_v46 = vld [vmem:[%s8238_s19 + $0x88] sm:$0xff] }
 0x529   : > { %v5591_v32 = vpop.permute.xlu1 %5590  ;;  %v5512_v58 = vadd.f32 %v5480_v53, %v5320_v34  ;;  %v9688_v39 = vpop.permute.xlu0 %5406  ;;  %v4714_v53 = vmul.f32 %v7939_v41, %v9668_v59  ;;  %v7941_v59 = vld [vmem:[%s8279_s22 + $0x88] sm:$0xff] }
 0x52a   : > { %v5672_v62 = vmul.f32 %v7930_v43, %v5591_v32  ;;  %v6404_v43 = vmul.f32 -1.442695, %v9045_v18 }
 0x52b   : > { %7630 = vset.pattern.permute.xlu1 %v8077_v55  ;;  %7643 = vset.pattern.permute.xlu0 %v8074_v28 }
 0x52c   : > { %v5704_v30 = vadd.f32 %v5672_v62, %v5512_v58  ;;  %4854 = vperm.xlu1 %7630, %v9613_v7   ;;  %4670 = vperm.xlu0 %7643, %v9691_v52  }
 0x52e   : > { %5736 = vst.msk [vmem:[%s9147_s21 + $0x78] sm:$0xff] %vm959_vm0, %v5704_v30  ;;  %v4627_v35 = vpop.permute.xlu1 %4626  ;;  %v9699_v15 = vpop.permute.xlu0 %4459  ;;  %v5789_v34 = vsel %vm959_vm0, %v5704_v30, 0.0  ;;  %v5098_v30 = vmul.f32 %v7941_v59, %v9679_v3 }
 0x52f   : > { %v4711_v16 = vmul.f32 %v7932_v19, %v4627_v35  ;;  %v9723_v44 = vpop.eup %7800 }
 0x530   : > { %7632 = vset.pattern.permute.xlu1 %v8079_v60  ;;  %7645 = vset.pattern.permute.xlu0 %v8076_v54  ;;  %v7803_v25 = vpop.eup %7802 }
 0x531   : > { %v4743_v40 = vadd.f32 %v4711_v16, %v4551_v50  ;;  %5238 = vperm.xlu1 %7632, %v9613_v7   ;;  %5054 = vperm.xlu0 %7645, %v9691_v52   ;;  %v4308_v13 = vadd.f32 1.0, %v7803_v25  ;;  %v7942_v50 = vld [vmem:[%s8430_s24 + $0x88] sm:$0xff] }
 0x532   : > { %v7943_v16 = vld [vmem:[%s8574_s26 + $0x88] sm:$0xff] }
 0x533   : > { %v5011_v2 = vpop.permute.xlu1 %5010  ;;  %v4935_v10 = vadd.f32 %v4903_v4, %v4743_v40  ;;  %v9711_v37 = vpop.permute.xlu0 %4826  ;;  %7804 = vrcp.f32 %v4308_v13  ;;  %v5482_v3 = vmul.f32 %v7943_v16, %v9688_v39 }
 0x534   : > { %v5095_v63 = vmul.f32 %v7934_v36, %v5011_v2  ;;  %7806 = vpow2.f32 %v6404_v43  ;;  %v7944_v2 = vld [vmem:[%s8660_s18 + $0x88] sm:$0xff] }
 0x535   : > { %7634 = vset.pattern.permute.xlu1 %v8080_v26  ;;  %7647 = vset.pattern.permute.xlu0 %v8078_v49 }
 0x536   : > { %v5127_v24 = vadd.f32 %v5095_v63, %v4935_v10  ;;  %5622 = vperm.xlu1 %7634, %v9613_v7   ;;  %5438 = vperm.xlu0 %7647, %v9691_v52  }
 0x538   : > { %v5395_v11 = vpop.permute.xlu1 %5394  ;;  %v5319_v1 = vadd.f32 %v5287_v5, %v5127_v24  ;;  %v9720_v33 = vpop.permute.xlu0 %5210  ;;  %v7945_v24 = vld [vmem:[%s8238_s19 + $0x80] sm:$0xff] }
 0x539   : > { %v5479_v12 = vmul.f32 %v7936_v31, %v5395_v11  ;;  %v4553_v11 = vmul.f32 %v7945_v24, %v9699_v15  ;;  %v6407_v15 = vmul.f32 -1.442695, %v9048_v38 }
 0x53a   : > { %7636 = vset.pattern.permute.xlu1 %v8074_v28  ;;  %7649 = vset.pattern.permute.xlu0 %v8075_v14 }
 0x53b   : > { %v5511_v7 = vadd.f32 %v5479_v12, %v5319_v1  ;;  %4658 = vperm.xlu1 %7636, %v9645_v0   ;;  %4499 = vperm.xlu0 %7649, %v9723_v44   ;;  %v7946_v1 = vld [vmem:[%s8381_s20 + $0x80] sm:$0xff] }
 0x53d   : > { %v5703_v56 = vadd.f32 %v5671_v27, %v5511_v7  ;;  %v4465_v21 = vpop.permute.xlu1 %4464  ;;  %v9731_v6 = vpop.permute.xlu0 %5594  ;;  %v4905_v27 = vmul.f32 %v7947_v51, %v9711_v37  ;;  %v7949_v37 = vld [vmem:[%s8430_s24 + $0x80] sm:$0xff] }
 0x53e   : > { %v4554_v8 = vmul.f32 %v7938_v46, %v4465_v21  ;;  %v9769_v36 = vpop.eup %7804 }
 0x53f   : > { %5735 = vst.msk [vmem:[%s9147_s21 + $0x70] sm:$0xff] %vm959_vm0, %v5703_v56  ;;  %v5787_v47 = vsel %vm959_vm0, %v5703_v56, 0.0  ;;  %7638 = vset.pattern.permute.xlu1 %v8076_v54  ;;  %7651 = vset.pattern.permute.xlu0 %v8077_v55  ;;  %v7807_v63 = vpop.eup %7806 }
 0x540   : > { %v5788_v61 = vadd.f32 %v5787_v47, %v9670_v22  ;;  %5042 = vperm.xlu1 %7638, %v9645_v0   ;;  %4858 = vperm.xlu0 %7651, %v9723_v44   ;;  %v4746_v62 = vadd.f32 %v4714_v53, %v4554_v8  ;;  %v7940_v22 = vld [vmem:[%s8218_s28 + $0x88] sm:$0xff]  ;;  %v4307_v12 = vadd.f32 1.0, %v7807_v63  ;;  %v7948_v47 = vld [vmem:[%s8279_s22 + $0x80] sm:$0xff]  ;;  %v5289_v8 = vmul.f32 %v7949_v37, %v9720_v33 }
 0x541   : > { %v7950_v53 = vld [vmem:[%s8574_s26 + $0x80] sm:$0xff] }
 0x542   : > { %v4831_v29 = vpop.permute.xlu1 %4830  ;;  %v9745_v32 = vpop.permute.xlu0 %4646  ;;  %v9747_v58 = vadd.f32 %v5789_v34, %v5788_v61  ;;  %7808 = vrcp.f32 %v4307_v12 }
 0x543   : > { %v4906_v42 = vmul.f32 %v7940_v22, %v4831_v29  ;;  %7810 = vpow2.f32 %v6407_v15  ;;  %v7951_v29 = vld [vmem:[%s8660_s18 + $0x80] sm:$0xff] }
 0x544   : > { %7640 = vset.pattern.permute.xlu1 %v8078_v49  ;;  %7653 = vset.pattern.permute.xlu0 %v8079_v60  ;;  %v5673_v33 = vmul.f32 %v7951_v29, %v9731_v6 }
 0x545   : > { %v4938_v35 = vadd.f32 %v4906_v42, %v4746_v62  ;;  %5426 = vperm.xlu1 %7640, %v9645_v0   ;;  %5242 = vperm.xlu0 %7653, %v9723_v44  }
 0x547   : > { %v5215_v18 = vpop.permute.xlu1 %5214  ;;  %v5130_v57 = vadd.f32 %v5098_v30, %v4938_v35  ;;  %v9757_v17 = vpop.permute.xlu0 %5030  ;;  %v7952_v30 = vld [vmem:[%s8238_s19 + $0x98] sm:$0xff] }
 0x548   : > { %v5290_v19 = vmul.f32 %v7942_v50, %v5215_v18  ;;  %v7953_v18 = vld [vmem:[%s8381_s20 + $0x98] sm:$0xff] }
 0x549   : > { %7642 = vset.pattern.permute.xlu1 %v8075_v14  ;;  %7655 = vset.pattern.permute.xlu0 %v8080_v26 }
 0x54a   : > { %v5322_v48 = vadd.f32 %v5290_v19, %v5130_v57  ;;  %4504 = vperm.xlu1 %7642, %v9691_v52   ;;  %5626 = vperm.xlu0 %7655, %v9723_v44   ;;  %v4716_v57 = vmul.f32 %v7953_v18, %v9745_v32  ;;  %v7964_v18 = vld [vmem:[%s8574_s26 + $0x90] sm:$0xff] }
 0x54c   : > { %v5599_v0 = vpop.permute.xlu1 %5598  ;;  %v5514_v4 = vadd.f32 %v5482_v3, %v5322_v48  ;;  %v9766_v40 = vpop.permute.xlu0 %5414 }
 0x54d   : > { %v5674_v10 = vmul.f32 %v7944_v2, %v5599_v0  ;;  %v9809_v42 = vpop.eup %7808  ;;  %v6406_v0 = vmul.f32 -1.442695, %v9051_v20 }
 0x54e   : > { %7644 = vset.pattern.permute.xlu1 %v8077_v55  ;;  %7657 = vset.pattern.permute.xlu0 %v8074_v28  ;;  %v7811_v19 = vpop.eup %7810 }
 0x54f   : > { %v5706_v39 = vadd.f32 %v5674_v10, %v5514_v4  ;;  %4862 = vperm.xlu1 %7644, %v9691_v52   ;;  %4678 = vperm.xlu0 %7657, %v9769_v36   ;;  %v7954_v4 = vld [vmem:[%s8218_s28 + $0x98] sm:$0xff]  ;;  %v4310_v32 = vadd.f32 1.0, %v7811_v19  ;;  %7812 = vpow2.f32 %v6406_v0 }
 0x550   : > { %v7955_v10 = vld [vmem:[%s8279_s22 + $0x98] sm:$0xff] }
 0x551   : > { %5738 = vst.msk [vmem:[%s9147_s21 + $0x88] sm:$0xff] %vm959_vm0, %v5706_v39  ;;  %v4635_v9 = vpop.permute.xlu1 %4634  ;;  %v9777_v5 = vpop.permute.xlu0 %4469  ;;  %v5793_v50 = vsel %vm959_vm0, %v5706_v39, 0.0  ;;  %v5100_v39 = vmul.f32 %v7955_v10, %v9757_v17  ;;  %7814 = vrcp.f32 %v4310_v32  ;;  %v7966_v10 = vld [vmem:[%s8238_s19 + $0xa8] sm:$0xff] }
 0x552   : > { %v4713_v31 = vmul.f32 %v7946_v1, %v4635_v9 }
 0x553   : > { %7646 = vset.pattern.permute.xlu1 %v8079_v60  ;;  %7659 = vset.pattern.permute.xlu0 %v8076_v54 }
 0x554   : > { %v4745_v7 = vadd.f32 %v4713_v31, %v4553_v11  ;;  %5246 = vperm.xlu1 %7646, %v9691_v52   ;;  %5062 = vperm.xlu0 %7659, %v9769_v36   ;;  %v7956_v11 = vld [vmem:[%s8430_s24 + $0x98] sm:$0xff] }
 0x555   : > { %v7957_v31 = vld [vmem:[%s8574_s26 + $0x98] sm:$0xff] }
 0x556   : > { %v5019_v25 = vpop.permute.xlu1 %5018  ;;  %v4937_v56 = vadd.f32 %v4905_v27, %v4745_v7  ;;  %v9788_v21 = vpop.permute.xlu0 %4834  ;;  %v5484_v17 = vmul.f32 %v7957_v31, %v9766_v40  ;;  %v7958_v7 = vld [vmem:[%s8660_s18 + $0x98] sm:$0xff] }
 0x557   : > { %v5097_v46 = vmul.f32 %v7948_v47, %v5019_v25 }
 0x558   : > { %7648 = vset.pattern.permute.xlu1 %v8080_v26  ;;  %7661 = vset.pattern.permute.xlu0 %v8078_v49 }
 0x559   : > { %v5129_v13 = vadd.f32 %v5097_v46, %v4937_v56  ;;  %5630 = vperm.xlu1 %7648, %v9691_v52   ;;  %5446 = vperm.xlu0 %7661, %v9769_v36   ;;  %v7813_v40 = vpop.eup %7812  ;;  %v7959_v46 = vld [vmem:[%s8238_s19 + $0x90] sm:$0xff] }
 0x55a   : > { %v4555_v37 = vmul.f32 %v7959_v46, %v9777_v5  ;;  %v7971_v46 = vld [vmem:[%s8574_s26 + $0xa8] sm:$0xff] }
 0x55b   : > { %v5403_v61 = vpop.permute.xlu1 %5402  ;;  %v5321_v38 = vadd.f32 %v5289_v8, %v5129_v13  ;;  %v9798_v41 = vpop.permute.xlu0 %5218  ;;  %v7960_v8 = vld [vmem:[%s8381_s20 + $0x90] sm:$0xff] }
 0x55c   : > { %v5481_v34 = vmul.f32 %v7950_v53, %v5403_v61  ;;  %v9861_v61 = vpop.eup %7814  ;;  %v7961_v53 = vld [vmem:[%s8218_s28 + $0x90] sm:$0xff] }
 0x55d   : > { %7650 = vset.pattern.permute.xlu1 %v8074_v28  ;;  %7662 = vset.pattern.permute.xlu0 %v8080_v26 }
 0x55e   : > { %v5513_v43 = vadd.f32 %v5481_v34, %v5321_v38  ;;  %4666 = vperm.xlu1 %7650, %v9723_v44   ;;  %5638 = vperm.xlu0 %7662, %v9769_v36   ;;  %v4309_v38 = vadd.f32 1.0, %v7813_v40  ;;  %v4907_v34 = vmul.f32 %v7961_v53, %v9788_v21  ;;  %v7963_v21 = vld [vmem:[%s8430_s24 + $0x90] sm:$0xff]  ;;  %v7970_v40 = vld [vmem:[%s8430_s24 + $0xa8] sm:$0xff] }
 0x560   : > { %v5705_v52 = vadd.f32 %v5673_v33, %v5513_v43  ;;  %v4475_v62 = vpop.permute.xlu1 %4474  ;;  %v9807_v22 = vpop.permute.xlu0 %5602  ;;  %7816 = vrcp.f32 %v4309_v38 }
 0x561   : > { %v4556_v35 = vmul.f32 %v7952_v30, %v4475_v62  ;;  %v7962_v62 = vld [vmem:[%s8279_s22 + $0x90] sm:$0xff] }
 0x562   : > { %5737 = vst.msk [vmem:[%s9147_s21 + $0x80] sm:$0xff] %vm959_vm0, %v5705_v52  ;;  %v5791_v59 = vsel %vm959_vm0, %v5705_v52, 0.0  ;;  %7652 = vset.pattern.permute.xlu1 %v8076_v54  ;;  %7663 = vset.pattern.permute.xlu0 %v8075_v14  ;;  %v6409_v52 = vmul.f32 -1.442695, %v9056_v23 }
 0x563   : > { %v5792_v6 = vadd.f32 %v5791_v59, %v9747_v58  ;;  %5050 = vperm.xlu1 %7652, %v9723_v44   ;;  %4509 = vperm.xlu0 %7663, %v9809_v42   ;;  %v4748_v58 = vadd.f32 %v4716_v57, %v4556_v35 }
 0x564   : > { %7818 = vpow2.f32 %v6409_v52 }
 0x565   : > { %v4839_v16 = vpop.permute.xlu1 %4838  ;;  %v9823_v3 = vpop.permute.xlu0 %4654  ;;  %v9825_v48 = vadd.f32 %v5793_v50, %v5792_v6  ;;  %v7965_v50 = vld [vmem:[%s8660_s18 + $0x90] sm:$0xff] }
 0x566   : > { %v4908_v2 = vmul.f32 %v7954_v4, %v4839_v16  ;;  %v6408_v4 = vmul.f32 -1.442695, %v9059_v45  ;;  %v7967_v45 = vld [vmem:[%s8381_s20 + $0xa8] sm:$0xff] }
 0x567   : > { %7654 = vset.pattern.permute.xlu1 %v8078_v49  ;;  %7665 = vset.pattern.permute.xlu0 %v8077_v55 }
 0x568   : > { %v4940_v63 = vadd.f32 %v4908_v2, %v4748_v58  ;;  %5434 = vperm.xlu1 %7654, %v9723_v44   ;;  %4866 = vperm.xlu0 %7665, %v9809_v42   ;;  %7820 = vpow2.f32 %v6408_v4 }
 0x56a   : > { %v5223_v20 = vpop.permute.xlu1 %5222  ;;  %v5132_v9 = vadd.f32 %v5100_v39, %v4940_v63  ;;  %v9835_v24 = vpop.permute.xlu0 %5038  ;;  %v4718_v63 = vmul.f32 %v7967_v45, %v9823_v3 }
 0x56b   : > { %v5292_v1 = vmul.f32 %v7956_v11, %v5223_v20  ;;  %v9891_v2 = vpop.eup %7816 }
 0x56c   : > { %7656 = vset.pattern.permute.xlu1 %v8075_v14  ;;  %7667 = vset.pattern.permute.xlu0 %v8079_v60 }
 0x56d   : > { %v5324_v44 = vadd.f32 %v5292_v1, %v5132_v9  ;;  %4514 = vperm.xlu1 %7656, %v9769_v36   ;;  %5250 = vperm.xlu0 %7667, %v9809_v42  }
 0x56e   : > { %v7819_v9 = vpop.eup %7818 }
 0x56f   : > { %v5607_v12 = vpop.permute.xlu1 %5606  ;;  %v5516_v51 = vadd.f32 %v5484_v17, %v5324_v44  ;;  %v9844_v27 = vpop.permute.xlu0 %5422  ;;  %v7968_v17 = vld [vmem:[%s8218_s28 + $0xa8] sm:$0xff]  ;;  %v4312_v3 = vadd.f32 1.0, %v7819_v9 }
 0x570   : > { %v5676_v25 = vmul.f32 %v7958_v7, %v5607_v12  ;;  %v7969_v44 = vld [vmem:[%s8279_s22 + $0xa8] sm:$0xff] }
 0x571   : > { %7658 = vset.pattern.permute.xlu1 %v8077_v55  ;;  %7669 = vset.pattern.permute.xlu0 %v8080_v26  ;;  %v5102_v12 = vmul.f32 %v7969_v44, %v9835_v24  ;;  %7822 = vrcp.f32 %v4312_v3  ;;  %v5486_v24 = vmul.f32 %v7971_v46, %v9844_v27  ;;  %v7981_v3 = vld [vmem:[%s8381_s20 + $0xb8] sm:$0xff] }
 0x572   : > { %v9849_v56 = vadd.f32 %v5676_v25, %v5516_v51  ;;  %4870 = vperm.xlu1 %7658, %v9769_v36   ;;  %5634 = vperm.xlu0 %7669, %v9809_v42  }
 0x574   : > { %5740 = vst.msk [vmem:[%s9147_s21 + $0x98] sm:$0xff] %vm959_vm0, %v9849_v56  ;;  %v4643_v15 = vpop.permute.xlu1 %4642  ;;  %v9856_v47 = vpop.permute.xlu0 %4479  ;;  %v5797_v20 = vsel %vm959_vm0, %v9849_v56, 0.0 }
 0x575   : > { %v4715_v13 = vmul.f32 %v7960_v8, %v4643_v15  ;;  %v7821_v8 = vpop.eup %7820 }
 0x576   : > { %7660 = vset.pattern.permute.xlu1 %v8079_v60  ;;  %7671 = vset.pattern.permute.xlu0 %v8074_v28  ;;  %v4311_v27 = vadd.f32 1.0, %v7821_v8 }
 0x577   : > { %v4747_v29 = vadd.f32 %v4715_v13, %v4555_v37  ;;  %5254 = vperm.xlu1 %7660, %v9769_v36   ;;  %4686 = vperm.xlu0 %7671, %v9861_v61   ;;  %v5291_v36 = vmul.f32 %v7963_v21, %v9798_v41  ;;  %v5675_v41 = vmul.f32 %v7965_v50, %v9807_v22  ;;  %v7974_v21 = vld [vmem:[%s8381_s20 + $0xa0] sm:$0xff] }
 0x578   : > { %7824 = vrcp.f32 %v4311_v27 }
 0x579   : > { %v5027_v5 = vpop.permute.xlu1 %5026  ;;  %v4939_v33 = vadd.f32 %v4907_v34, %v4747_v29  ;;  %v9869_v43 = vpop.permute.xlu0 %4842  ;;  %v7972_v34 = vld [vmem:[%s8660_s18 + $0xa8] sm:$0xff] }
 0x57a   : > { %v5099_v59 = vmul.f32 %v7962_v62, %v5027_v5  ;;  %v7973_v62 = vld [vmem:[%s8238_s19 + $0xa0] sm:$0xff] }
 0x57b   : > { %7664 = vset.pattern.permute.xlu1 %v8074_v28  ;;  %7673 = vset.pattern.permute.xlu0 %v8076_v54 }
 0x57c   : > { %v5131_v30 = vadd.f32 %v5099_v59, %v4939_v33  ;;  %4674 = vperm.xlu1 %7664, %v9809_v42   ;;  %5070 = vperm.xlu0 %7673, %v9861_v61   ;;  %v4557_v59 = vmul.f32 %v7973_v62, %v9856_v47 }
 0x57e   : > { %v5411_v35 = vpop.permute.xlu1 %5410  ;;  %v5323_v6 = vadd.f32 %v5291_v36, %v5131_v30  ;;  %v9879_v23 = vpop.permute.xlu0 %5226 }
 0x57f   : > { %v5483_v57 = vmul.f32 %v7964_v18, %v5411_v35  ;;  %v9940_v30 = vpop.eup %7822  ;;  %v7975_v35 = vld [vmem:[%s8218_s28 + $0xa0] sm:$0xff] }
 0x580   : > { %7666 = vset.pattern.permute.xlu1 %v8076_v54  ;;  %7676 = vset.pattern.permute.xlu0 %v8080_v26 }
 0x581   : > { %v5515_v19 = vadd.f32 %v5483_v57, %v5323_v6  ;;  %5058 = vperm.xlu1 %7666, %v9809_v42   ;;  %5646 = vperm.xlu0 %7676, %v9861_v61   ;;  %v4909_v6 = vmul.f32 %v7975_v35, %v9869_v43 }
 0x583   : > { %v5707_v16 = vadd.f32 %v5675_v41, %v5515_v19  ;;  %v4485_v0 = vpop.permute.xlu1 %4484  ;;  %v9888_v58 = vpop.permute.xlu0 %5610  ;;  %v7976_v41 = vld [vmem:[%s8279_s22 + $0xa0] sm:$0xff] }
 0x584   : > { %v4558_v22 = vmul.f32 %v7966_v10, %v4485_v0  ;;  %v7978_v10 = vld [vmem:[%s8574_s26 + $0xa0] sm:$0xff] }
 0x585   : > { %5739 = vst.msk [vmem:[%s9147_s21 + $0x90] sm:$0xff] %vm959_vm0, %v5707_v16  ;;  %v5795_v32 = vsel %vm959_vm0, %v5707_v16, 0.0  ;;  %7668 = vset.pattern.permute.xlu1 %v8078_v49  ;;  %7677 = vset.pattern.permute.xlu0 %v8075_v14  ;;  %v7977_v16 = vld [vmem:[%s8430_s24 + $0xa0] sm:$0xff] }
 0x586   : > { %v5796_v39 = vadd.f32 %v5795_v32, %v9825_v48  ;;  %5442 = vperm.xlu1 %7668, %v9809_v42   ;;  %4519 = vperm.xlu0 %7677, %v9891_v2   ;;  %v4750_v48 = vadd.f32 %v4718_v63, %v4558_v22  ;;  %v5293_v43 = vmul.f32 %v7977_v16, %v9879_v23  ;;  %v7979_v23 = vld [vmem:[%s8660_s18 + $0xa0] sm:$0xff] }
 0x587   : > { %v5677_v45 = vmul.f32 %v7979_v23, %v9888_v58  ;;  %v7993_v23 = vld [vmem:[%s8660_s18 + $0xb0] sm:$0xff] }
 0x588   : > { %v4847_v11 = vpop.permute.xlu1 %4846  ;;  %v9906_v1 = vpop.permute.xlu0 %4662  ;;  %v9908_v31 = vadd.f32 %v5797_v20, %v5796_v39 }
 0x589   : > { %v4910_v42 = vmul.f32 %v7968_v17, %v4847_v11  ;;  %v9960_v39 = vpop.eup %7824  ;;  %v7980_v17 = vld [vmem:[%s8238_s19 + $0xb8] sm:$0xff]  ;;  %v4720_v44 = vmul.f32 %v7981_v3, %v9906_v1 }
 0x58a   : > { %7670 = vset.pattern.permute.xlu1 %v8075_v14  ;;  %7679 = vset.pattern.permute.xlu0 %v8077_v55 }
 0x58b   : > { %v4942_v51 = vadd.f32 %v4910_v42, %v4750_v48  ;;  %4524 = vperm.xlu1 %7670, %v9861_v61   ;;  %4874 = vperm.xlu0 %7679, %v9891_v2  }
 0x58d   : > { %v5231_v7 = vpop.permute.xlu1 %5230  ;;  %v5134_v25 = vadd.f32 %v5102_v12, %v4942_v51  ;;  %v9917_v56 = vpop.permute.xlu0 %5046 }
 0x58e   : > { %v5294_v15 = vmul.f32 %v7970_v40, %v5231_v7 }
 0x58f   : > { %7672 = vset.pattern.permute.xlu1 %v8077_v55  ;;  %7681 = vset.pattern.permute.xlu0 %v8079_v60 }
 0x590   : > { %v5326_v37 = vadd.f32 %v5294_v15, %v5134_v25  ;;  %4878 = vperm.xlu1 %7672, %v9861_v61   ;;  %5258 = vperm.xlu0 %7681, %v9891_v2   ;;  %v7982_v15 = vld [vmem:[%s8218_s28 + $0xb8] sm:$0xff] }
 0x592   : > { %v5615_v13 = vpop.permute.xlu1 %5614  ;;  %v5518_v38 = vadd.f32 %v5486_v24, %v5326_v37  ;;  %v9926_v53 = vpop.permute.xlu0 %5430 }
 0x593   : > { %v5678_v29 = vmul.f32 %v7972_v34, %v5615_v13  ;;  %v7984_v13 = vld [vmem:[%s8430_s24 + $0xb8] sm:$0xff] }
 0x594   : > { %7674 = vset.pattern.permute.xlu1 %v8079_v60  ;;  %7683 = vset.pattern.permute.xlu0 %v8080_v26 }
 0x595   : > { %v5710_v5 = vadd.f32 %v5678_v29, %v5518_v38  ;;  %5262 = vperm.xlu1 %7674, %v9861_v61   ;;  %5642 = vperm.xlu0 %7683, %v9891_v2  }
 0x597   : > { %5742 = vst.msk [vmem:[%s9147_s21 + $0xa8] sm:$0xff] %vm959_vm0, %v5710_v5  ;;  %v4651_v33 = vpop.permute.xlu1 %4650  ;;  %v9935_v52 = vpop.permute.xlu0 %4489  ;;  %v5801_v12 = vsel %vm959_vm0, %v5710_v5, 0.0 }
 0x598   : > { %v4717_v36 = vmul.f32 %v7974_v21, %v4651_v33  ;;  %v7986_v33 = vld [vmem:[%s8660_s18 + $0xb8] sm:$0xff] }
 0x599   : > { %7675 = vset.pattern.permute.xlu1 %v8078_v49  ;;  %7685 = vset.pattern.permute.xlu0 %v8074_v28 }
 0x59a   : > { %v4749_v18 = vadd.f32 %v4717_v36, %v4557_v59  ;;  %5454 = vperm.xlu1 %7675, %v9861_v61   ;;  %4694 = vperm.xlu0 %7685, %v9940_v30   ;;  %v7987_v59 = vld [vmem:[%s8238_s19 + $0xb0] sm:$0xff] }
 0x59b   : > { %v4559_v21 = vmul.f32 %v7987_v59, %v9935_v52  ;;  %v7988_v36 = vld [vmem:[%s8381_s20 + $0xb0] sm:$0xff] }
 0x59c   : > { %v5035_v47 = vpop.permute.xlu1 %5034  ;;  %v4941_v57 = vadd.f32 %v4909_v6, %v4749_v18  ;;  %v9948_v50 = vpop.permute.xlu0 %4850  ;;  %v7989_v18 = vld [vmem:[%s8218_s28 + $0xb0] sm:$0xff] }
 0x59d   : > { %v5101_v19 = vmul.f32 %v7976_v41, %v5035_v47  ;;  %v7991_v52 = vld [vmem:[%s8430_s24 + $0xb0] sm:$0xff] }
 0x59e   : > { %7678 = vset.pattern.permute.xlu1 %v8074_v28  ;;  %7687 = vset.pattern.permute.xlu0 %v8076_v54 }
 0x59f   : > { %v5133_v0 = vadd.f32 %v5101_v19, %v4941_v57  ;;  %4682 = vperm.xlu1 %7678, %v9891_v2   ;;  %5078 = vperm.xlu0 %7687, %v9940_v30   ;;  %v7990_v19 = vld [vmem:[%s8279_s22 + $0xb0] sm:$0xff] }
 0x5a1   : > { %v5419_v61 = vpop.permute.xlu1 %5418  ;;  %v5325_v4 = vadd.f32 %v5293_v43, %v5133_v0  ;;  %v9957_v32 = vpop.permute.xlu0 %5234 }
 0x5a2   : > { %v5485_v22 = vmul.f32 %v7978_v10, %v5419_v61  ;;  %v5295_v0 = vmul.f32 %v7991_v52, %v9957_v32  ;;  %v7992_v10 = vld [vmem:[%s8574_s26 + $0xb0] sm:$0xff]  ;;  %v8006_v52 = vld [vmem:[%s8574_s26 + $0xc0] sm:$0xff] }
 0x5a3   : > { %7680 = vset.pattern.permute.xlu1 %v8076_v54  ;;  %7690 = vset.pattern.permute.xlu0 %v8075_v14 }
 0x5a4   : > { %v5517_v63 = vadd.f32 %v5485_v22, %v5325_v4  ;;  %5066 = vperm.xlu1 %7680, %v9891_v2   ;;  %4529 = vperm.xlu0 %7690, %v9960_v39  }
 0x5a6   : > { %v5709_v20 = vadd.f32 %v5677_v45, %v5517_v63  ;;  %v4495_v9 = vpop.permute.xlu1 %4494  ;;  %v9968_v11 = vpop.permute.xlu0 %5618 }
 0x5a7   : > { %v4560_v42 = vmul.f32 %v7980_v17, %v4495_v9  ;;  %v5679_v45 = vmul.f32 %v7993_v23, %v9968_v11  ;;  %v7995_v11 = vld [vmem:[%s8381_s20 + $0xc8] sm:$0xff] }
 0x5a8   : > { %5741 = vst.msk [vmem:[%s9147_s21 + $0xa0] sm:$0xff] %vm959_vm0, %v5709_v20  ;;  %v5799_v48 = vsel %vm959_vm0, %v5709_v20, 0.0  ;;  %7682 = vset.pattern.permute.xlu1 %v8078_v49  ;;  %7692 = vset.pattern.permute.xlu0 %v8077_v55 }
 0x5a9   : > { %v5800_v58 = vadd.f32 %v5799_v48, %v9908_v31  ;;  %5450 = vperm.xlu1 %7682, %v9891_v2   ;;  %4882 = vperm.xlu0 %7692, %v9960_v39   ;;  %v4752_v40 = vadd.f32 %v4720_v44, %v4560_v42  ;;  %v7983_v2 = vld [vmem:[%s8279_s22 + $0xb8] sm:$0xff]  ;;  %v7994_v48 = vld [vmem:[%s8238_s19 + $0xc8] sm:$0xff] }
 0x5aa   : > { %v5104_v31 = vmul.f32 %v7983_v2, %v9917_v56 }
 0x5ab   : > { %v4855_v51 = vpop.permute.xlu1 %4854  ;;  %v9982_v7 = vpop.permute.xlu0 %4670  ;;  %v9984_v25 = vadd.f32 %v5801_v12, %v5800_v58 }
 0x5ac   : > { %v4912_v46 = vmul.f32 %v7982_v15, %v4855_v51  ;;  %v4722_v42 = vmul.f32 %v7995_v11, %v9982_v7 }
 0x5ad   : > { %7684 = vset.pattern.permute.xlu1 %v8075_v14  ;;  %7694 = vset.pattern.permute.xlu0 %v8079_v60  ;;  %v7985_v14 = vld [vmem:[%s8574_s26 + $0xb8] sm:$0xff] }
 0x5ae   : > { %v4944_v1 = vadd.f32 %v4912_v46, %v4752_v40  ;;  %4534 = vperm.xlu1 %7684, %v9940_v30   ;;  %5266 = vperm.xlu0 %7694, %v9960_v39   ;;  %v5488_v56 = vmul.f32 %v7985_v14, %v9926_v53  ;;  %v7996_v40 = vld [vmem:[%s8218_s28 + $0xc8] sm:$0xff] }
 0x5af   : > { %v8000_v14 = vld [vmem:[%s8660_s18 + $0xc8] sm:$0xff] }
 0x5b0   : > { %v5239_v24 = vpop.permute.xlu1 %5238  ;;  %v5136_v37 = vadd.f32 %v5104_v31, %v4944_v1  ;;  %v9993_v8 = vpop.permute.xlu0 %5054  ;;  %v7998_v31 = vld [vmem:[%s8430_s24 + $0xc8] sm:$0xff] }
 0x5b1   : > { %v5296_v38 = vmul.f32 %v7984_v13, %v5239_v24 }
 0x5b2   : > { %7686 = vset.pattern.permute.xlu1 %v8077_v55  ;;  %7696 = vset.pattern.permute.xlu0 %v8080_v26 }
 0x5b3   : > { %v5328_v34 = vadd.f32 %v5296_v38, %v5136_v37  ;;  %4886 = vperm.xlu1 %7686, %v9940_v30   ;;  %5650 = vperm.xlu0 %7696, %v9960_v39  }
 0x5b5   : > { %v5623_v29 = vpop.permute.xlu1 %5622  ;;  %v5520_v27 = vadd.f32 %v5488_v56, %v5328_v34  ;;  %v10002_v5 = vpop.permute.xlu0 %5438 }
 0x5b6   : > { %v5680_v62 = vmul.f32 %v7986_v33, %v5623_v29 }
 0x5b7   : > { %7688 = vset.pattern.permute.xlu1 %v8079_v60  ;;  %v4911_v60 = vmul.f32 %v7989_v18, %v9948_v50  ;;  %v8004_v18 = vld [vmem:[%s8279_s22 + $0xc0] sm:$0xff] }
 0x5b8   : > { %v5712_v55 = vadd.f32 %v5680_v62, %v5520_v27  ;;  %5270 = vperm.xlu1 %7688, %v9940_v30   ;;  %v8001_v27 = vld [vmem:[%s8238_s19 + $0xc0] sm:$0xff] }
 0x5b9   : > { %v8002_v62 = vld [vmem:[%s8381_s20 + $0xc0] sm:$0xff] }
 0x5ba   : > { %5744 = vst.msk [vmem:[%s9147_s21 + $0xb8] sm:$0xff] %vm959_vm0, %v5712_v55  ;;  %v4659_v53 = vpop.permute.xlu1 %4658  ;;  %v10012_v6 = vpop.permute.xlu0 %4499  ;;  %v5805_v58 = vsel %vm959_vm0, %v5712_v55, 0.0 }
 0x5bb   : > { %v4719_v35 = vmul.f32 %v7988_v36, %v4659_v53  ;;  %v4561_v33 = vmul.f32 %v8001_v27, %v10012_v6 }
 0x5bc   : > { %7689 = vset.pattern.permute.xlu1 %v8078_v49 }
 0x5bd   : > { %v4751_v47 = vadd.f32 %v4719_v35, %v4559_v21  ;;  %5462 = vperm.xlu1 %7689, %v9940_v30  }
 0x5bf   : > { %v5043_v57 = vpop.permute.xlu1 %5042  ;;  %v4943_v41 = vadd.f32 %v4911_v60, %v4751_v47  ;;  %v10019_v43 = vpop.permute.xlu0 %4858  ;;  %v8005_v47 = vld [vmem:[%s8430_s24 + $0xc0] sm:$0xff] }
 0x5c0   : > { %v5103_v16 = vmul.f32 %v7990_v19, %v5043_v57 }
 0x5c1   : > { %7691 = vset.pattern.permute.xlu1 %v8074_v28 }
 0x5c2   : > { %v5135_v61 = vadd.f32 %v5103_v16, %v4943_v41  ;;  %4690 = vperm.xlu1 %7691, %v9960_v39  }
 0x5c4   : > { %v5427_v50 = vpop.permute.xlu1 %5426  ;;  %v5327_v4 = vadd.f32 %v5295_v0, %v5135_v61  ;;  %v5243_v28 = vpop.permute.xlu0 %5242  ;;  %v8007_v61 = vld [vmem:[%s8660_s18 + $0xc0] sm:$0xff] }
 0x5c5   : > { %v5487_v22 = vmul.f32 %v7992_v10, %v5427_v50  ;;  %v5297_v57 = vmul.f32 %v8005_v47, %v5243_v28 }
 0x5c6   : > { %7693 = vset.pattern.permute.xlu1 %v8076_v54 }
 0x5c7   : > { %v5519_v63 = vadd.f32 %v5487_v22, %v5327_v4  ;;  %5074 = vperm.xlu1 %7693, %v9960_v39  }
 0x5c9   : > { %v5711_v20 = vadd.f32 %v5679_v45, %v5519_v63  ;;  %v4505_v32 = vpop.permute.xlu1 %4504  ;;  %v5627_v3 = vpop.permute.xlu0 %5626  ;;  %v8008_v45 = vld [vmem:[%s8238_s19 + $0xd8] sm:$0xff] }
 0x5ca   : > { %v4562_v17 = vmul.f32 %v7994_v48, %v4505_v32  ;;  %v5681_v50 = vmul.f32 %v8007_v61, %v5627_v3  ;;  %v8011_v3 = vld [vmem:[%s8279_s22 + $0xd8] sm:$0xff] }
 0x5cb   : > { %5743 = vst.msk [vmem:[%s9147_s21 + $0xb0] sm:$0xff] %vm959_vm0, %v5711_v20  ;;  %v5803_v9 = vsel %vm959_vm0, %v5711_v20, 0.0  ;;  %7695 = vset.pattern.permute.xlu1 %v8078_v49  ;;  %v7997_v49 = vld [vmem:[%s8279_s22 + $0xc8] sm:$0xff]  ;;  %v8009_v20 = vld [vmem:[%s8381_s20 + $0xd8] sm:$0xff] }
 0x5cc   : > { %v5804_v54 = vadd.f32 %v5803_v9, %v9984_v25  ;;  %5458 = vperm.xlu1 %7695, %v9960_v39   ;;  %v4754_v51 = vadd.f32 %v4722_v42, %v4562_v17  ;;  %v5106_v25 = vmul.f32 %v7997_v49, %v9993_v8  ;;  %v8010_v42 = vld [vmem:[%s8218_s28 + $0xd8] sm:$0xff] }
 0x5cd   : > { %v8012_v49 = vld [vmem:[%s8430_s24 + $0xd8] sm:$0xff] }
 0x5ce   : > { %v4863_v44 = vpop.permute.xlu1 %4862  ;;  %v5806_v12 = vadd.f32 %v5805_v58, %v5804_v54  ;;  %v4679_v39 = vpop.permute.xlu0 %4678 }
 0x5cf   : > { %v4914_v15 = vmul.f32 %v7996_v40, %v4863_v44  ;;  %v4724_v32 = vmul.f32 %v8009_v20, %v4679_v39 }
 0x5d0   : > { %7697 = vset.pattern.permute.xlu1 %v8080_v26  ;;  %v8081_v26 = vmov 0.0  }
 0x5d1   : > { %v4946_v46 = vadd.f32 %v4914_v15, %v4754_v51  ;;  %5654 = vperm.xlu1 %7697, %v9940_v30   ;;  %5758 = vst.msk [vmem:[%s10049_s27] sm:$0x1] %vm5757_vm3, %v8081_v26  ;;  %v7999_v30 = vld [vmem:[%s8574_s26 + $0xc8] sm:$0xff] }
 0x5d2   : > { %v5490_v24 = vmul.f32 %v7999_v30, %v10002_v5  ;;  %v8003_v5 = vld [vmem:[%s8218_s28 + $0xc0] sm:$0xff]  ;;  %v8015_v30 = vld [vmem:[%s8238_s19 + $0xd0] sm:$0xff] }
 0x5d3   : > { %v5247_v7 = vpop.permute.xlu1 %5246  ;;  %v5138_v2 = vadd.f32 %v5106_v25, %v4946_v46  ;;  %v5063_v38 = vpop.permute.xlu0 %5062  ;;  %v4913_v59 = vmul.f32 %v8003_v5, %v10019_v43  ;;  %v8013_v46 = vld [vmem:[%s8574_s26 + $0xd8] sm:$0xff] }
 0x5d4   : > { %v5298_v1 = vmul.f32 %v7998_v31, %v5247_v7  ;;  %v5108_v44 = vmul.f32 %v8011_v3, %v5063_v38 }
 0x5d6   : > { %v5330_v37 = vadd.f32 %v5298_v1, %v5138_v2  ;;  %v8014_v2 = vld [vmem:[%s8660_s18 + $0xd8] sm:$0xff] }
 0x5d8   : > { %v5631_v8 = vpop.permute.xlu1 %5630  ;;  %v5522_v13 = vadd.f32 %v5490_v24, %v5330_v37  ;;  %v5447_v53 = vpop.permute.xlu0 %5446  ;;  %v8016_v37 = vld [vmem:[%s8381_s20 + $0xd0] sm:$0xff] }
 0x5d9   : > { %v5682_v56 = vmul.f32 %v8000_v14, %v5631_v8  ;;  %v5492_v39 = vmul.f32 %v8013_v46, %v5447_v53  ;;  %v8017_v14 = vld [vmem:[%s8218_s28 + $0xd0] sm:$0xff] }
 0x5db   : > { %v5714_v34 = vadd.f32 %v5682_v56, %v5522_v13 }
 0x5dd   : > { %5746 = vst.msk [vmem:[%s9147_s21 + $0xc8] sm:$0xff] %vm959_vm0, %v5714_v34  ;;  %v4667_v29 = vpop.permute.xlu1 %4666  ;;  %v5639_v41 = vpop.permute.xlu0 %5638  ;;  %v5809_v9 = vsel %vm959_vm0, %v5714_v34, 0.0 }
 0x5de   : > { %v4721_v55 = vmul.f32 %v8002_v62, %v4667_v29  ;;  %v5684_v26 = vmul.f32 %v8014_v2, %v5639_v41  ;;  %v8030_v2 = vld [vmem:[%s8381_s20 + $0xe0] sm:$0xff] }
 0x5e0   : > { %v4753_v21 = vadd.f32 %v4721_v55, %v4561_v33  ;;  %v8018_v33 = vld [vmem:[%s8279_s22 + $0xd0] sm:$0xff] }
 0x5e1   : > { %v8019_v55 = vld [vmem:[%s8430_s24 + $0xd0] sm:$0xff] }
 0x5e2   : > { %v5051_v36 = vpop.permute.xlu1 %5050  ;;  %v4945_v35 = vadd.f32 %v4913_v59, %v4753_v21  ;;  %v4510_v43 = vpop.permute.xlu0 %4509 }
 0x5e3   : > { %v5105_v60 = vmul.f32 %v8004_v18, %v5051_v36  ;;  %v4563_v24 = vmul.f32 %v8015_v30, %v4510_v43 }
 0x5e5   : > { %v5137_v19 = vadd.f32 %v5105_v60, %v4945_v35  ;;  %v8020_v35 = vld [vmem:[%s8574_s26 + $0xd0] sm:$0xff] }
 0x5e6   : > { %v8021_v60 = vld [vmem:[%s8660_s18 + $0xd0] sm:$0xff] }
 0x5e7   : > { %v5435_v6 = vpop.permute.xlu1 %5434  ;;  %v5329_v16 = vadd.f32 %v5297_v57, %v5137_v19  ;;  %v4867_v48 = vpop.permute.xlu0 %4866 }
 0x5e8   : > { %v5489_v0 = vmul.f32 %v8006_v52, %v5435_v6  ;;  %v4915_v56 = vmul.f32 %v8017_v14, %v4867_v48  ;;  %v8022_v52 = vld [vmem:[%s8238_s19 + $0xe8] sm:$0xff]  ;;  %v8033_v14 = vld [vmem:[%s8430_s24 + $0xe0] sm:$0xff] }
 0x5ea   : > { %v5521_v4 = vadd.f32 %v5489_v0, %v5329_v16 }
 0x5ec   : > { %v5713_v10 = vadd.f32 %v5681_v50, %v5521_v4  ;;  %v4515_v22 = vpop.permute.xlu1 %4514  ;;  %v5251_v15 = vpop.permute.xlu0 %5250  ;;  %v8023_v4 = vld [vmem:[%s8381_s20 + $0xe8] sm:$0xff] }
 0x5ed   : > { %v4564_v63 = vmul.f32 %v8008_v45, %v4515_v22  ;;  %v5299_v53 = vmul.f32 %v8019_v55, %v5251_v15 }
 0x5ee   : > { %5745 = vst.msk [vmem:[%s9147_s21 + $0xc0] sm:$0xff] %vm959_vm0, %v5713_v10  ;;  %v5807_v23 = vsel %vm959_vm0, %v5713_v10, 0.0 }
 0x5ef   : > { %v5808_v28 = vadd.f32 %v5807_v23, %v5806_v12  ;;  %v4756_v11 = vadd.f32 %v4724_v32, %v4564_v63  ;;  %v8024_v63 = vld [vmem:[%s8218_s28 + $0xe8] sm:$0xff] }
 0x5f0   : > { %v8025_v32 = vld [vmem:[%s8279_s22 + $0xe8] sm:$0xff] }
 0x5f1   : > { %v4871_v17 = vpop.permute.xlu1 %4870  ;;  %v5810_v54 = vadd.f32 %v5809_v9, %v5808_v28  ;;  %v5635_v13 = vpop.permute.xlu0 %5634 }
 0x5f2   : > { %v4916_v58 = vmul.f32 %v8010_v42, %v4871_v17  ;;  %v5683_v47 = vmul.f32 %v8021_v60, %v5635_v13  ;;  %v8032_v13 = vld [vmem:[%s8279_s22 + $0xe0] sm:$0xff] }
 0x5f4   : > { %v4948_v51 = vadd.f32 %v4916_v58, %v4756_v11  ;;  %v8026_v11 = vld [vmem:[%s8430_s24 + $0xe8] sm:$0xff] }
 0x5f6   : > { %v5255_v40 = vpop.permute.xlu1 %5254  ;;  %v5140_v12 = vadd.f32 %v5108_v44, %v4948_v51  ;;  %v4687_v5 = vpop.permute.xlu0 %4686  ;;  %v8027_v44 = vld [vmem:[%s8574_s26 + $0xe8] sm:$0xff] }
 0x5f7   : > { %v5300_v25 = vmul.f32 %v8012_v49, %v5255_v40  ;;  %v4726_v43 = vmul.f32 %v8023_v4, %v4687_v5 }
 0x5f9   : > { %v5332_v7 = vadd.f32 %v5300_v25, %v5140_v12  ;;  %v8028_v12 = vld [vmem:[%s8660_s18 + $0xe8] sm:$0xff] }
 0x5fb   : > { %v5524_v31 = vadd.f32 %v5492_v39, %v5332_v7  ;;  %v4675_v1 = vpop.permute.xlu1 %4674  ;;  %v5071_v41 = vpop.permute.xlu0 %5070  ;;  %v8029_v39 = vld [vmem:[%s8238_s19 + $0xe0] sm:$0xff] }
 0x5fc   : > { %v4723_v8 = vmul.f32 %v8016_v37, %v4675_v1  ;;  %v5110_v9 = vmul.f32 %v8025_v32, %v5071_v41 }
 0x5fd   : > { %v5716_v38 = vadd.f32 %v5684_v26, %v5524_v31  ;;  %v8031_v31 = vld [vmem:[%s8218_s28 + $0xe0] sm:$0xff] }
 0x5fe   : > { %v4755_v34 = vadd.f32 %v4723_v8, %v4563_v24 }
 0x5ff   : > { %5748 = vst.msk [vmem:[%s9147_s21 + $0xd8] sm:$0xff] %vm959_vm0, %v5716_v38  ;;  %v5813_v50 = vsel %vm959_vm0, %v5716_v38, 0.0 }
 0x600   : > { %v5059_v29 = vpop.permute.xlu1 %5058  ;;  %v4947_v27 = vadd.f32 %v4915_v56, %v4755_v34  ;;  %v5647_v10 = vpop.permute.xlu0 %5646 }
 0x601   : > { %v5107_v62 = vmul.f32 %v8018_v33, %v5059_v29  ;;  %v5686_v15 = vmul.f32 %v8028_v12, %v5647_v10 }
 0x603   : > { %v5139_v59 = vadd.f32 %v5107_v62, %v4947_v27  ;;  %v8034_v62 = vld [vmem:[%s8574_s26 + $0xe0] sm:$0xff] }
 0x605   : > { %v5443_v21 = vpop.permute.xlu1 %5442  ;;  %v5331_v36 = vadd.f32 %v5299_v53, %v5139_v59  ;;  %v4520_v17 = vpop.permute.xlu0 %4519  ;;  %v8035_v53 = vld [vmem:[%s8660_s18 + $0xe0] sm:$0xff] }
 0x606   : > { %v5491_v18 = vmul.f32 %v8020_v35, %v5443_v21  ;;  %v4565_v7 = vmul.f32 %v8029_v39, %v4520_v17 }
 0x608   : > { %v5523_v57 = vadd.f32 %v5491_v18, %v5331_v36 }
 0x60a   : > { %v5715_v19 = vadd.f32 %v5683_v47, %v5523_v57  ;;  %v4525_v6 = vpop.permute.xlu1 %4524  ;;  %v4875_v40 = vpop.permute.xlu0 %4874 }
 0x60b   : > { %v4566_v0 = vmul.f32 %v8022_v52, %v4525_v6  ;;  %v4917_v1 = vmul.f32 %v8031_v31, %v4875_v40  ;;  %v8036_v6 = vld [vmem:[%s8238_s19 + $0xf8] sm:$0xff] }
 0x60c   : > { %5747 = vst.msk [vmem:[%s9147_s21 + $0xd0] sm:$0xff] %vm959_vm0, %v5715_v19  ;;  %v5811_v16 = vsel %vm959_vm0, %v5715_v19, 0.0 }
 0x60d   : > { %v5812_v61 = vadd.f32 %v5811_v16, %v5810_v54  ;;  %v4758_v45 = vadd.f32 %v4726_v43, %v4566_v0  ;;  %v8037_v0 = vld [vmem:[%s8238_s19 + $0xf0] sm:$0xff]  ;;  %v8039_v43 = vld [vmem:[%s8381_s20 + $0xf8] sm:$0xff] }
 0x60f   : > { %v4879_v22 = vpop.permute.xlu1 %4878  ;;  %v10094_v23 = vadd.f32 %v5813_v50, %v5812_v61  ;;  %v5259_v30 = vpop.permute.xlu0 %5258  ;;  %v8038_v50 = vld [vmem:[%s8381_s20 + $0xf0] sm:$0xff] }
 0x610   : > { %v4918_v28 = vmul.f32 %v8024_v63, %v4879_v22  ;;  %v5301_v56 = vmul.f32 %v8033_v14, %v5259_v30  ;;  %v8040_v22 = vld [vmem:[%s8218_s28 + $0xf8] sm:$0xff]  ;;  %v8041_v63 = vld [vmem:[%s8218_s28 + $0xf0] sm:$0xff] }
 0x611   : > { %v8047_v30 = vld [vmem:[%s8574_s26 + $0xf8] sm:$0xff] }
 0x612   : > { %v4950_v20 = vadd.f32 %v4918_v28, %v4758_v45 }
 0x614   : > { %v5263_v48 = vpop.permute.xlu1 %5262  ;;  %v5142_v54 = vadd.f32 %v5110_v9, %v4950_v20  ;;  %v5643_v29 = vpop.permute.xlu0 %5642 }
 0x615   : > { %v5302_v42 = vmul.f32 %v8026_v11, %v5263_v48  ;;  %v5685_v5 = vmul.f32 %v8035_v53, %v5643_v29  ;;  %v8042_v11 = vld [vmem:[%s8279_s22 + $0xf0] sm:$0xff] }
 0x617   : > { %v5334_v3 = vadd.f32 %v5302_v42, %v5142_v54 }
 0x619   : > { %v5455_v58 = vpop.permute.xlu1 %5454  ;;  %v4695_v21 = vpop.permute.xlu0 %4694 }
 0x61a   : > { %v5494_v51 = vmul.f32 %v8027_v44, %v5455_v58  ;;  %v4728_v10 = vmul.f32 %v8039_v43, %v4695_v21  ;;  %v8043_v58 = vld [vmem:[%s8279_s22 + $0xf8] sm:$0xff]  ;;  %v8044_v44 = vld [vmem:[%s8430_s24 + $0xf0] sm:$0xff] }
 0x61c   : > { %v5526_v49 = vadd.f32 %v5494_v51, %v5334_v3 }
 0x61e   : > { %v10101_v25 = vadd.f32 %v5686_v15, %v5526_v49  ;;  %v4683_v46 = vpop.permute.xlu1 %4682  ;;  %v5079_v60 = vpop.permute.xlu0 %5078 }
 0x61f   : > { %v4725_v26 = vmul.f32 %v8030_v2, %v4683_v46  ;;  %v5112_v3 = vmul.f32 %v8043_v58, %v5079_v60  ;;  %v8045_v46 = vld [vmem:[%s8430_s24 + $0xf8] sm:$0xff]  ;;  %v5759_v60 = vld [vmem:[%s10049_s27] sm:$0x1] }
 0x620   : > { %5750 = vst.msk [vmem:[%s9147_s21 + $0xe8] sm:$0xff] %vm959_vm0, %v10101_v25  ;;  %v5817_v14 = vsel %vm959_vm0, %v10101_v25, 0.0 }
 0x621   : > { %v4757_v24 = vadd.f32 %v4725_v26, %v4565_v7  ;;  %v8046_v26 = vld [vmem:[%s8574_s26 + $0xf0] sm:$0xff] }
 0x623   : > { %v5067_v37 = vpop.permute.xlu1 %5066  ;;  %v4949_v8 = vadd.f32 %v4917_v1, %v4757_v24  ;;  %v4530_v57 = vpop.permute.xlu0 %4529 }
 0x624   : > { %v5109_v38 = vmul.f32 %v8032_v13, %v5067_v37  ;;  %v4567_v61 = vmul.f32 %v8037_v0, %v4530_v57  ;;  %v8048_v37 = vld [vmem:[%s8660_s18 + $0xf0] sm:$0xff] }
 0x626   : > { %v5141_v34 = vadd.f32 %v5109_v38, %v4949_v8 }
 0x628   : > { %v5451_v27 = vpop.permute.xlu1 %5450  ;;  %v5333_v33 = vadd.f32 %v5301_v56, %v5141_v34  ;;  %v4883_v19 = vpop.permute.xlu0 %4882 }
 0x629   : > { %v5493_v55 = vmul.f32 %v8034_v62, %v5451_v27  ;;  %v4919_v28 = vmul.f32 %v8041_v63, %v4883_v19 }
 0x62b   : > { %v5525_v59 = vadd.f32 %v5493_v55, %v5333_v33  ;;  %v8049_v33 = vld [vmem:[%s8660_s18 + $0xf8] sm:$0xff] }
 0x62d   : > { %v5717_v36 = vadd.f32 %v5685_v5, %v5525_v59  ;;  %v4535_v35 = vpop.permute.xlu1 %4534  ;;  %v5267_v9 = vpop.permute.xlu0 %5266 }
 0x62e   : > { %v4568_v16 = vmul.f32 %v8036_v6, %v4535_v35  ;;  %v5303_v51 = vmul.f32 %v8044_v44, %v5267_v9 }
 0x62f   : > { %5749 = vst.msk [vmem:[%s9147_s21 + $0xe0] sm:$0xff] %vm959_vm0, %v5717_v36  ;;  %v5815_v12 = vsel %vm959_vm0, %v5717_v36, 0.0 }
 0x630   : > { %v4760_v32 = vadd.f32 %v4728_v10, %v4568_v16  ;;  %v5816_v1 = vadd.f32 %v5815_v12, %v10094_v23 }
 0x632   : > { %v4887_v18 = vpop.permute.xlu1 %4886  ;;  %v5651_v15 = vpop.permute.xlu0 %5650  ;;  %v5818_v27 = vadd.f32 %v5817_v14, %v5816_v1 }
 0x633   : > { %v4920_v45 = vmul.f32 %v8040_v22, %v4887_v18  ;;  %v5687_v8 = vmul.f32 %v8048_v37, %v5651_v15 }
 0x635   : > { %v4952_v54 = vadd.f32 %v4920_v45, %v4760_v32 }
 0x637   : > { %v5271_v47 = vpop.permute.xlu1 %5270  ;;  %v5144_v49 = vadd.f32 %v5112_v3, %v4952_v54 }
 0x638   : > { %v5304_v39 = vmul.f32 %v8045_v46, %v5271_v47 }
 0x63a   : > { %v5336_v38 = vadd.f32 %v5304_v39, %v5144_v49 }
 0x63c   : > { %v5463_v41 = vpop.permute.xlu1 %5462 }
 0x63d   : > { %v5496_v24 = vmul.f32 %v8047_v30, %v5463_v41 }
 0x63f   : > { %v5528_v29 = vadd.f32 %v5496_v24, %v5336_v38 }
 0x641   : > { %v4691_v52 = vpop.permute.xlu1 %4690 }
 0x642   : > { %v4727_v4 = vmul.f32 %v8038_v50, %v4691_v52 }
 0x644   : > { %v4759_v20 = vadd.f32 %v4727_v4, %v4567_v61 }
 0x646   : > { %v5075_v48 = vpop.permute.xlu1 %5074  ;;  %v4951_v17 = vadd.f32 %v4919_v28, %v4759_v20 }
 0x647   : > { %v5111_v42 = vmul.f32 %v8042_v11, %v5075_v48 }
 0x649   : > { %v5143_v40 = vadd.f32 %v5111_v42, %v4951_v17 }
 0x64b   : > { %v5459_v7 = vpop.permute.xlu1 %5458  ;;  %v5335_v2 = vadd.f32 %v5303_v51, %v5143_v40 }
 0x64c   : > { %v5495_v31 = vmul.f32 %v8046_v26, %v5459_v7 }
 0x64e   : > { %v5527_v13 = vadd.f32 %v5495_v31, %v5335_v2 }
 0x650   : > { %v5719_v56 = vadd.f32 %v5687_v8, %v5527_v13  ;;  %v5655_v34 = vpop.permute.xlu1 %5654 }
 0x651   : > { %v5688_v62 = vmul.f32 %v8049_v33, %v5655_v34 }
 0x652   : > { %5751 = vst.msk [vmem:[%s9147_s21 + $0xf0] sm:$0xff] %vm959_vm0, %v5719_v56  ;;  %v5819_v23 = vsel %vm959_vm0, %v5719_v56, 0.0 }
 0x653   : > { %v5720_v55 = vadd.f32 %v5688_v62, %v5528_v29  ;;  %v5820_v53 = vadd.f32 %v5819_v23, %v5818_v27 }
 0x655   : > { %5752 = vst.msk [vmem:[%s9147_s21 + $0xf8] sm:$0xff] %vm959_vm0, %v5720_v55  ;;  %v5821_v5 = vsel %vm959_vm0, %v5720_v55, 0.0 }
 0x656   : > { %v5822_v59 = vadd.f32 %v5821_v5, %v5820_v53 }
 0x658   : > { %v5823_v25 = vrot.slane %v5822_v59, 4 }
 0x65a   : > { %v5824_v21 = vadd.f32 %v5823_v25, %v5822_v59 }
 0x65c   : > { %v5825_v36 = vrot.slane %v5824_v21, 2 }
 0x65e   : > { %v5826_v35 = vadd.f32 %v5825_v36, %v5824_v21 }
 0x660   : > { %v5827_v18 = vrot.slane %v5826_v35, 1 }
 0x662   : > { %v5828_v47 = vadd.f32 %v5827_v18, %v5826_v35 }
 0x664   : > { %v5829_v57 = vadd.f32 %v5828_v47, %v5759_v60 }
 0x666   : > { %5831 = vst.msk [vmem:[%s10049_s27] sm:$0x1] %vm5757_vm3, %v5829_v57 }
 0x667 PF: > { %s25_s15 = sadd.s32 1, %s8072_s15   ;;  %s10166_s29 = smov %s8068_s30 }
 0x668   : > { %p22_p5 = scmp.ge.s32.totalorder %s25_s15, 4   ;;  %s10167_s30 = smov %s10169_s16 }
 0x66a   :  { %24 = sbr.rel (!%p22_p5) target bundleno = 2 (0x2), region = 142 }

</bundles_post_ra>
